<compile_context>
chip_gen: v5e
topology: v5e:2x2
jax: 0.10.0
libtpu: 0.0.40
codegen_flags: <defaults>
</compile_context>

<pallas_src>
import functools

import jax
import jax.numpy as jnp
import numpy as np
from jax import lax
from jax.experimental import pallas as pl
from jax.experimental.pallas import tpu as pltpu


def _cross_nat2d_kernel(xc_ref, xprv_ref, xnxt_ref,
                        yc_ref, yprv_ref, ynxt_ref,
                        wq_ref, bq_ref, wv_ref, bv_ref, wk_ref, bk_ref,
                        wp_ref, bp_ref, hsum_ref, o_ref, *,
                        H, W, Wp, C, TH, K, pad):
    f32 = jnp.float32
    bf16 = jnp.bfloat16
    NH = TH + 2 * pad            # halo strip rows
    P = TH * W                   # output positions in this strip

    r0 = pl.program_id(1) * TH   # first global output row of this strip

    # ---- assemble row halo: [prev pad rows | TH current rows | next pad rows]
    xc = xc_ref[...]                                            # (TH, Wp, C)
    x_halo = jnp.concatenate([xprv_ref[...], xc, xnxt_ref[...]], axis=0)
    y_halo = jnp.concatenate([yprv_ref[...], yc_ref[...], ynxt_ref[...]],
                             axis=0)                            # (NH, Wp, C)

    # ---- projections (bf16 operands, f32 accumulation on the MXU).
    # q only needs the TH x W output positions; scale is folded into wq/bq.
    q_in = xc[:, pad:pad + W, :].reshape(P, C)
    q = (jnp.dot(q_in, wq_ref[...], preferred_element_type=f32)
         + bq_ref[...]).astype(bf16)                            # (P, C) bf16

    v3 = (jnp.dot(x_halo.reshape(NH * Wp, C), wv_ref[...],
                  preferred_element_type=f32)
          + bv_ref[...]).astype(bf16).reshape(NH, Wp, C)
    k3 = (jnp.dot(y_halo.reshape(NH * Wp, C), wk_ref[...],
                  preferred_element_type=f32)
          + bk_ref[...]).astype(bf16).reshape(NH, Wp, C)

    # ---- NATTEN clamped-window gather helpers.
    col = lax.broadcasted_iota(jnp.int32, (1, W, 1), 1)
    left_m = col < pad
    right_m = col > (W - 1 - pad)

    def gather_cols(a, dj):
        # source col = clip(j - pad, 0, W - K) + dj, on the zero-padded
        # (Wp = W + 2*pad) column axis: static slice + two edge selects.
        base = a[:, dj:dj + W, :]
        left = a[:, dj + pad:dj + pad + 1, :]
        right = a[:, W - K + dj + pad:W - K + dj + pad + 1, :]
        return jnp.where(left_m, left, jnp.where(right_m, right, base))

    row_ids = r0 + lax.broadcasted_iota(jnp.int32, (TH, 1, 1), 0)
    top_m = row_ids < pad
    bot_m = row_ids > (H - 1 - pad)

    def gather_rows(acol, di):
        # source row = clip(i - pad, 0, H - K) + di, on the halo-row axis:
        # static slice + two single-row edge selects (first/last strip only).
        base = acol[di:di + TH]
        top = acol[di + pad:di + pad + 1]
        bot = acol[di + TH - pad - 1:di + TH - pad]
        return jnp.where(top_m, top, jnp.where(bot_m, bot, base))

    hsum = hsum_ref[...]                                        # (C, C) bf16

    # ---- pass 1: per-head logits for every neighborhood offset.
    k_cols = [gather_cols(k3, dj) for dj in range(K)]
    logits = []
    for di in range(K):
        for dj in range(K):
            kg = gather_rows(k_cols[dj], di).reshape(P, C)
            # per-head <q, k>, broadcast over head_dim via block-ones matmul.
            logits.append(jnp.dot(q * kg, hsum, preferred_element_type=f32))

    m = logits[0]
    for lg in logits[1:]:
        m = jnp.maximum(m, lg)

    # ---- pass 2: softmax over the K*K offsets + weighted sum of gathered v.
    v_cols = [gather_cols(v3, dj) for dj in range(K)]
    den = jnp.zeros((P, C), f32)
    num = jnp.zeros((P, C), f32)
    idx = 0
    for di in range(K):
        for dj in range(K):
            p = jnp.exp(logits[idx] - m)
            idx += 1
            vg = gather_rows(v_cols[dj], di).reshape(P, C)
            den = den + p
            num = num + p * vg

    attn_out = num * pl.reciprocal(den, approx=True)            # (P, C) f32

    out = (jnp.dot(attn_out.astype(bf16), wp_ref[...],
                   preferred_element_type=f32) + bp_ref[...])
    o_ref[...] = out.reshape(TH, W, C)


def cross_nat2d(x, y, params, *, num_heads, kernel_size):
    B, H, W, C = x.shape
    K = kernel_size
    pad = K // 2
    assert K % 2 == 1 and K >= 3, "only odd kernel_size >= 3 supported"
    assert H >= K and W >= K
    assert C % num_heads == 0
    head_dim = C // num_heads
    scale = float(head_dim) ** -0.5
    wqv, bqv, wk, bk, wp, bp = params

    bf16 = jnp.bfloat16
    f32 = jnp.float32

    # Split the fused qv projection; fold the q scale into weights + bias.
    wq = (wqv[:, :C] * scale).astype(bf16)
    bq = (bqv[:, :C] * scale).astype(f32)
    wv = wqv[:, C:].astype(bf16)
    bv = bqv[:, C:].astype(f32)
    wk_b = wk.astype(bf16)
    bk_f = bk.astype(f32)
    wp_b = wp.astype(bf16)
    bp_f = bp.astype(f32)

    # Row-strip size: small per-step live set, B * (H/TH) grid steps.
    TH = None
    for t in (8, 16, 32):
        if H % t == 0 and t > pad and t % pad == 0:
            TH = t
            break
    if TH is None:
        TH = H
    assert TH > pad and TH % pad == 0 and H % TH == 0 and H % pad == 0
    NS = H // TH
    RP = TH // pad               # prev/next halo stride in pad-row blocks
    NB = H // pad                # number of pad-row blocks along H

    # Zero-pad columns so column gathers are static slices + edge selects.
    Wp = W + 2 * pad
    x_p = jnp.pad(x, ((0, 0), (0, 0), (pad, pad), (0, 0))).astype(bf16)
    y_p = jnp.pad(y, ((0, 0), (0, 0), (pad, pad), (0, 0))).astype(bf16)

    # Block-ones head matrix: hsum[c, c'] = 1 iff c, c' belong to the same head.
    hsum = jnp.asarray(
        np.kron(np.eye(num_heads, dtype=np.float32),
                np.ones((head_dim, head_dim), dtype=np.float32)),
        dtype=bf16)

    kernel = functools.partial(_cross_nat2d_kernel, H=H, W=W, Wp=Wp, C=C,
                               TH=TH, K=K, pad=pad)

    def cspec(a):
        nd = a.ndim
        return pl.BlockSpec(a.shape, lambda b, s, _nd=nd: (0,) * _nd)

    cur_spec = pl.BlockSpec((None, TH, Wp, C), lambda b, s: (b, s, 0, 0))
    prv_spec = pl.BlockSpec(
        (None, pad, Wp, C),
        lambda b, s: (b, jnp.maximum(s * RP - 1, 0), 0, 0))
    nxt_spec = pl.BlockSpec(
        (None, pad, Wp, C),
        lambda b, s: (b, jnp.minimum((s + 1) * RP, NB - 1), 0, 0))

    out = pl.pallas_call(
        kernel,
        out_shape=jax.ShapeDtypeStruct((B, H, W, C), jnp.float32),
        grid=(B, NS),
        in_specs=[cur_spec, prv_spec, nxt_spec,
                  cur_spec, prv_spec, nxt_spec,
                  cspec(wq), cspec(bq), cspec(wv), cspec(bv),
                  cspec(wk_b), cspec(bk_f), cspec(wp_b), cspec(bp_f),
                  cspec(hsum)],
        out_specs=pl.BlockSpec((None, TH, W, C), lambda b, s: (b, s, 0, 0)),
        compiler_params=pltpu.CompilerParams(
            dimension_semantics=("parallel", "parallel")),
    )(x_p, x_p, x_p, y_p, y_p, y_p,
      wq, bq, wv, bv, wk_b, bk_f, wp_b, bp_f, hsum)
    return out


def cross_nat2d_ref(x, y, params, *, num_heads, kernel_size):
    """Pure-JAX f32 reference mirroring the PyTorch forward (eval, defaults)."""
    wqv, bqv, wk, bk, wp, bp = params
    B, H, W, C = x.shape
    hd = C // num_heads
    K = kernel_size
    pad = K // 2
    scale = float(hd) ** -0.5

    qv = x @ wqv + bqv[0]
    q = qv[..., :C].reshape(B, H, W, num_heads, hd) * scale
    v = qv[..., C:].reshape(B, H, W, num_heads, hd)
    k = (y @ wk + bk[0]).reshape(B, H, W, num_heads, hd)

    si = jnp.clip(jnp.arange(H) - pad, 0, H - K)
    sj = jnp.clip(jnp.arange(W) - pad, 0, W - K)

    logits, vs = [], []
    for di in range(K):
        for dj in range(K):
            kg = k[:, si + di][:, :, sj + dj]
            vg = v[:, si + di][:, :, sj + dj]
            logits.append(jnp.einsum('bhwnd,bhwnd->bhwn', q, kg))
            vs.append(vg)
    logits = jnp.stack(logits, axis=-1)
    attn = jax.nn.softmax(logits, axis=-1)
    out = sum(attn[..., i, None] * vs[i] for i in range(K * K))
    out = out.reshape(B, H, W, C)
    return out @ wp + bp[0]


if __name__ == "__main__":
    B, H, W, C = 2, 16, 16, 32
    num_heads, kernel_size = 4, 3

    key = jax.random.PRNGKey(0)
    ks = jax.random.split(key, 8)
    x = jax.random.normal(ks[0], (B, H, W, C), jnp.float32)
    y = jax.random.normal(ks[1], (B, H, W, C), jnp.float32)

    # Deterministic synthetic parameters (Linear weights as (in, out); the
    # qv Linear is fused: first C outputs -> q, last C outputs -> v).
    wqv = 0.05 * jax.random.normal(ks[2], (C, 2 * C), jnp.float32)
    wk = 0.05 * jax.random.normal(ks[3], (C, C), jnp.float32)
    wp = 0.05 * jax.random.normal(ks[4], (C, C), jnp.float32)
    bqv = 0.01 * jax.random.normal(ks[5], (1, 2 * C), jnp.float32)
    bk = 0.01 * jax.random.normal(ks[6], (1, C), jnp.float32)
    bp = 0.01 * jax.random.normal(ks[7], (1, C), jnp.float32)
    params = (wqv, bqv, wk, bk, wp, bp)

    out = cross_nat2d(x, y, params, num_heads=num_heads,
                      kernel_size=kernel_size)
    out = jax.block_until_ready(out)

    ref = jax.block_until_ready(
        cross_nat2d_ref(x, y, params, num_heads=num_heads,
                        kernel_size=kernel_size))

    # bf16 matmul/gather operands + approximate reciprocal shift results
    # slightly relative to the pure-f32 reference.
    np.testing.assert_allclose(np.asarray(out), np.asarray(ref),
                               rtol=1e-2, atol=1e-2)
    print("KERNEL_OK")
</pallas_src>

<mosaic_0001>
module attributes {stable_mosaic.version = 11 : i64} {
  func.func @_cross_nat2d_kernel(%arg0: i32, %arg1: i32, %arg2: memref<1x8x18x32xbf16, #tpu.memory_space<vmem>>, %arg3: memref<1x1x18x32xbf16, #tpu.memory_space<vmem>>, %arg4: memref<1x1x18x32xbf16, #tpu.memory_space<vmem>>, %arg5: memref<1x8x18x32xbf16, #tpu.memory_space<vmem>>, %arg6: memref<1x1x18x32xbf16, #tpu.memory_space<vmem>>, %arg7: memref<1x1x18x32xbf16, #tpu.memory_space<vmem>>, %arg8: memref<32x32xbf16, #tpu.memory_space<vmem>>, %arg9: memref<1x32xf32, #tpu.memory_space<vmem>>, %arg10: memref<32x32xbf16, #tpu.memory_space<vmem>>, %arg11: memref<1x32xf32, #tpu.memory_space<vmem>>, %arg12: memref<32x32xbf16, #tpu.memory_space<vmem>>, %arg13: memref<1x32xf32, #tpu.memory_space<vmem>>, %arg14: memref<32x32xbf16, #tpu.memory_space<vmem>>, %arg15: memref<1x32xf32, #tpu.memory_space<vmem>>, %arg16: memref<32x32xbf16, #tpu.memory_space<vmem>>, %arg17: memref<1x8x16x32xf32, #tpu.memory_space<vmem>>) attributes {dimension_semantics = [#tpu.dimension_semantics<parallel>, #tpu.dimension_semantics<parallel>], iteration_bounds = array<i64: 2, 2>, scalar_prefetch = 0 : i64, scratch_operands = 0 : i64, tpu.core_type = #tpu.core_type<tc>, window_params = [{transform_indices = @transform_0, window_bounds = array<i64: 1, 8, 18, 32>}, {transform_indices = @transform_1, window_bounds = array<i64: 1, 1, 18, 32>}, {transform_indices = @transform_2, window_bounds = array<i64: 1, 1, 18, 32>}, {transform_indices = @transform_3, window_bounds = array<i64: 1, 8, 18, 32>}, {transform_indices = @transform_4, window_bounds = array<i64: 1, 1, 18, 32>}, {transform_indices = @transform_5, window_bounds = array<i64: 1, 1, 18, 32>}, {pipeline_mode = #tpu.pipeline_mode<synchronous>, transform_indices = @transform_6, window_bounds = array<i64: 32, 32>}, {pipeline_mode = #tpu.pipeline_mode<synchronous>, transform_indices = @transform_7, window_bounds = array<i64: 1, 32>}, {pipeline_mode = #tpu.pipeline_mode<synchronous>, transform_indices = @transform_8, window_bounds = array<i64: 32, 32>}, {pipeline_mode = #tpu.pipeline_mode<synchronous>, transform_indices = @transform_9, window_bounds = array<i64: 1, 32>}, {pipeline_mode = #tpu.pipeline_mode<synchronous>, transform_indices = @transform_10, window_bounds = array<i64: 32, 32>}, {pipeline_mode = #tpu.pipeline_mode<synchronous>, transform_indices = @transform_11, window_bounds = array<i64: 1, 32>}, {pipeline_mode = #tpu.pipeline_mode<synchronous>, transform_indices = @transform_12, window_bounds = array<i64: 32, 32>}, {pipeline_mode = #tpu.pipeline_mode<synchronous>, transform_indices = @transform_13, window_bounds = array<i64: 1, 32>}, {pipeline_mode = #tpu.pipeline_mode<synchronous>, transform_indices = @transform_14, window_bounds = array<i64: 32, 32>}, {transform_indices = @transform_15, window_bounds = array<i64: 1, 8, 16, 32>}]} {
    %c8_i32 = arith.constant 8 : i32
    %0 = arith.muli %arg1, %c8_i32 : i32
    %c0 = arith.constant 0 : index
    %c0_0 = arith.constant 0 : index
    %c0_1 = arith.constant 0 : index
    %c0_2 = arith.constant 0 : index
    %1 = vector.load %arg2[%c0, %c0_0, %c0_1, %c0_2] : memref<1x8x18x32xbf16, #tpu.memory_space<vmem>>, vector<1x8x18x32xbf16>
    %2 = vector.shape_cast %1 : vector<1x8x18x32xbf16> to vector<8x18x32xbf16>
    %c0_3 = arith.constant 0 : index
    %c0_4 = arith.constant 0 : index
    %c0_5 = arith.constant 0 : index
    %c0_6 = arith.constant 0 : index
    %3 = vector.load %arg3[%c0_3, %c0_4, %c0_5, %c0_6] : memref<1x1x18x32xbf16, #tpu.memory_space<vmem>>, vector<1x1x18x32xbf16>
    %4 = vector.shape_cast %3 : vector<1x1x18x32xbf16> to vector<1x18x32xbf16>
    %c0_7 = arith.constant 0 : index
    %c0_8 = arith.constant 0 : index
    %c0_9 = arith.constant 0 : index
    %c0_10 = arith.constant 0 : index
    %5 = vector.load %arg4[%c0_7, %c0_8, %c0_9, %c0_10] : memref<1x1x18x32xbf16, #tpu.memory_space<vmem>>, vector<1x1x18x32xbf16>
    %6 = vector.shape_cast %5 : vector<1x1x18x32xbf16> to vector<1x18x32xbf16>
    %7 = tpu.concatenate %4, %2, %6 in 0 : vector<1x18x32xbf16>, vector<8x18x32xbf16>, vector<1x18x32xbf16> -> vector<10x18x32xbf16>
    %c0_11 = arith.constant 0 : index
    %c0_12 = arith.constant 0 : index
    %c0_13 = arith.constant 0 : index
    %c0_14 = arith.constant 0 : index
    %8 = vector.load %arg6[%c0_11, %c0_12, %c0_13, %c0_14] : memref<1x1x18x32xbf16, #tpu.memory_space<vmem>>, vector<1x1x18x32xbf16>
    %9 = vector.shape_cast %8 : vector<1x1x18x32xbf16> to vector<1x18x32xbf16>
    %c0_15 = arith.constant 0 : index
    %c0_16 = arith.constant 0 : index
    %c0_17 = arith.constant 0 : index
    %c0_18 = arith.constant 0 : index
    %10 = vector.load %arg5[%c0_15, %c0_16, %c0_17, %c0_18] : memref<1x8x18x32xbf16, #tpu.memory_space<vmem>>, vector<1x8x18x32xbf16>
    %11 = vector.shape_cast %10 : vector<1x8x18x32xbf16> to vector<8x18x32xbf16>
    %c0_19 = arith.constant 0 : index
    %c0_20 = arith.constant 0 : index
    %c0_21 = arith.constant 0 : index
    %c0_22 = arith.constant 0 : index
    %12 = vector.load %arg7[%c0_19, %c0_20, %c0_21, %c0_22] : memref<1x1x18x32xbf16, #tpu.memory_space<vmem>>, vector<1x1x18x32xbf16>
    %13 = vector.shape_cast %12 : vector<1x1x18x32xbf16> to vector<1x18x32xbf16>
    %14 = tpu.concatenate %9, %11, %13 in 0 : vector<1x18x32xbf16>, vector<8x18x32xbf16>, vector<1x18x32xbf16> -> vector<10x18x32xbf16>
    %15 = vector.extract_strided_slice %2 {offsets = [0, 1, 0], sizes = [8, 16, 32], strides = [1, 1, 1]} : vector<8x18x32xbf16> to vector<8x16x32xbf16>
    %16 = vector.shape_cast %15 : vector<8x16x32xbf16> to vector<128x32xbf16>
    %c0_23 = arith.constant 0 : index
    %c0_24 = arith.constant 0 : index
    %17 = vector.load %arg8[%c0_23, %c0_24] : memref<32x32xbf16, #tpu.memory_space<vmem>>, vector<32x32xbf16>
    %cst = arith.constant dense<0.000000e+00> : vector<128x32xf32>
    %18 = tpu.matmul %16, %17, %cst {dimension_numbers = #tpu.dot_dimension_numbers<[1], [0], [0], [1], [0, 0, 1, 1], [], []>} : vector<128x32xbf16>, vector<32x32xbf16>, vector<128x32xf32> -> vector<128x32xf32>
    %c0_25 = arith.constant 0 : index
    %c0_26 = arith.constant 0 : index
    %19 = vector.load %arg9[%c0_25, %c0_26] : memref<1x32xf32, #tpu.memory_space<vmem>>, vector<1x32xf32>
    %20 = vector.broadcast %19 : vector<1x32xf32> to vector<128x32xf32>
    %21 = arith.addf %18, %20 : vector<128x32xf32>
    %22 = arith.truncf %21 : vector<128x32xf32> to vector<128x32xbf16>
    %23 = vector.shape_cast %7 : vector<10x18x32xbf16> to vector<180x32xbf16>
    %c0_27 = arith.constant 0 : index
    %c0_28 = arith.constant 0 : index
    %24 = vector.load %arg10[%c0_27, %c0_28] : memref<32x32xbf16, #tpu.memory_space<vmem>>, vector<32x32xbf16>
    %cst_29 = arith.constant dense<0.000000e+00> : vector<180x32xf32>
    %25 = tpu.matmul %23, %24, %cst_29 {dimension_numbers = #tpu.dot_dimension_numbers<[1], [0], [0], [1], [0, 0, 1, 1], [], []>} : vector<180x32xbf16>, vector<32x32xbf16>, vector<180x32xf32> -> vector<180x32xf32>
    %c0_30 = arith.constant 0 : index
    %c0_31 = arith.constant 0 : index
    %26 = vector.load %arg11[%c0_30, %c0_31] : memref<1x32xf32, #tpu.memory_space<vmem>>, vector<1x32xf32>
    %27 = vector.broadcast %26 : vector<1x32xf32> to vector<180x32xf32>
    %28 = arith.addf %25, %27 : vector<180x32xf32>
    %29 = arith.truncf %28 : vector<180x32xf32> to vector<180x32xbf16>
    %30 = vector.shape_cast %29 : vector<180x32xbf16> to vector<10x18x32xbf16>
    %31 = vector.shape_cast %14 : vector<10x18x32xbf16> to vector<180x32xbf16>
    %c0_32 = arith.constant 0 : index
    %c0_33 = arith.constant 0 : index
    %32 = vector.load %arg12[%c0_32, %c0_33] : memref<32x32xbf16, #tpu.memory_space<vmem>>, vector<32x32xbf16>
    %cst_34 = arith.constant dense<0.000000e+00> : vector<180x32xf32>
    %33 = tpu.matmul %31, %32, %cst_34 {dimension_numbers = #tpu.dot_dimension_numbers<[1], [0], [0], [1], [0, 0, 1, 1], [], []>} : vector<180x32xbf16>, vector<32x32xbf16>, vector<180x32xf32> -> vector<180x32xf32>
    %c0_35 = arith.constant 0 : index
    %c0_36 = arith.constant 0 : index
    %34 = vector.load %arg13[%c0_35, %c0_36] : memref<1x32xf32, #tpu.memory_space<vmem>>, vector<1x32xf32>
    %35 = vector.broadcast %34 : vector<1x32xf32> to vector<180x32xf32>
    %36 = arith.addf %33, %35 : vector<180x32xf32>
    %37 = arith.truncf %36 : vector<180x32xf32> to vector<180x32xbf16>
    %38 = vector.shape_cast %37 : vector<180x32xbf16> to vector<10x18x32xbf16>
    %39 = tpu.iota {dimensions = array<i32: 1>} : vector<1x16x1xi32>
    %c1_i32 = arith.constant 1 : i32
    %40 = vector.broadcast %c1_i32 : i32 to vector<1x16x1xi32>
    %41 = arith.cmpi slt, %39, %40 : vector<1x16x1xi32>
    %c14_i32 = arith.constant 14 : i32
    %42 = vector.broadcast %c14_i32 : i32 to vector<1x16x1xi32>
    %43 = arith.cmpi sgt, %39, %42 : vector<1x16x1xi32>
    %44 = tpu.iota {dimensions = array<i32: 0>} : vector<8x1x1xi32>
    %45 = vector.broadcast %0 : i32 to vector<8x1x1xi32>
    %46 = arith.addi %45, %44 : vector<8x1x1xi32>
    %c1_i32_37 = arith.constant 1 : i32
    %47 = vector.broadcast %c1_i32_37 : i32 to vector<8x1x1xi32>
    %48 = arith.cmpi slt, %46, %47 : vector<8x1x1xi32>
    %c14_i32_38 = arith.constant 14 : i32
    %49 = vector.broadcast %c14_i32_38 : i32 to vector<8x1x1xi32>
    %50 = arith.cmpi sgt, %46, %49 : vector<8x1x1xi32>
    %c0_39 = arith.constant 0 : index
    %c0_40 = arith.constant 0 : index
    %51 = vector.load %arg16[%c0_39, %c0_40] : memref<32x32xbf16, #tpu.memory_space<vmem>>, vector<32x32xbf16>
    %52 = vector.extract_strided_slice %38 {offsets = [0, 0, 0], sizes = [10, 16, 32], strides = [1, 1, 1]} : vector<10x18x32xbf16> to vector<10x16x32xbf16>
    %53 = vector.extract_strided_slice %38 {offsets = [0, 1, 0], sizes = [10, 1, 32], strides = [1, 1, 1]} : vector<10x18x32xbf16> to vector<10x1x32xbf16>
    %54 = vector.extract_strided_slice %38 {offsets = [0, 14, 0], sizes = [10, 1, 32], strides = [1, 1, 1]} : vector<10x18x32xbf16> to vector<10x1x32xbf16>
    %55 = vector.shape_cast %43 : vector<1x16x1xi1> to vector<1x16x1xi1>
    %56 = vector.broadcast %55 : vector<1x16x1xi1> to vector<10x16x32xi1>
    %57 = vector.shape_cast %54 : vector<10x1x32xbf16> to vector<10x1x32xbf16>
    %58 = vector.broadcast %57 : vector<10x1x32xbf16> to vector<10x16x32xbf16>
    %59 = arith.select %56, %58, %52 : vector<10x16x32xi1>, vector<10x16x32xbf16>
    %60 = vector.shape_cast %41 : vector<1x16x1xi1> to vector<1x16x1xi1>
    %61 = vector.broadcast %60 : vector<1x16x1xi1> to vector<10x16x32xi1>
    %62 = vector.shape_cast %53 : vector<10x1x32xbf16> to vector<10x1x32xbf16>
    %63 = vector.broadcast %62 : vector<10x1x32xbf16> to vector<10x16x32xbf16>
    %64 = arith.select %61, %63, %59 : vector<10x16x32xi1>, vector<10x16x32xbf16>
    %65 = vector.extract_strided_slice %38 {offsets = [0, 1, 0], sizes = [10, 16, 32], strides = [1, 1, 1]} : vector<10x18x32xbf16> to vector<10x16x32xbf16>
    %66 = vector.extract_strided_slice %38 {offsets = [0, 2, 0], sizes = [10, 1, 32], strides = [1, 1, 1]} : vector<10x18x32xbf16> to vector<10x1x32xbf16>
    %67 = vector.extract_strided_slice %38 {offsets = [0, 15, 0], sizes = [10, 1, 32], strides = [1, 1, 1]} : vector<10x18x32xbf16> to vector<10x1x32xbf16>
    %68 = vector.shape_cast %43 : vector<1x16x1xi1> to vector<1x16x1xi1>
    %69 = vector.broadcast %68 : vector<1x16x1xi1> to vector<10x16x32xi1>
    %70 = vector.shape_cast %67 : vector<10x1x32xbf16> to vector<10x1x32xbf16>
    %71 = vector.broadcast %70 : vector<10x1x32xbf16> to vector<10x16x32xbf16>
    %72 = arith.select %69, %71, %65 : vector<10x16x32xi1>, vector<10x16x32xbf16>
    %73 = vector.shape_cast %41 : vector<1x16x1xi1> to vector<1x16x1xi1>
    %74 = vector.broadcast %73 : vector<1x16x1xi1> to vector<10x16x32xi1>
    %75 = vector.shape_cast %66 : vector<10x1x32xbf16> to vector<10x1x32xbf16>
    %76 = vector.broadcast %75 : vector<10x1x32xbf16> to vector<10x16x32xbf16>
    %77 = arith.select %74, %76, %72 : vector<10x16x32xi1>, vector<10x16x32xbf16>
    %78 = vector.extract_strided_slice %38 {offsets = [0, 2, 0], sizes = [10, 16, 32], strides = [1, 1, 1]} : vector<10x18x32xbf16> to vector<10x16x32xbf16>
    %79 = vector.extract_strided_slice %38 {offsets = [0, 3, 0], sizes = [10, 1, 32], strides = [1, 1, 1]} : vector<10x18x32xbf16> to vector<10x1x32xbf16>
    %80 = vector.extract_strided_slice %38 {offsets = [0, 16, 0], sizes = [10, 1, 32], strides = [1, 1, 1]} : vector<10x18x32xbf16> to vector<10x1x32xbf16>
    %81 = vector.shape_cast %43 : vector<1x16x1xi1> to vector<1x16x1xi1>
    %82 = vector.broadcast %81 : vector<1x16x1xi1> to vector<10x16x32xi1>
    %83 = vector.shape_cast %80 : vector<10x1x32xbf16> to vector<10x1x32xbf16>
    %84 = vector.broadcast %83 : vector<10x1x32xbf16> to vector<10x16x32xbf16>
    %85 = arith.select %82, %84, %78 : vector<10x16x32xi1>, vector<10x16x32xbf16>
    %86 = vector.shape_cast %41 : vector<1x16x1xi1> to vector<1x16x1xi1>
    %87 = vector.broadcast %86 : vector<1x16x1xi1> to vector<10x16x32xi1>
    %88 = vector.shape_cast %79 : vector<10x1x32xbf16> to vector<10x1x32xbf16>
    %89 = vector.broadcast %88 : vector<10x1x32xbf16> to vector<10x16x32xbf16>
    %90 = arith.select %87, %89, %85 : vector<10x16x32xi1>, vector<10x16x32xbf16>
    %91 = vector.extract_strided_slice %64 {offsets = [0, 0, 0], sizes = [8, 16, 32], strides = [1, 1, 1]} : vector<10x16x32xbf16> to vector<8x16x32xbf16>
    %92 = vector.extract_strided_slice %64 {offsets = [1, 0, 0], sizes = [1, 16, 32], strides = [1, 1, 1]} : vector<10x16x32xbf16> to vector<1x16x32xbf16>
    %93 = vector.extract_strided_slice %64 {offsets = [6, 0, 0], sizes = [1, 16, 32], strides = [1, 1, 1]} : vector<10x16x32xbf16> to vector<1x16x32xbf16>
    %94 = vector.shape_cast %50 : vector<8x1x1xi1> to vector<8x1x1xi1>
    %95 = vector.broadcast %94 : vector<8x1x1xi1> to vector<8x16x32xi1>
    %96 = vector.shape_cast %93 : vector<1x16x32xbf16> to vector<1x16x32xbf16>
    %97 = vector.broadcast %96 : vector<1x16x32xbf16> to vector<8x16x32xbf16>
    %98 = arith.select %95, %97, %91 : vector<8x16x32xi1>, vector<8x16x32xbf16>
    %99 = vector.shape_cast %48 : vector<8x1x1xi1> to vector<8x1x1xi1>
    %100 = vector.broadcast %99 : vector<8x1x1xi1> to vector<8x16x32xi1>
    %101 = vector.shape_cast %92 : vector<1x16x32xbf16> to vector<1x16x32xbf16>
    %102 = vector.broadcast %101 : vector<1x16x32xbf16> to vector<8x16x32xbf16>
    %103 = arith.select %100, %102, %98 : vector<8x16x32xi1>, vector<8x16x32xbf16>
    %104 = vector.shape_cast %103 : vector<8x16x32xbf16> to vector<128x32xbf16>
    %105 = arith.mulf %22, %104 : vector<128x32xbf16>
    %cst_41 = arith.constant dense<0.000000e+00> : vector<128x32xf32>
    %106 = tpu.matmul %105, %51, %cst_41 {dimension_numbers = #tpu.dot_dimension_numbers<[1], [0], [0], [1], [0, 0, 1, 1], [], []>} : vector<128x32xbf16>, vector<32x32xbf16>, vector<128x32xf32> -> vector<128x32xf32>
    %107 = vector.extract_strided_slice %77 {offsets = [0, 0, 0], sizes = [8, 16, 32], strides = [1, 1, 1]} : vector<10x16x32xbf16> to vector<8x16x32xbf16>
    %108 = vector.extract_strided_slice %77 {offsets = [1, 0, 0], sizes = [1, 16, 32], strides = [1, 1, 1]} : vector<10x16x32xbf16> to vector<1x16x32xbf16>
    %109 = vector.extract_strided_slice %77 {offsets = [6, 0, 0], sizes = [1, 16, 32], strides = [1, 1, 1]} : vector<10x16x32xbf16> to vector<1x16x32xbf16>
    %110 = vector.shape_cast %50 : vector<8x1x1xi1> to vector<8x1x1xi1>
    %111 = vector.broadcast %110 : vector<8x1x1xi1> to vector<8x16x32xi1>
    %112 = vector.shape_cast %109 : vector<1x16x32xbf16> to vector<1x16x32xbf16>
    %113 = vector.broadcast %112 : vector<1x16x32xbf16> to vector<8x16x32xbf16>
    %114 = arith.select %111, %113, %107 : vector<8x16x32xi1>, vector<8x16x32xbf16>
    %115 = vector.shape_cast %48 : vector<8x1x1xi1> to vector<8x1x1xi1>
    %116 = vector.broadcast %115 : vector<8x1x1xi1> to vector<8x16x32xi1>
    %117 = vector.shape_cast %108 : vector<1x16x32xbf16> to vector<1x16x32xbf16>
    %118 = vector.broadcast %117 : vector<1x16x32xbf16> to vector<8x16x32xbf16>
    %119 = arith.select %116, %118, %114 : vector<8x16x32xi1>, vector<8x16x32xbf16>
    %120 = vector.shape_cast %119 : vector<8x16x32xbf16> to vector<128x32xbf16>
    %121 = arith.mulf %22, %120 : vector<128x32xbf16>
    %cst_42 = arith.constant dense<0.000000e+00> : vector<128x32xf32>
    %122 = tpu.matmul %121, %51, %cst_42 {dimension_numbers = #tpu.dot_dimension_numbers<[1], [0], [0], [1], [0, 0, 1, 1], [], []>} : vector<128x32xbf16>, vector<32x32xbf16>, vector<128x32xf32> -> vector<128x32xf32>
    %123 = vector.extract_strided_slice %90 {offsets = [0, 0, 0], sizes = [8, 16, 32], strides = [1, 1, 1]} : vector<10x16x32xbf16> to vector<8x16x32xbf16>
    %124 = vector.extract_strided_slice %90 {offsets = [1, 0, 0], sizes = [1, 16, 32], strides = [1, 1, 1]} : vector<10x16x32xbf16> to vector<1x16x32xbf16>
    %125 = vector.extract_strided_slice %90 {offsets = [6, 0, 0], sizes = [1, 16, 32], strides = [1, 1, 1]} : vector<10x16x32xbf16> to vector<1x16x32xbf16>
    %126 = vector.shape_cast %50 : vector<8x1x1xi1> to vector<8x1x1xi1>
    %127 = vector.broadcast %126 : vector<8x1x1xi1> to vector<8x16x32xi1>
    %128 = vector.shape_cast %125 : vector<1x16x32xbf16> to vector<1x16x32xbf16>
    %129 = vector.broadcast %128 : vector<1x16x32xbf16> to vector<8x16x32xbf16>
    %130 = arith.select %127, %129, %123 : vector<8x16x32xi1>, vector<8x16x32xbf16>
    %131 = vector.shape_cast %48 : vector<8x1x1xi1> to vector<8x1x1xi1>
    %132 = vector.broadcast %131 : vector<8x1x1xi1> to vector<8x16x32xi1>
    %133 = vector.shape_cast %124 : vector<1x16x32xbf16> to vector<1x16x32xbf16>
    %134 = vector.broadcast %133 : vector<1x16x32xbf16> to vector<8x16x32xbf16>
    %135 = arith.select %132, %134, %130 : vector<8x16x32xi1>, vector<8x16x32xbf16>
    %136 = vector.shape_cast %135 : vector<8x16x32xbf16> to vector<128x32xbf16>
    %137 = arith.mulf %22, %136 : vector<128x32xbf16>
    %cst_43 = arith.constant dense<0.000000e+00> : vector<128x32xf32>
    %138 = tpu.matmul %137, %51, %cst_43 {dimension_numbers = #tpu.dot_dimension_numbers<[1], [0], [0], [1], [0, 0, 1, 1], [], []>} : vector<128x32xbf16>, vector<32x32xbf16>, vector<128x32xf32> -> vector<128x32xf32>
    %139 = vector.extract_strided_slice %64 {offsets = [1, 0, 0], sizes = [8, 16, 32], strides = [1, 1, 1]} : vector<10x16x32xbf16> to vector<8x16x32xbf16>
    %140 = vector.extract_strided_slice %64 {offsets = [2, 0, 0], sizes = [1, 16, 32], strides = [1, 1, 1]} : vector<10x16x32xbf16> to vector<1x16x32xbf16>
    %141 = vector.extract_strided_slice %64 {offsets = [7, 0, 0], sizes = [1, 16, 32], strides = [1, 1, 1]} : vector<10x16x32xbf16> to vector<1x16x32xbf16>
    %142 = vector.shape_cast %50 : vector<8x1x1xi1> to vector<8x1x1xi1>
    %143 = vector.broadcast %142 : vector<8x1x1xi1> to vector<8x16x32xi1>
    %144 = vector.shape_cast %141 : vector<1x16x32xbf16> to vector<1x16x32xbf16>
    %145 = vector.broadcast %144 : vector<1x16x32xbf16> to vector<8x16x32xbf16>
    %146 = arith.select %143, %145, %139 : vector<8x16x32xi1>, vector<8x16x32xbf16>
    %147 = vector.shape_cast %48 : vector<8x1x1xi1> to vector<8x1x1xi1>
    %148 = vector.broadcast %147 : vector<8x1x1xi1> to vector<8x16x32xi1>
    %149 = vector.shape_cast %140 : vector<1x16x32xbf16> to vector<1x16x32xbf16>
    %150 = vector.broadcast %149 : vector<1x16x32xbf16> to vector<8x16x32xbf16>
    %151 = arith.select %148, %150, %146 : vector<8x16x32xi1>, vector<8x16x32xbf16>
    %152 = vector.shape_cast %151 : vector<8x16x32xbf16> to vector<128x32xbf16>
    %153 = arith.mulf %22, %152 : vector<128x32xbf16>
    %cst_44 = arith.constant dense<0.000000e+00> : vector<128x32xf32>
    %154 = tpu.matmul %153, %51, %cst_44 {dimension_numbers = #tpu.dot_dimension_numbers<[1], [0], [0], [1], [0, 0, 1, 1], [], []>} : vector<128x32xbf16>, vector<32x32xbf16>, vector<128x32xf32> -> vector<128x32xf32>
    %155 = vector.extract_strided_slice %77 {offsets = [1, 0, 0], sizes = [8, 16, 32], strides = [1, 1, 1]} : vector<10x16x32xbf16> to vector<8x16x32xbf16>
    %156 = vector.extract_strided_slice %77 {offsets = [2, 0, 0], sizes = [1, 16, 32], strides = [1, 1, 1]} : vector<10x16x32xbf16> to vector<1x16x32xbf16>
    %157 = vector.extract_strided_slice %77 {offsets = [7, 0, 0], sizes = [1, 16, 32], strides = [1, 1, 1]} : vector<10x16x32xbf16> to vector<1x16x32xbf16>
    %158 = vector.shape_cast %50 : vector<8x1x1xi1> to vector<8x1x1xi1>
    %159 = vector.broadcast %158 : vector<8x1x1xi1> to vector<8x16x32xi1>
    %160 = vector.shape_cast %157 : vector<1x16x32xbf16> to vector<1x16x32xbf16>
    %161 = vector.broadcast %160 : vector<1x16x32xbf16> to vector<8x16x32xbf16>
    %162 = arith.select %159, %161, %155 : vector<8x16x32xi1>, vector<8x16x32xbf16>
    %163 = vector.shape_cast %48 : vector<8x1x1xi1> to vector<8x1x1xi1>
    %164 = vector.broadcast %163 : vector<8x1x1xi1> to vector<8x16x32xi1>
    %165 = vector.shape_cast %156 : vector<1x16x32xbf16> to vector<1x16x32xbf16>
    %166 = vector.broadcast %165 : vector<1x16x32xbf16> to vector<8x16x32xbf16>
    %167 = arith.select %164, %166, %162 : vector<8x16x32xi1>, vector<8x16x32xbf16>
    %168 = vector.shape_cast %167 : vector<8x16x32xbf16> to vector<128x32xbf16>
    %169 = arith.mulf %22, %168 : vector<128x32xbf16>
    %cst_45 = arith.constant dense<0.000000e+00> : vector<128x32xf32>
    %170 = tpu.matmul %169, %51, %cst_45 {dimension_numbers = #tpu.dot_dimension_numbers<[1], [0], [0], [1], [0, 0, 1, 1], [], []>} : vector<128x32xbf16>, vector<32x32xbf16>, vector<128x32xf32> -> vector<128x32xf32>
    %171 = vector.extract_strided_slice %90 {offsets = [1, 0, 0], sizes = [8, 16, 32], strides = [1, 1, 1]} : vector<10x16x32xbf16> to vector<8x16x32xbf16>
    %172 = vector.extract_strided_slice %90 {offsets = [2, 0, 0], sizes = [1, 16, 32], strides = [1, 1, 1]} : vector<10x16x32xbf16> to vector<1x16x32xbf16>
    %173 = vector.extract_strided_slice %90 {offsets = [7, 0, 0], sizes = [1, 16, 32], strides = [1, 1, 1]} : vector<10x16x32xbf16> to vector<1x16x32xbf16>
    %174 = vector.shape_cast %50 : vector<8x1x1xi1> to vector<8x1x1xi1>
    %175 = vector.broadcast %174 : vector<8x1x1xi1> to vector<8x16x32xi1>
    %176 = vector.shape_cast %173 : vector<1x16x32xbf16> to vector<1x16x32xbf16>
    %177 = vector.broadcast %176 : vector<1x16x32xbf16> to vector<8x16x32xbf16>
    %178 = arith.select %175, %177, %171 : vector<8x16x32xi1>, vector<8x16x32xbf16>
    %179 = vector.shape_cast %48 : vector<8x1x1xi1> to vector<8x1x1xi1>
    %180 = vector.broadcast %179 : vector<8x1x1xi1> to vector<8x16x32xi1>
    %181 = vector.shape_cast %172 : vector<1x16x32xbf16> to vector<1x16x32xbf16>
    %182 = vector.broadcast %181 : vector<1x16x32xbf16> to vector<8x16x32xbf16>
    %183 = arith.select %180, %182, %178 : vector<8x16x32xi1>, vector<8x16x32xbf16>
    %184 = vector.shape_cast %183 : vector<8x16x32xbf16> to vector<128x32xbf16>
    %185 = arith.mulf %22, %184 : vector<128x32xbf16>
    %cst_46 = arith.constant dense<0.000000e+00> : vector<128x32xf32>
    %186 = tpu.matmul %185, %51, %cst_46 {dimension_numbers = #tpu.dot_dimension_numbers<[1], [0], [0], [1], [0, 0, 1, 1], [], []>} : vector<128x32xbf16>, vector<32x32xbf16>, vector<128x32xf32> -> vector<128x32xf32>
    %187 = vector.extract_strided_slice %64 {offsets = [2, 0, 0], sizes = [8, 16, 32], strides = [1, 1, 1]} : vector<10x16x32xbf16> to vector<8x16x32xbf16>
    %188 = vector.extract_strided_slice %64 {offsets = [3, 0, 0], sizes = [1, 16, 32], strides = [1, 1, 1]} : vector<10x16x32xbf16> to vector<1x16x32xbf16>
    %189 = vector.extract_strided_slice %64 {offsets = [8, 0, 0], sizes = [1, 16, 32], strides = [1, 1, 1]} : vector<10x16x32xbf16> to vector<1x16x32xbf16>
    %190 = vector.shape_cast %50 : vector<8x1x1xi1> to vector<8x1x1xi1>
    %191 = vector.broadcast %190 : vector<8x1x1xi1> to vector<8x16x32xi1>
    %192 = vector.shape_cast %189 : vector<1x16x32xbf16> to vector<1x16x32xbf16>
    %193 = vector.broadcast %192 : vector<1x16x32xbf16> to vector<8x16x32xbf16>
    %194 = arith.select %191, %193, %187 : vector<8x16x32xi1>, vector<8x16x32xbf16>
    %195 = vector.shape_cast %48 : vector<8x1x1xi1> to vector<8x1x1xi1>
    %196 = vector.broadcast %195 : vector<8x1x1xi1> to vector<8x16x32xi1>
    %197 = vector.shape_cast %188 : vector<1x16x32xbf16> to vector<1x16x32xbf16>
    %198 = vector.broadcast %197 : vector<1x16x32xbf16> to vector<8x16x32xbf16>
    %199 = arith.select %196, %198, %194 : vector<8x16x32xi1>, vector<8x16x32xbf16>
    %200 = vector.shape_cast %199 : vector<8x16x32xbf16> to vector<128x32xbf16>
    %201 = arith.mulf %22, %200 : vector<128x32xbf16>
    %cst_47 = arith.constant dense<0.000000e+00> : vector<128x32xf32>
    %202 = tpu.matmul %201, %51, %cst_47 {dimension_numbers = #tpu.dot_dimension_numbers<[1], [0], [0], [1], [0, 0, 1, 1], [], []>} : vector<128x32xbf16>, vector<32x32xbf16>, vector<128x32xf32> -> vector<128x32xf32>
    %203 = vector.extract_strided_slice %77 {offsets = [2, 0, 0], sizes = [8, 16, 32], strides = [1, 1, 1]} : vector<10x16x32xbf16> to vector<8x16x32xbf16>
    %204 = vector.extract_strided_slice %77 {offsets = [3, 0, 0], sizes = [1, 16, 32], strides = [1, 1, 1]} : vector<10x16x32xbf16> to vector<1x16x32xbf16>
    %205 = vector.extract_strided_slice %77 {offsets = [8, 0, 0], sizes = [1, 16, 32], strides = [1, 1, 1]} : vector<10x16x32xbf16> to vector<1x16x32xbf16>
    %206 = vector.shape_cast %50 : vector<8x1x1xi1> to vector<8x1x1xi1>
    %207 = vector.broadcast %206 : vector<8x1x1xi1> to vector<8x16x32xi1>
    %208 = vector.shape_cast %205 : vector<1x16x32xbf16> to vector<1x16x32xbf16>
    %209 = vector.broadcast %208 : vector<1x16x32xbf16> to vector<8x16x32xbf16>
    %210 = arith.select %207, %209, %203 : vector<8x16x32xi1>, vector<8x16x32xbf16>
    %211 = vector.shape_cast %48 : vector<8x1x1xi1> to vector<8x1x1xi1>
    %212 = vector.broadcast %211 : vector<8x1x1xi1> to vector<8x16x32xi1>
    %213 = vector.shape_cast %204 : vector<1x16x32xbf16> to vector<1x16x32xbf16>
    %214 = vector.broadcast %213 : vector<1x16x32xbf16> to vector<8x16x32xbf16>
    %215 = arith.select %212, %214, %210 : vector<8x16x32xi1>, vector<8x16x32xbf16>
    %216 = vector.shape_cast %215 : vector<8x16x32xbf16> to vector<128x32xbf16>
    %217 = arith.mulf %22, %216 : vector<128x32xbf16>
    %cst_48 = arith.constant dense<0.000000e+00> : vector<128x32xf32>
    %218 = tpu.matmul %217, %51, %cst_48 {dimension_numbers = #tpu.dot_dimension_numbers<[1], [0], [0], [1], [0, 0, 1, 1], [], []>} : vector<128x32xbf16>, vector<32x32xbf16>, vector<128x32xf32> -> vector<128x32xf32>
    %219 = vector.extract_strided_slice %90 {offsets = [2, 0, 0], sizes = [8, 16, 32], strides = [1, 1, 1]} : vector<10x16x32xbf16> to vector<8x16x32xbf16>
    %220 = vector.extract_strided_slice %90 {offsets = [3, 0, 0], sizes = [1, 16, 32], strides = [1, 1, 1]} : vector<10x16x32xbf16> to vector<1x16x32xbf16>
    %221 = vector.extract_strided_slice %90 {offsets = [8, 0, 0], sizes = [1, 16, 32], strides = [1, 1, 1]} : vector<10x16x32xbf16> to vector<1x16x32xbf16>
    %222 = vector.shape_cast %50 : vector<8x1x1xi1> to vector<8x1x1xi1>
    %223 = vector.broadcast %222 : vector<8x1x1xi1> to vector<8x16x32xi1>
    %224 = vector.shape_cast %221 : vector<1x16x32xbf16> to vector<1x16x32xbf16>
    %225 = vector.broadcast %224 : vector<1x16x32xbf16> to vector<8x16x32xbf16>
    %226 = arith.select %223, %225, %219 : vector<8x16x32xi1>, vector<8x16x32xbf16>
    %227 = vector.shape_cast %48 : vector<8x1x1xi1> to vector<8x1x1xi1>
    %228 = vector.broadcast %227 : vector<8x1x1xi1> to vector<8x16x32xi1>
    %229 = vector.shape_cast %220 : vector<1x16x32xbf16> to vector<1x16x32xbf16>
    %230 = vector.broadcast %229 : vector<1x16x32xbf16> to vector<8x16x32xbf16>
    %231 = arith.select %228, %230, %226 : vector<8x16x32xi1>, vector<8x16x32xbf16>
    %232 = vector.shape_cast %231 : vector<8x16x32xbf16> to vector<128x32xbf16>
    %233 = arith.mulf %22, %232 : vector<128x32xbf16>
    %cst_49 = arith.constant dense<0.000000e+00> : vector<128x32xf32>
    %234 = tpu.matmul %233, %51, %cst_49 {dimension_numbers = #tpu.dot_dimension_numbers<[1], [0], [0], [1], [0, 0, 1, 1], [], []>} : vector<128x32xbf16>, vector<32x32xbf16>, vector<128x32xf32> -> vector<128x32xf32>
    %235 = arith.maximumf %106, %122 : vector<128x32xf32>
    %236 = arith.maximumf %235, %138 : vector<128x32xf32>
    %237 = arith.maximumf %236, %154 : vector<128x32xf32>
    %238 = arith.maximumf %237, %170 : vector<128x32xf32>
    %239 = arith.maximumf %238, %186 : vector<128x32xf32>
    %240 = arith.maximumf %239, %202 : vector<128x32xf32>
    %241 = arith.maximumf %240, %218 : vector<128x32xf32>
    %242 = arith.maximumf %241, %234 : vector<128x32xf32>
    %243 = vector.extract_strided_slice %30 {offsets = [0, 0, 0], sizes = [10, 16, 32], strides = [1, 1, 1]} : vector<10x18x32xbf16> to vector<10x16x32xbf16>
    %244 = vector.extract_strided_slice %30 {offsets = [0, 1, 0], sizes = [10, 1, 32], strides = [1, 1, 1]} : vector<10x18x32xbf16> to vector<10x1x32xbf16>
    %245 = vector.extract_strided_slice %30 {offsets = [0, 14, 0], sizes = [10, 1, 32], strides = [1, 1, 1]} : vector<10x18x32xbf16> to vector<10x1x32xbf16>
    %246 = vector.shape_cast %43 : vector<1x16x1xi1> to vector<1x16x1xi1>
    %247 = vector.broadcast %246 : vector<1x16x1xi1> to vector<10x16x32xi1>
    %248 = vector.shape_cast %245 : vector<10x1x32xbf16> to vector<10x1x32xbf16>
    %249 = vector.broadcast %248 : vector<10x1x32xbf16> to vector<10x16x32xbf16>
    %250 = arith.select %247, %249, %243 : vector<10x16x32xi1>, vector<10x16x32xbf16>
    %251 = vector.shape_cast %41 : vector<1x16x1xi1> to vector<1x16x1xi1>
    %252 = vector.broadcast %251 : vector<1x16x1xi1> to vector<10x16x32xi1>
    %253 = vector.shape_cast %244 : vector<10x1x32xbf16> to vector<10x1x32xbf16>
    %254 = vector.broadcast %253 : vector<10x1x32xbf16> to vector<10x16x32xbf16>
    %255 = arith.select %252, %254, %250 : vector<10x16x32xi1>, vector<10x16x32xbf16>
    %256 = vector.extract_strided_slice %30 {offsets = [0, 1, 0], sizes = [10, 16, 32], strides = [1, 1, 1]} : vector<10x18x32xbf16> to vector<10x16x32xbf16>
    %257 = vector.extract_strided_slice %30 {offsets = [0, 2, 0], sizes = [10, 1, 32], strides = [1, 1, 1]} : vector<10x18x32xbf16> to vector<10x1x32xbf16>
    %258 = vector.extract_strided_slice %30 {offsets = [0, 15, 0], sizes = [10, 1, 32], strides = [1, 1, 1]} : vector<10x18x32xbf16> to vector<10x1x32xbf16>
    %259 = vector.shape_cast %43 : vector<1x16x1xi1> to vector<1x16x1xi1>
    %260 = vector.broadcast %259 : vector<1x16x1xi1> to vector<10x16x32xi1>
    %261 = vector.shape_cast %258 : vector<10x1x32xbf16> to vector<10x1x32xbf16>
    %262 = vector.broadcast %261 : vector<10x1x32xbf16> to vector<10x16x32xbf16>
    %263 = arith.select %260, %262, %256 : vector<10x16x32xi1>, vector<10x16x32xbf16>
    %264 = vector.shape_cast %41 : vector<1x16x1xi1> to vector<1x16x1xi1>
    %265 = vector.broadcast %264 : vector<1x16x1xi1> to vector<10x16x32xi1>
    %266 = vector.shape_cast %257 : vector<10x1x32xbf16> to vector<10x1x32xbf16>
    %267 = vector.broadcast %266 : vector<10x1x32xbf16> to vector<10x16x32xbf16>
    %268 = arith.select %265, %267, %263 : vector<10x16x32xi1>, vector<10x16x32xbf16>
    %269 = vector.extract_strided_slice %30 {offsets = [0, 2, 0], sizes = [10, 16, 32], strides = [1, 1, 1]} : vector<10x18x32xbf16> to vector<10x16x32xbf16>
    %270 = vector.extract_strided_slice %30 {offsets = [0, 3, 0], sizes = [10, 1, 32], strides = [1, 1, 1]} : vector<10x18x32xbf16> to vector<10x1x32xbf16>
    %271 = vector.extract_strided_slice %30 {offsets = [0, 16, 0], sizes = [10, 1, 32], strides = [1, 1, 1]} : vector<10x18x32xbf16> to vector<10x1x32xbf16>
    %272 = vector.shape_cast %43 : vector<1x16x1xi1> to vector<1x16x1xi1>
    %273 = vector.broadcast %272 : vector<1x16x1xi1> to vector<10x16x32xi1>
    %274 = vector.shape_cast %271 : vector<10x1x32xbf16> to vector<10x1x32xbf16>
    %275 = vector.broadcast %274 : vector<10x1x32xbf16> to vector<10x16x32xbf16>
    %276 = arith.select %273, %275, %269 : vector<10x16x32xi1>, vector<10x16x32xbf16>
    %277 = vector.shape_cast %41 : vector<1x16x1xi1> to vector<1x16x1xi1>
    %278 = vector.broadcast %277 : vector<1x16x1xi1> to vector<10x16x32xi1>
    %279 = vector.shape_cast %270 : vector<10x1x32xbf16> to vector<10x1x32xbf16>
    %280 = vector.broadcast %279 : vector<10x1x32xbf16> to vector<10x16x32xbf16>
    %281 = arith.select %278, %280, %276 : vector<10x16x32xi1>, vector<10x16x32xbf16>
    %cst_50 = arith.constant 0.000000e+00 : f32
    %282 = vector.broadcast %cst_50 : f32 to vector<128x32xf32>
    %cst_51 = arith.constant 0.000000e+00 : f32
    %283 = vector.broadcast %cst_51 : f32 to vector<128x32xf32>
    %284 = arith.subf %106, %242 : vector<128x32xf32>
    %285 = math.exp %284 : vector<128x32xf32>
    %286 = vector.extract_strided_slice %255 {offsets = [0, 0, 0], sizes = [8, 16, 32], strides = [1, 1, 1]} : vector<10x16x32xbf16> to vector<8x16x32xbf16>
    %287 = vector.extract_strided_slice %255 {offsets = [1, 0, 0], sizes = [1, 16, 32], strides = [1, 1, 1]} : vector<10x16x32xbf16> to vector<1x16x32xbf16>
    %288 = vector.extract_strided_slice %255 {offsets = [6, 0, 0], sizes = [1, 16, 32], strides = [1, 1, 1]} : vector<10x16x32xbf16> to vector<1x16x32xbf16>
    %289 = vector.shape_cast %50 : vector<8x1x1xi1> to vector<8x1x1xi1>
    %290 = vector.broadcast %289 : vector<8x1x1xi1> to vector<8x16x32xi1>
    %291 = vector.shape_cast %288 : vector<1x16x32xbf16> to vector<1x16x32xbf16>
    %292 = vector.broadcast %291 : vector<1x16x32xbf16> to vector<8x16x32xbf16>
    %293 = arith.select %290, %292, %286 : vector<8x16x32xi1>, vector<8x16x32xbf16>
    %294 = vector.shape_cast %48 : vector<8x1x1xi1> to vector<8x1x1xi1>
    %295 = vector.broadcast %294 : vector<8x1x1xi1> to vector<8x16x32xi1>
    %296 = vector.shape_cast %287 : vector<1x16x32xbf16> to vector<1x16x32xbf16>
    %297 = vector.broadcast %296 : vector<1x16x32xbf16> to vector<8x16x32xbf16>
    %298 = arith.select %295, %297, %293 : vector<8x16x32xi1>, vector<8x16x32xbf16>
    %299 = vector.shape_cast %298 : vector<8x16x32xbf16> to vector<128x32xbf16>
    %300 = arith.addf %282, %285 : vector<128x32xf32>
    %301 = arith.extf %299 : vector<128x32xbf16> to vector<128x32xf32>
    %302 = arith.mulf %285, %301 : vector<128x32xf32>
    %303 = arith.addf %283, %302 : vector<128x32xf32>
    %304 = arith.subf %122, %242 : vector<128x32xf32>
    %305 = math.exp %304 : vector<128x32xf32>
    %306 = vector.extract_strided_slice %268 {offsets = [0, 0, 0], sizes = [8, 16, 32], strides = [1, 1, 1]} : vector<10x16x32xbf16> to vector<8x16x32xbf16>
    %307 = vector.extract_strided_slice %268 {offsets = [1, 0, 0], sizes = [1, 16, 32], strides = [1, 1, 1]} : vector<10x16x32xbf16> to vector<1x16x32xbf16>
    %308 = vector.extract_strided_slice %268 {offsets = [6, 0, 0], sizes = [1, 16, 32], strides = [1, 1, 1]} : vector<10x16x32xbf16> to vector<1x16x32xbf16>
    %309 = vector.shape_cast %50 : vector<8x1x1xi1> to vector<8x1x1xi1>
    %310 = vector.broadcast %309 : vector<8x1x1xi1> to vector<8x16x32xi1>
    %311 = vector.shape_cast %308 : vector<1x16x32xbf16> to vector<1x16x32xbf16>
    %312 = vector.broadcast %311 : vector<1x16x32xbf16> to vector<8x16x32xbf16>
    %313 = arith.select %310, %312, %306 : vector<8x16x32xi1>, vector<8x16x32xbf16>
    %314 = vector.shape_cast %48 : vector<8x1x1xi1> to vector<8x1x1xi1>
    %315 = vector.broadcast %314 : vector<8x1x1xi1> to vector<8x16x32xi1>
    %316 = vector.shape_cast %307 : vector<1x16x32xbf16> to vector<1x16x32xbf16>
    %317 = vector.broadcast %316 : vector<1x16x32xbf16> to vector<8x16x32xbf16>
    %318 = arith.select %315, %317, %313 : vector<8x16x32xi1>, vector<8x16x32xbf16>
    %319 = vector.shape_cast %318 : vector<8x16x32xbf16> to vector<128x32xbf16>
    %320 = arith.addf %300, %305 : vector<128x32xf32>
    %321 = arith.extf %319 : vector<128x32xbf16> to vector<128x32xf32>
    %322 = arith.mulf %305, %321 : vector<128x32xf32>
    %323 = arith.addf %303, %322 : vector<128x32xf32>
    %324 = arith.subf %138, %242 : vector<128x32xf32>
    %325 = math.exp %324 : vector<128x32xf32>
    %326 = vector.extract_strided_slice %281 {offsets = [0, 0, 0], sizes = [8, 16, 32], strides = [1, 1, 1]} : vector<10x16x32xbf16> to vector<8x16x32xbf16>
    %327 = vector.extract_strided_slice %281 {offsets = [1, 0, 0], sizes = [1, 16, 32], strides = [1, 1, 1]} : vector<10x16x32xbf16> to vector<1x16x32xbf16>
    %328 = vector.extract_strided_slice %281 {offsets = [6, 0, 0], sizes = [1, 16, 32], strides = [1, 1, 1]} : vector<10x16x32xbf16> to vector<1x16x32xbf16>
    %329 = vector.shape_cast %50 : vector<8x1x1xi1> to vector<8x1x1xi1>
    %330 = vector.broadcast %329 : vector<8x1x1xi1> to vector<8x16x32xi1>
    %331 = vector.shape_cast %328 : vector<1x16x32xbf16> to vector<1x16x32xbf16>
    %332 = vector.broadcast %331 : vector<1x16x32xbf16> to vector<8x16x32xbf16>
    %333 = arith.select %330, %332, %326 : vector<8x16x32xi1>, vector<8x16x32xbf16>
    %334 = vector.shape_cast %48 : vector<8x1x1xi1> to vector<8x1x1xi1>
    %335 = vector.broadcast %334 : vector<8x1x1xi1> to vector<8x16x32xi1>
    %336 = vector.shape_cast %327 : vector<1x16x32xbf16> to vector<1x16x32xbf16>
    %337 = vector.broadcast %336 : vector<1x16x32xbf16> to vector<8x16x32xbf16>
    %338 = arith.select %335, %337, %333 : vector<8x16x32xi1>, vector<8x16x32xbf16>
    %339 = vector.shape_cast %338 : vector<8x16x32xbf16> to vector<128x32xbf16>
    %340 = arith.addf %320, %325 : vector<128x32xf32>
    %341 = arith.extf %339 : vector<128x32xbf16> to vector<128x32xf32>
    %342 = arith.mulf %325, %341 : vector<128x32xf32>
    %343 = arith.addf %323, %342 : vector<128x32xf32>
    %344 = arith.subf %154, %242 : vector<128x32xf32>
    %345 = math.exp %344 : vector<128x32xf32>
    %346 = vector.extract_strided_slice %255 {offsets = [1, 0, 0], sizes = [8, 16, 32], strides = [1, 1, 1]} : vector<10x16x32xbf16> to vector<8x16x32xbf16>
    %347 = vector.extract_strided_slice %255 {offsets = [2, 0, 0], sizes = [1, 16, 32], strides = [1, 1, 1]} : vector<10x16x32xbf16> to vector<1x16x32xbf16>
    %348 = vector.extract_strided_slice %255 {offsets = [7, 0, 0], sizes = [1, 16, 32], strides = [1, 1, 1]} : vector<10x16x32xbf16> to vector<1x16x32xbf16>
    %349 = vector.shape_cast %50 : vector<8x1x1xi1> to vector<8x1x1xi1>
    %350 = vector.broadcast %349 : vector<8x1x1xi1> to vector<8x16x32xi1>
    %351 = vector.shape_cast %348 : vector<1x16x32xbf16> to vector<1x16x32xbf16>
    %352 = vector.broadcast %351 : vector<1x16x32xbf16> to vector<8x16x32xbf16>
    %353 = arith.select %350, %352, %346 : vector<8x16x32xi1>, vector<8x16x32xbf16>
    %354 = vector.shape_cast %48 : vector<8x1x1xi1> to vector<8x1x1xi1>
    %355 = vector.broadcast %354 : vector<8x1x1xi1> to vector<8x16x32xi1>
    %356 = vector.shape_cast %347 : vector<1x16x32xbf16> to vector<1x16x32xbf16>
    %357 = vector.broadcast %356 : vector<1x16x32xbf16> to vector<8x16x32xbf16>
    %358 = arith.select %355, %357, %353 : vector<8x16x32xi1>, vector<8x16x32xbf16>
    %359 = vector.shape_cast %358 : vector<8x16x32xbf16> to vector<128x32xbf16>
    %360 = arith.addf %340, %345 : vector<128x32xf32>
    %361 = arith.extf %359 : vector<128x32xbf16> to vector<128x32xf32>
    %362 = arith.mulf %345, %361 : vector<128x32xf32>
    %363 = arith.addf %343, %362 : vector<128x32xf32>
    %364 = arith.subf %170, %242 : vector<128x32xf32>
    %365 = math.exp %364 : vector<128x32xf32>
    %366 = vector.extract_strided_slice %268 {offsets = [1, 0, 0], sizes = [8, 16, 32], strides = [1, 1, 1]} : vector<10x16x32xbf16> to vector<8x16x32xbf16>
    %367 = vector.extract_strided_slice %268 {offsets = [2, 0, 0], sizes = [1, 16, 32], strides = [1, 1, 1]} : vector<10x16x32xbf16> to vector<1x16x32xbf16>
    %368 = vector.extract_strided_slice %268 {offsets = [7, 0, 0], sizes = [1, 16, 32], strides = [1, 1, 1]} : vector<10x16x32xbf16> to vector<1x16x32xbf16>
    %369 = vector.shape_cast %50 : vector<8x1x1xi1> to vector<8x1x1xi1>
    %370 = vector.broadcast %369 : vector<8x1x1xi1> to vector<8x16x32xi1>
    %371 = vector.shape_cast %368 : vector<1x16x32xbf16> to vector<1x16x32xbf16>
    %372 = vector.broadcast %371 : vector<1x16x32xbf16> to vector<8x16x32xbf16>
    %373 = arith.select %370, %372, %366 : vector<8x16x32xi1>, vector<8x16x32xbf16>
    %374 = vector.shape_cast %48 : vector<8x1x1xi1> to vector<8x1x1xi1>
    %375 = vector.broadcast %374 : vector<8x1x1xi1> to vector<8x16x32xi1>
    %376 = vector.shape_cast %367 : vector<1x16x32xbf16> to vector<1x16x32xbf16>
    %377 = vector.broadcast %376 : vector<1x16x32xbf16> to vector<8x16x32xbf16>
    %378 = arith.select %375, %377, %373 : vector<8x16x32xi1>, vector<8x16x32xbf16>
    %379 = vector.shape_cast %378 : vector<8x16x32xbf16> to vector<128x32xbf16>
    %380 = arith.addf %360, %365 : vector<128x32xf32>
    %381 = arith.extf %379 : vector<128x32xbf16> to vector<128x32xf32>
    %382 = arith.mulf %365, %381 : vector<128x32xf32>
    %383 = arith.addf %363, %382 : vector<128x32xf32>
    %384 = arith.subf %186, %242 : vector<128x32xf32>
    %385 = math.exp %384 : vector<128x32xf32>
    %386 = vector.extract_strided_slice %281 {offsets = [1, 0, 0], sizes = [8, 16, 32], strides = [1, 1, 1]} : vector<10x16x32xbf16> to vector<8x16x32xbf16>
    %387 = vector.extract_strided_slice %281 {offsets = [2, 0, 0], sizes = [1, 16, 32], strides = [1, 1, 1]} : vector<10x16x32xbf16> to vector<1x16x32xbf16>
    %388 = vector.extract_strided_slice %281 {offsets = [7, 0, 0], sizes = [1, 16, 32], strides = [1, 1, 1]} : vector<10x16x32xbf16> to vector<1x16x32xbf16>
    %389 = vector.shape_cast %50 : vector<8x1x1xi1> to vector<8x1x1xi1>
    %390 = vector.broadcast %389 : vector<8x1x1xi1> to vector<8x16x32xi1>
    %391 = vector.shape_cast %388 : vector<1x16x32xbf16> to vector<1x16x32xbf16>
    %392 = vector.broadcast %391 : vector<1x16x32xbf16> to vector<8x16x32xbf16>
    %393 = arith.select %390, %392, %386 : vector<8x16x32xi1>, vector<8x16x32xbf16>
    %394 = vector.shape_cast %48 : vector<8x1x1xi1> to vector<8x1x1xi1>
    %395 = vector.broadcast %394 : vector<8x1x1xi1> to vector<8x16x32xi1>
    %396 = vector.shape_cast %387 : vector<1x16x32xbf16> to vector<1x16x32xbf16>
    %397 = vector.broadcast %396 : vector<1x16x32xbf16> to vector<8x16x32xbf16>
    %398 = arith.select %395, %397, %393 : vector<8x16x32xi1>, vector<8x16x32xbf16>
    %399 = vector.shape_cast %398 : vector<8x16x32xbf16> to vector<128x32xbf16>
    %400 = arith.addf %380, %385 : vector<128x32xf32>
    %401 = arith.extf %399 : vector<128x32xbf16> to vector<128x32xf32>
    %402 = arith.mulf %385, %401 : vector<128x32xf32>
    %403 = arith.addf %383, %402 : vector<128x32xf32>
    %404 = arith.subf %202, %242 : vector<128x32xf32>
    %405 = math.exp %404 : vector<128x32xf32>
    %406 = vector.extract_strided_slice %255 {offsets = [2, 0, 0], sizes = [8, 16, 32], strides = [1, 1, 1]} : vector<10x16x32xbf16> to vector<8x16x32xbf16>
    %407 = vector.extract_strided_slice %255 {offsets = [3, 0, 0], sizes = [1, 16, 32], strides = [1, 1, 1]} : vector<10x16x32xbf16> to vector<1x16x32xbf16>
    %408 = vector.extract_strided_slice %255 {offsets = [8, 0, 0], sizes = [1, 16, 32], strides = [1, 1, 1]} : vector<10x16x32xbf16> to vector<1x16x32xbf16>
    %409 = vector.shape_cast %50 : vector<8x1x1xi1> to vector<8x1x1xi1>
    %410 = vector.broadcast %409 : vector<8x1x1xi1> to vector<8x16x32xi1>
    %411 = vector.shape_cast %408 : vector<1x16x32xbf16> to vector<1x16x32xbf16>
    %412 = vector.broadcast %411 : vector<1x16x32xbf16> to vector<8x16x32xbf16>
    %413 = arith.select %410, %412, %406 : vector<8x16x32xi1>, vector<8x16x32xbf16>
    %414 = vector.shape_cast %48 : vector<8x1x1xi1> to vector<8x1x1xi1>
    %415 = vector.broadcast %414 : vector<8x1x1xi1> to vector<8x16x32xi1>
    %416 = vector.shape_cast %407 : vector<1x16x32xbf16> to vector<1x16x32xbf16>
    %417 = vector.broadcast %416 : vector<1x16x32xbf16> to vector<8x16x32xbf16>
    %418 = arith.select %415, %417, %413 : vector<8x16x32xi1>, vector<8x16x32xbf16>
    %419 = vector.shape_cast %418 : vector<8x16x32xbf16> to vector<128x32xbf16>
    %420 = arith.addf %400, %405 : vector<128x32xf32>
    %421 = arith.extf %419 : vector<128x32xbf16> to vector<128x32xf32>
    %422 = arith.mulf %405, %421 : vector<128x32xf32>
    %423 = arith.addf %403, %422 : vector<128x32xf32>
    %424 = arith.subf %218, %242 : vector<128x32xf32>
    %425 = math.exp %424 : vector<128x32xf32>
    %426 = vector.extract_strided_slice %268 {offsets = [2, 0, 0], sizes = [8, 16, 32], strides = [1, 1, 1]} : vector<10x16x32xbf16> to vector<8x16x32xbf16>
    %427 = vector.extract_strided_slice %268 {offsets = [3, 0, 0], sizes = [1, 16, 32], strides = [1, 1, 1]} : vector<10x16x32xbf16> to vector<1x16x32xbf16>
    %428 = vector.extract_strided_slice %268 {offsets = [8, 0, 0], sizes = [1, 16, 32], strides = [1, 1, 1]} : vector<10x16x32xbf16> to vector<1x16x32xbf16>
    %429 = vector.shape_cast %50 : vector<8x1x1xi1> to vector<8x1x1xi1>
    %430 = vector.broadcast %429 : vector<8x1x1xi1> to vector<8x16x32xi1>
    %431 = vector.shape_cast %428 : vector<1x16x32xbf16> to vector<1x16x32xbf16>
    %432 = vector.broadcast %431 : vector<1x16x32xbf16> to vector<8x16x32xbf16>
    %433 = arith.select %430, %432, %426 : vector<8x16x32xi1>, vector<8x16x32xbf16>
    %434 = vector.shape_cast %48 : vector<8x1x1xi1> to vector<8x1x1xi1>
    %435 = vector.broadcast %434 : vector<8x1x1xi1> to vector<8x16x32xi1>
    %436 = vector.shape_cast %427 : vector<1x16x32xbf16> to vector<1x16x32xbf16>
    %437 = vector.broadcast %436 : vector<1x16x32xbf16> to vector<8x16x32xbf16>
    %438 = arith.select %435, %437, %433 : vector<8x16x32xi1>, vector<8x16x32xbf16>
    %439 = vector.shape_cast %438 : vector<8x16x32xbf16> to vector<128x32xbf16>
    %440 = arith.addf %420, %425 : vector<128x32xf32>
    %441 = arith.extf %439 : vector<128x32xbf16> to vector<128x32xf32>
    %442 = arith.mulf %425, %441 : vector<128x32xf32>
    %443 = arith.addf %423, %442 : vector<128x32xf32>
    %444 = arith.subf %234, %242 : vector<128x32xf32>
    %445 = math.exp %444 : vector<128x32xf32>
    %446 = vector.extract_strided_slice %281 {offsets = [2, 0, 0], sizes = [8, 16, 32], strides = [1, 1, 1]} : vector<10x16x32xbf16> to vector<8x16x32xbf16>
    %447 = vector.extract_strided_slice %281 {offsets = [3, 0, 0], sizes = [1, 16, 32], strides = [1, 1, 1]} : vector<10x16x32xbf16> to vector<1x16x32xbf16>
    %448 = vector.extract_strided_slice %281 {offsets = [8, 0, 0], sizes = [1, 16, 32], strides = [1, 1, 1]} : vector<10x16x32xbf16> to vector<1x16x32xbf16>
    %449 = vector.shape_cast %50 : vector<8x1x1xi1> to vector<8x1x1xi1>
    %450 = vector.broadcast %449 : vector<8x1x1xi1> to vector<8x16x32xi1>
    %451 = vector.shape_cast %448 : vector<1x16x32xbf16> to vector<1x16x32xbf16>
    %452 = vector.broadcast %451 : vector<1x16x32xbf16> to vector<8x16x32xbf16>
    %453 = arith.select %450, %452, %446 : vector<8x16x32xi1>, vector<8x16x32xbf16>
    %454 = vector.shape_cast %48 : vector<8x1x1xi1> to vector<8x1x1xi1>
    %455 = vector.broadcast %454 : vector<8x1x1xi1> to vector<8x16x32xi1>
    %456 = vector.shape_cast %447 : vector<1x16x32xbf16> to vector<1x16x32xbf16>
    %457 = vector.broadcast %456 : vector<1x16x32xbf16> to vector<8x16x32xbf16>
    %458 = arith.select %455, %457, %453 : vector<8x16x32xi1>, vector<8x16x32xbf16>
    %459 = vector.shape_cast %458 : vector<8x16x32xbf16> to vector<128x32xbf16>
    %460 = arith.addf %440, %445 : vector<128x32xf32>
    %461 = arith.extf %459 : vector<128x32xbf16> to vector<128x32xf32>
    %462 = arith.mulf %445, %461 : vector<128x32xf32>
    %463 = arith.addf %443, %462 : vector<128x32xf32>
    %464 = tpu.reciprocal %460 {approx = true} : vector<128x32xf32> -> vector<128x32xf32>
    %465 = arith.mulf %463, %464 : vector<128x32xf32>
    %466 = arith.truncf %465 : vector<128x32xf32> to vector<128x32xbf16>
    %c0_52 = arith.constant 0 : index
    %c0_53 = arith.constant 0 : index
    %467 = vector.load %arg14[%c0_52, %c0_53] : memref<32x32xbf16, #tpu.memory_space<vmem>>, vector<32x32xbf16>
    %cst_54 = arith.constant dense<0.000000e+00> : vector<128x32xf32>
    %468 = tpu.matmul %466, %467, %cst_54 {dimension_numbers = #tpu.dot_dimension_numbers<[1], [0], [0], [1], [0, 0, 1, 1], [], []>} : vector<128x32xbf16>, vector<32x32xbf16>, vector<128x32xf32> -> vector<128x32xf32>
    %c0_55 = arith.constant 0 : index
    %c0_56 = arith.constant 0 : index
    %469 = vector.load %arg15[%c0_55, %c0_56] : memref<1x32xf32, #tpu.memory_space<vmem>>, vector<1x32xf32>
    %470 = vector.broadcast %469 : vector<1x32xf32> to vector<128x32xf32>
    %471 = arith.addf %468, %470 : vector<128x32xf32>
    %472 = vector.shape_cast %471 : vector<128x32xf32> to vector<8x16x32xf32>
    %c0_57 = arith.constant 0 : index
    %c0_58 = arith.constant 0 : index
    %c0_59 = arith.constant 0 : index
    %c0_60 = arith.constant 0 : index
    %473 = vector.load %arg17[%c0_57, %c0_58, %c0_59, %c0_60] : memref<1x8x16x32xf32, #tpu.memory_space<vmem>>, vector<1x8x16x32xf32>
    %474 = vector.shape_cast %473 : vector<1x8x16x32xf32> to vector<8x16x32xf32>
    %475 = vector.shape_cast %472 : vector<8x16x32xf32> to vector<1x8x16x32xf32>
    tpu.vector_store %arg17[%c0_57, %c0_58, %c0_59, %c0_60], %475 {strides = array<i32>} : memref<1x8x16x32xf32, #tpu.memory_space<vmem>>, vector<1x8x16x32xf32>,
    return
  }
  func.func @transform_0(%arg0: i32, %arg1: i32) -> (i32, i32, i32, i32) {
    %c0_i32 = arith.constant 0 : i32
    %c0_i32_0 = arith.constant 0 : i32
    %c0_i32_1 = arith.constant 0 : i32
    return %arg0, %arg1, %c0_i32, %c0_i32_0 : i32, i32, i32, i32
  }
  func.func @transform_1(%arg0: i32, %arg1: i32) -> (i32, i32, i32, i32) {
    %c8_i32 = arith.constant 8 : i32
    %0 = arith.muli %arg1, %c8_i32 : i32
    %c1_i32 = arith.constant 1 : i32
    %1 = arith.subi %0, %c1_i32 : i32
    %c0_i32 = arith.constant 0 : i32
    %2 = arith.maxsi %1, %c0_i32 : i32
    %c0_i32_0 = arith.constant 0 : i32
    %c0_i32_1 = arith.constant 0 : i32
    %c0_i32_2 = arith.constant 0 : i32
    return %arg0, %2, %c0_i32_0, %c0_i32_1 : i32, i32, i32, i32
  }
  func.func @transform_2(%arg0: i32, %arg1: i32) -> (i32, i32, i32, i32) {
    %c1_i32 = arith.constant 1 : i32
    %0 = arith.addi %arg1, %c1_i32 : i32
    %c8_i32 = arith.constant 8 : i32
    %1 = arith.muli %0, %c8_i32 : i32
    %c15_i32 = arith.constant 15 : i32
    %2 = arith.minsi %1, %c15_i32 : i32
    %c0_i32 = arith.constant 0 : i32
    %c0_i32_0 = arith.constant 0 : i32
    %c0_i32_1 = arith.constant 0 : i32
    return %arg0, %2, %c0_i32, %c0_i32_0 : i32, i32, i32, i32
  }
  func.func @transform_3(%arg0: i32, %arg1: i32) -> (i32, i32, i32, i32) {
    %c0_i32 = arith.constant 0 : i32
    %c0_i32_0 = arith.constant 0 : i32
    %c0_i32_1 = arith.constant 0 : i32
    return %arg0, %arg1, %c0_i32, %c0_i32_0 : i32, i32, i32, i32
  }
  func.func @transform_4(%arg0: i32, %arg1: i32) -> (i32, i32, i32, i32) {
    %c8_i32 = arith.constant 8 : i32
    %0 = arith.muli %arg1, %c8_i32 : i32
    %c1_i32 = arith.constant 1 : i32
    %1 = arith.subi %0, %c1_i32 : i32
    %c0_i32 = arith.constant 0 : i32
    %2 = arith.maxsi %1, %c0_i32 : i32
    %c0_i32_0 = arith.constant 0 : i32
    %c0_i32_1 = arith.constant 0 : i32
    %c0_i32_2 = arith.constant 0 : i32
    return %arg0, %2, %c0_i32_0, %c0_i32_1 : i32, i32, i32, i32
  }
  func.func @transform_5(%arg0: i32, %arg1: i32) -> (i32, i32, i32, i32) {
    %c1_i32 = arith.constant 1 : i32
    %0 = arith.addi %arg1, %c1_i32 : i32
    %c8_i32 = arith.constant 8 : i32
    %1 = arith.muli %0, %c8_i32 : i32
    %c15_i32 = arith.constant 15 : i32
    %2 = arith.minsi %1, %c15_i32 : i32
    %c0_i32 = arith.constant 0 : i32
    %c0_i32_0 = arith.constant 0 : i32
    %c0_i32_1 = arith.constant 0 : i32
    return %arg0, %2, %c0_i32, %c0_i32_0 : i32, i32, i32, i32
  }
  func.func @transform_6(%arg0: i32, %arg1: i32) -> (i32, i32) {
    %c0_i32 = arith.constant 0 : i32
    %c0_i32_0 = arith.constant 0 : i32
    %c0_i32_1 = arith.constant 0 : i32
    return %c0_i32, %c0_i32_0 : i32, i32
  }
  func.func @transform_7(%arg0: i32, %arg1: i32) -> (i32, i32) {
    %c0_i32 = arith.constant 0 : i32
    %c0_i32_0 = arith.constant 0 : i32
    %c0_i32_1 = arith.constant 0 : i32
    return %c0_i32, %c0_i32_0 : i32, i32
  }
  func.func @transform_8(%arg0: i32, %arg1: i32) -> (i32, i32) {
    %c0_i32 = arith.constant 0 : i32
    %c0_i32_0 = arith.constant 0 : i32
    %c0_i32_1 = arith.constant 0 : i32
    return %c0_i32, %c0_i32_0 : i32, i32
  }
  func.func @transform_9(%arg0: i32, %arg1: i32) -> (i32, i32) {
    %c0_i32 = arith.constant 0 : i32
    %c0_i32_0 = arith.constant 0 : i32
    %c0_i32_1 = arith.constant 0 : i32
    return %c0_i32, %c0_i32_0 : i32, i32
  }
  func.func @transform_10(%arg0: i32, %arg1: i32) -> (i32, i32) {
    %c0_i32 = arith.constant 0 : i32
    %c0_i32_0 = arith.constant 0 : i32
    %c0_i32_1 = arith.constant 0 : i32
    return %c0_i32, %c0_i32_0 : i32, i32
  }
  func.func @transform_11(%arg0: i32, %arg1: i32) -> (i32, i32) {
    %c0_i32 = arith.constant 0 : i32
    %c0_i32_0 = arith.constant 0 : i32
    %c0_i32_1 = arith.constant 0 : i32
    return %c0_i32, %c0_i32_0 : i32, i32
  }
  func.func @transform_12(%arg0: i32, %arg1: i32) -> (i32, i32) {
    %c0_i32 = arith.constant 0 : i32
    %c0_i32_0 = arith.constant 0 : i32
    %c0_i32_1 = arith.constant 0 : i32
    return %c0_i32, %c0_i32_0 : i32, i32
  }
  func.func @transform_13(%arg0: i32, %arg1: i32) -> (i32, i32) {
    %c0_i32 = arith.constant 0 : i32
    %c0_i32_0 = arith.constant 0 : i32
    %c0_i32_1 = arith.constant 0 : i32
    return %c0_i32, %c0_i32_0 : i32, i32
  }
  func.func @transform_14(%arg0: i32, %arg1: i32) -> (i32, i32) {
    %c0_i32 = arith.constant 0 : i32
    %c0_i32_0 = arith.constant 0 : i32
    %c0_i32_1 = arith.constant 0 : i32
    return %c0_i32, %c0_i32_0 : i32, i32
  }
  func.func @transform_15(%arg0: i32, %arg1: i32) -> (i32, i32, i32, i32) {
    %c0_i32 = arith.constant 0 : i32
    %c0_i32_0 = arith.constant 0 : i32
    %c0_i32_1 = arith.constant 0 : i32
    return %arg0, %arg1, %c0_i32, %c0_i32_0 : i32, i32, i32, i32
  }
}

</mosaic_0001>

<bundles_post_ra>
// kernel: tpu_custom_call.1
= control target key start
LH: loop header
LB: loop body
LE: loop exit
PB: predicated region body
PF: predicated region fallthrough
CT: control target
= control target key end

     0   :  { %s14641_s0 = inlined_call_operand.vmem [shape: bf16[2,16,18,32], index: 0, kind: input, shape index: {}]   ;;  %s14642_s1 = inlined_call_operand.vmem [shape: bf16[2,16,18,32], index: 1, kind: input, shape index: {}]   ;;  %s14643_s2 = inlined_call_operand.vmem [shape: bf16[2,16,18,32], index: 2, kind: input, shape index: {}]   ;;  %s14644_s3 = inlined_call_operand.vmem [shape: bf16[2,16,18,32], index: 3, kind: input, shape index: {}]   ;;  %s14645_s4 = inlined_call_operand.vmem [shape: bf16[2,16,18,32], index: 4, kind: input, shape index: {}]   ;;  %s14646_s5 = inlined_call_operand.vmem [shape: bf16[2,16,18,32], index: 5, kind: input, shape index: {}]   ;;  %s14647_s6 = inlined_call_operand.vmem [shape: bf16[32,32], index: 6, kind: input, shape index: {}]   ;;  %s14648_s7 = inlined_call_operand.vmem [shape: f32[1,32], index: 7, kind: input, shape index: {}]   ;;  %s14649_s8 = inlined_call_operand.vmem [shape: bf16[32,32], index: 8, kind: input, shape index: {}]   ;;  %s14650_s9 = inlined_call_operand.vmem [shape: f32[1,32], index: 9, kind: input, shape index: {}]   ;;  %s14651_s10 = inlined_call_operand.vmem [shape: bf16[32,32], index: 10, kind: input, shape index: {}]   ;;  %s14652_s11 = inlined_call_operand.vmem [shape: f32[1,32], index: 11, kind: input, shape index: {}]   ;;  %s14653_s12 = inlined_call_operand.vmem [shape: bf16[32,32], index: 12, kind: input, shape index: {}]   ;;  %s14654_s13 = inlined_call_operand.vmem [shape: f32[1,32], index: 13, kind: input, shape index: {}]   ;;  %s14655_s14 = inlined_call_operand.vmem [shape: bf16[32,32], index: 14, kind: input, shape index: {}]   ;;  %s14656_s15 = inlined_call_operand.hbm [shape: f32[2,16,16,32], index: 15, kind: output, shape index: {}]  }
   0x1   :  { %15396 = sst [smem:[#allocation233_spill]] %s14651_s10 }
   0x2   :  { %15397 = sst [smem:[#allocation234_spill]] %s14654_s13 }
   0x3   :  { %15398 = sst [smem:[#allocation235_spill]] %s14656_s15 }
   0x4   :  { %20 = vsyncpa [#allocation3], 0 }
   0x5   :  { %22 = vsyncpa [#allocation3 + $0x1], 0  ;;  %s8384_s18 = smov 0   ;;  %s8386_s19 = smov 0  }
   0x6   :  { %s8388_s20 = smov 0   ;;  %s8390_s21 = smov 0  }
   0x7   :  { %s8392_s22 = smov 0   ;;  %s8394_s23 = smov 0  }
   0x8   :  { %s8396_s24 = smov 0   ;;  %s8398_s25 = smov 0  }
   0x9 LB: > { %15399 = sst [smem:[#allocation5_spill]] %s8270_s18  ;;  %s7553_s26 = sadd.s32 4294967295, %s8298_s25   ;;  %s8298_s25 = sphi %s8398_s25, %s28_s25   ;;  %s8294_s24 = sphi %s8396_s24, %s17053_s24   ;;  %s8290_s23 = sphi %s8394_s23, %s17052_s23   ;;  %s8286_s22 = sphi %s8392_s22, %s17056_s22   ;;  %s8282_s21 = sphi %s8390_s21, %s17050_s21   ;;  %s8278_s20 = sphi %s8388_s20, %s17049_s20   ;;  %s8274_s19 = sphi %s8386_s19, %s17055_s19   ;;  %s8270_s18 = sphi %s8384_s18, %s17054_s18  }
   0xa   : > { %15400 = sst [smem:[#allocation6_spill]] %s8278_s20  ;;  %s7554_s27 = sadd.s32 4294967294, %s8298_s25  }
   0xb   : > { %15401 = sst [smem:[#allocation7_spill]] %s8290_s23  ;;  %s37_s28 = sadd.s32 1, %s8290_s23 }
   0xc   : > { %15402 = sst [smem:[#allocation8_spill]] %s8294_s24  ;;  %p38_p0 = scmp.ge.s32.totalorder %s37_s28, 2 }
   0xd   : > { %s40_s29 = sadd.s32 1, %s8294_s24  ;;  %p448_p1 = scmp.ne.s32.totalorder %s8278_s20, %s8274_s19 }
   0xe   : > { %p449_p2 = scmp.eq.s32.totalorder %s7553_s26, 3  ;;  %s17058_s28 = smov (%p38_p0, %s37_s28), 0 }
   0xf   : > { %15403 = sst [smem:[#allocation9_spill]] %s17058_s28  ;;  %s17060_s29 = smov (!%p38_p0, %s40_s29), %s8294_s24 }
  0x10   : > { %s434_s30 = ssub.s32 %s8290_s23, %s17058_s28  ;;  %p8435_p3 = por %p449_p2, %p448_p1 }
  0x11   : > { %p42_p4 = scmp.ge.s32.totalorder %s17060_s29, 2  ;;  %p454_p5 = scmp.ne.s32.totalorder %s8274_s19, %s8270_s18 }
  0x12   : > { %p455_p6 = scmp.eq.s32.totalorder %s7554_s27, 3  ;;  %p7569_p7 = scmp.ge.s32.totalorder %s8298_s25, 1 }
  0x13   : > { %s17062_s29 = smov (%p42_p4, %s17060_s29), 0  ;;  %p608_p9 = scmp.lt.s32.totalorder %s8298_s25, 5 }
  0x14   : > { %15405 = sst [smem:[#allocation10_spill]] %s17062_s29  ;;  %p8444_p8 = por %p455_p6, %p454_p5 }
  0x15   : > { %s433_s26 = ssub.s32 %s8294_s24, %s17062_s29  ;;  %s438_s15 = sadd.s32 1, %s8278_s20 }
  0x16   : > { %s435_s13 = sor.u32 %s434_s30, %s433_s26  ;;  %p609_p10 = pnand %p7569_p7, %p608_p9 }
  0x17   : > { %p436_p11 = scmp.eq.s32.totalorder %s435_s13, 0 }
  0x18   : > { %612 = sbr.rel (%p609_p10) target bundleno = 2039 (0x7f7), region = 80 }
  0x19   : > { %s8453_s28 = scalar_select %p436_p11, %s8278_s20, %s438_s15  }
  0x1b   : > { %15407 = sst [smem:[#allocation11_spill]] %s8453_s28 }
  0x1d   : > { %s15408_s10 = sld [smem:[#allocation233_spill]]  ;;  %s8459_s27 = sshll.u32 %s8282_s21, 3  ;;  %vm1267_vm0 = vcmask 1040384   ;;  %vm1271_vm1 = vcmask 1041409   ;;  %vm1275_vm2 = vcmask 1042434   ;;  %vm1279_vm3 = vcmask 1043459  }
  0x1e   : > { %p724_p12 = scmp.lt.s32.totalorder %s8286_s22, 1  ;;  %s7574_s29 = sadd.s32 4294967295, %s8459_s27  ;;  %vm1117_vm4 = vcmask 261120   ;;  %vm878_vm5 = vsmask.f32 3328  ;;  %vm8300_vm9 = vmmov 0  }
  0x1f   : > { %p736_p13 = scmp.gt.s32.totalorder %s7574_s29, 0  ;;  %p7575_p0 = scmp.lt.s32.totalorder %s7574_s29, 15  ;;  %vm879_vm6 = vsmask.f32 7440  ;;  %vm3162_vm10 = vmpackc.low %vm8300_vm9, %vm8300_vm9 }
  0x20   : > { %s725_s15 = scalar_select %p724_p12, %s8286_s22, 1  ;;  %vm8853_vm7 = vmor %vm878_vm5, %vm879_vm6 }
  0x21   : > { %s17064_s29 = smov (!%p736_p13, %s7574_s29), 0  ;;  %p726_p1 = scmp.lt.s32.totalorder %s8459_s27, 15 }
  0x22   : > { %s8467_s18 = smul.u32 48, %s725_s15  ;;  %s17066_s29 = smov (!%p7575_p0, %s17064_s29), 15 }
  0x23   : > { %v7786_v0 = vld [vmem:[%s15408_s10 + $0x8] sm:$0xff]  ;;  %v7785_v1 = vld [vmem:[%s15408_s10] sm:$0xff]  ;;  %s7796_s23 = smul.u32 3, %s17066_s29 }
  0x24   : > { %2686 = vmatpush.bf16.msra.mxu2 %v7786_v0  ;;  %s727_s24 = scalar_select %p726_p1, %s8459_s27, 15 }
  0x25   : > { %s8471_s26 = sadd.s32 %s7796_s23, %s8467_s18 }
  0x26   : > { %s7580_s28 = sshll.u32 %s8471_s26, 2  ;;  %s7794_s15 = smul.u32 3, %s727_s24 }
  0x27   : > { %s8480_s10 = scalar_lea.vmem %s14642_s1, %s7580_s28 }
  0x28   : > { %2687 = vmatpush.bf16.msra.mxu2 %v7785_v1  ;;  %v842_v2 = vld [vmem:[%s8480_s10] sm:$0xf]  ;;  %s8484_s20 = sadd.s32 %s8467_s18, %s7794_s15  ;;  %v843_v3 = vld [vmem:[%s8480_s10 + $0x4] sm:$0xf]  ;;  %v844_v21 = vld [vmem:[%s8480_s10 + $0x8] sm:$0x1] }
  0x29   : > { %v1237_v4 = vrot.slane %v842_v2, 3  ;;  %s7572_s29 = sshll.u32 %s8484_s20, 2  ;;  %v1238_v5 = vrot.slane %v843_v3, 3  ;;  %v1239_v24 = vrot.slane %v844_v21, 3  ;;  %s7776_s10 = sadd.s32 8, %s8459_s27 }
  0x2a   : > { %s8497_s30 = scalar_lea.vmem %s14641_s0, %s7572_s29  ;;  %p8677_p2 = scmp.lt.s32.totalorder %s7776_s10, 15 }
  0x2b   : > { %v1270_v6 = vsel %vm1267_vm0, %v842_v2, %v1237_v4  ;;  %v1272_v7 = vsel %vm1271_vm1, %v842_v2, %v1237_v4  ;;  %v1276_v8 = vsel %vm1275_vm2, %v842_v2, %v1237_v4  ;;  %v1280_v9 = vsel %vm1279_vm3, %v842_v2, %v1237_v4  ;;  %v8504_v19 = vld [vmem:[%s8497_s30] sm:$0xf]  ;;  %v8509_v23 = vld [vmem:[%s8497_s30 + $0x4] sm:$0xf]  ;;  %v8530_v40 = vld [vmem:[%s8497_s30 + $0xc] sm:$0xf] }
  0x2c   : > { %v1274_v10 = vrot.slane %v1272_v7, 1  ;;  %v1278_v11 = vrot.slane %v1276_v8, 2  ;;  %v1282_v12 = vrot.slane %v1280_v9, 3  ;;  %v1285_v13 = vsel %vm1267_vm0, %v843_v3, %v1238_v5  ;;  %1525 = vst [vmem:[#allocation1] ss:$9 sm:$0xff] %v1270_v6  ;;  %s17068_s10 = smov (!%p8677_p2, %s7776_s10), 15 }
  0x2d   : > { %v1286_v14 = vsel %vm1271_vm1, %v843_v3, %v1238_v5  ;;  %v1289_v15 = vsel %vm1275_vm2, %v843_v3, %v1238_v5  ;;  %v1292_v16 = vsel %vm1279_vm3, %v843_v3, %v1238_v5  ;;  %1536 = vst [vmem:[#allocation1 + $0x4] ss:$9 sm:$0xff] %v1285_v13  ;;  %v1240_v22 = vrot.slane %v8504_v19, 3  ;;  %v8533_v41 = vld [vmem:[%s8497_s30 + $0x8] sm:$0x1]  ;;  %s17070_s10 = smov (!%p8677_p2, %s17068_s10), 15 }
  0x2e   : > { %v1288_v17 = vrot.slane %v1286_v14, 1  ;;  %v1291_v18 = vrot.slane %v1289_v15, 2  ;;  %1528 = vst [vmem:[#allocation1 + $0x1] ss:$9 sm:$0xff] %v1274_v10  ;;  %v1294_v20 = vrot.slane %v1292_v16, 3  ;;  %v1241_v25 = vrot.slane %v8509_v23, 3 }
  0x2f   : > { %1531 = vst [vmem:[#allocation1 + $0x2] ss:$9 sm:$0xff] %v1278_v11  ;;  %v1300_v26 = vsel %vm1271_vm1, %v8504_v19, %v1240_v22  ;;  %v1303_v27 = vsel %vm1275_vm2, %v8504_v19, %v1240_v22  ;;  %v1297_v28 = vsel %vm1267_vm0, %v844_v21, %v1239_v24  ;;  %v1306_v29 = vsel %vm1279_vm3, %v8504_v19, %v1240_v22  ;;  %v8537_v43 = vld [vmem:[%s8497_s30 + $0x10] sm:$0xf]  ;;  %v824_v60 = vld [vmem:[%s8497_s30 + $0x18] sm:$0xf] }
  0x30   : > { %1534 = vst [vmem:[#allocation1 + $0x3] ss:$9 sm:$0xff] %v1282_v12  ;;  %v1299_v30 = vsel %vm1267_vm0, %v8504_v19, %v1240_v22  ;;  %v1302_v31 = vrot.slane %v1300_v26, 1  ;;  %v1305_v32 = vrot.slane %v1303_v27, 2  ;;  %v1311_v33 = vsel %vm1271_vm1, %v8509_v23, %v1241_v25  ;;  %v8561_v61 = vld [vmem:[%s8497_s30 + $0x14] sm:$0x1] }
  0x31   : > { %1539 = vst [vmem:[#allocation1 + $0x5] ss:$9 sm:$0xff] %v1288_v17  ;;  %v1308_v35 = vrot.slane %v1306_v29, 3  ;;  %v1314_v36 = vsel %vm1275_vm2, %v8509_v23, %v1241_v25  ;;  %v1310_v37 = vsel %vm1267_vm0, %v8509_v23, %v1241_v25  ;;  %v1313_v38 = vrot.slane %v1311_v33, 1  ;;  %v825_v3 = vld [vmem:[%s8497_s30 + $0x1c] sm:$0xf] }
  0x32   : > { %1542 = vst [vmem:[#allocation1 + $0x6] ss:$9 sm:$0xff] %v1291_v18  ;;  %v1316_v39 = vrot.slane %v1314_v36, 2  ;;  %v1243_v42 = vrot.slane %v8530_v40, 3  ;;  %v1317_v44 = vsel %vm1279_vm3, %v8509_v23, %v1241_v25  ;;  %v1242_v45 = vrot.slane %v8533_v41, 3  ;;  %s7797_s15 = smul.u32 3, %s17070_s10  ;;  %s8788_s10 = scalar_lea.vmem %s14644_s3, %s7572_s29 }
  0x33   : > { %1545 = vst [vmem:[#allocation1 + $0x7] ss:$9 sm:$0xff] %v1294_v20  ;;  %v1244_v46 = vrot.slane %v8537_v43, 3  ;;  %v1319_v47 = vrot.slane %v1317_v44, 3  ;;  %v1246_v62 = vrot.slane %v824_v60, 3  ;;  %v1245_v1 = vrot.slane %v8561_v61, 3 }
  0x34   : > { %v1324_v48 = vsel %vm1271_vm1, %v8530_v40, %v1243_v42  ;;  %v1327_v49 = vsel %vm1275_vm2, %v8530_v40, %v1243_v42  ;;  %v1321_v50 = vsel %vm1267_vm0, %v8533_v41, %v1242_v45  ;;  %v1330_v51 = vsel %vm1279_vm3, %v8530_v40, %v1243_v42  ;;  %v827_v16 = vld [vmem:[%s8497_s30 + $0x24] sm:$0xf]  ;;  %v8580_v17 = vld [vmem:[%s8497_s30 + $0x20] sm:$0x1]  ;;  %v828_v36 = vld [vmem:[%s8497_s30 + $0x28] sm:$0xf]  ;;  %s761_s24 = sadd.s32 %s7797_s15, %s8467_s18  ;;  %s8766_s18 = scalar_lea.vmem %s14645_s4, %s7580_s28 }
  0x35   : > { %v1323_v52 = vsel %vm1267_vm0, %v8530_v40, %v1243_v42  ;;  %v1326_v53 = vrot.slane %v1324_v48, 1  ;;  %v1329_v55 = vrot.slane %v1327_v49, 2  ;;  %v1335_v56 = vsel %vm1271_vm1, %v8537_v43, %v1244_v46  ;;  %v8596_v42 = vld [vmem:[%s8497_s30 + $0x30] sm:$0xf]  ;;  %v829_v44 = vld [vmem:[%s8497_s30 + $0x2c] sm:$0x1] }
  0x36   : > { %v1332_v57 = vrot.slane %v1330_v51, 3  ;;  %v1334_v58 = vsel %vm1267_vm0, %v8537_v43, %v1244_v46  ;;  %v1337_v59 = vrot.slane %v1335_v56, 1  ;;  %v1338_v63 = vsel %vm1275_vm2, %v8537_v43, %v1244_v46  ;;  %s8723_s23 = sshll.u32 %s761_s24, 2  ;;  %s720_s28 = sand.u32 1, %s8274_s19  }
  0x37   : > { %v1341_v0 = vsel %vm1279_vm3, %v8537_v43, %v1244_v46  ;;  %v1340_v2 = vrot.slane %v1338_v63, 2  ;;  %v1348_v5 = vsel %vm1271_vm1, %v824_v60, %v1246_v62  ;;  %v1351_v6 = vsel %vm1275_vm2, %v824_v60, %v1246_v62  ;;  %s8737_s13 = scalar_lea.vmem %s14643_s2, %s8723_s23  ;;  %s14481_s26 = sshll.u32 %s720_s28, 7 }
  0x38   : > { %v1343_v4 = vrot.slane %v1341_v0, 3  ;;  %v1345_v7 = vsel %vm1267_vm0, %v8561_v61, %v1245_v1  ;;  %v1354_v8 = vsel %vm1279_vm3, %v824_v60, %v1246_v62  ;;  %v1247_v10 = vrot.slane %v825_v3, 3  ;;  %v8618_v1 = vld [vmem:[%s8497_s30 + $0x3c] sm:$0xf] }
  0x39   : > { %v1347_v11 = vsel %vm1267_vm0, %v824_v60, %v1246_v62  ;;  %v1350_v12 = vrot.slane %v1348_v5, 1  ;;  %v1353_v13 = vrot.slane %v1351_v6, 2  ;;  %v1356_v14 = vrot.slane %v1354_v8, 3  ;;  %v8614_v62 = vld [vmem:[%s8497_s30 + $0x34] sm:$0xf] }
  0x3a   : > { %v8523_v34 = vld [vmem:[#allocation1] sm:$0xff]  ;;  %v1358_v15 = vsel %vm1267_vm0, %v825_v3, %v1247_v10  ;;  %v1359_v18 = vsel %vm1271_vm1, %v825_v3, %v1247_v10  ;;  %v1249_v20 = vrot.slane %v827_v16, 3  ;;  %v1362_v21 = vsel %vm1275_vm2, %v825_v3, %v1247_v10 }
  0x3b   : > { %1547 = vst [vmem:[#allocation1] ss:$9 sm:$0xff] %v1297_v28  ;;  %v1365_v22 = vsel %vm1279_vm3, %v825_v3, %v1247_v10  ;;  %v1248_v24 = vrot.slane %v8580_v17, 3  ;;  %v1361_v25 = vrot.slane %v1359_v18, 1  ;;  %v1364_v26 = vrot.slane %v1362_v21, 2 }
  0x3c   : > { %1548 = vst [vmem:[#allocation1 + $0x1] ss:$9 sm:$0xff] %v1299_v30  ;;  %v1367_v27 = vrot.slane %v1365_v22, 3  ;;  %v1372_v28 = vsel %vm1271_vm1, %v827_v16, %v1249_v20  ;;  %v1375_v29 = vsel %vm1275_vm2, %v827_v16, %v1249_v20  ;;  %v1371_v33 = vsel %vm1267_vm0, %v827_v16, %v1249_v20  ;;  %v8623_v3 = vld [vmem:[%s8497_s30 + $0x38] sm:$0x1] }
  0x3d   : > { %1550 = vst [vmem:[#allocation1 + $0x2] ss:$9 sm:$0xff] %v1302_v31  ;;  %v1369_v31 = vsel %vm1267_vm0, %v8580_v17, %v1248_v24  ;;  %v1252_v46 = vrot.slane %v8596_v42, 3  ;;  %v1251_v49 = vrot.slane %v829_v44, 3  ;;  %v1253_v0 = vrot.slane %v8614_v62, 3 }
  0x3e   : > { %1552 = vst [vmem:[#allocation1 + $0x3] ss:$9 sm:$0xff] %v1305_v32  ;;  %v1378_v32 = vsel %vm1279_vm3, %v827_v16, %v1249_v20  ;;  %v1255_v5 = vrot.slane %v8618_v1, 3  ;;  %v1254_v10 = vrot.slane %v8623_v3, 3  ;;  %v8644_v22 = vld [vmem:[%s8497_s30 + $0x40] sm:$0xf] }
  0x3f   : > { %1554 = vst [vmem:[#allocation1 + $0x4] ss:$9 sm:$0xff] %v1308_v35  ;;  %v1374_v35 = vrot.slane %v1372_v28, 1  ;;  %v1413_v8 = vsel %vm1279_vm3, %v8614_v62, %v1253_v0  ;;  %v1256_v24 = vrot.slane %v8644_v22, 3 }
  0x40   : > { %1555 = vst [vmem:[#allocation1 + $0x5] ss:$9 sm:$0xff] %v1310_v37  ;;  %v1377_v37 = vrot.slane %v1375_v29, 2  ;;  %v1420_v16 = vsel %vm1271_vm1, %v8618_v1, %v1255_v5  ;;  %v1417_v18 = vsel %vm1267_vm0, %v8623_v3, %v1254_v10  ;;  %v1419_v20 = vsel %vm1267_vm0, %v8618_v1, %v1255_v5 }
  0x41   : > { %1557 = vst [vmem:[#allocation1 + $0x6] ss:$9 sm:$0xff] %v1313_v38  ;;  %v1380_v38 = vrot.slane %v1378_v32, 3  ;;  %v1422_v21 = vrot.slane %v1420_v16, 1  ;;  %v1431_v29 = vsel %vm1271_vm1, %v8644_v22, %v1256_v24 }
  0x42   : > { %1559 = vst [vmem:[#allocation1 + $0x7] ss:$9 sm:$0xff] %v1316_v39  ;;  %v1250_v39 = vrot.slane %v828_v36, 3 }
  0x44   : > { %v1383_v45 = vsel %vm1271_vm1, %v828_v36, %v1250_v39  ;;  %v1389_v48 = vsel %vm1279_vm3, %v828_v36, %v1250_v39 }
  0x45   : > { %v1385_v51 = vrot.slane %v1383_v45, 1 }
  0x49   : > { %v8553_v54 = vld [vmem:[#allocation1] sm:$0xff] }
  0x4a   : > { %1562 = vst [vmem:[#allocation1] ss:$9 sm:$0xff] %v1319_v47  ;;  %v1386_v47 = vsel %vm1275_vm2, %v828_v36, %v1250_v39 }
  0x4b   : > { %1563 = vst [vmem:[#allocation1 + $0x1] ss:$9 sm:$0xff] %v1321_v50  ;;  %v1382_v50 = vsel %vm1267_vm0, %v828_v36, %v1250_v39 }
  0x4c   : > { %1564 = vst [vmem:[#allocation1 + $0x2] ss:$9 sm:$0xff] %v1323_v52  ;;  %v1388_v52 = vrot.slane %v1386_v47, 2 }
  0x4d   : > { %1566 = vst [vmem:[#allocation1 + $0x3] ss:$9 sm:$0xff] %v1326_v53  ;;  %v1391_v53 = vrot.slane %v1389_v48, 3 }
  0x4e   : > { %1568 = vst [vmem:[#allocation1 + $0x4] ss:$9 sm:$0xff] %v1329_v55  ;;  %v1396_v55 = vsel %vm1271_vm1, %v8596_v42, %v1252_v46 }
  0x4f   : > { %1570 = vst [vmem:[#allocation1 + $0x5] ss:$9 sm:$0xff] %v1332_v57  ;;  %v1399_v57 = vsel %vm1275_vm2, %v8596_v42, %v1252_v46  ;;  %v1398_v60 = vrot.slane %v1396_v55, 1 }
  0x50   : > { %1571 = vst [vmem:[#allocation1 + $0x6] ss:$9 sm:$0xff] %v1334_v58  ;;  %v1393_v58 = vsel %vm1267_vm0, %v829_v44, %v1251_v49  ;;  %v1401_v63 = vrot.slane %v1399_v57, 2  ;;  %v8675_v49 = vld [vmem:[%s8497_s30 + $0x4c] sm:$0xf] }
  0x51   : > { %1573 = vst [vmem:[#allocation1 + $0x7] ss:$9 sm:$0xff] %v1337_v59  ;;  %v1395_v59 = vsel %vm1267_vm0, %v8596_v42, %v1252_v46  ;;  %v8691_v57 = vld [vmem:[%s8497_s30 + $0x50] sm:$0x1] }
  0x58   : > { %v8574_v9 = vld [vmem:[#allocation1] sm:$0xff] }
  0x59   : > { %1576 = vst [vmem:[#allocation1] ss:$9 sm:$0xff] %v1340_v2  ;;  %v1402_v2 = vsel %vm1279_vm3, %v8596_v42, %v1252_v46 }
  0x5a   : > { %1578 = vst [vmem:[#allocation1 + $0x1] ss:$9 sm:$0xff] %v1343_v4  ;;  %v1407_v4 = vsel %vm1271_vm1, %v8614_v62, %v1253_v0  ;;  %v1404_v6 = vrot.slane %v1402_v2, 3 }
  0x5b   : > { %1579 = vst [vmem:[#allocation1 + $0x2] ss:$9 sm:$0xff] %v1345_v7  ;;  %v1410_v7 = vsel %vm1275_vm2, %v8614_v62, %v1253_v0 }
  0x5c   : > { %1580 = vst [vmem:[#allocation1 + $0x3] ss:$9 sm:$0xff] %v1347_v11  ;;  %v1406_v11 = vsel %vm1267_vm0, %v8614_v62, %v1253_v0 }
  0x5d   : > { %1582 = vst [vmem:[#allocation1 + $0x4] ss:$9 sm:$0xff] %v1350_v12  ;;  %v1409_v12 = vrot.slane %v1407_v4, 1  ;;  %v1260_v4 = vrot.slane %v8691_v57, 3 }
  0x5e   : > { %1584 = vst [vmem:[#allocation1 + $0x5] ss:$9 sm:$0xff] %v1353_v13  ;;  %v1412_v13 = vrot.slane %v1410_v7, 2 }
  0x5f   : > { %1586 = vst [vmem:[#allocation1 + $0x6] ss:$9 sm:$0xff] %v1356_v14 }
  0x60   : > { %1587 = vst [vmem:[#allocation1 + $0x7] ss:$9 sm:$0xff] %v1358_v15  ;;  %v1415_v15 = vrot.slane %v1413_v8, 3  ;;  %v8707_v8 = vld [vmem:[%s8497_s30 + $0x54] sm:$0xf] }
  0x67   : > { %v8588_v30 = vld [vmem:[#allocation1] sm:$0xff] }
  0x68   : > { %1590 = vst [vmem:[#allocation1] ss:$9 sm:$0xff] %v1361_v25  ;;  %v1423_v25 = vsel %vm1275_vm2, %v8618_v1, %v1255_v5 }
  0x69   : > { %1592 = vst [vmem:[#allocation1 + $0x1] ss:$9 sm:$0xff] %v1364_v26  ;;  %v1426_v26 = vsel %vm1279_vm3, %v8618_v1, %v1255_v5  ;;  %v1425_v28 = vrot.slane %v1423_v25, 2 }
  0x6a   : > { %1594 = vst [vmem:[#allocation1 + $0x2] ss:$9 sm:$0xff] %v1367_v27  ;;  %v8652_v27 = vld [vmem:[%s8497_s30 + $0x44] sm:$0x1]  ;;  %v1428_v32 = vrot.slane %v1426_v26, 3 }
  0x6b   : > { %1595 = vst [vmem:[#allocation1 + $0x3] ss:$9 sm:$0xff] %v1369_v31  ;;  %v8657_v31 = vld [vmem:[%s8497_s30 + $0x48] sm:$0xf]  ;;  %v1257_v36 = vrot.slane %v8652_v27, 3 }
  0x6c   : > { %1596 = vst [vmem:[#allocation1 + $0x4] ss:$9 sm:$0xff] %v1371_v33  ;;  %v1434_v33 = vsel %vm1275_vm2, %v8644_v22, %v1256_v24  ;;  %v1258_v44 = vrot.slane %v8657_v31, 3 }
  0x6d   : > { %1598 = vst [vmem:[#allocation1 + $0x5] ss:$9 sm:$0xff] %v1374_v35  ;;  %v1437_v35 = vsel %vm1279_vm3, %v8644_v22, %v1256_v24  ;;  %v1436_v45 = vrot.slane %v1434_v33, 2  ;;  %v1441_v47 = vsel %vm1267_vm0, %v8652_v27, %v1257_v36 }
  0x6e   : > { %1600 = vst [vmem:[#allocation1 + $0x6] ss:$9 sm:$0xff] %v1377_v37  ;;  %v1430_v37 = vsel %vm1267_vm0, %v8644_v22, %v1256_v24  ;;  %v1439_v46 = vrot.slane %v1437_v35, 3  ;;  %v1443_v48 = vsel %vm1267_vm0, %v8657_v31, %v1258_v44 }
  0x6f   : > { %1602 = vst [vmem:[#allocation1 + $0x7] ss:$9 sm:$0xff] %v1380_v38  ;;  %v1433_v38 = vrot.slane %v1431_v29, 1 }
  0x76   : > { %v8606_v56 = vld [vmem:[#allocation1] sm:$0xff] }
  0x77   : > { %1604 = vst [vmem:[#allocation1] ss:$9 sm:$0xff] %v1382_v50  ;;  %v1259_v50 = vrot.slane %v8675_v49, 3 }
  0x78   : > { %1606 = vst [vmem:[#allocation1 + $0x1] ss:$9 sm:$0xff] %v1385_v51  ;;  %v1444_v51 = vsel %vm1271_vm1, %v8657_v31, %v1258_v44 }
  0x79   : > { %1608 = vst [vmem:[#allocation1 + $0x2] ss:$9 sm:$0xff] %v1388_v52  ;;  %v1447_v52 = vsel %vm1275_vm2, %v8657_v31, %v1258_v44  ;;  %v1446_v55 = vrot.slane %v1444_v51, 1  ;;  %v1461_v0 = vsel %vm1279_vm3, %v8675_v49, %v1259_v50  ;;  %v1454_v5 = vsel %vm1267_vm0, %v8675_v49, %v1259_v50 }
  0x7a   : > { %1610 = vst [vmem:[#allocation1 + $0x3] ss:$9 sm:$0xff] %v1391_v53  ;;  %v1450_v53 = vsel %vm1279_vm3, %v8657_v31, %v1258_v44  ;;  %v1463_v10 = vrot.slane %v1461_v0, 3 }
  0x7b   : > { %1611 = vst [vmem:[#allocation1 + $0x4] ss:$9 sm:$0xff] %v1393_v58  ;;  %v1449_v58 = vrot.slane %v1447_v52, 2 }
  0x7c   : > { %1612 = vst [vmem:[#allocation1 + $0x5] ss:$9 sm:$0xff] %v1395_v59  ;;  %v1455_v59 = vsel %vm1271_vm1, %v8675_v49, %v1259_v50 }
  0x7d   : > { %1614 = vst [vmem:[#allocation1 + $0x6] ss:$9 sm:$0xff] %v1398_v60  ;;  %v1452_v60 = vrot.slane %v1450_v53, 3 }
  0x7e   : > { %1616 = vst [vmem:[#allocation1 + $0x7] ss:$9 sm:$0xff] %v1401_v63  ;;  %v1458_v63 = vsel %vm1275_vm2, %v8675_v49, %v1259_v50 }
  0x7f   : > { %v1460_v7 = vrot.slane %v1458_v63, 2 }
  0x85   : > { %v8635_v14 = vld [vmem:[#allocation1] sm:$0xff] }
  0x86   : > { %1619 = vst [vmem:[#allocation1] ss:$9 sm:$0xff] %v1404_v6  ;;  %v1457_v6 = vrot.slane %v1455_v59, 1 }
  0x87   : > { %1620 = vst [vmem:[#allocation1 + $0x1] ss:$9 sm:$0xff] %v1406_v11  ;;  %v1465_v11 = vsel %vm1267_vm0, %v8691_v57, %v1260_v4 }
  0x88   : > { %1622 = vst [vmem:[#allocation1 + $0x2] ss:$9 sm:$0xff] %v1409_v12  ;;  %v1261_v12 = vrot.slane %v8707_v8, 3 }
  0x89   : > { %1624 = vst [vmem:[#allocation1 + $0x3] ss:$9 sm:$0xff] %v1412_v13  ;;  %v8713_v13 = vld [vmem:[%s8497_s30 + $0x58] sm:$0xf] }
  0x8a   : > { %1626 = vst [vmem:[#allocation1 + $0x4] ss:$9 sm:$0xff] %v1415_v15  ;;  %v1262_v15 = vrot.slane %v8713_v13, 3  ;;  %v1468_v16 = vsel %vm1271_vm1, %v8707_v8, %v1261_v12 }
  0x8b   : > { %1627 = vst [vmem:[#allocation1 + $0x5] ss:$9 sm:$0xff] %v1417_v18  ;;  %v1471_v18 = vsel %vm1275_vm2, %v8707_v8, %v1261_v12  ;;  %v1470_v24 = vrot.slane %v1468_v16, 1  ;;  %v848_v16 = vld [vmem:[%s8766_s18] sm:$0xf] }
  0x8c   : > { %1628 = vst [vmem:[#allocation1 + $0x6] ss:$9 sm:$0xff] %v1419_v20  ;;  %v1474_v20 = vsel %vm1279_vm3, %v8707_v8, %v1261_v12  ;;  %v1473_v25 = vrot.slane %v1471_v18, 2  ;;  %v1479_v26 = vsel %vm1271_vm1, %v8713_v13, %v1262_v15  ;;  %v1482_v29 = vsel %vm1275_vm2, %v8713_v13, %v1262_v15 }
  0x8d   : > { %1630 = vst [vmem:[#allocation1 + $0x7] ss:$9 sm:$0xff] %v1422_v21  ;;  %v1467_v21 = vsel %vm1267_vm0, %v8707_v8, %v1261_v12  ;;  %v1485_v33 = vsel %vm1279_vm3, %v8713_v13, %v1262_v15  ;;  %v1478_v35 = vsel %vm1267_vm0, %v8713_v13, %v1262_v15  ;;  %v1481_v36 = vrot.slane %v1479_v26, 1 }
  0x8e   : > { %v1487_v44 = vrot.slane %v1485_v33, 3 }
  0x94   : > { %v8666_v39 = vld [vmem:[#allocation1] sm:$0xff] }
  0x95   : > { %1633 = vst [vmem:[#allocation1] ss:$9 sm:$0xff] %v1425_v28  ;;  %v1476_v28 = vrot.slane %v1474_v20, 3 }
  0x96   : > { %1635 = vst [vmem:[#allocation1 + $0x1] ss:$9 sm:$0xff] %v1428_v32 }
  0x97   : > { %1636 = vst [vmem:[#allocation1 + $0x2] ss:$9 sm:$0xff] %v1430_v37  ;;  %v1484_v37 = vrot.slane %v1482_v29, 2 }
  0x98   : > { %1638 = vst [vmem:[#allocation1 + $0x3] ss:$9 sm:$0xff] %v1433_v38  ;;  %v845_v38 = vld [vmem:[%s8737_s13] sm:$0xf] }
  0x99   : > { %1640 = vst [vmem:[#allocation1 + $0x4] ss:$9 sm:$0xff] %v1436_v45  ;;  %v8745_v45 = vld [vmem:[%s8497_s30 + $0x5c] sm:$0x1] }
  0x9a   : > { %1642 = vst [vmem:[#allocation1 + $0x5] ss:$9 sm:$0xff] %v1439_v46  ;;  %v1264_v46 = vrot.slane %v845_v38, 3 }
  0x9b   : > { %1643 = vst [vmem:[#allocation1 + $0x6] ss:$9 sm:$0xff] %v1441_v47  ;;  %v846_v47 = vld [vmem:[%s8737_s13 + $0x4] sm:$0xf] }
  0x9c   : > { %1644 = vst [vmem:[#allocation1 + $0x7] ss:$9 sm:$0xff] %v1443_v48  ;;  %v1263_v48 = vrot.slane %v8745_v45, 3  ;;  %v1265_v50 = vrot.slane %v846_v47, 3  ;;  %v1493_v51 = vsel %vm1271_vm1, %v845_v38, %v1264_v46  ;;  %v1496_v52 = vsel %vm1275_vm2, %v845_v38, %v1264_v46 }
  0x9d   : > { %v1495_v59 = vrot.slane %v1493_v51, 1 }
  0x9e   : > { %v1489_v53 = vsel %vm1267_vm0, %v8745_v45, %v1263_v48  ;;  %v1505_v63 = vsel %vm1271_vm1, %v846_v47, %v1265_v50  ;;  %v1511_v12 = vsel %vm1279_vm3, %v846_v47, %v1265_v50 }
  0x9f   : > { %v1513_v18 = vrot.slane %v1511_v12, 3 }
  0xa3   : > { %v8699_v2 = vld [vmem:[#allocation1] sm:$0xff] }
  0xa4   : > { %1647 = vst [vmem:[#allocation1] ss:$9 sm:$0xff] %v1446_v55  ;;  %v1499_v55 = vsel %vm1279_vm3, %v845_v38, %v1264_v46 }
  0xa5   : > { %1649 = vst [vmem:[#allocation1 + $0x1] ss:$9 sm:$0xff] %v1449_v58  ;;  %v1492_v58 = vsel %vm1267_vm0, %v845_v38, %v1264_v46  ;;  %v1501_v4 = vrot.slane %v1499_v55, 3  ;;  %v851_v55 = vld [vmem:[%s8788_s10] sm:$0xf] }
  0xa6   : > { %1651 = vst [vmem:[#allocation1 + $0x2] ss:$9 sm:$0xff] %v1452_v60  ;;  %v1498_v60 = vrot.slane %v1496_v52, 2 }
  0xa7   : > { %1652 = vst [vmem:[#allocation1 + $0x3] ss:$9 sm:$0xff] %v1454_v5  ;;  %v1508_v5 = vsel %vm1275_vm2, %v846_v47, %v1265_v50 }
  0xa8   : > { %1654 = vst [vmem:[#allocation1 + $0x4] ss:$9 sm:$0xff] %v1457_v6  ;;  %v1504_v6 = vsel %vm1267_vm0, %v846_v47, %v1265_v50 }
  0xa9   : > { %1656 = vst [vmem:[#allocation1 + $0x5] ss:$9 sm:$0xff] %v1460_v7  ;;  %v1507_v7 = vrot.slane %v1505_v63, 1 }
  0xaa   : > { %1658 = vst [vmem:[#allocation1 + $0x6] ss:$9 sm:$0xff] %v1463_v10  ;;  %v1510_v10 = vrot.slane %v1508_v5, 2 }
  0xab   : > { %1659 = vst [vmem:[#allocation1 + $0x7] ss:$9 sm:$0xff] %v1465_v11  ;;  %v847_v11 = vld [vmem:[%s8737_s13 + $0x8] sm:$0x1]  ;;  %s9007_s13 = scalar_lea.vmem %s14646_s5, %s8723_s23  ;;  %s7761_s23 = sshll.u32 %s8286_s22, 5 }
  0xac   : > { %v1266_v15 = vrot.slane %v847_v11, 3 }
  0xae   : > { %v1516_v20 = vsel %vm1267_vm0, %v847_v11, %v1266_v15 }
  0xb2   : > { %v8731_v32 = vld [vmem:[#allocation1] sm:$0xff] }
  0xb3   : > { %1661 = vst [vmem:[#allocation1] ss:$9 sm:$0xff] %v1467_v21 }
  0xb4   : > { %1663 = vst [vmem:[#allocation1 + $0x1] ss:$9 sm:$0xff] %v1470_v24  ;;  %v2167_v24 = vrot.slane %v848_v16, 3 }
  0xb5   : > { %1665 = vst [vmem:[#allocation1 + $0x2] ss:$9 sm:$0xff] %v1473_v25  ;;  %v849_v25 = vld [vmem:[%s8766_s18 + $0x4] sm:$0xf] }
  0xb6   : > { %1667 = vst [vmem:[#allocation1 + $0x3] ss:$9 sm:$0xff] %v1476_v28  ;;  %v2168_v26 = vrot.slane %v849_v25, 3  ;;  %v2200_v28 = vsel %vm1271_vm1, %v848_v16, %v2167_v24  ;;  %v2203_v29 = vsel %vm1275_vm2, %v848_v16, %v2167_v24  ;;  %v2206_v33 = vsel %vm1279_vm3, %v848_v16, %v2167_v24 }
  0xb7   : > { %1668 = vst [vmem:[#allocation1 + $0x4] ss:$9 sm:$0xff] %v1478_v35  ;;  %v2199_v35 = vsel %vm1267_vm0, %v848_v16, %v2167_v24  ;;  %v2208_v46 = vrot.slane %v2206_v33, 3  ;;  %v853_v33 = vld [vmem:[%s8788_s10 + $0x8] sm:$0x1] }
  0xb8   : > { %1670 = vst [vmem:[#allocation1 + $0x5] ss:$9 sm:$0xff] %v1481_v36  ;;  %v2202_v36 = vrot.slane %v2200_v28, 1  ;;  %v2212_v38 = vsel %vm1271_vm1, %v849_v25, %v2168_v26  ;;  %v2215_v47 = vsel %vm1275_vm2, %v849_v25, %v2168_v26  ;;  %v2218_v48 = vsel %vm1279_vm3, %v849_v25, %v2168_v26 }
  0xb9   : > { %1672 = vst [vmem:[#allocation1 + $0x6] ss:$9 sm:$0xff] %v1484_v37  ;;  %v2205_v37 = vrot.slane %v2203_v29, 2  ;;  %v2211_v50 = vsel %vm1267_vm0, %v849_v25, %v2168_v26  ;;  %v2214_v51 = vrot.slane %v2212_v38, 1  ;;  %v2217_v52 = vrot.slane %v2215_v47, 2 }
  0xba   : > { %1674 = vst [vmem:[#allocation1 + $0x7] ss:$9 sm:$0xff] %v1487_v44  ;;  %v854_v29 = vld [vmem:[%s8788_s10 + $0xc] sm:$0xf]  ;;  %v2172_v38 = vrot.slane %v853_v33, 3 }
  0xc1   : > { %v8756_v0 = vld [vmem:[#allocation1] sm:$0xff] }
  0xc2   : > { %1676 = vst [vmem:[#allocation1] ss:$9 sm:$0xff] %v1489_v53  ;;  %v2220_v53 = vrot.slane %v2218_v48, 3 }
  0xc3   : > { %1677 = vst [vmem:[#allocation1 + $0x1] ss:$9 sm:$0xff] %v1492_v58  ;;  %v850_v58 = vld [vmem:[%s8766_s18 + $0x8] sm:$0x1] }
  0xc4   : > { %1679 = vst [vmem:[#allocation1 + $0x2] ss:$9 sm:$0xff] %v1495_v59  ;;  %v2170_v59 = vrot.slane %v851_v55, 3  ;;  %v2169_v63 = vrot.slane %v850_v58, 3 }
  0xc5   : > { %1681 = vst [vmem:[#allocation1 + $0x3] ss:$9 sm:$0xff] %v1498_v60  ;;  %v852_v60 = vld [vmem:[%s8788_s10 + $0x4] sm:$0xf] }
  0xc6   : > { %1683 = vst [vmem:[#allocation1 + $0x4] ss:$9 sm:$0xff] %v1501_v4  ;;  %v2171_v4 = vrot.slane %v852_v60, 3  ;;  %v2227_v5 = vsel %vm1271_vm1, %v851_v55, %v2170_v59  ;;  %v2226_v11 = vsel %vm1267_vm0, %v851_v55, %v2170_v59 }
  0xc7   : > { %1684 = vst [vmem:[#allocation1 + $0x5] ss:$9 sm:$0xff] %v1504_v6  ;;  %v2230_v6 = vsel %vm1275_vm2, %v851_v55, %v2170_v59  ;;  %v2229_v12 = vrot.slane %v2227_v5, 1 }
  0xc8   : > { %1686 = vst [vmem:[#allocation1 + $0x6] ss:$9 sm:$0xff] %v1507_v7  ;;  %v2223_v7 = vsel %vm1267_vm0, %v850_v58, %v2169_v63  ;;  %v2232_v16 = vrot.slane %v2230_v6, 2  ;;  %v2242_v24 = vsel %vm1275_vm2, %v852_v60, %v2171_v4  ;;  %v2238_v25 = vsel %vm1267_vm0, %v852_v60, %v2171_v4  ;;  %v857_v6 = vld [vmem:[%s8788_s10 + $0x18] sm:$0xf] }
  0xc9   : > { %1688 = vst [vmem:[#allocation1 + $0x7] ss:$9 sm:$0xff] %v1510_v10  ;;  %v2233_v10 = vsel %vm1279_vm3, %v851_v55, %v2170_v59  ;;  %v2244_v28 = vrot.slane %v2242_v24, 2 }
  0xd0   : > { %v8771_v21 = vld [vmem:[#allocation1] sm:$0xff] }
  0xd1   : > { %1691 = vst [vmem:[#allocation1] ss:$9 sm:$0xff] %v1513_v18  ;;  %v2239_v18 = vsel %vm1271_vm1, %v852_v60, %v2171_v4 }
  0xd2   : > { %1692 = vst [vmem:[#allocation1 + $0x1] ss:$9 sm:$0xff] %v1516_v20  ;;  %v2235_v20 = vrot.slane %v2233_v10, 3  ;;  %v2241_v26 = vrot.slane %v2239_v18, 1  ;;  %v2176_v10 = vrot.slane %v857_v6, 3 }
  0xd3   : > { %v858_v18 = vld [vmem:[%s8788_s10 + $0x1c] sm:$0xf] }
  0xd4   : > { %v2281_v24 = vsel %vm1271_vm1, %v857_v6, %v2176_v10 }
  0xd9   : > { %v8779_v44 = vld [vmem:[#allocation1] sm:$0xff] }
  0xda   : > { %2475 = vst [vmem:[#allocation1] ss:$9 sm:$0xff] %v2199_v35  ;;  %v2173_v35 = vrot.slane %v854_v29, 3 }
  0xdb   : > { %2478 = vst [vmem:[#allocation1 + $0x1] ss:$9 sm:$0xff] %v2202_v36  ;;  %v855_v36 = vld [vmem:[%s8788_s10 + $0x10] sm:$0xf] }
  0xdc   : > { %2481 = vst [vmem:[#allocation1 + $0x2] ss:$9 sm:$0xff] %v2205_v37  ;;  %v2245_v37 = vsel %vm1279_vm3, %v852_v60, %v2171_v4  ;;  %v2254_v48 = vsel %vm1271_vm1, %v854_v29, %v2173_v35  ;;  %v2253_v55 = vsel %vm1267_vm0, %v854_v29, %v2173_v35 }
  0xdd   : > { %2484 = vst [vmem:[#allocation1 + $0x3] ss:$9 sm:$0xff] %v2208_v46  ;;  %v2174_v46 = vrot.slane %v855_v36, 3  ;;  %v2247_v47 = vrot.slane %v2245_v37, 3  ;;  %v2256_v58 = vrot.slane %v2254_v48, 1  ;;  %v2283_v37 = vrot.slane %v2281_v24, 1 }
  0xde   : > { %2486 = vst [vmem:[#allocation1 + $0x4] ss:$9 sm:$0xff] %v2211_v50  ;;  %v2257_v50 = vsel %vm1275_vm2, %v854_v29, %v2173_v35  ;;  %v860_v48 = vld [vmem:[%s8788_s10 + $0x24] sm:$0xf] }
  0xdf   : > { %2489 = vst [vmem:[#allocation1 + $0x5] ss:$9 sm:$0xff] %v2214_v51  ;;  %v2250_v51 = vsel %vm1267_vm0, %v853_v33, %v2172_v38  ;;  %v2259_v59 = vrot.slane %v2257_v50, 2  ;;  %v2266_v60 = vsel %vm1271_vm1, %v855_v36, %v2174_v46  ;;  %v2265_v4 = vsel %vm1267_vm0, %v855_v36, %v2174_v46  ;;  %v859_v50 = vld [vmem:[%s8788_s10 + $0x20] sm:$0x1] }
  0xe0   : > { %2492 = vst [vmem:[#allocation1 + $0x6] ss:$9 sm:$0xff] %v2217_v52  ;;  %v2260_v52 = vsel %vm1279_vm3, %v854_v29, %v2173_v35  ;;  %v2268_v5 = vrot.slane %v2266_v60, 1  ;;  %v2287_v29 = vsel %vm1279_vm3, %v857_v6, %v2176_v10  ;;  %v2177_v33 = vrot.slane %v858_v18, 3 }
  0xe1   : > { %2495 = vst [vmem:[#allocation1 + $0x7] ss:$9 sm:$0xff] %v2220_v53  ;;  %v2262_v63 = vrot.slane %v2260_v52, 3  ;;  %v2280_v35 = vsel %vm1267_vm0, %v857_v6, %v2176_v10  ;;  %v2289_v38 = vrot.slane %v2287_v29, 3 }
  0xe2   : > { %v2296_v52 = vsel %vm1275_vm2, %v858_v18, %v2177_v33 }
  0xe3   : > { %v2298_v60 = vrot.slane %v2296_v52, 2  ;;  %v981_v52 = vshll.u32 %v8596_v42, 16 }
  0xe8   : > { %v2496_v15 = vld [vmem:[#allocation1] sm:$0xff] }
  0xe9   : > { %7646 = vmatmul.msk.bf16.vlgmr.msra.gmra.mxu2 %vm1117_vm4, %v2496_v15  ;;  %2497 = vst [vmem:[#allocation1] ss:$9 sm:$0xff] %v2223_v7  ;;  %v856_v7 = vld [vmem:[%s8788_s10 + $0x14] sm:$0x1] }
  0xea   : > { %2498 = vst [vmem:[#allocation1 + $0x1] ss:$9 sm:$0xff] %v2226_v11  ;;  %v2269_v11 = vsel %vm1275_vm2, %v855_v36, %v2174_v46  ;;  %v2175_v15 = vrot.slane %v856_v7, 3 }
  0xeb   : > { %2500 = vst [vmem:[#allocation1 + $0x2] ss:$9 sm:$0xff] %v2229_v12  ;;  %v2272_v12 = vsel %vm1279_vm3, %v855_v36, %v2174_v46  ;;  %v7782_v46 = vld [vmem:[%s14647_s6 + $0x8] sm:$0xff] }
  0xec   : > { %2502 = vst [vmem:[#allocation1 + $0x3] ss:$9 sm:$0xff] %v2232_v16  ;;  %v2271_v16 = vrot.slane %v2269_v11, 2  ;;  %1148 = vmatpush.bf16.msra.mxu0 %v7782_v46  ;;  %7792 = vmatpush.bf16.msra.mxu3 %v7782_v46  ;;  %v7781_v46 = vld [vmem:[%s14647_s6] sm:$0xff] }
  0xed   : > { %2504 = vst [vmem:[#allocation1 + $0x4] ss:$9 sm:$0xff] %v2235_v20  ;;  %v2274_v20 = vrot.slane %v2272_v12, 3 }
  0xee   : > { %2505 = vst [vmem:[#allocation1 + $0x5] ss:$9 sm:$0xff] %v2238_v25  ;;  %v2284_v25 = vsel %vm1275_vm2, %v857_v6, %v2176_v10  ;;  %v895_v6 = vshrl.u32 %v8509_v23, 16 }
  0xef   : > { %2507 = vst [vmem:[#allocation1 + $0x6] ss:$9 sm:$0xff] %v2241_v26  ;;  %v2286_v36 = vrot.slane %v2284_v25, 2 }
  0xf0   : > { %2509 = vst [vmem:[#allocation1 + $0x7] ss:$9 sm:$0xff] %v2244_v28  ;;  %v2277_v28 = vsel %vm1267_vm0, %v856_v7, %v2175_v15  ;;  %v861_v15 = vld [vmem:[%s8788_s10 + $0x28] sm:$0xf]  ;;  %v897_v25 = vrot.slane %v895_v6, 4  ;;  %1149 = vmatpush.bf16.msra.mxu0 %v7781_v46  ;;  %7793 = vmatpush.bf16.msra.mxu3 %v7781_v46  ;;  %v983_v6 = vrot.slane %v981_v52, 5 }
  0xf7   : > { %v2510_v53 = vld [vmem:[#allocation1] sm:$0xff] }
  0xf8   : > { %2512 = vst [vmem:[#allocation1] ss:$9 sm:$0xff] %v2247_v47  ;;  %v2292_v47 = vsel %vm1267_vm0, %v858_v18, %v2177_v33 }
  0xf9   : > { %7647 = vmatmul.msk.bf16.gmra.mxu2 %vm1117_vm4, %v2510_v53  ;;  %2513 = vst [vmem:[#allocation1 + $0x1] ss:$9 sm:$0xff] %v2250_v51  ;;  %v2293_v51 = vsel %vm1271_vm1, %v858_v18, %v2177_v33  ;;  %v2179_v53 = vrot.slane %v860_v48, 3 }
  0xfa   : > { %2514 = vst [vmem:[#allocation1 + $0x2] ss:$9 sm:$0xff] %v2253_v55  ;;  %v2299_v55 = vsel %vm1279_vm3, %v858_v18, %v2177_v33  ;;  %v901_v33 = vshll.u32 %v8533_v41, 16 }
  0xfb   : > { %2516 = vst [vmem:[#allocation1 + $0x3] ss:$9 sm:$0xff] %v2256_v58  ;;  %v2178_v58 = vrot.slane %v859_v50, 3  ;;  %v2301_v7 = vrot.slane %v2299_v55, 3  ;;  %v2308_v10 = vsel %vm1271_vm1, %v860_v48, %v2179_v53  ;;  %v2311_v11 = vsel %vm1275_vm2, %v860_v48, %v2179_v53 }
  0xfc   : > { %2518 = vst [vmem:[#allocation1 + $0x4] ss:$9 sm:$0xff] %v2259_v59  ;;  %v2295_v59 = vrot.slane %v2293_v51, 1  ;;  %v2314_v12 = vsel %vm1279_vm3, %v860_v48, %v2179_v53  ;;  %v978_v51 = vshrl.u32 %v8596_v42, 16  ;;  %v991_v55 = vshrl.u32 %v8614_v62, 16 }
  0xfd   : > { %2520 = vst [vmem:[#allocation1 + $0x5] ss:$9 sm:$0xff] %v2262_v63  ;;  %v882_v63 = vshrl.u32 %v8504_v19, 16 }
  0xfe   : > { %2521 = vst [vmem:[#allocation1 + $0x6] ss:$9 sm:$0xff] %v2265_v4  ;;  %v885_v4 = vshll.u32 %v8504_v19, 16  ;;  %v2304_v19 = vsel %vm1267_vm0, %v859_v50, %v2178_v58  ;;  %v903_v50 = vrot.slane %v901_v33, 5 }
  0xff   : > { %2523 = vst [vmem:[#allocation1 + $0x7] ss:$9 sm:$0xff] %v2268_v5  ;;  %v891_v5 = vshll.u32 %v8509_v23, 16  ;;  %v884_v18 = vrot.slane %v882_v63, 4  ;;  %v2310_v23 = vrot.slane %v2308_v10, 1  ;;  %v7784_v63 = vld [vmem:[%s14649_s8 + $0x8] sm:$0xff] }
 0x100   : > { %1736 = vmatpush.bf16.msra.mxu1 %v7784_v63 }
 0x101   : > { %v893_v24 = vrot.slane %v891_v5, 5  ;;  %v980_v5 = vrot.slane %v978_v51, 4  ;;  %v909_v51 = vshll.u32 %v8530_v40, 16 }
 0x103   : > { %v898_v29 = vor.u32 %v897_v25, %v893_v24 }
 0x106   : > { %v2524_v26 = vld [vmem:[#allocation1] sm:$0xff] }
 0x107   : > { %2526 = vst [vmem:[#allocation1] ss:$9 sm:$0xff] %v2271_v16 }
 0x108   : > { %2528 = vst [vmem:[#allocation1 + $0x1] ss:$9 sm:$0xff] %v2274_v20  ;;  %v887_v20 = vrot.slane %v885_v4, 5 }
 0x109   : > { %7648 = vmatmul.msk.bf16.gmra.mxu2 %vm1117_vm4, %v2524_v26  ;;  %2529 = vst [vmem:[#allocation1 + $0x2] ss:$9 sm:$0xff] %v2277_v28  ;;  %v2307_v26 = vsel %vm1267_vm0, %v860_v48, %v2179_v53  ;;  %v899_v48 = vrot.slane %v898_v29, 4  ;;  %v987_v53 = vshll.u32 %v8614_v62, 16 }
 0x10a   : > { %2530 = vst [vmem:[#allocation1 + $0x3] ss:$9 sm:$0xff] %v2280_v35  ;;  %v888_v28 = vor.u32 %v887_v20, %v884_v18  ;;  %v2313_v35 = vrot.slane %v2311_v11, 2  ;;  %v993_v11 = vrot.slane %v991_v55, 4  ;;  %v984_v18 = vor.u32 %v983_v6, %v980_v5 }
 0x10b   : > { %2532 = vst [vmem:[#allocation1 + $0x4] ss:$9 sm:$0xff] %v2283_v37  ;;  %v2316_v37 = vrot.slane %v2314_v12, 3  ;;  %v989_v10 = vrot.slane %v987_v53, 5  ;;  %v915_v55 = vshll.u32 %v8537_v43, 16  ;;  %v925_v6 = vshll.u32 %v8561_v61, 16 }
 0x10c   : > { %2534 = vst [vmem:[#allocation1 + $0x5] ss:$9 sm:$0xff] %v2286_v36  ;;  %v2180_v36 = vrot.slane %v861_v15, 3  ;;  %v1005_v61 = vshll.u32 %v8618_v1, 16 }
 0x10d   : > { %2536 = vst [vmem:[#allocation1 + $0x6] ss:$9 sm:$0xff] %v2289_v38  ;;  %v8848_v38 = vld [vmem:[%s8788_s10 + $0x30] sm:$0xf] }
 0x10e   : > { %2537 = vst [vmem:[#allocation1 + $0x7] ss:$9 sm:$0xff] %v2292_v47  ;;  %v889_v47 = vrot.slane %v888_v28, 4  ;;  %v8871_v62 = vrot.slane %v8848_v38, 3  ;;  %v2320_v12 = vsel %vm1271_vm1, %v861_v15, %v2180_v36  ;;  %v2326_v20 = vsel %vm1279_vm3, %v861_v15, %v2180_v36 }
 0x10f   : > { %v2322_v28 = vrot.slane %v2320_v12, 1 }
 0x110   : > { %v894_v58 = vsel %vm8853_vm7, %v889_v47, %v893_v24  ;;  %v994_v24 = vor.u32 %v993_v11, %v989_v10  ;;  %v906_v47 = vshrl.u32 %v8530_v40, 16  ;;  %v917_v40 = vrot.slane %v915_v55, 5  ;;  %v864_v11 = vld [vmem:[%s8788_s10 + $0x34] sm:$0xf] }
 0x111   : > { %v1081_v4 = vunpack.c.l.b16 %v894_v58  ;;  %v919_v58 = vshrl.u32 %v8537_v43, 16  ;;  %v7783_v43 = vld [vmem:[%s14649_s8] sm:$0xff] }
 0x112   : > { %v995_v33 = vrot.slane %v994_v24, 4  ;;  %v908_v53 = vrot.slane %v906_v47, 4  ;;  %v1015_v24 = vshrl.u32 %v8644_v22, 16  ;;  %1737 = vmatpush.bf16.msra.mxu1 %v7783_v43  ;;  %v865_v47 = vld [vmem:[%s8788_s10 + $0x38] sm:$0x1] }
 0x113   : > { %v921_v5 = vrot.slane %v919_v58, 4 }
 0x115   : > { %v2538_v16 = vld [vmem:[#allocation1] sm:$0xff]  ;;  %7626 = vmatmul.msk.bf16.vlgmr.msra.gmra.mxu1 %vm1117_vm4, %v8523_v34 }
 0x116   : > { %2540 = vst [vmem:[#allocation1] ss:$9 sm:$0xff] %v2295_v59  ;;  %v904_v59 = vsel %vm8853_vm7, %v899_v48, %v903_v50  ;;  %v2338_v50 = vsel %vm1275_vm2, %v8848_v38, %v8871_v62 }
 0x117   : > { %2542 = vst [vmem:[#allocation1 + $0x1] ss:$9 sm:$0xff] %v2298_v60  ;;  %v997_v60 = vshll.u32 %v8623_v3, 16  ;;  %v1082_v42 = vunpack.c.l.b16 %v904_v59  ;;  %v2323_v3 = vsel %vm1275_vm2, %v861_v15, %v2180_v36 }
 0x118   : > { %2544 = vst [vmem:[#allocation1 + $0x2] ss:$9 sm:$0xff] %v2301_v7  ;;  %v862_v7 = vld [vmem:[%s8788_s10 + $0x2c] sm:$0x1]  ;;  %v2325_v29 = vrot.slane %v2323_v3, 2  ;;  %v927_v3 = vrot.slane %v925_v6, 5 }
 0x119   : > { %7649 = vmatmul.msk.bf16.gmra.mxu2 %vm1117_vm4, %v2538_v16  ;;  %2545 = vst [vmem:[#allocation1 + $0x3] ss:$9 sm:$0xff] %v2304_v19  ;;  %v1097_v16 = vpack.c.b16 %v1082_v42, %v1081_v4  ;;  %v999_v25 = vrot.slane %v997_v60, 5  ;;  %v2181_v19 = vrot.slane %v862_v7, 3  ;;  %v2334_v60 = vsel %vm1267_vm0, %v8848_v38, %v8871_v62 }
 0x11a   : > { %2546 = vst [vmem:[#allocation1 + $0x4] ss:$9 sm:$0xff] %v2307_v26  ;;  %v985_v26 = vrot.slane %v984_v18, 4  ;;  %v911_v4 = vrot.slane %v909_v51, 5 }
 0x11b   : > { %2548 = vst [vmem:[#allocation1 + $0x5] ss:$9 sm:$0xff] %v2310_v23  ;;  %7610 = vmatmul.msk.bf16.vlgmr.msra.gmra.mxu0 %vm1117_vm4, %v1097_v16  ;;  %v2319_v23 = vsel %vm1267_vm0, %v861_v15, %v2180_v36  ;;  %v1000_v15 = vsel %vm8853_vm7, %v995_v33, %v999_v25  ;;  %v2331_v59 = vsel %vm1267_vm0, %v862_v7, %v2181_v19  ;;  %v1002_v16 = vshrl.u32 %v8618_v1, 16 }
 0x11c   : > { %2550 = vst [vmem:[#allocation1 + $0x6] ss:$9 sm:$0xff] %v2313_v35  ;;  %v2328_v35 = vrot.slane %v2326_v20, 3  ;;  %v990_v46 = vsel %vm8853_vm7, %v985_v26, %v989_v10  ;;  %v1090_v52 = vunpack.c.l.b16 %v1000_v15  ;;  %v2340_v10 = vrot.slane %v2338_v50, 2 }
 0x11d   : > { %2552 = vst [vmem:[#allocation1 + $0x7] ss:$9 sm:$0xff] %v2316_v37  ;;  %v2335_v37 = vsel %vm1271_vm1, %v8848_v38, %v8871_v62  ;;  %v1089_v36 = vunpack.c.l.b16 %v990_v46  ;;  %v912_v12 = vor.u32 %v911_v4, %v908_v53  ;;  %v922_v7 = vor.u32 %v921_v5, %v917_v40 }
 0x11e   : > { %v2337_v63 = vrot.slane %v2335_v37, 1  ;;  %v1011_v20 = vshll.u32 %v8644_v22, 16  ;;  %v1021_v25 = vshll.u32 %v8652_v27, 16  ;;  %v2183_v19 = vrot.slane %v864_v11, 3 }
 0x11f   : > { %v1101_v42 = vpack.c.b16 %v1090_v52, %v1089_v36  ;;  %v913_v18 = vrot.slane %v912_v12, 4  ;;  %v923_v26 = vrot.slane %v922_v7, 4  ;;  %v2341_v1 = vsel %vm1279_vm3, %v8848_v38, %v8871_v62  ;;  %v8197_v12 = vld [vmem:[%s8497_s30 + $0x18] sm:$0xf] }
 0x120   : > { %v1013_v22 = vrot.slane %v1011_v20, 5  ;;  %v1023_v15 = vrot.slane %v1021_v25, 5  ;;  %v2343_v38 = vrot.slane %v2341_v1, 3  ;;  %v2347_v62 = vsel %vm1271_vm1, %v864_v11, %v2183_v19 }
 0x121   : > { %7614 = vmatmul.msk.bf16.vlgmr.msra.gmra.mxu3 %vm1117_vm4, %v1101_v42  ;;  %v918_v33 = vsel %vm8853_vm7, %v913_v18, %v917_v40  ;;  %v928_v27 = vsel %vm8853_vm7, %v923_v26, %v927_v3  ;;  %v2350_v52 = vsel %vm1275_vm2, %v864_v11, %v2183_v19  ;;  %v2353_v53 = vsel %vm1279_vm3, %v864_v11, %v2183_v19 }
 0x122   : > { %v1083_v37 = vunpack.c.l.b16 %v918_v33  ;;  %v2352_v5 = vrot.slane %v2350_v52, 2  ;;  %v2355_v6 = vrot.slane %v2353_v53, 3  ;;  %v930_v43 = vshrl.u32 %v8197_v12, 16  ;;  %v867_v33 = vld [vmem:[%s8788_s10 + $0x40] sm:$0xf] }
 0x123   : > { %v933_v3 = vshll.u32 %v8197_v12, 16  ;;  %v949_v1 = vshll.u32 %v8580_v17, 16  ;;  %v1039_v17 = vshrl.u32 %v8675_v49, 16 }
 0x124   : > { %v2553_v48 = vld [vmem:[#allocation1] sm:$0xff]  ;;  %v932_v20 = vrot.slane %v930_v43, 4 }
 0x125   : > { %2554 = vst [vmem:[#allocation1] ss:$9 sm:$0xff] %v2319_v23  ;;  %v1004_v23 = vrot.slane %v1002_v16, 4  ;;  %v935_v25 = vrot.slane %v933_v3, 5  ;;  %7627 = vmatmul.msk.bf16.gmra.mxu1 %vm1117_vm4, %v8553_v54 }
 0x126   : > { %2556 = vst [vmem:[#allocation1 + $0x1] ss:$9 sm:$0xff] %v2322_v28  ;;  %v1007_v28 = vrot.slane %v1005_v61, 5 }
 0x127   : > { %2558 = vst [vmem:[#allocation1 + $0x2] ss:$9 sm:$0xff] %v2325_v29  ;;  %v8909_v29 = vld [vmem:[%s8788_s10 + $0x3c] sm:$0xf] }
 0x128   : > { %2560 = vst [vmem:[#allocation1 + $0x3] ss:$9 sm:$0xff] %v2328_v35  ;;  %v1017_v35 = vrot.slane %v1015_v24, 4  ;;  %v1008_v46 = vor.u32 %v1007_v28, %v1004_v23  ;;  %v8922_v36 = vrot.slane %v8909_v29, 3 }
 0x129   : > { %7650 = vmatmul.msk.bf16.gmra.mxu2 %vm1117_vm4, %v2553_v48  ;;  %2561 = vst [vmem:[#allocation1 + $0x4] ss:$9 sm:$0xff] %v2331_v59  ;;  %v1084_v48 = vunpack.c.l.b16 %v928_v27  ;;  %v2184_v59 = vrot.slane %v865_v47, 3  ;;  %v951_v27 = vrot.slane %v949_v1, 5  ;;  %v870_v1 = vld [vmem:[%s8788_s10 + $0x4c] sm:$0xf] }
 0x12a   : > { %2562 = vst [vmem:[#allocation1 + $0x5] ss:$9 sm:$0xff] %v2334_v60  ;;  %v1018_v50 = vor.u32 %v1017_v35, %v1013_v22  ;;  %v1009_v51 = vrot.slane %v1008_v46, 4  ;;  %v2346_v60 = vsel %vm1267_vm0, %v864_v11, %v2183_v19  ;;  %v2362_v7 = vsel %vm1271_vm1, %v8909_v29, %v8922_v36  ;;  %v8198_v11 = vld [vmem:[%s8497_s30 + $0x1c] sm:$0xf] }
 0x12b   : > { %2564 = vst [vmem:[#allocation1 + $0x6] ss:$9 sm:$0xff] %v2337_v63  ;;  %v1098_v55 = vpack.c.b16 %v1084_v48, %v1083_v37  ;;  %v2349_v63 = vrot.slane %v2347_v62, 1  ;;  %v939_v16 = vshll.u32 %v8198_v11, 16  ;;  %v943_v61 = vshrl.u32 %v8198_v11, 16 }
 0x12c   : > { %2566 = vst [vmem:[#allocation1 + $0x7] ss:$9 sm:$0xff] %v2340_v10  ;;  %v1019_v58 = vrot.slane %v1018_v50, 4  ;;  %v1014_v34 = vsel %vm8853_vm7, %v1009_v51, %v1013_v22  ;;  %v2358_v24 = vsel %vm1267_vm0, %v865_v47, %v2184_v59  ;;  %v2361_v23 = vsel %vm1267_vm0, %v8909_v29, %v8922_v36 }
 0x12d   : > { %7611 = vmatmul.msk.bf16.gmra.mxu0 %vm1117_vm4, %v1098_v55  ;;  %v1091_v42 = vunpack.c.l.b16 %v1014_v34  ;;  %v941_v19 = vrot.slane %v939_v16, 5  ;;  %v945_v26 = vrot.slane %v943_v61, 4  ;;  %v2364_v28 = vrot.slane %v2362_v7, 1 }
 0x12e   : > { %v1024_v4 = vsel %vm8853_vm7, %v1019_v58, %v1023_v15  ;;  %v936_v22 = vor.u32 %v935_v25, %v932_v20  ;;  %v1026_v37 = vshrl.u32 %v8657_v31, 16  ;;  %v1029_v46 = vshll.u32 %v8657_v31, 16 }
 0x12f   : > { %v1092_v10 = vunpack.c.l.b16 %v1024_v4  ;;  %v946_v35 = vor.u32 %v945_v26, %v941_v19  ;;  %v1035_v47 = vshll.u32 %v8675_v49, 16  ;;  %v1045_v15 = vshll.u32 %v8691_v57, 16 }
 0x130   : > { %v937_v48 = vrot.slane %v936_v22, 4  ;;  %v1028_v62 = vrot.slane %v1026_v37, 4  ;;  %v1031_v51 = vrot.slane %v1029_v46, 5  ;;  %v2365_v53 = vsel %vm1275_vm2, %v8909_v29, %v8922_v36  ;;  %v871_v46 = vld [vmem:[%s8788_s10 + $0x50] sm:$0x1] }
 0x131   : > { %v1102_v18 = vpack.c.b16 %v1092_v10, %v1091_v42  ;;  %v947_v50 = vrot.slane %v946_v35, 4  ;;  %v1037_v52 = vrot.slane %v1035_v47, 5  ;;  %v1041_v58 = vrot.slane %v1039_v17, 4  ;;  %v869_v10 = vld [vmem:[%s8788_s10 + $0x48] sm:$0xf] }
 0x132   : > { %v942_v31 = vsel %vm8853_vm7, %v937_v48, %v941_v19  ;;  %v2368_v49 = vsel %vm1279_vm3, %v8909_v29, %v8922_v36  ;;  %v1032_v34 = vor.u32 %v1031_v51, %v1028_v62  ;;  %v1047_v4 = vrot.slane %v1045_v15, 5 }
 0x133   : > { %v2567_v40 = vld [vmem:[#allocation1] sm:$0xff]  ;;  %7615 = vmatmul.msk.bf16.gmra.mxu3 %vm1117_vm4, %v1102_v18  ;;  %v952_v55 = vsel %vm8853_vm7, %v947_v50, %v951_v27  ;;  %v1085_v57 = vunpack.c.l.b16 %v942_v31  ;;  %v2367_v42 = vrot.slane %v2365_v53, 2  ;;  %v2370_v12 = vrot.slane %v2368_v49, 3  ;;  %v872_v53 = vld [vmem:[%s8788_s10 + $0x54] sm:$0xf] }
 0x134   : > { %2569 = vst [vmem:[#allocation1] ss:$9 sm:$0xff] %v2343_v38  ;;  %v2186_v38 = vrot.slane %v867_v33, 3  ;;  %v1086_v59 = vunpack.c.l.b16 %v952_v55  ;;  %v2188_v20 = vrot.slane %v869_v10, 3  ;;  %v2190_v62 = vrot.slane %v871_v46, 3 }
 0x135   : > { %2570 = vst [vmem:[#allocation1 + $0x1] ss:$9 sm:$0xff] %v2346_v60  ;;  %v868_v60 = vld [vmem:[%s8788_s10 + $0x44] sm:$0x1]  ;;  %7628 = vmatmul.msk.bf16.gmra.mxu1 %vm1117_vm4, %v8574_v9  ;;  %v2191_v55 = vrot.slane %v872_v53, 3 }
 0x136   : > { %2572 = vst [vmem:[#allocation1 + $0x2] ss:$9 sm:$0xff] %v2349_v63  ;;  %v1042_v63 = vor.u32 %v1041_v58, %v1037_v52  ;;  %v2377_v43 = vsel %vm1275_vm2, %v867_v33, %v2186_v38  ;;  %v2187_v29 = vrot.slane %v868_v60, 3  ;;  %v2380_v36 = vsel %vm1279_vm3, %v867_v33, %v2186_v38  ;;  %v873_v49 = vld [vmem:[%s8788_s10 + $0x58] sm:$0xf] }
 0x137   : > { %2574 = vst [vmem:[#allocation1 + $0x3] ss:$9 sm:$0xff] %v2352_v5  ;;  %v1099_v5 = vpack.c.b16 %v1086_v59, %v1085_v57  ;;  %v2373_v54 = vsel %vm1267_vm0, %v867_v33, %v2186_v38  ;;  %v2382_v19 = vrot.slane %v2380_v36, 3  ;;  %v2389_v22 = vsel %vm1271_vm1, %v869_v10, %v2188_v20  ;;  %v8199_v57 = vld [vmem:[%s8497_s30 + $0x24] sm:$0xf] }
 0x138   : > { %2576 = vst [vmem:[#allocation1 + $0x4] ss:$9 sm:$0xff] %v2355_v6  ;;  %v1033_v6 = vrot.slane %v1032_v34, 4  ;;  %v1043_v7 = vrot.slane %v1042_v63, 4  ;;  %v2392_v35 = vsel %vm1275_vm2, %v869_v10, %v2188_v20  ;;  %v2395_v27 = vsel %vm1279_vm3, %v869_v10, %v2188_v20 }
 0x139   : > { %7651 = vmatmul.msk.bf16.gmra.mxu2 %vm1117_vm4, %v2567_v40  ;;  %2577 = vst [vmem:[#allocation1 + $0x5] ss:$9 sm:$0xff] %v2358_v24  ;;  %v2374_v40 = vsel %vm1271_vm1, %v867_v33, %v2186_v38  ;;  %v2379_v24 = vrot.slane %v2377_v43, 2  ;;  %v2189_v33 = vrot.slane %v870_v1, 3  ;;  %v2391_v37 = vrot.slane %v2389_v22, 1 }
 0x13a   : > { %2578 = vst [vmem:[#allocation1 + $0x6] ss:$9 sm:$0xff] %v2361_v23  ;;  %v1038_v3 = vsel %vm8853_vm7, %v1033_v6, %v1037_v52  ;;  %v2376_v16 = vrot.slane %v2374_v40, 1  ;;  %v1048_v61 = vsel %vm8853_vm7, %v1043_v7, %v1047_v4  ;;  %v2385_v23 = vsel %vm1267_vm0, %v868_v60, %v2187_v29  ;;  %v8200_v60 = vld [vmem:[%s8497_s30 + $0x28] sm:$0xf] }
 0x13b   : > { %2580 = vst [vmem:[#allocation1 + $0x7] ss:$9 sm:$0xff] %v2364_v28  ;;  %v1093_v18 = vunpack.c.l.b16 %v1038_v3  ;;  %v1094_v25 = vunpack.c.l.b16 %v1048_v61  ;;  %v2388_v28 = vsel %vm1267_vm0, %v869_v10, %v2188_v20  ;;  %v2394_v47 = vrot.slane %v2392_v35, 2  ;;  %v8201_v3 = vld [vmem:[%s8497_s30 + $0x2c] sm:$0x1]  ;;  %s7791_s30 = sshll.u32 %s8282_s21, 4 }
 0x13c   : > { %v2401_v48 = vsel %vm1271_vm1, %v870_v1, %v2189_v33  ;;  %v2397_v50 = vrot.slane %v2395_v27, 3  ;;  %v2404_v17 = vsel %vm1275_vm2, %v870_v1, %v2189_v33  ;;  %v2407_v38 = vsel %vm1279_vm3, %v870_v1, %v2189_v33  ;;  %s7345_s21 = scalar_lea.sflag [#allocation3], %s720_s28 }
 0x13d   : > { %7612 = vmatmul.msk.bf16.gmra.mxu0 %vm1117_vm4, %v1099_v5  ;;  %v1103_v26 = vpack.c.b16 %v1094_v25, %v1093_v18  ;;  %v2400_v51 = vsel %vm1267_vm0, %v870_v1, %v2189_v33  ;;  %v2403_v52 = vrot.slane %v2401_v48, 1  ;;  %v2406_v9 = vrot.slane %v2404_v17, 2 }
 0x13e   : > { %v2409_v31 = vrot.slane %v2407_v38, 3  ;;  %v2412_v58 = vsel %vm1267_vm0, %v871_v46, %v2190_v62  ;;  %v954_v59 = vshrl.u32 %v8199_v57, 16  ;;  %v957_v34 = vshll.u32 %v8199_v57, 16 }
 0x13f   : > { %v963_v63 = vshll.u32 %v8200_v60, 16  ;;  %v967_v4 = vshrl.u32 %v8200_v60, 16  ;;  %v2416_v40 = vsel %vm1271_vm1, %v872_v53, %v2191_v55  ;;  %v2419_v43 = vsel %vm1275_vm2, %v872_v53, %v2191_v55 }
 0x140   : > { %v956_v5 = vrot.slane %v954_v59, 4  ;;  %v959_v6 = vrot.slane %v957_v34, 5  ;;  %v2422_v7 = vsel %vm1279_vm3, %v872_v53, %v2191_v55  ;;  %v2421_v25 = vrot.slane %v2419_v43, 2 }
 0x141   : > { %v965_v10 = vrot.slane %v963_v63, 5  ;;  %v1053_v46 = vshll.u32 %v8707_v8, 16  ;;  %v1063_v48 = vshrl.u32 %v8713_v13, 16 }
 0x142   : > { %v2581_v11 = vld [vmem:[#allocation1] sm:$0xff]  ;;  %v960_v29 = vor.u32 %v959_v6, %v956_v5 }
 0x143   : > { %2583 = vst [vmem:[#allocation1] ss:$9 sm:$0xff] %v2367_v42  ;;  %7616 = vmatmul.msk.bf16.gmra.mxu3 %vm1117_vm4, %v1103_v26  ;;  %v2192_v42 = vrot.slane %v873_v49, 3 }
 0x144   : > { %2585 = vst [vmem:[#allocation1 + $0x1] ss:$9 sm:$0xff] %v2370_v12  ;;  %v969_v12 = vrot.slane %v967_v4, 4  ;;  %v961_v18 = vrot.slane %v960_v29, 4 }
 0x145   : > { %2586 = vst [vmem:[#allocation1 + $0x2] ss:$9 sm:$0xff] %v2373_v54  ;;  %v2415_v54 = vsel %vm1267_vm0, %v872_v53, %v2191_v55  ;;  %v2428_v61 = vsel %vm1271_vm1, %v873_v49, %v2192_v42  ;;  %7629 = vmatmul.msk.bf16.gmra.mxu1 %vm1117_vm4, %v8588_v30  ;;  %v2427_v30 = vsel %vm1267_vm0, %v873_v49, %v2192_v42  ;;  %v1065_v53 = vrot.slane %v1063_v48, 4  ;;  %v876_v55 = vld [vmem:[%s9007_s13 + $0x4] sm:$0xf] }
 0x146   : > { %2588 = vst [vmem:[#allocation1 + $0x3] ss:$9 sm:$0xff] %v2376_v16  ;;  %v970_v36 = vor.u32 %v969_v12, %v965_v10  ;;  %v2418_v16 = vrot.slane %v2416_v40, 1  ;;  %v966_v1 = vsel %vm8853_vm7, %v961_v18, %v965_v10  ;;  %v2430_v22 = vrot.slane %v2428_v61, 1  ;;  %v9044_v18 = vld [vmem:[%s14652_s11] ss:$0 sm:$0xff] }
 0x147   : > { %2590 = vst [vmem:[#allocation1 + $0x4] ss:$9 sm:$0xff] %v2379_v24  ;;  %v1087_v35 = vunpack.c.l.b16 %v966_v1  ;;  %v2195_v4 = vrot.slane %v876_v55, 3 }
 0x148   : > { %2592 = vst [vmem:[#allocation1 + $0x5] ss:$9 sm:$0xff] %v2382_v19  ;;  %v971_v20 = vrot.slane %v970_v36, 4  ;;  %v2424_v19 = vrot.slane %v2422_v7, 3 }
 0x149   : > { %7652 = vmatmul.msk.bf16.gmra.mxu2 %vm1117_vm4, %v2581_v11  ;;  %2593 = vst [vmem:[#allocation1 + $0x6] ss:$9 sm:$0xff] %v2385_v23  ;;  %v973_v11 = vshll.u32 %v8201_v3, 16  ;;  %v2431_v23 = vsel %vm1275_vm2, %v873_v49, %v2192_v42  ;;  %v2455_v36 = vsel %vm1271_vm1, %v876_v55, %v2195_v4 }
 0x14a   : > { %2594 = vst [vmem:[#allocation1 + $0x7] ss:$9 sm:$0xff] %v2388_v28  ;;  %v2434_v28 = vsel %vm1279_vm3, %v873_v49, %v2192_v42  ;;  %v2433_v17 = vrot.slane %v2431_v23, 2  ;;  %v2457_v61 = vrot.slane %v2455_v36, 1 }
 0x14b   : > { %v975_v24 = vrot.slane %v973_v11, 5 }
 0x14d   : > { %v976_v33 = vsel %vm8853_vm7, %v971_v20, %v975_v24  ;;  %v877_v24 = vld [vmem:[%s9007_s13 + $0x8] sm:$0x1] }
 0x14e   : > { %v1088_v27 = vunpack.c.l.b16 %v976_v33 }
 0x150   : > { %v1100_v38 = vpack.c.b16 %v1088_v27, %v1087_v35 }
 0x151   : > { %v2595_v15 = vld [vmem:[#allocation1] sm:$0xff] }
 0x152   : > { %2597 = vst [vmem:[#allocation1] ss:$9 sm:$0xff] %v2391_v37  ;;  %v1050_v37 = vshrl.u32 %v8707_v8, 16  ;;  %7613 = vmatmul.msk.bf16.gmra.mxu0 %vm1117_vm4, %v1100_v38 }
 0x153   : > { %2599 = vst [vmem:[#allocation1 + $0x1] ss:$9 sm:$0xff] %v2394_v47  ;;  %v1059_v47 = vshll.u32 %v8713_v13, 16  ;;  %v1069_v13 = vshll.u32 %v8745_v45, 16 }
 0x154   : > { %2601 = vst [vmem:[#allocation1 + $0x2] ss:$9 sm:$0xff] %v2397_v50  ;;  %v875_v50 = vld [vmem:[%s9007_s13] sm:$0xf]  ;;  %v1052_v62 = vrot.slane %v1050_v37, 4  ;;  %s14502_s13 = scalar_lea.vmem [#allocation2], %s14481_s26 }
 0x155   : > { %2602 = vst [vmem:[#allocation1 + $0x3] ss:$9 sm:$0xff] %v2400_v51  ;;  %v1055_v51 = vrot.slane %v1053_v46, 5  ;;  %v1071_v59 = vrot.slane %v1069_v13, 5  ;;  %7630 = vmatmul.msk.bf16.gmra.mxu1 %vm1117_vm4, %v8606_v56  ;;  %s17046_s26 = sld [smem:[#allocation235_spill]]  ;;  %s7360_s29 = sshll.u32 %s14502_s13, 4  ;;  %s7361_s29 = int_to_ptr.vmem [resolvable:$true] %s7360_s29 }
 0x156   : > { %2604 = vst [vmem:[#allocation1 + $0x4] ss:$9 sm:$0xff] %v2403_v52  ;;  %v1061_v52 = vrot.slane %v1059_v47, 5 }
 0x157   : > { %2606 = vst [vmem:[#allocation1 + $0x5] ss:$9 sm:$0xff] %v2406_v9  ;;  %v874_v9 = vld [vmem:[%s8788_s10 + $0x5c] sm:$0x1]  ;;  %v1056_v8 = vor.u32 %v1055_v51, %v1052_v62  ;;  %s7357_s10 = sadd.s32 %s7791_s30, %s7761_s23 }
 0x158   : > { %2608 = vst [vmem:[#allocation1 + $0x6] ss:$9 sm:$0xff] %v2409_v31  ;;  %v1066_v31 = vor.u32 %v1065_v53, %v1061_v52  ;;  %v2193_v34 = vrot.slane %v874_v9, 3  ;;  %s7762_s15 = sshll.u32 %s7357_s10, 3 }
 0x159   : > { %7653 = vmatmul.msk.bf16.gmra.mxu2 %vm1117_vm4, %v2595_v15  ;;  %2609 = vst [vmem:[#allocation1 + $0x7] ss:$9 sm:$0xff] %v2412_v58  ;;  %v2436_v15 = vrot.slane %v2434_v28, 3  ;;  %v2194_v58 = vrot.slane %v875_v50, 3  ;;  %v1057_v49 = vrot.slane %v1056_v8, 4 }
 0x15a   : > { %v1067_v57 = vrot.slane %v1066_v31, 4  ;;  %v2439_v10 = vsel %vm1267_vm0, %v874_v9, %v2193_v34 }
 0x15b   : > { %v1062_v60 = vsel %vm8853_vm7, %v1057_v49, %v1061_v52  ;;  %v2443_v42 = vsel %vm1271_vm1, %v875_v50, %v2194_v58  ;;  %v2446_v5 = vsel %vm1275_vm2, %v875_v50, %v2194_v58  ;;  %v2449_v12 = vsel %vm1279_vm3, %v875_v50, %v2194_v58  ;;  %s7359_s20 = scalar_lea.hbm %s17046_s26, %s7762_s15  ;;  %s8224_s15 = scalar_lea.hbm %s17046_s26, 512 }
 0x15c   : > { %v1072_v63 = vsel %vm8853_vm7, %v1067_v57, %v1071_v59  ;;  %v1095_v45 = vunpack.c.l.b16 %v1062_v60  ;;  %v2442_v7 = vsel %vm1267_vm0, %v875_v50, %v2194_v58  ;;  %v2445_v29 = vrot.slane %v2443_v42, 1 }
 0x15d   : > { %v1096_v40 = vunpack.c.l.b16 %v1072_v63  ;;  %v2448_v41 = vrot.slane %v2446_v5, 2  ;;  %v2451_v11 = vrot.slane %v2449_v12, 3 }
 0x15f   : > { %v1104_v43 = vpack.c.b16 %v1096_v40, %v1095_v45 }
 0x160   : > { %v2610_v26 = vld [vmem:[#allocation1] sm:$0xff] }
 0x161   : > { %2611 = vst [vmem:[#allocation1] ss:$9 sm:$0xff] %v2415_v54  ;;  %7617 = vmatmul.msk.bf16.gmra.mxu3 %vm1117_vm4, %v1104_v43  ;;  %v2458_v54 = vsel %vm1275_vm2, %v876_v55, %v2195_v4 }
 0x162   : > { %2613 = vst [vmem:[#allocation1 + $0x1] ss:$9 sm:$0xff] %v2418_v16  ;;  %v2454_v16 = vsel %vm1267_vm0, %v876_v55, %v2195_v4  ;;  %v2460_v56 = vrot.slane %v2458_v54, 2 }
 0x163   : > { %2615 = vst [vmem:[#allocation1 + $0x2] ss:$9 sm:$0xff] %v2421_v25 }
 0x164   : > { %2617 = vst [vmem:[#allocation1 + $0x3] ss:$9 sm:$0xff] %v2424_v19  ;;  %v2461_v19 = vsel %vm1279_vm3, %v876_v55, %v2195_v4 }
 0x165   : > { %2618 = vst [vmem:[#allocation1 + $0x4] ss:$9 sm:$0xff] %v2427_v30  ;;  %v2463_v1 = vrot.slane %v2461_v19, 3  ;;  %7631 = vmatmul.msk.bf16.gmra.mxu1 %vm1117_vm4, %v8635_v14 }
 0x166   : > { %2620 = vst [vmem:[#allocation1 + $0x5] ss:$9 sm:$0xff] %v2430_v22 }
 0x167   : > { %2622 = vst [vmem:[#allocation1 + $0x6] ss:$9 sm:$0xff] %v2433_v17 }
 0x168   : > { %2624 = vst [vmem:[#allocation1 + $0x7] ss:$9 sm:$0xff] %v2436_v15 }
 0x169   : > { %7654 = vmatmul.msk.bf16.gmra.mxu2 %vm1117_vm4, %v2610_v26  ;;  %v2196_v26 = vrot.slane %v877_v24, 3 }
 0x16b   : > { %v2466_v30 = vsel %vm1267_vm0, %v877_v24, %v2196_v26 }
 0x16c   : > { %v2689_v6 = vpop.f32.mrf.mxu2 }
 0x16d   : > { %v2690_v25 = vadd.f32 %v9044_v18, %v2689_v6 }
 0x16f   : > { %v2625_v3 = vld [vmem:[#allocation1] sm:$0xff]  ;;  %v2748_v23 = vpack.c.bf16 %v2690_v25, %v2690_v25 }
 0x170   : > { %2626 = vst [vmem:[#allocation1] ss:$9 sm:$0xff] %v2439_v10 }
 0x171   : > { %2627 = vst [vmem:[#allocation1 + $0x1] ss:$9 sm:$0xff] %v2442_v7  ;;  %v2794_v27 = vrot.slane %v2748_v23, 3 }
 0x172   : > { %2629 = vst [vmem:[#allocation1 + $0x2] ss:$9 sm:$0xff] %v2445_v29 }
 0x173   : > { %2631 = vst [vmem:[#allocation1 + $0x3] ss:$9 sm:$0xff] %v2448_v41  ;;  %v2820_v48 = vsel %vm1271_vm1, %v2748_v23, %v2794_v27  ;;  %v2823_v17 = vsel %vm1275_vm2, %v2748_v23, %v2794_v27  ;;  %v2826_v38 = vsel %vm1279_vm3, %v2748_v23, %v2794_v27  ;;  %v9062_v51 = vsel %vm1267_vm0, %v2748_v23, %v2794_v27 }
 0x174   : > { %2633 = vst [vmem:[#allocation1 + $0x4] ss:$9 sm:$0xff] %v2451_v11  ;;  %v2691_v20 = vpop.f32.mrf.mxu2  ;;  %v9064_v52 = vrot.slane %v2820_v48, 1  ;;  %v9066_v14 = vrot.slane %v2823_v17, 2  ;;  %v9069_v8 = vrot.slane %v2826_v38, 3 }
 0x175   : > { %2634 = vst [vmem:[#allocation1 + $0x5] ss:$9 sm:$0xff] %v2454_v16  ;;  %v2692_v28 = vadd.f32 %v9044_v18, %v2691_v20  ;;  %7632 = vmatmul.msk.bf16.gmra.mxu1 %vm1117_vm4, %v8666_v39 }
 0x176   : > { %2636 = vst [vmem:[#allocation1 + $0x6] ss:$9 sm:$0xff] %v2457_v61 }
 0x177   : > { %2638 = vst [vmem:[#allocation1 + $0x7] ss:$9 sm:$0xff] %v2460_v56  ;;  %v2749_v37 = vpack.c.bf16 %v2692_v28, %v2692_v28 }
 0x179   : > { %7655 = vmatmul.msk.bf16.gmra.mxu2 %vm1117_vm4, %v2625_v3  ;;  %v2795_v50 = vrot.slane %v2749_v37, 3 }
 0x17b   : > { %v2832_v53 = vsel %vm1271_vm1, %v2749_v37, %v2795_v50  ;;  %v2835_v31 = vsel %vm1275_vm2, %v2749_v37, %v2795_v50  ;;  %v2838_v13 = vsel %vm1279_vm3, %v2749_v37, %v2795_v50  ;;  %v9077_v58 = vsel %vm1267_vm0, %v2749_v37, %v2795_v50 }
 0x17c   : > { %v2694_v33 = vpop.f32.mrf.mxu2  ;;  %v9079_v49 = vrot.slane %v2832_v53, 1  ;;  %v9083_v57 = vrot.slane %v2835_v31, 2  ;;  %v9086_v59 = vrot.slane %v2838_v13, 3 }
 0x17d   : > { %v2695_v22 = vadd.f32 %v9044_v18, %v2694_v33 }
 0x17e   : > { %v2639_v35 = vld [vmem:[#allocation1] sm:$0xff] }
 0x17f   : > { %2641 = vst [vmem:[#allocation1] ss:$9 sm:$0xff] %v2463_v1  ;;  %v2750_v46 = vpack.c.bf16 %v2695_v22, %v2695_v22 }
 0x180   : > { %2642 = vst [vmem:[#allocation1 + $0x1] ss:$9 sm:$0xff] %v2466_v30 }
 0x181   : > { %v2796_v47 = vrot.slane %v2750_v46, 3 }
 0x183   : > { %v9058_v15 = vsel %vm1267_vm0, %v2750_v46, %v2796_v47  ;;  %v2844_v42 = vsel %vm1271_vm1, %v2750_v46, %v2796_v47  ;;  %v2847_v40 = vsel %vm1275_vm2, %v2750_v46, %v2796_v47  ;;  %v2850_v6 = vsel %vm1279_vm3, %v2750_v46, %v2796_v47 }
 0x184   : > { %15412 = vst [vmem:[#allocation12_spill] sm:$0xff] %v9058_v15  ;;  %v2696_v62 = vpop.f32.mrf.mxu2  ;;  %v9098_v10 = vrot.slane %v2844_v42, 1  ;;  %v9103_v43 = vrot.slane %v2847_v40, 2  ;;  %v9106_v29 = vrot.slane %v2850_v6, 3 }
 0x185   : > { %v2697_v55 = vadd.f32 %v9044_v18, %v2696_v62  ;;  %7633 = vmatmul.msk.bf16.gmra.mxu1 %vm1117_vm4, %v8699_v2 }
 0x186   : > { %15413 = vst [vmem:[#allocation13_spill] sm:$0xff] %v9103_v43 }
 0x187   : > { %v2643_v9 = vld [vmem:[#allocation1] sm:$0xff]  ;;  %v2751_v34 = vpack.c.bf16 %v2697_v55, %v2697_v55 }
 0x188   : > { %3176 = vst [vmem:[#allocation1] ss:$9 sm:$0xff] %v9062_v51 }
 0x189   : > { %3179 = vst [vmem:[#allocation1 + $0x1] ss:$9 sm:$0xff] %v9064_v52  ;;  %7656 = vmatmul.msk.bf16.gmra.mxu2 %vm1117_vm4, %v2639_v35  ;;  %v2797_v45 = vrot.slane %v2751_v34, 3 }
 0x18a   : > { %3182 = vst [vmem:[#allocation1 + $0x2] ss:$9 sm:$0xff] %v9066_v14 }
 0x18b   : > { %3185 = vst [vmem:[#allocation1 + $0x3] ss:$9 sm:$0xff] %v9069_v8  ;;  %v2856_v39 = vsel %vm1271_vm1, %v2751_v34, %v2797_v45  ;;  %v2859_v41 = vsel %vm1275_vm2, %v2751_v34, %v2797_v45  ;;  %v2862_v3 = vsel %vm1279_vm3, %v2751_v34, %v2797_v45  ;;  %v9115_v54 = vsel %vm1267_vm0, %v2751_v34, %v2797_v45 }
 0x18c   : > { %3187 = vst [vmem:[#allocation1 + $0x4] ss:$9 sm:$0xff] %v9077_v58  ;;  %v2699_v60 = vpop.f32.mrf.mxu2  ;;  %v9117_v16 = vrot.slane %v2856_v39, 1  ;;  %v9120_v61 = vrot.slane %v2859_v41, 2  ;;  %v9123_v56 = vrot.slane %v2862_v3, 3 }
 0x18d   : > { %3190 = vst [vmem:[#allocation1 + $0x5] ss:$9 sm:$0xff] %v9079_v49  ;;  %v2700_v63 = vadd.f32 %v9044_v18, %v2699_v60 }
 0x18e   : > { %3193 = vst [vmem:[#allocation1 + $0x6] ss:$9 sm:$0xff] %v9083_v57 }
 0x18f   : > { %3195 = vst [vmem:[#allocation1 + $0x7] ss:$9 sm:$0xff] %v9086_v59  ;;  %v2752_v4 = vpack.c.bf16 %v2700_v63, %v2700_v63 }
 0x191   : > { %v2798_v5 = vrot.slane %v2752_v4, 3 }
 0x193   : > { %v9101_v12 = vsel %vm1271_vm1, %v2752_v4, %v2798_v5  ;;  %v9129_v24 = vsel %vm1267_vm0, %v2752_v4, %v2798_v5  ;;  %v2871_v28 = vsel %vm1275_vm2, %v2752_v4, %v2798_v5  ;;  %v2874_v33 = vsel %vm1279_vm3, %v2752_v4, %v2798_v5 }
 0x194   : > { %v2701_v7 = vpop.f32.mrf.mxu2  ;;  %15414 = vst [vmem:[#allocation14_spill] sm:$0xff] %v9129_v24  ;;  %v9144_v27 = vrot.slane %v2871_v28, 2  ;;  %v9147_v47 = vrot.slane %v2874_v33, 3 }
 0x195   : > { %v2702_v11 = vadd.f32 %v9044_v18, %v2701_v7  ;;  %7634 = vmatmul.msk.bf16.gmra.mxu1 %vm1117_vm4, %v8731_v32 }
 0x196   : > { %v9109_v36 = vld [vmem:[#allocation1] sm:$0xff]  ;;  %15415 = vst [vmem:[#allocation15_spill] sm:$0xff] %v9147_v47 }
 0x197   : > { %3198 = vst [vmem:[#allocation1] ss:$9 sm:$0xff] %v9098_v10  ;;  %v2753_v20 = vpack.c.bf16 %v2702_v11, %v2702_v11 }
 0x198   : > { %3200 = vst [vmem:[#allocation1 + $0x1] ss:$9 sm:$0xff] %v9103_v43 }
 0x199   : > { %3202 = vst [vmem:[#allocation1 + $0x2] ss:$9 sm:$0xff] %v9106_v29  ;;  %7657 = vmatmul.msk.bf16.gmra.mxu2 %vm1117_vm4, %v2643_v9  ;;  %v2799_v26 = vrot.slane %v2753_v20, 3 }
 0x19a   : > { %3203 = vst [vmem:[#allocation1 + $0x3] ss:$9 sm:$0xff] %v9115_v54 }
 0x19b   : > { %3205 = vst [vmem:[#allocation1 + $0x4] ss:$9 sm:$0xff] %v9117_v16  ;;  %v2880_v30 = vsel %vm1271_vm1, %v2753_v20, %v2799_v26  ;;  %v2883_v22 = vsel %vm1275_vm2, %v2753_v20, %v2799_v26  ;;  %v2886_v37 = vsel %vm1279_vm3, %v2753_v20, %v2799_v26  ;;  %v9152_v48 = vsel %vm1267_vm0, %v2753_v20, %v2799_v26 }
 0x19c   : > { %3207 = vst [vmem:[#allocation1 + $0x5] ss:$9 sm:$0xff] %v9120_v61  ;;  %v2704_v25 = vpop.f32.mrf.mxu2  ;;  %v9154_v50 = vrot.slane %v2880_v30, 1  ;;  %v9158_v38 = vrot.slane %v2883_v22, 2  ;;  %v9162_v53 = vrot.slane %v2886_v37, 3  ;;  %v9215_v22 = vpop.f32.mrf.mxu1 }
 0x19d   : > { %3209 = vst [vmem:[#allocation1 + $0x6] ss:$9 sm:$0xff] %v9123_v56  ;;  %v2705_v19 = vadd.f32 %v9044_v18, %v2704_v25 }
 0x19e   : > { %3210 = vst [vmem:[#allocation1 + $0x7] ss:$9 sm:$0xff] %v9129_v24 }
 0x19f   : > { %v2754_v23 = vpack.c.bf16 %v2705_v19, %v2705_v19  ;;  %15416 = vst [vmem:[#allocation16_spill] sm:$0xff] %v9152_v48 }
 0x1a0   : > { %15417 = vst [vmem:[#allocation17_spill] sm:$0xff] %v9154_v50 }
 0x1a1   : > { %v2800_v1 = vrot.slane %v2754_v23, 3  ;;  %15418 = vst [vmem:[#allocation18_spill] sm:$0xff] %v9158_v38 }
 0x1a2   : > { %15419 = vst [vmem:[#allocation19_spill] sm:$0xff] %v9162_v53 }
 0x1a3   : > { %v9142_v35 = vsel %vm1275_vm2, %v2754_v23, %v2800_v1  ;;  %v2892_v62 = vsel %vm1271_vm1, %v2754_v23, %v2800_v1  ;;  %v9167_v31 = vsel %vm1267_vm0, %v2754_v23, %v2800_v1  ;;  %v2898_v4 = vsel %vm1279_vm3, %v2754_v23, %v2800_v1  ;;  %15430 = vst [vmem:[#allocation30_spill] sm:$0xff] %v9215_v22 }
 0x1a4   : > { %v2706_v46 = vpop.f32.mrf.mxu2  ;;  %15420 = vst [vmem:[#allocation20_spill] sm:$0xff] %v9167_v31  ;;  %v9169_v13 = vrot.slane %v2892_v62, 1  ;;  %v9182_v6 = vrot.slane %v2898_v4, 3 }
 0x1a5   : > { %v9149_v2 = vld [vmem:[#allocation1] sm:$0xff]  ;;  %v2707_v17 = vadd.f32 %v9044_v18, %v2706_v46  ;;  %7635 = vmatmul.msk.bf16.gmra.mxu1 %vm1117_vm4, %v8756_v0 }
 0x1a6   : > { %3213 = vst [vmem:[#allocation1] ss:$9 sm:$0xff] %v9144_v27 }
 0x1a7   : > { %3215 = vst [vmem:[#allocation1 + $0x1] ss:$9 sm:$0xff] %v9147_v47  ;;  %v2755_v9 = vpack.c.bf16 %v2707_v17, %v2707_v17 }
 0x1a8   : > { %3216 = vst [vmem:[#allocation1 + $0x2] ss:$9 sm:$0xff] %v9152_v48 }
 0x1a9   : > { %3218 = vst [vmem:[#allocation1 + $0x3] ss:$9 sm:$0xff] %v9154_v50  ;;  %v2801_v55 = vrot.slane %v2755_v9, 3 }
 0x1aa   : > { %15421 = vst [vmem:[#allocation21_spill] sm:$0xff] %v9169_v13 }
 0x1ab   : > { %3220 = vst [vmem:[#allocation1 + $0x4] ss:$9 sm:$0xff] %v9158_v38  ;;  %v2904_v42 = vsel %vm1271_vm1, %v2755_v9, %v2801_v55  ;;  %v2907_v45 = vsel %vm1275_vm2, %v2755_v9, %v2801_v55  ;;  %v2910_v5 = vsel %vm1279_vm3, %v2755_v9, %v2801_v55  ;;  %v9196_v20 = vsel %vm1267_vm0, %v2755_v9, %v2801_v55 }
 0x1ac   : > { %3222 = vst [vmem:[#allocation1 + $0x5] ss:$9 sm:$0xff] %v9162_v53  ;;  %v2709_v34 = vpop.f32.mrf.mxu2  ;;  %v9184_v39 = vrot.slane %v2904_v42, 1  ;;  %v9191_v32 = vrot.slane %v2907_v45, 2  ;;  %v9198_v25 = vrot.slane %v2910_v5, 3 }
 0x1ad   : > { %3223 = vst [vmem:[#allocation1 + $0x6] ss:$9 sm:$0xff] %v9167_v31  ;;  %v2710_v60 = vadd.f32 %v9044_v18, %v2709_v34 }
 0x1ae   : > { %3224 = vst [vmem:[#allocation1 + $0x7] ss:$9 sm:$0xff] %v9169_v13 }
 0x1af   : > { %v2756_v63 = vpack.c.bf16 %v2710_v60, %v2710_v60  ;;  %15422 = vst [vmem:[#allocation22_spill] sm:$0xff] %v9184_v39 }
 0x1b0   : > { %15424 = vst [vmem:[#allocation24_spill] sm:$0xff] %v9191_v32 }
 0x1b1   : > { %v2802_v40 = vrot.slane %v2756_v63, 3  ;;  %15425 = vst [vmem:[#allocation25_spill] sm:$0xff] %v9196_v20 }
 0x1b2   : > { %15426 = vst [vmem:[#allocation26_spill] sm:$0xff] %v9198_v25 }
 0x1b3   : > { %v9187_v7 = vsel %vm1279_vm3, %v2756_v63, %v2802_v40  ;;  %v2916_v3 = vsel %vm1271_vm1, %v2756_v63, %v2802_v40  ;;  %v2919_v19 = vsel %vm1275_vm2, %v2756_v63, %v2802_v40  ;;  %v9205_v23 = vsel %vm1267_vm0, %v2756_v63, %v2802_v40 }
 0x1b4   : > { %15423 = vst [vmem:[#allocation23_spill] sm:$0xff] %v9187_v7  ;;  %v2711_v11 = vpop.f32.mrf.mxu2  ;;  %v9207_v28 = vrot.slane %v2916_v3, 1  ;;  %v9210_v33 = vrot.slane %v2919_v19, 2 }
 0x1b5   : > { %v9189_v41 = vld [vmem:[#allocation1] sm:$0xff]  ;;  %v2712_v26 = vadd.f32 %v9044_v18, %v2711_v11  ;;  %15427 = vst [vmem:[#allocation27_spill] sm:$0xff] %v9205_v23  ;;  %7636 = vmatmul.msk.bf16.gmra.mxu1 %vm1117_vm4, %v8771_v21 }
 0x1b6   : > { %3227 = vst [vmem:[#allocation1] ss:$9 sm:$0xff] %v9182_v6 }
 0x1b7   : > { %3228 = vst [vmem:[#allocation1 + $0x1] ss:$9 sm:$0xff] %v9196_v20  ;;  %v2757_v1 = vpack.c.bf16 %v2712_v26, %v2712_v26 }
 0x1b8   : > { %3230 = vst [vmem:[#allocation1 + $0x2] ss:$9 sm:$0xff] %v9184_v39 }
 0x1b9   : > { %15428 = vst [vmem:[#allocation28_spill] sm:$0xff] %v9207_v28  ;;  %v2803_v30 = vrot.slane %v2757_v1, 3 }
 0x1ba   : > { %3232 = vst [vmem:[#allocation1 + $0x3] ss:$9 sm:$0xff] %v9191_v32 }
 0x1bb   : > { %15429 = vst [vmem:[#allocation29_spill] sm:$0xff] %v9210_v33  ;;  %v2928_v17 = vsel %vm1271_vm1, %v2757_v1, %v2803_v30  ;;  %v2931_v62 = vsel %vm1275_vm2, %v2757_v1, %v2803_v30  ;;  %v2934_v55 = vsel %vm1279_vm3, %v2757_v1, %v2803_v30  ;;  %v9231_v42 = vsel %vm1267_vm0, %v2757_v1, %v2803_v30  ;;  %v9246_v1 = vpop.f32.mrf.mxu1 }
 0x1bc   : > { %3234 = vst [vmem:[#allocation1 + $0x4] ss:$9 sm:$0xff] %v9198_v25  ;;  %v2714_v37 = vpop.f32.mrf.mxu2  ;;  %v9224_v34 = vrot.slane %v2928_v17, 1  ;;  %v9226_v63 = vrot.slane %v2931_v62, 2  ;;  %v9233_v45 = vrot.slane %v2934_v55, 3 }
 0x1bd   : > { %3235 = vst [vmem:[#allocation1 + $0x5] ss:$9 sm:$0xff] %v9205_v23  ;;  %v2715_v46 = vadd.f32 %v9044_v18, %v2714_v37 }
 0x1be   : > { %3237 = vst [vmem:[#allocation1 + $0x6] ss:$9 sm:$0xff] %v9207_v28 }
 0x1bf   : > { %3238 = vst [vmem:[#allocation1 + $0x7] ss:$9 sm:$0xff] %v9210_v33  ;;  %v2758_v9 = vpack.c.bf16 %v2715_v46, %v2715_v46  ;;  %v1151_v33 = vpop.f32.mrf.mxu0 }
 0x1c0   : > { %15431 = vst [vmem:[#allocation31_spill] sm:$0xff] %v9224_v34 }
 0x1c1   : > { %v2804_v60 = vrot.slane %v2758_v9, 3  ;;  %15432 = vst [vmem:[#allocation32_spill] sm:$0xff] %v9226_v63 }
 0x1c2   : > { %15434 = vst [vmem:[#allocation34_spill] sm:$0xff] %v9231_v42 }
 0x1c3   : > { %15435 = vst [vmem:[#allocation35_spill] sm:$0xff] %v9233_v45  ;;  %v2940_v40 = vsel %vm1271_vm1, %v2758_v9, %v2804_v60  ;;  %v2943_v0 = vsel %vm1275_vm2, %v2758_v9, %v2804_v60  ;;  %v2946_v5 = vsel %vm1279_vm3, %v2758_v9, %v2804_v60  ;;  %v9241_v11 = vsel %vm1267_vm0, %v2758_v9, %v2804_v60  ;;  %v9265_v60 = vld [vmem:[%s14650_s9] ss:$0 sm:$0xff] }
 0x1c4   : > { %v2716_v3 = vpop.f32.mrf.mxu2  ;;  %15436 = vst [vmem:[#allocation36_spill] sm:$0xff] %v9241_v11  ;;  %v9243_v19 = vrot.slane %v2940_v40, 1  ;;  %v9249_v30 = vrot.slane %v2943_v0, 2  ;;  %v9252_v37 = vrot.slane %v2946_v5, 3  ;;  %v1744_v5 = vpop.f32.mrf.mxu1 }
 0x1c5   : > { %v2717_v26 = vadd.f32 %v9044_v18, %v2716_v3  ;;  %15438 = vst [vmem:[#allocation38_spill] sm:$0xff] %v9246_v1  ;;  %7637 = vmatmul.msk.bf16.gmra.mxu1 %vm1117_vm4, %v8779_v44 }
 0x1c6   : > { %v9228_v4 = vld [vmem:[#allocation1] sm:$0xff]  ;;  %15437 = vst [vmem:[#allocation37_spill] sm:$0xff] %v9243_v19 }
 0x1c7   : > { %15433 = vst [vmem:[#allocation33_spill] sm:$0xff] %v9228_v4  ;;  %v2759_v46 = vpack.c.bf16 %v2717_v26, %v2717_v26  ;;  %v1745_v26 = vadd.f32 %v9265_v60, %v1744_v5 }
 0x1c8   : > { %3240 = vst [vmem:[#allocation1] ss:$9 sm:$0xff] %v9231_v42 }
 0x1c9   : > { %3242 = vst [vmem:[#allocation1 + $0x1] ss:$9 sm:$0xff] %v9224_v34  ;;  %v2805_v17 = vrot.slane %v2759_v46, 3 }
 0x1ca   : > { %3244 = vst [vmem:[#allocation1 + $0x2] ss:$9 sm:$0xff] %v9226_v63 }
 0x1cb   : > { %15439 = vst [vmem:[#allocation39_spill] sm:$0xff] %v9249_v30  ;;  %v9259_v62 = vsel %vm1267_vm0, %v2759_v46, %v2805_v17  ;;  %v2952_v9 = vsel %vm1271_vm1, %v2759_v46, %v2805_v17  ;;  %v2955_v40 = vsel %vm1275_vm2, %v2759_v46, %v2805_v17  ;;  %v2958_v3 = vsel %vm1279_vm3, %v2759_v46, %v2805_v17 }
 0x1cc   : > { %3246 = vst [vmem:[#allocation1 + $0x3] ss:$9 sm:$0xff] %v9233_v45  ;;  %v2719_v55 = vpop.f32.mrf.mxu2  ;;  %v9273_v1 = vrot.slane %v2952_v9, 1 }
 0x1cd   : > { %15440 = vst [vmem:[#allocation40_spill] sm:$0xff] %v9252_v37  ;;  %v2720_v0 = vadd.f32 %v9044_v18, %v2719_v55 }
 0x1ce   : > { %3247 = vst [vmem:[#allocation1 + $0x4] ss:$9 sm:$0xff] %v9241_v11  ;;  %v9281_v11 = vpack.c.bf16 %v1745_v26, %v1745_v26 }
 0x1cf   : > { %3249 = vst [vmem:[#allocation1 + $0x5] ss:$9 sm:$0xff] %v9243_v19  ;;  %v2760_v22 = vpack.c.bf16 %v2720_v0, %v2720_v0 }
 0x1d0   : > { %3251 = vst [vmem:[#allocation1 + $0x6] ss:$9 sm:$0xff] %v9249_v30  ;;  %v9300_v26 = vrot.slane %v9281_v11, 3 }
 0x1d1   : > { %3252 = vst [vmem:[#allocation1 + $0x7] ss:$9 sm:$0xff] %v9252_v37  ;;  %v9277_v37 = vrot.slane %v2958_v3, 3  ;;  %v2806_v30 = vrot.slane %v2760_v22, 3 }
 0x1d2   : > { %15441 = vst [vmem:[#allocation41_spill] sm:$0xff] %v9259_v62  ;;  %v9275_v62 = vrot.slane %v2955_v40, 2 }
 0x1d3   : > { %15442 = vst [vmem:[#allocation42_spill] sm:$0xff] %v9273_v1  ;;  %v9285_v46 = vsel %vm1267_vm0, %v2760_v22, %v2806_v30  ;;  %v2964_v17 = vsel %vm1271_vm1, %v2760_v22, %v2806_v30  ;;  %v2967_v21 = vsel %vm1275_vm2, %v2760_v22, %v2806_v30  ;;  %v2970_v9 = vsel %vm1279_vm3, %v2760_v22, %v2806_v30 }
 0x1d4   : > { %15443 = vst [vmem:[#allocation43_spill] sm:$0xff] %v9275_v62  ;;  %v9291_v55 = vrot.slane %v2964_v17, 1  ;;  %v9293_v40 = vrot.slane %v2967_v21, 2  ;;  %v2721_v0 = vpop.f32.mrf.mxu2  ;;  %v9296_v5 = vrot.slane %v2970_v9, 3  ;;  %v9307_v30 = vsel %vm1267_vm0, %v9281_v11, %v9300_v26 }
 0x1d5   : > { %15444 = vst [vmem:[#allocation44_spill] sm:$0xff] %v9277_v37  ;;  %v2722_v3 = vadd.f32 %v9044_v18, %v2721_v0  ;;  %v3087_v21 = vlaneseq }
 0x1d6   : > { %15446 = vst [vmem:[#allocation46_spill] sm:$0xff] %v9281_v11 }
 0x1d7   : > { %15447 = vst [vmem:[#allocation47_spill] sm:$0xff] %v9285_v46  ;;  %v2761_v22 = vpack.c.bf16 %v2722_v3, %v2722_v3 }
 0x1d8   : > { %v9279_v19 = vld [vmem:[#allocation1] sm:$0xff]  ;;  %15448 = vst [vmem:[#allocation48_spill] sm:$0xff] %v9291_v55 }
 0x1d9   : > { %15445 = vst [vmem:[#allocation45_spill] sm:$0xff] %v9279_v19  ;;  %v2807_v17 = vrot.slane %v2761_v22, 3 }
 0x1da   : > { %3255 = vst [vmem:[#allocation1] ss:$9 sm:$0xff] %v9273_v1 }
 0x1db   : > { %3257 = vst [vmem:[#allocation1 + $0x1] ss:$9 sm:$0xff] %v9275_v62  ;;  %v9312_v9 = vsel %vm1267_vm0, %v2761_v22, %v2807_v17  ;;  %v9315_v0 = vsel %vm1271_vm1, %v2761_v22, %v2807_v17 }
 0x1dc   : > { %15449 = vst [vmem:[#allocation49_spill] sm:$0xff] %v9293_v40  ;;  %v2724_v3 = vpop.f32.mrf.mxu2 }
 0x1dd   : > { %3259 = vst [vmem:[#allocation1 + $0x2] ss:$9 sm:$0xff] %v9277_v37  ;;  %v2725_v11 = vadd.f32 %v9044_v18, %v2724_v3 }
 0x1de   : > { %15450 = vst [vmem:[#allocation50_spill] sm:$0xff] %v9296_v5 }
 0x1df   : > { %15451 = vst [vmem:[#allocation51_spill] sm:$0xff] %v9300_v26  ;;  %v2979_v26 = vsel %vm1275_vm2, %v2761_v22, %v2807_v17 }
 0x1e0   : > { %3260 = vst [vmem:[#allocation1 + $0x3] ss:$9 sm:$0xff] %v9285_v46  ;;  %v9317_v46 = vpop.f32.mrf.mxu1  ;;  %v9325_v62 = vrot.slane %v2979_v26, 2 }
 0x1e1   : > { %3262 = vst [vmem:[#allocation1 + $0x4] ss:$9 sm:$0xff] %v9291_v55 }
 0x1e2   : > { %15452 = vst [vmem:[#allocation52_spill] sm:$0xff] %v9307_v30  ;;  %v3088_v30 = vshrl.u32 %v3087_v21, 7 }
 0x1e3   : > { %3264 = vst [vmem:[#allocation1 + $0x5] ss:$9 sm:$0xff] %v9293_v40  ;;  %v2762_v40 = vpack.c.bf16 %v2725_v11, %v2725_v11 }
 0x1e4   : > { %3266 = vst [vmem:[#allocation1 + $0x6] ss:$9 sm:$0xff] %v9296_v5  ;;  %v2982_v5 = vsel %vm1279_vm3, %v2761_v22, %v2807_v17  ;;  %v3089_v37 = vadd.s32 8, %v3088_v30  ;;  %v2726_v26 = vpop.f32.mrf.mxu2  ;;  %vm3090_vm12 = vcmp.lt.s32.totalorder %v3088_v30, 1 }
 0x1e5   : > { %15453 = vst [vmem:[#allocation53_spill] sm:$0xff] %v9312_v9  ;;  %v2808_v55 = vrot.slane %v2762_v40, 3  ;;  %v2727_v17 = vadd.f32 %v9044_v18, %v2726_v26  ;;  %vm3390_vm13 = vmpackc.low %vm3090_vm12, %vm3090_vm12 }
 0x1e6   : > { %15454 = vst [vmem:[#allocation54_spill] sm:$0xff] %v9315_v0  ;;  %v9327_v0 = vrot.slane %v2982_v5, 3  ;;  %vm3093_vm8 = vcmp.gt.s32.totalorder %v3089_v37, 14 }
 0x1e7   : > { %15455 = vst [vmem:[#allocation55_spill] sm:$0xff] %v9317_v46  ;;  %v2988_v21 = vsel %vm1271_vm1, %v2762_v40, %v2808_v55  ;;  %v2991_v44 = vsel %vm1275_vm2, %v2762_v40, %v2808_v55  ;;  %v2994_v3 = vsel %vm1279_vm3, %v2762_v40, %v2808_v55  ;;  %vm3163_vm11 = vmpackc.low %vm3093_vm8, %vm3093_vm8 }
 0x1e8   : > { %3267 = vst [vmem:[#allocation1 + $0x7] ss:$9 sm:$0xff] %v9312_v9  ;;  %v9332_v9 = vsel %vm1267_vm0, %v2762_v40, %v2808_v55  ;;  %v9338_v11 = vrot.slane %v2988_v21, 1  ;;  %v9340_v22 = vrot.slane %v2991_v44, 2  ;;  %v9343_v5 = vrot.slane %v2994_v3, 3 }
 0x1e9   : > { %15456 = vst [vmem:[#allocation56_spill] sm:$0xff] %v9325_v62  ;;  %v2763_v55 = vpack.c.bf16 %v2727_v17, %v2727_v17  ;;  %v8301_v44 = vmov 0   ;;  %v9363_v17 = vld [vmem:[%s14655_s14 + $0x8] sm:$0xff] }
 0x1ea   : > { %15457 = vst [vmem:[#allocation57_spill] sm:$0xff] %v9327_v0  ;;  %v3164_v37 = vsel %vm3162_vm10, 65537, %v8301_v44  ;;  %4079 = vmatpush.bf16.msrb.mxu3 %v9363_v17  ;;  %4463 = vmatpush.bf16.msrb.mxu1 %v9363_v17 }
 0x1eb   : > { %15459 = vst [vmem:[#allocation59_spill] sm:$0xff] %v9332_v9  ;;  %v2809_v40 = vrot.slane %v2763_v55, 3  ;;  %4591 = vmatpush.bf16.msrb.mxu2 %v9363_v17  ;;  %4207 = vmatpush.bf16.msrb.mxu0 %v9363_v17 }
 0x1ec   : > { %15460 = vst [vmem:[#allocation60_spill] sm:$0xff] %v9338_v11 }
 0x1ed   : > { %15461 = vst [vmem:[#allocation61_spill] sm:$0xff] %v9340_v22  ;;  %v9354_v3 = vsel %vm1267_vm0, %v2763_v55, %v2809_v40  ;;  %v9358_v26 = vsel %vm1275_vm2, %v2763_v55, %v2809_v40  ;;  %v3006_v19 = vsel %vm1279_vm3, %v2763_v55, %v2809_v40 }
 0x1ee   : > { %15462 = vst [vmem:[#allocation62_spill] sm:$0xff] %v9343_v5 }
 0x1ef   : > { %v9329_v46 = vld [vmem:[#allocation1] sm:$0xff]  ;;  %15464 = vst [vmem:[#allocation64_spill] sm:$0xff] %v9354_v3 }
 0x1f0   : > { %15458 = vst [vmem:[#allocation58_spill] sm:$0xff] %v9329_v46  ;;  %v1749_v46 = vpop.f32.mrf.mxu1 }
 0x1f1   : > { %3270 = vst [vmem:[#allocation1] ss:$9 sm:$0xff] %v9325_v62  ;;  %v1750_v1 = vadd.f32 %v9265_v60, %v1749_v46  ;;  %v3000_v46 = vsel %vm1271_vm1, %v2763_v55, %v2809_v40 }
 0x1f2   : > { %3272 = vst [vmem:[#allocation1 + $0x1] ss:$9 sm:$0xff] %v9327_v0  ;;  %v3392_v0 = vsel %vm3390_vm13, 65537, %v8301_v44 }
 0x1f3   : > { %3273 = vst [vmem:[#allocation1 + $0x2] ss:$9 sm:$0xff] %v9332_v9  ;;  %v9351_v21 = vpack.c.bf16 %v1750_v1, %v1750_v1  ;;  %v2729_v1 = vpop.f32.mrf.mxu2  ;;  %v3394_v4 = vunpack.c.l.b16 %v3392_v0 }
 0x1f4   : > { %3275 = vst [vmem:[#allocation1 + $0x3] ss:$9 sm:$0xff] %v9338_v11  ;;  %v2730_v11 = vadd.f32 %v9044_v18, %v2729_v1 }
 0x1f5   : > { %3277 = vst [vmem:[#allocation1 + $0x4] ss:$9 sm:$0xff] %v9340_v22  ;;  %v9365_v22 = vrot.slane %v3000_v46, 1  ;;  %v9370_v9 = vrot.slane %v9351_v21, 3 }
 0x1f6   : > { %3279 = vst [vmem:[#allocation1 + $0x5] ss:$9 sm:$0xff] %v9343_v5  ;;  %v3165_v5 = vsel %vm3163_vm11, 65537, %v8301_v44 }
 0x1f7   : > { %15463 = vst [vmem:[#allocation63_spill] sm:$0xff] %v9351_v21  ;;  %v3167_v46 = vunpack.c.l.b16 %v3165_v5  ;;  %v9382_v1 = vsel %vm1271_vm1, %v9351_v21, %v9370_v9  ;;  %v9399_v21 = vunpack.c.h.b16 %v8301_v44 }
 0x1f8   : > { %15465 = vst [vmem:[#allocation65_spill] sm:$0xff] %v9358_v26  ;;  %v3166_v26 = vunpack.c.l.b16 %v3164_v37  ;;  %v9387_v37 = vld [vmem:[%s14655_s14] sm:$0xff]  ;;  %v9389_v30 = vpop.f32.mrf.mxu1 }
 0x1f9   : > { %15466 = vst [vmem:[#allocation66_spill] sm:$0xff] %v9365_v22  ;;  %4080 = vmatpush.bf16.msrb.mxu3 %v9387_v37  ;;  %4464 = vmatpush.bf16.msrb.mxu1 %v9387_v37 }
 0x1fa   : > { %3280 = vst [vmem:[#allocation1 + $0x6] ss:$9 sm:$0xff] %v9354_v3  ;;  %v2764_v3 = vpack.c.bf16 %v2730_v11, %v2730_v11  ;;  %v3350_v11 = vshrl.u32 %v9062_v51, 16  ;;  %v9395_v5 = vunpack.i.l.s16 %v3166_v26  ;;  %4208 = vmatpush.bf16.msrb.mxu0 %v9387_v37  ;;  %4592 = vmatpush.bf16.msrb.mxu2 %v9387_v37  ;;  %v9407_v26 = vrot.slane %v3006_v19, 3 }
 0x1fb   : > { %15467 = vst [vmem:[#allocation67_spill] sm:$0xff] %v9370_v9  ;;  %v7659_v9 = vunpack.i.l.s16 %v3167_v46  ;;  %v3374_v46 = vshrl.u32 %v9325_v62, 16 }
 0x1fc   : > { %3281 = vst [vmem:[#allocation1 + $0x7] ss:$9 sm:$0xff] %v9365_v22  ;;  %v2810_v45 = vrot.slane %v2764_v3, 3  ;;  %v3351_v7 = vpack.i.b16 %v3350_v11, %v3350_v11  ;;  %v3126_v11 = vpack.i.b16 %v9086_v59, %v9086_v59  ;;  %vm3402_vm6 = vcmp.ne.s32.totalorder %v9395_v5, %v9399_v21 }
 0x1fd   : > { %15468 = vst [vmem:[#allocation68_spill] sm:$0xff] %v9382_v1  ;;  %v9397_v1 = vunpack.c.l.b16 %v8301_v44  ;;  %4335 = vmatpush.bf16.msra.mxu3 %v9363_v17  ;;  %v2731_v44 = vpop.f32.mrf.mxu2  ;;  %4975 = vmatpush.bf16.msra.mxu1 %v9363_v17  ;;  %vm3174_vm15 = vcmp.ne.s32.totalorder %v7659_v9, %v9399_v21  ;;  %v9458_v9 = vld [vmem:[%s14648_s7] ss:$0 sm:$0xff]  ;;  %v3378_v39 = vshrl.u32 %v9407_v26, 16 }
 0x1fe   : > { %15469 = vst [vmem:[#allocation69_spill] sm:$0xff] %v9389_v30  ;;  %v3012_v55 = vsel %vm1271_vm1, %v2764_v3, %v2810_v45  ;;  %v3015_v40 = vsel %vm1275_vm2, %v2764_v3, %v2810_v45  ;;  %v3018_v30 = vsel %vm1279_vm3, %v2764_v3, %v2810_v45  ;;  %4719 = vmatpush.bf16.msra.mxu0 %v9363_v17 }
 0x1ff   : > { %15470 = vst [vmem:[#allocation70_spill] sm:$0xff] %v9407_v26  ;;  %v9409_v63 = vrot.slane %v3012_v55, 1  ;;  %v9414_v42 = vrot.slane %v3015_v40, 2  ;;  %5103 = vmatpush.bf16.msra.mxu2 %v9363_v17  ;;  %v9419_v19 = vsel %vm1267_vm0, %v2764_v3, %v2810_v45  ;;  %v9421_v0 = vrot.slane %v3018_v30, 3 }
 0x200   : > { %15473 = vst [vmem:[#allocation73_spill] sm:$0xff] %v9419_v19  ;;  %vm3173_vm14 = vcmp.ne.s32.totalorder %v9395_v5, %v9397_v1  ;;  %v3148_v55 = vpack.i.b16 %v9365_v22, %v9365_v22  ;;  %v3354_v45 = vshrl.u32 %v9098_v10, 16  ;;  %v7660_v3 = vunpack.i.l.s16 %v3394_v4 }
 0x201   : > { %15471 = vst [vmem:[#allocation71_spill] sm:$0xff] %v9409_v63  ;;  %4336 = vmatpush.bf16.msra.mxu3 %v9387_v37  ;;  %v3129_v30 = vpack.i.b16 %v9129_v24, %v9129_v24  ;;  %v2732_v40 = vadd.f32 %v9044_v18, %v2731_v44  ;;  %4976 = vmatpush.bf16.msra.mxu1 %v9387_v37  ;;  %vm9446_vm5 = vmpackc.low %vm3174_vm15, %vm3173_vm14  ;;  %v15475_v4 = vmov 0 }
 0x202   : > { %15472 = vst [vmem:[#allocation72_spill] sm:$0xff] %v9414_v42  ;;  %4720 = vmatpush.bf16.msra.mxu0 %v9387_v37  ;;  %v3375_v22 = vpack.i.b16 %v3374_v46, %v3374_v46  ;;  %v15476_v4 = vsel %vm9446_vm5, 4294967295, %v15475_v4  ;;  %v3150_v46 = vperm.slane %v3148_v55, 0  ;;  %v3355_v62 = vpack.i.b16 %v3354_v45, %v3354_v45 }
 0x203   : > { %v3282_v34 = vld [vmem:[#allocation1] sm:$0xff]  ;;  %15474 = vst [vmem:[#allocation74_spill] sm:$0xff] %v9421_v0  ;;  %5104 = vmatpush.bf16.msra.mxu2 %v9387_v37  ;;  %v2765_v44 = vpack.c.bf16 %v2732_v40, %v2732_v40  ;;  %vm3401_vm7 = vcmp.ne.s32.totalorder %v7660_v3, %v9397_v1  ;;  %v3131_v28 = vperm.slane %v3129_v30, 0 }
 0x204   : > { %3284 = vst [vmem:[#allocation1] ss:$9 sm:$0xff] %v9407_v26  ;;  %v3377_v23 = vperm.slane %v3375_v22, 0  ;;  %v3342_v25 = vsel %vm9446_vm5, %v3150_v46, %v3282_v34  ;;  %vm9477_vm8 = vmpackc.low %vm3402_vm6, %vm3401_vm7  ;;  %v15480_v34 = vmov 0  ;;  %v9489_v46 = vstv %s8459_s27  ;;  %s17021_s27 = sld [smem:[#allocation234_spill]] }
 0x205   : > { %3285 = vst [vmem:[#allocation1 + $0x1] ss:$9 sm:$0xff] %v9419_v19  ;;  %v3353_v19 = vperm.slane %v3351_v7, 0  ;;  %v3128_v7 = vperm.slane %v3126_v11, 0  ;;  %v2734_v40 = vpop.f32.mrf.mxu2  ;;  %v15481_v34 = vsel %vm9477_vm8, 4294967295, %v15480_v34  ;;  %vm3110_vm9 = vcmp.gt.s32.totalorder %v9489_v46, 14 }
 0x206   : > { %3287 = vst [vmem:[#allocation1 + $0x2] ss:$9 sm:$0xff] %v9409_v63  ;;  %v1754_v63 = vpop.f32.mrf.mxu1  ;;  %v2735_v55 = vadd.f32 %v9044_v18, %v2734_v40  ;;  %v9494_v21 = vsel %vm9477_vm8, %v3377_v23, %v3342_v25  ;;  %vm3102_vm10 = vcmp.lt.s32.totalorder %v9489_v46, 1 }
 0x207   : > { %3289 = vst [vmem:[#allocation1 + $0x3] ss:$9 sm:$0xff] %v9414_v42  ;;  %v1755_v42 = vadd.f32 %v9265_v60, %v1754_v63  ;;  %v3336_v63 = vsel %vm9446_vm5, %v3128_v7, %v9109_v36  ;;  %v3337_v7 = vsel %vm9446_vm5, %v3131_v28, %v9149_v2 }
 0x208   : > { %15477 = vst [vmem:[#allocation75_spill] sm:$0xff] %v15476_v4  ;;  %v2766_v5 = vpack.c.bf16 %v2735_v55, %v2735_v55 }
 0x209   : > { %3291 = vst [vmem:[#allocation1 + $0x4] ss:$9 sm:$0xff] %v9421_v0  ;;  %v2811_v0 = vrot.slane %v2765_v44, 3  ;;  %v9486_v30 = vpack.c.bf16 %v1755_v42, %v1755_v42 }
 0x20a   : > { %15482 = vst [vmem:[#allocation78_spill] sm:$0xff] %v15481_v34  ;;  %v2812_v40 = vrot.slane %v2766_v5, 3 }
 0x20b   : > { %v9467_v1 = vsel %vm1267_vm0, %v2765_v44, %v2811_v0  ;;  %v3024_v11 = vsel %vm1271_vm1, %v2765_v44, %v2811_v0  ;;  %v3027_v45 = vsel %vm1275_vm2, %v2765_v44, %v2811_v0  ;;  %v9472_v3 = vsel %vm1279_vm3, %v2765_v44, %v2811_v0  ;;  %15485 = vst [vmem:[#allocation81_spill] sm:$0xff] %v9486_v30  ;;  %v1153_v44 = vpop.f32.mrf.mxu0 }
 0x20c   : > { %15478 = vst [vmem:[#allocation76_spill] sm:$0xff] %v9467_v1  ;;  %v9481_v22 = vrot.slane %v3024_v11, 1  ;;  %v9483_v36 = vrot.slane %v3027_v45, 2  ;;  %v1152_v0 = vadd.f32 %v9458_v9, %v1151_v33  ;;  %v1154_v42 = vadd.f32 %v9458_v9, %v1153_v44 }
 0x20d   : > { %15479 = vst [vmem:[#allocation77_spill] sm:$0xff] %v9472_v3  ;;  %v3404_v33 = vsel %vm9477_vm8, %v3353_v19, %v3336_v63  ;;  %v3357_v11 = vperm.slane %v3355_v62, 0  ;;  %v9506_v25 = vrot.slane %v9486_v30, 3  ;;  %v3036_v2 = vsel %vm1271_vm1, %v2766_v5, %v2812_v40  ;;  %v2736_v28 = vpop.f32.mrf.mxu2 }
 0x20e   : > { %15483 = vst [vmem:[#allocation79_spill] sm:$0xff] %v9481_v22  ;;  %v3950_v23 = vsel %vm3110_vm9, %v9494_v21, %v3404_v33  ;;  %v1191_v55 = vpack.c.bf16 %v1152_v0, %v1152_v0  ;;  %v3039_v19 = vsel %vm1275_vm2, %v2766_v5, %v2812_v40  ;;  %v1192_v62 = vpack.c.bf16 %v1154_v42, %v1154_v42  ;;  %v9529_v33 = vpop.f32.mrf.mxu1 }
 0x20f   : > { %15484 = vst [vmem:[#allocation80_spill] sm:$0xff] %v9483_v36  ;;  %v9515_v45 = vsel %vm9477_vm8, %v3357_v11, %v3337_v7  ;;  %v3042_v63 = vsel %vm1279_vm3, %v2766_v5, %v2812_v40  ;;  %v9522_v3 = vrot.slane %v3036_v2, 1  ;;  %v9527_v0 = vsel %vm1275_vm2, %v9486_v30, %v9506_v25 }
 0x210   : > { %3292 = vst [vmem:[#allocation1 + $0x5] ss:$9 sm:$0xff] %v9467_v1  ;;  %v3973_v44 = vsel %vm3102_vm10, %v9515_v45, %v3950_v23  ;;  %v9531_v7 = vunpack.c.l.bf16 %v1191_v55  ;;  %v9533_v11 = vrot.slane %v3039_v19, 2  ;;  %v9538_v1 = vrot.slane %v3042_v63, 3 }
 0x211   : > { %15486 = vst [vmem:[#allocation82_spill] sm:$0xff] %v9489_v46  ;;  %v3997_v23 = vunpack.c.l.bf16 %v3973_v44  ;;  %v9540_v2 = vunpack.c.l.bf16 %v1192_v62  ;;  %v3152_v55 = vpack.i.b16 %v9483_v36, %v9483_v36  ;;  %v3998_v19 = vunpack.c.h.bf16 %v3973_v44 }
 0x212   : > { %15487 = vst [vmem:[#allocation83_spill] sm:$0xff] %v9494_v21  ;;  %v3358_v63 = vshrl.u32 %v9144_v27, 16  ;;  %v2737_v62 = vadd.f32 %v9044_v18, %v2736_v28  ;;  %v3133_v44 = vpack.i.b16 %v9169_v13, %v9169_v13 }
 0x213   : > { %3294 = vst [vmem:[#allocation1 + $0x6] ss:$9 sm:$0xff] %v9481_v22  ;;  %v9536_v22 = vsel %vm1267_vm0, %v2766_v5, %v2812_v40  ;;  %v1156_v32 = vpop.f32.mrf.mxu0  ;;  %v4013_v5 = vmul.f32 %v3997_v23, %v9531_v7  ;;  %v4014_v30 = vmul.f32 %v3998_v19, %v9540_v2 }
 0x214   : > { %3295 = vst [vmem:[#allocation1 + $0x7] ss:$9 sm:$0xff] %v9483_v36 }
 0x215   : > { %15488 = vst [vmem:[#allocation84_spill] sm:$0xff] %v9506_v25  ;;  %v2739_v40 = vpop.f32.mrf.mxu2 }
 0x216   : > { %15489 = vst [vmem:[#allocation85_spill] sm:$0xff] %v9522_v3  ;;  %v2740_v25 = vadd.f32 %v9044_v18, %v2739_v40  ;;  %v1759_v26 = vpop.f32.mrf.mxu1  ;;  %v1157_v40 = vadd.f32 %v9458_v9, %v1156_v32 }
 0x217   : > { %15490 = vst [vmem:[#allocation86_spill] sm:$0xff] %v9527_v0  ;;  %v3379_v0 = vpack.i.b16 %v3378_v39, %v3378_v39  ;;  %v1760_v28 = vadd.f32 %v9265_v60, %v1759_v26  ;;  %v9575_v60 = vadd.s32 1, %v9489_v46 }
 0x218   : > { %15491 = vst [vmem:[#allocation87_spill] sm:$0xff] %v9529_v33  ;;  %v2767_v33 = vpack.c.bf16 %v2737_v62, %v2737_v62  ;;  %v2768_v36 = vpack.c.bf16 %v2740_v25, %v2740_v25 }
 0x219   : > { %15492 = vst [vmem:[#allocation88_spill] sm:$0xff] %v9531_v7  ;;  %v3381_v20 = vperm.slane %v3379_v0, 0  ;;  %vm3111_vm11 = vcmp.gt.s32.totalorder %v9575_v60, 14  ;;  %vm14799_vm12 = vcmp.lt.s32.totalorder %v9575_v60, 1 }
 0x21a   : > { %15493 = vst [vmem:[#allocation89_spill] sm:$0xff] %v9533_v11  ;;  %v2813_v23 = vrot.slane %v2767_v33, 3  ;;  %v2814_v39 = vrot.slane %v2768_v36, 3 }
 0x21b   : > { %v3296_v42 = vld [vmem:[#allocation1] sm:$0xff]  ;;  %15494 = vst [vmem:[#allocation90_spill] sm:$0xff] %v9536_v22  ;;  %v1158_v0 = vpop.f32.mrf.mxu0 }
 0x21c   : > { %15495 = vst [vmem:[#allocation91_spill] sm:$0xff] %v9538_v1  ;;  %v9561_v19 = vsel %vm1267_vm0, %v2767_v33, %v2813_v23  ;;  %v3051_v25 = vsel %vm1275_vm2, %v2767_v33, %v2813_v23 }
 0x21d   : > { %15496 = vst [vmem:[#allocation92_spill] sm:$0xff] %v9540_v2  ;;  %v2741_v26 = vpop.f32.mrf.mxu2 }
 0x21e   : > { %3297 = vst [vmem:[#allocation1] ss:$9 sm:$0xff] %v9536_v22  ;;  %v4029_v22 = vpack.c.bf16 %v4014_v30, %v4013_v5  ;;  %v3048_v30 = vsel %vm1271_vm1, %v2767_v33, %v2813_v23 }
 0x21f   : > { %3299 = vst [vmem:[#allocation1 + $0x1] ss:$9 sm:$0xff] %v9522_v3  ;;  %v3154_v3 = vperm.slane %v3152_v55, 0  ;;  %v3054_v55 = vsel %vm1279_vm3, %v2767_v33, %v2813_v23  ;;  %v9567_v5 = vrot.slane %v3048_v30, 1  ;;  %v1159_v33 = vadd.f32 %v9458_v9, %v1158_v0 }
 0x220   : > { %3301 = vst [vmem:[#allocation1 + $0x2] ss:$9 sm:$0xff] %v9533_v11  ;;  %v3359_v11 = vpack.i.b16 %v3358_v63, %v3358_v63  ;;  %7670 = vmatmul.msk.bf16.vlgmr.msrb.gmra.mxu3 %vm1117_vm4, %v4029_v22  ;;  %v9571_v22 = vrot.slane %v3054_v55, 3  ;;  %v9584_v63 = vpack.c.bf16 %v1760_v28, %v1760_v28  ;;  %v3066_v30 = vsel %vm1279_vm3, %v2768_v36, %v2814_v39 }
 0x221   : > { %3303 = vst [vmem:[#allocation1 + $0x3] ss:$9 sm:$0xff] %v9538_v1  ;;  %v3343_v1 = vsel %vm9446_vm5, %v3154_v3, %v3296_v42  ;;  %4847 = vmatpush.bf16.msrb.mxu3 %v9363_v17  ;;  %v9569_v3 = vrot.slane %v3051_v25, 2  ;;  %v3135_v42 = vperm.slane %v3133_v44, 0  ;;  %v9591_v44 = vsel %vm1267_vm0, %v2768_v36, %v2814_v39 }
 0x222   : > { %3304 = vst [vmem:[#allocation1 + $0x4] ss:$9 sm:$0xff] %v9561_v19  ;;  %v9581_v17 = vsel %vm9477_vm8, %v3381_v20, %v3343_v1  ;;  %v3361_v32 = vperm.slane %v3359_v11, 0  ;;  %v1193_v1 = vpack.c.bf16 %v1157_v40, %v1157_v40  ;;  %v1194_v23 = vpack.c.bf16 %v1159_v33, %v1159_v33 }
 0x223   : > { %15497 = vst [vmem:[#allocation93_spill] sm:$0xff] %v9575_v60  ;;  %v3338_v62 = vsel %vm9446_vm5, %v3135_v42, %v9189_v41  ;;  %v4378_v20 = vsel %vm3110_vm9, %v9581_v17, %v9515_v45  ;;  %v3060_v41 = vsel %vm1271_vm1, %v2768_v36, %v2814_v39  ;;  %v9607_v11 = vrot.slane %v9584_v63, 3 }
 0x224   : > { %15498 = vst [vmem:[#allocation94_spill] sm:$0xff] %v9581_v17  ;;  %v9603_v28 = vsel %vm9477_vm8, %v3361_v32, %v3338_v62  ;;  %v3951_v25 = vsel %vm3111_vm11, %v9494_v21, %v9515_v45  ;;  %v9618_v0 = vrot.slane %v3060_v41, 1  ;;  %v9620_v40 = vunpack.c.l.bf16 %v1193_v1 }
 0x225   : > { %3306 = vst [vmem:[#allocation1 + $0x5] ss:$9 sm:$0xff] %v9567_v5  ;;  %4848 = vmatpush.bf16.msrb.mxu3 %v9387_v37  ;;  %v3063_v37 = vsel %vm1275_vm2, %v2768_v36, %v2814_v39  ;;  %v4385_v55 = vsel %vm3102_vm10, %v9603_v28, %v4378_v20  ;;  %v2744_v42 = vpop.f32.mrf.mxu2  ;;  %v9622_v33 = vunpack.c.l.bf16 %v1194_v23  ;;  %v9629_v36 = vsel %vm1279_vm3, %v9584_v63, %v9607_v11 }
 0x226   : > { %15499 = vst [vmem:[#allocation95_spill] sm:$0xff] %v9584_v63  ;;  %v9624_v62 = vrot.slane %v3063_v37, 2  ;;  %v9631_v39 = vrot.slane %v3066_v30, 3  ;;  %v3974_v32 = vsel %vm14799_vm12, %v9515_v45, %v3951_v25  ;;  %v4393_v20 = vunpack.c.l.bf16 %v4385_v55 }
 0x227   : > { %3308 = vst [vmem:[#allocation1 + $0x6] ss:$9 sm:$0xff] %v9569_v3  ;;  %v4394_v41 = vunpack.c.h.bf16 %v4385_v55  ;;  %v3999_v1 = vunpack.c.l.bf16 %v3974_v32  ;;  %v4000_v23 = vunpack.c.h.bf16 %v3974_v32  ;;  %v2742_v55 = vadd.f32 %v9044_v18, %v2741_v26 }
 0x228   : > { %15500 = vst [vmem:[#allocation96_spill] sm:$0xff] %v9591_v44  ;;  %v4409_v37 = vmul.f32 %v4393_v20, %v9531_v7  ;;  %v2745_v63 = vadd.f32 %v9044_v18, %v2744_v42 }
 0x229   : > { %3309 = vst [vmem:[#allocation1 + $0x7] ss:$9 sm:$0xff] %v9571_v22  ;;  %v4016_v30 = vmul.f32 %v4000_v23, %v9622_v33  ;;  %v4410_v25 = vmul.f32 %v4394_v41, %v9540_v2  ;;  %v15526_v2 = vld [vmem:[#allocation23_spill] sm:$0xff] }
 0x22a   : > { %15501 = vst [vmem:[#allocation97_spill] sm:$0xff] %v9603_v28 }
 0x22b   : > { %15502 = vst [vmem:[#allocation98_spill] sm:$0xff] %v9607_v11 }
 0x22c   : > { %15503 = vst [vmem:[#allocation99_spill] sm:$0xff] %v9618_v0 }
 0x22d   : > { %15504 = vst [vmem:[#allocation100_spill] sm:$0xff] %v9620_v40  ;;  %v2746_v32 = vpop.f32.mrf.mxu2 }
 0x22e   : > { %15505 = vst [vmem:[#allocation101_spill] sm:$0xff] %v9622_v33 }
 0x22f   : > { %15506 = vst [vmem:[#allocation102_spill] sm:$0xff] %v9624_v62 }
 0x230   : > { %15507 = vst [vmem:[#allocation103_spill] sm:$0xff] %v9629_v36  ;;  %v9636_v44 = vld [vmem:[#allocation1] sm:$0xff]  ;;  %v4015_v36 = vmul.f32 %v3999_v1, %v9620_v40  ;;  %v2770_v1 = vpack.c.bf16 %v2745_v63, %v2745_v63 }
 0x231   : > { %15508 = vst [vmem:[#allocation104_spill] sm:$0xff] %v9636_v44  ;;  %v4425_v44 = vpack.c.bf16 %v4410_v25, %v4409_v37 }
 0x232   : > { %3312 = vst [vmem:[#allocation1] ss:$9 sm:$0xff] %v9618_v0  ;;  %v4030_v11 = vpack.c.bf16 %v4016_v30, %v4015_v36  ;;  %v2769_v0 = vpack.c.bf16 %v2742_v55, %v2742_v55 }
 0x233   : > { %3314 = vst [vmem:[#allocation1 + $0x1] ss:$9 sm:$0xff] %v9624_v62  ;;  %7694 = vmatmul.msk.bf16.vlgmr.msrb.gmra.mxu1 %vm1117_vm4, %v4425_v44  ;;  %v2816_v44 = vrot.slane %v2770_v1, 3 }
 0x234   : > { %3316 = vst [vmem:[#allocation1 + $0x2] ss:$9 sm:$0xff] %v9631_v39  ;;  %7671 = vmatmul.msk.bf16.gmra.mxu3 %vm1117_vm4, %v4030_v11  ;;  %v2815_v20 = vrot.slane %v2769_v0, 3 }
 0x235   : > { %v9665_v63 = vsel %vm1267_vm0, %v2770_v1, %v2816_v44  ;;  %v9668_v11 = vsel %vm1271_vm1, %v2770_v1, %v2816_v44  ;;  %v15520_v1 = vld [vmem:[#allocation22_spill] sm:$0xff]  ;;  %v15524_v44 = vld [vmem:[#allocation28_spill] sm:$0xff] }
 0x236   : > { %v9650_v7 = vsel %vm1267_vm0, %v2769_v0, %v2815_v20  ;;  %v3072_v23 = vsel %vm1271_vm1, %v2769_v0, %v2815_v20  ;;  %v3075_v41 = vsel %vm1275_vm2, %v2769_v0, %v2815_v20  ;;  %v3078_v26 = vsel %vm1279_vm3, %v2769_v0, %v2815_v20  ;;  %15509 = vst [vmem:[#allocation105_spill] sm:$0xff] %v9665_v63  ;;  %v15519_v20 = vld [vmem:[#allocation25_spill] sm:$0xff] }
 0x237   : > { %v9655_v18 = vrot.slane %v3072_v23, 1  ;;  %v9657_v42 = vrot.slane %v3075_v41, 2  ;;  %v9659_v36 = vrot.slane %v3078_v26, 3  ;;  %3317 = vst [vmem:[#allocation1 + $0x3] ss:$9 sm:$0xff] %v9650_v7  ;;  %v15521_v23 = vld [vmem:[#allocation24_spill] sm:$0xff] }
 0x238   : > { %3324 = vst [vmem:[#allocation1 + $0x7] ss:$9 sm:$0xff] %v9665_v63  ;;  %v15522_v41 = vld [vmem:[#allocation26_spill] sm:$0xff] }
 0x239   : > { %3319 = vst [vmem:[#allocation1 + $0x4] ss:$9 sm:$0xff] %v9655_v18 }
 0x23a   : > { %3321 = vst [vmem:[#allocation1 + $0x5] ss:$9 sm:$0xff] %v9657_v42 }
 0x23b   : > { %3323 = vst [vmem:[#allocation1 + $0x6] ss:$9 sm:$0xff] %v9659_v36 }
 0x242   : > { %v9672_v0 = vld [vmem:[#allocation1] sm:$0xff] }
 0x243   : > { %15510 = vst [vmem:[#allocation106_spill] sm:$0xff] %v9672_v0  ;;  %v15525_v0 = vld [vmem:[#allocation29_spill] sm:$0xff] }
 0x244   : > { %3454 = vst [vmem:[#allocation1] ss:$9 sm:$0xff] %v9062_v51  ;;  %v9696_v51 = vrot.slane %v9101_v12, 1  ;;  %v9712_v12 = vrot.slane %v9142_v35, 2  ;;  %v15523_v35 = vld [vmem:[#allocation27_spill] sm:$0xff] }
 0x245   : > { %3456 = vst [vmem:[#allocation1 + $0x1] ss:$9 sm:$0xff] %v9064_v52 }
 0x246   : > { %3458 = vst [vmem:[#allocation1 + $0x2] ss:$9 sm:$0xff] %v9066_v14 }
 0x247   : > { %3460 = vst [vmem:[#allocation1 + $0x3] ss:$9 sm:$0xff] %v9069_v8 }
 0x248   : > { %3462 = vst [vmem:[#allocation1 + $0x4] ss:$9 sm:$0xff] %v9077_v58 }
 0x249   : > { %3464 = vst [vmem:[#allocation1 + $0x5] ss:$9 sm:$0xff] %v9079_v49 }
 0x24a   : > { %3466 = vst [vmem:[#allocation1 + $0x6] ss:$9 sm:$0xff] %v9083_v57 }
 0x24b   : > { %3468 = vst [vmem:[#allocation1 + $0x7] ss:$9 sm:$0xff] %v9086_v59 }
 0x24c   : > { %15513 = vst [vmem:[#allocation109_spill] sm:$0xff] %v9696_v51 }
 0x24d   : > { %15516 = vst [vmem:[#allocation112_spill] sm:$0xff] %v9712_v12 }
 0x252   : > { %v9682_v37 = vld [vmem:[#allocation1] sm:$0xff] }
 0x253   : > { %15511 = vst [vmem:[#allocation107_spill] sm:$0xff] %v9682_v37 }
 0x254   : > { %3470 = vst [vmem:[#allocation1] ss:$9 sm:$0xff] %v9058_v15 }
 0x25b   : > { %v9685_v30 = vld [vmem:[#allocation1] sm:$0xff] }
 0x25c   : > { %15512 = vst [vmem:[#allocation108_spill] sm:$0xff] %v9685_v30  ;;  %v9728_v30 = vrot.slane %v15526_v2, 3  ;;  %v3137_v2 = vpack.i.b16 %v15525_v0, %v15525_v0 }
 0x25d   : > { %3472 = vst [vmem:[#allocation1] ss:$9 sm:$0xff] %v9098_v10 }
 0x25e   : > { %3473 = vst [vmem:[#allocation1 + $0x1] ss:$9 sm:$0xff] %v9103_v43 }
 0x25f   : > { %3474 = vst [vmem:[#allocation1 + $0x2] ss:$9 sm:$0xff] %v9106_v29 }
 0x260   : > { %3475 = vst [vmem:[#allocation1 + $0x3] ss:$9 sm:$0xff] %v9115_v54 }
 0x261   : > { %3476 = vst [vmem:[#allocation1 + $0x4] ss:$9 sm:$0xff] %v9117_v16 }
 0x262   : > { %3477 = vst [vmem:[#allocation1 + $0x5] ss:$9 sm:$0xff] %v9120_v61 }
 0x263   : > { %3478 = vst [vmem:[#allocation1 + $0x6] ss:$9 sm:$0xff] %v9123_v56 }
 0x264   : > { %3479 = vst [vmem:[#allocation1 + $0x7] ss:$9 sm:$0xff] %v9129_v24 }
 0x265   : > { %15527 = vst [vmem:[#allocation23_spill] sm:$0xff] %v9728_v30 }
 0x26b   : > { %v9698_v25 = vld [vmem:[#allocation1] sm:$0xff] }
 0x26c   : > { %15514 = vst [vmem:[#allocation110_spill] sm:$0xff] %v9698_v25  ;;  %v9735_v25 = vpop.f32.mrf.mxu3 }
 0x26d   : > { %3482 = vst [vmem:[#allocation1] ss:$9 sm:$0xff] %v9696_v51  ;;  %v15549_v51 = vld [vmem:[#allocation45_spill] sm:$0xff] }
 0x274   : > { %v9701_v10 = vld [vmem:[#allocation1] sm:$0xff] }
 0x275   : > { %15515 = vst [vmem:[#allocation111_spill] sm:$0xff] %v9701_v10 }
 0x276   : > { %3484 = vst [vmem:[#allocation1] ss:$9 sm:$0xff] %v9144_v27  ;;  %v1161_v27 = vpop.f32.mrf.mxu0 }
 0x277   : > { %3485 = vst [vmem:[#allocation1 + $0x1] ss:$9 sm:$0xff] %v9147_v47 }
 0x278   : > { %3486 = vst [vmem:[#allocation1 + $0x2] ss:$9 sm:$0xff] %v9152_v48 }
 0x279   : > { %3487 = vst [vmem:[#allocation1 + $0x3] ss:$9 sm:$0xff] %v9154_v50  ;;  %v15540_v50 = vld [vmem:[#allocation37_spill] sm:$0xff] }
 0x27a   : > { %3488 = vst [vmem:[#allocation1 + $0x4] ss:$9 sm:$0xff] %v9158_v38 }
 0x27b   : > { %3489 = vst [vmem:[#allocation1 + $0x5] ss:$9 sm:$0xff] %v9162_v53 }
 0x27c   : > { %3490 = vst [vmem:[#allocation1 + $0x6] ss:$9 sm:$0xff] %v9167_v31  ;;  %v15538_v31 = vld [vmem:[#allocation35_spill] sm:$0xff] }
 0x27d   : > { %3491 = vst [vmem:[#allocation1 + $0x7] ss:$9 sm:$0xff] %v9169_v13  ;;  %v15537_v13 = vld [vmem:[#allocation33_spill] sm:$0xff] }
 0x27e   : > { %v1163_v26 = vpop.f32.mrf.mxu0 }
 0x284   : > { %v9714_v55 = vld [vmem:[#allocation1] sm:$0xff] }
 0x285   : > { %15517 = vst [vmem:[#allocation113_spill] sm:$0xff] %v9714_v55  ;;  %v1164_v55 = vadd.f32 %v9458_v9, %v1163_v26 }
 0x286   : > { %3494 = vst [vmem:[#allocation1] ss:$9 sm:$0xff] %v9712_v12  ;;  %v1166_v37 = vpop.f32.mrf.mxu0  ;;  %v9762_v12 = vadd.s32 3, %v9489_v46 }
 0x288   : > { %vm14830_vm15 = vcmp.gt.s32.totalorder %v9762_v12, 14  ;;  %vm14821_vm6 = vcmp.lt.s32.totalorder %v9762_v12, 1 }
 0x28d   : > { %v9717_v32 = vld [vmem:[#allocation1] sm:$0xff] }
 0x28e   : > { %15518 = vst [vmem:[#allocation114_spill] sm:$0xff] %v9717_v32  ;;  %v1162_v32 = vadd.f32 %v9458_v9, %v1161_v27 }
 0x28f   : > { %3496 = vst [vmem:[#allocation1] ss:$9 sm:$0xff] %v9182_v6 }
 0x290   : > { %3497 = vst [vmem:[#allocation1 + $0x1] ss:$9 sm:$0xff] %v15519_v20  ;;  %v15535_v20 = vld [vmem:[#allocation32_spill] sm:$0xff] }
 0x291   : > { %3498 = vst [vmem:[#allocation1 + $0x2] ss:$9 sm:$0xff] %v15520_v1 }
 0x292   : > { %3499 = vst [vmem:[#allocation1 + $0x3] ss:$9 sm:$0xff] %v15521_v23  ;;  %v9739_v23 = vadd.s32 2, %v9489_v46 }
 0x293   : > { %3500 = vst [vmem:[#allocation1 + $0x4] ss:$9 sm:$0xff] %v15522_v41  ;;  %v1195_v41 = vpack.c.bf16 %v1162_v32, %v1162_v32  ;;  %v15533_v32 = vld [vmem:[#allocation34_spill] sm:$0xff] }
 0x294   : > { %3501 = vst [vmem:[#allocation1 + $0x5] ss:$9 sm:$0xff] %v15523_v35  ;;  %v1196_v35 = vpack.c.bf16 %v1164_v55, %v1164_v55  ;;  %vm14810_vm13 = vcmp.gt.s32.totalorder %v9739_v23, 14  ;;  %vm14809_vm14 = vcmp.lt.s32.totalorder %v9739_v23, 1 }
 0x295   : > { %3502 = vst [vmem:[#allocation1 + $0x6] ss:$9 sm:$0xff] %v15524_v44  ;;  %v3362_v44 = vshrl.u32 %v9182_v6, 16  ;;  %v9744_v27 = vunpack.c.l.bf16 %v1195_v41  ;;  %v3952_v6 = vsel %vm14810_vm13, %v9494_v21, %v9603_v28  ;;  %v3139_v41 = vperm.slane %v3137_v2, 0 }
 0x296   : > { %3503 = vst [vmem:[#allocation1 + $0x7] ss:$9 sm:$0xff] %v15525_v0  ;;  %v9746_v26 = vunpack.c.l.bf16 %v1196_v35  ;;  %v15534_v0 = vld [vmem:[#allocation31_spill] sm:$0xff] }
 0x297   : > { %15529 = vst [vmem:[#allocation116_spill] sm:$0xff] %v9739_v23  ;;  %v3363_v55 = vpack.i.b16 %v3362_v44, %v3362_v44  ;;  %v3339_v44 = vsel %vm9446_vm5, %v3139_v41, %v15537_v13  ;;  %v15542_v41 = vld [vmem:[#allocation39_spill] sm:$0xff] }
 0x298   : > { %15530 = vst [vmem:[#allocation117_spill] sm:$0xff] %v9744_v27 }
 0x299   : > { %15531 = vst [vmem:[#allocation118_spill] sm:$0xff] %v9746_v26 }
 0x29a   : > { %15536 = vst [vmem:[#allocation34_spill] sm:$0xff] %v9762_v12  ;;  %v15575_v12 = vld [vmem:[#allocation59_spill] sm:$0xff] }
 0x29d   : > { %v9732_v10 = vld [vmem:[#allocation1] sm:$0xff] }
 0x29e   : > { %15528 = vst [vmem:[#allocation115_spill] sm:$0xff] %v9732_v10 }
 0x29f   : > { %3506 = vst [vmem:[#allocation1] ss:$9 sm:$0xff] %v9728_v30  ;;  %v3975_v30 = vsel %vm14809_vm14, %v9515_v45, %v3952_v6  ;;  %v3365_v6 = vperm.slane %v3363_v55, 0 }
 0x2a0   : > { %v4001_v35 = vunpack.c.l.bf16 %v3975_v30  ;;  %v4002_v1 = vunpack.c.h.bf16 %v3975_v30  ;;  %v1173_v30 = vpop.f32.mrf.mxu3 }
 0x2a1   : > { %v9777_v13 = vsel %vm9477_vm8, %v3365_v6, %v3339_v44  ;;  %v1174_v60 = vadd.f32 %v9458_v9, %v1173_v30 }
 0x2a2   : > { %v4017_v53 = vmul.f32 %v4001_v35, %v9744_v27  ;;  %v4018_v2 = vmul.f32 %v4002_v1, %v9746_v26  ;;  %15541 = vst [vmem:[#allocation33_spill] sm:$0xff] %v9777_v13  ;;  %v15543_v1 = vld [vmem:[#allocation40_spill] sm:$0xff]  ;;  %v3366_v35 = vshrl.u32 %v15533_v32, 16 }
 0x2a3   : > { %v3141_v44 = vpack.i.b16 %v15543_v1, %v15543_v1 }
 0x2a4   : > { %v4031_v48 = vpack.c.bf16 %v4018_v2, %v4017_v53 }
 0x2a6   : > { %v9748_v10 = vld [vmem:[#allocation1] sm:$0xff]  ;;  %7672 = vmatmul.msk.bf16.gmra.mxu3 %vm1117_vm4, %v4031_v48 }
 0x2a7   : > { %15532 = vst [vmem:[#allocation119_spill] sm:$0xff] %v9748_v10  ;;  %v1168_v10 = vpop.f32.mrf.mxu0 }
 0x2a8   : > { %3508 = vst [vmem:[#allocation1] ss:$9 sm:$0xff] %v15533_v32  ;;  %v1169_v38 = vadd.f32 %v9458_v9, %v1168_v10  ;;  %v3367_v32 = vpack.i.b16 %v3366_v35, %v3366_v35 }
 0x2a9   : > { %3509 = vst [vmem:[#allocation1 + $0x1] ss:$9 sm:$0xff] %v15534_v0  ;;  %v15539_v0 = vld [vmem:[#allocation36_spill] sm:$0xff] }
 0x2aa   : > { %3510 = vst [vmem:[#allocation1 + $0x2] ss:$9 sm:$0xff] %v15535_v20  ;;  %v1167_v20 = vadd.f32 %v9458_v9, %v1166_v37  ;;  %v3953_v37 = vsel %vm14830_vm15, %v9494_v21, %v9777_v13  ;;  %v1198_v55 = vpack.c.bf16 %v1169_v38, %v1169_v38  ;;  %v4379_v38 = vsel %vm3111_vm11, %v9581_v17, %v9603_v28 }
 0x2ab   : > { %3511 = vst [vmem:[#allocation1 + $0x3] ss:$9 sm:$0xff] %v15538_v31  ;;  %v3976_v53 = vsel %vm14821_vm6, %v9515_v45, %v3953_v37  ;;  %v4386_v37 = vsel %vm14799_vm12, %v9603_v28, %v4379_v38  ;;  %v1172_v38 = vadd.f32 %v9458_v9, %v9735_v25  ;;  %v15553_v25 = vld [vmem:[#allocation43_spill] sm:$0xff] }
 0x2ac   : > { %3512 = vst [vmem:[#allocation1 + $0x4] ss:$9 sm:$0xff] %v15539_v0  ;;  %v1197_v10 = vpack.c.bf16 %v1167_v20, %v1167_v20  ;;  %v9795_v48 = vunpack.c.l.bf16 %v1198_v55  ;;  %v4003_v6 = vunpack.c.l.bf16 %v3976_v53  ;;  %v1176_v0 = vpop.f32.mrf.mxu3  ;;  %v15547_v20 = vld [vmem:[#allocation41_spill] sm:$0xff]  ;;  %v3143_v55 = vperm.slane %v3141_v44, 0 }
 0x2ad   : > { %3513 = vst [vmem:[#allocation1 + $0x5] ss:$9 sm:$0xff] %v15540_v50  ;;  %v3369_v44 = vperm.slane %v3367_v32, 0  ;;  %v15555_v32 = vld [vmem:[#allocation47_spill] sm:$0xff] }
 0x2ae   : > { %3514 = vst [vmem:[#allocation1 + $0x6] ss:$9 sm:$0xff] %v15542_v41  ;;  %v9793_v2 = vunpack.c.l.bf16 %v1197_v10  ;;  %v4004_v41 = vunpack.c.h.bf16 %v3976_v53  ;;  %v9808_v10 = vadd.s32 4, %v9489_v46  ;;  %v4395_v53 = vunpack.c.l.bf16 %v4386_v37 }
 0x2af   : > { %3515 = vst [vmem:[#allocation1 + $0x7] ss:$9 sm:$0xff] %v15543_v1  ;;  %v4396_v1 = vunpack.c.h.bf16 %v4386_v37  ;;  %v3340_v35 = vsel %vm9446_vm5, %v3143_v55, %v15549_v51  ;;  %v4380_v51 = vsel %vm14810_vm13, %v9581_v17, %v9777_v13 }
 0x2b0   : > { %15544 = vst [vmem:[#allocation120_spill] sm:$0xff] %v9793_v2  ;;  %v4411_v31 = vmul.f32 %v4395_v53, %v9620_v40  ;;  %vm14938_vm7 = vcmp.gt.s32.totalorder %v9808_v10, 14  ;;  %vm14835_vm12 = vcmp.lt.s32.totalorder %v9808_v10, 1  ;;  %v4387_v55 = vsel %vm14809_vm14, %v9603_v28, %v4380_v51 }
 0x2b1   : > { %15545 = vst [vmem:[#allocation121_spill] sm:$0xff] %v9795_v48  ;;  %v4412_v47 = vmul.f32 %v4396_v1, %v9622_v33  ;;  %v15552_v1 = vld [vmem:[#allocation42_spill] sm:$0xff]  ;;  %v4397_v51 = vunpack.c.l.bf16 %v4387_v55  ;;  %v4398_v23 = vunpack.c.h.bf16 %v4387_v55 }
 0x2b2   : > { %15548 = vst [vmem:[#allocation123_spill] sm:$0xff] %v9808_v10  ;;  %v3370_v13 = vshrl.u32 %v15552_v1, 16  ;;  %v15561_v33 = vld [vmem:[#allocation50_spill] sm:$0xff] }
 0x2b3   : > { %v4426_v37 = vpack.c.bf16 %v4412_v47, %v4411_v31  ;;  %v1200_v31 = vpack.c.bf16 %v1174_v60, %v1174_v60 }
 0x2b4   : > { %v1178_v30 = vpop.f32.mrf.mxu3 }
 0x2b5   : > { %7695 = vmatmul.msk.bf16.gmra.mxu1 %vm1117_vm4, %v4426_v37  ;;  %v9851_v60 = vunpack.c.l.bf16 %v1200_v31  ;;  %v15560_v37 = vld [vmem:[#allocation53_spill] sm:$0xff]  ;;  %v3371_v31 = vpack.i.b16 %v3370_v13, %v3370_v13  ;;  %v1179_v13 = vadd.f32 %v9458_v9, %v1178_v30 }
 0x2b6   : > { %v9797_v50 = vld [vmem:[#allocation1] sm:$0xff] }
 0x2b7   : > { %15546 = vst [vmem:[#allocation122_spill] sm:$0xff] %v9797_v50  ;;  %v4019_v50 = vmul.f32 %v4003_v6, %v9793_v2 }
 0x2b8   : > { %3517 = vst [vmem:[#allocation1] ss:$9 sm:$0xff] %v15547_v20  ;;  %v4020_v20 = vmul.f32 %v4004_v41, %v9795_v48  ;;  %v9825_v41 = vsel %vm9477_vm8, %v3369_v44, %v3340_v35  ;;  %v15556_v35 = vld [vmem:[#allocation48_spill] sm:$0xff] }
 0x2b9   : > { %15551 = vst [vmem:[#allocation124_spill] sm:$0xff] %v9825_v41  ;;  %v3954_v47 = vsel %vm14938_vm7, %v9494_v21, %v9825_v41  ;;  %v4381_v30 = vsel %vm14830_vm15, %v9581_v17, %v9825_v41 }
 0x2ba   : > { %v4032_v6 = vpack.c.bf16 %v4020_v20, %v4019_v50  ;;  %v1199_v50 = vpack.c.bf16 %v1172_v38, %v1172_v38  ;;  %v15554_v20 = vld [vmem:[#allocation44_spill] sm:$0xff]  ;;  %v3977_v53 = vsel %vm14835_vm12, %v9515_v45, %v3954_v47  ;;  %15558 = vst [vmem:[#allocation125_spill] sm:$0xff] %v9851_v60  ;;  %v15559_v38 = vld [vmem:[#allocation49_spill] sm:$0xff]  ;;  %v9860_v47 = vadd.s32 5, %v9489_v46 }
 0x2bb   : > { %v4005_v40 = vunpack.c.l.bf16 %v3977_v53 }
 0x2bc   : > { %7673 = vmatmul.msk.bf16.gmra.mxu3 %vm1117_vm4, %v4032_v6  ;;  %v9849_v44 = vunpack.c.l.bf16 %v1199_v50  ;;  %v3144_v6 = vpack.i.b16 %v15560_v37, %v15560_v37  ;;  %15562 = vst [vmem:[#allocation126_spill] sm:$0xff] %v9860_v47  ;;  %v1181_v55 = vpop.f32.mrf.mxu3  ;;  %vm3115_vm14 = vcmp.gt.s32.totalorder %v9860_v47, 14  ;;  %vm3107_vm13 = vcmp.lt.s32.totalorder %v9860_v47, 1 }
 0x2be   : > { %15557 = vst [vmem:[#allocation42_spill] sm:$0xff] %v9849_v44  ;;  %v3146_v50 = vperm.slane %v3144_v6, 0  ;;  %v9874_v6 = vpop.f32.mrf.mxu1 }
 0x2bf   : > { %v9821_v24 = vld [vmem:[#allocation1] sm:$0xff] }
 0x2c0   : > { %15550 = vst [vmem:[#allocation45_spill] sm:$0xff] %v9821_v24  ;;  %v4006_v24 = vunpack.c.h.bf16 %v3977_v53 }
 0x2c1   : > { %3519 = vst [vmem:[#allocation1] ss:$9 sm:$0xff] %v15552_v1 }
 0x2c2   : > { %3520 = vst [vmem:[#allocation1 + $0x1] ss:$9 sm:$0xff] %v15553_v25  ;;  %v4022_v1 = vmul.f32 %v4006_v24, %v9851_v60 }
 0x2c3   : > { %3521 = vst [vmem:[#allocation1 + $0x2] ss:$9 sm:$0xff] %v15554_v20  ;;  %v15563_v20 = vld [vmem:[#allocation58_spill] sm:$0xff] }
 0x2c4   : > { %3522 = vst [vmem:[#allocation1 + $0x3] ss:$9 sm:$0xff] %v15555_v32  ;;  %v4021_v32 = vmul.f32 %v4005_v40, %v9849_v44  ;;  %v3341_v53 = vsel %vm9446_vm5, %v3146_v50, %v15563_v20 }
 0x2c5   : > { %3523 = vst [vmem:[#allocation1 + $0x4] ss:$9 sm:$0xff] %v15556_v35  ;;  %v4414_v35 = vmul.f32 %v4398_v23, %v9746_v26  ;;  %v3373_v23 = vperm.slane %v3371_v31, 0 }
 0x2c6   : > { %3524 = vst [vmem:[#allocation1 + $0x5] ss:$9 sm:$0xff] %v15559_v38  ;;  %v4413_v38 = vmul.f32 %v4397_v51, %v9744_v27  ;;  %v4033_v51 = vpack.c.bf16 %v4022_v1, %v4021_v32  ;;  %v1183_v1 = vpop.f32.mrf.mxu3  ;;  %v9908_v41 = vpop.f32.mrf.mxu1  ;;  %v15577_v27 = vld [vmem:[#allocation61_spill] sm:$0xff] }
 0x2c7   : > { %3525 = vst [vmem:[#allocation1 + $0x6] ss:$9 sm:$0xff] %v15561_v33  ;;  %v1177_v33 = vadd.f32 %v9458_v9, %v1176_v0  ;;  %v9882_v0 = vsel %vm9477_vm8, %v3373_v23, %v3341_v53 }
 0x2c8   : > { %3526 = vst [vmem:[#allocation1 + $0x7] ss:$9 sm:$0xff] %v15560_v37  ;;  %v15564_v37 = vld [vmem:[#allocation54_spill] sm:$0xff]  ;;  %v4427_v24 = vpack.c.bf16 %v4414_v35, %v4413_v38  ;;  %v3955_v20 = vsel %vm3115_vm14, %v9494_v21, %v9882_v0  ;;  %v1202_v35 = vpack.c.bf16 %v1179_v13, %v1179_v13  ;;  %v4388_v38 = vsel %vm14821_vm6, %v9603_v28, %v4381_v30  ;;  %v15572_v13 = vld [vmem:[#allocation56_spill] sm:$0xff]  ;;  %v15574_v30 = vld [vmem:[#allocation57_spill] sm:$0xff] }
 0x2c9   : > { %v9871_v25 = vrot.slane %v15564_v37, 1  ;;  %15566 = vst [vmem:[#allocation54_spill] sm:$0xff] %v9874_v6  ;;  %v1201_v32 = vpack.c.bf16 %v1177_v33, %v1177_v33  ;;  %v3978_v37 = vsel %vm3107_vm13, %v9515_v45, %v3955_v20  ;;  %v4399_v23 = vunpack.c.l.bf16 %v4388_v38  ;;  %v15576_v20 = vld [vmem:[#allocation60_spill] sm:$0xff] }
 0x2ca   : > { %15568 = vst [vmem:[#allocation128_spill] sm:$0xff] %v9882_v0  ;;  %7696 = vmatmul.msk.bf16.gmra.mxu1 %vm1117_vm4, %v4427_v24  ;;  %v9903_v31 = vunpack.c.l.bf16 %v1202_v35  ;;  %v4400_v24 = vunpack.c.h.bf16 %v4388_v38  ;;  %v4008_v33 = vunpack.c.h.bf16 %v3978_v37  ;;  %v9953_v6 = vadd.s32 7, %v9489_v46 }
 0x2cb   : > { %15565 = vst [vmem:[#allocation58_spill] sm:$0xff] %v9871_v25  ;;  %v9901_v50 = vunpack.c.l.bf16 %v1201_v32  ;;  %v4415_v32 = vmul.f32 %v4399_v23, %v9793_v2  ;;  %v15581_v23 = vld [vmem:[#allocation66_spill] sm:$0xff] }
 0x2cc   : > { %7674 = vmatmul.msk.bf16.gmra.mxu3 %vm1117_vm4, %v4033_v51  ;;  %15570 = vst [vmem:[#allocation130_spill] sm:$0xff] %v9903_v31  ;;  %v4007_v51 = vunpack.c.l.bf16 %v3978_v37  ;;  %v4416_v35 = vmul.f32 %v4400_v24, %v9795_v48  ;;  %v4024_v38 = vmul.f32 %v4008_v33, %v9903_v31  ;;  %v15578_v37 = vld [vmem:[#allocation62_spill] sm:$0xff]  ;;  %v4382_v33 = vsel %vm14938_vm7, %v9581_v17, %v9882_v0 }
 0x2cd   : > { %15569 = vst [vmem:[#allocation129_spill] sm:$0xff] %v9901_v50  ;;  %vm14937_vm15 = vcmp.gt.s32.totalorder %v9953_v6, 14 }
 0x2ce   : > { %15573 = vst [vmem:[#allocation56_spill] sm:$0xff] %v9908_v41  ;;  %v4023_v26 = vmul.f32 %v4007_v51, %v9901_v50  ;;  %v15580_v41 = vld [vmem:[#allocation64_spill] sm:$0xff]  ;;  %v4428_v24 = vpack.c.bf16 %v4416_v35, %v4415_v32  ;;  %v1186_v51 = vpop.f32.mrf.mxu3  ;;  %v9933_v2 = vpop.f32.mrf.mxu1  ;;  %v15583_v32 = vld [vmem:[#allocation65_spill] sm:$0xff] }
 0x2cf   : > { %v9877_v40 = vld [vmem:[#allocation1] sm:$0xff]  ;;  %15582 = vst [vmem:[#allocation60_spill] sm:$0xff] %v9933_v2  ;;  %v9943_v35 = vrot.slane %v15583_v32, 2 }
 0x2d0   : > { %15567 = vst [vmem:[#allocation127_spill] sm:$0xff] %v9877_v40  ;;  %v1184_v40 = vadd.f32 %v9458_v9, %v1183_v1  ;;  %v4034_v48 = vpack.c.bf16 %v4024_v38, %v4023_v26  ;;  %v4389_v26 = vsel %vm14835_vm12, %v9603_v28, %v4382_v33  ;;  %vm14903_vm12 = vcmp.lt.s32.totalorder %v9953_v6, 1 }
 0x2d1   : > { %3529 = vst [vmem:[#allocation1] ss:$9 sm:$0xff] %v9871_v25  ;;  %v4402_v0 = vunpack.c.h.bf16 %v4389_v26 }
 0x2d2   : > { %v1204_v1 = vpack.c.bf16 %v1184_v40, %v1184_v40  ;;  %15584 = vst [vmem:[#allocation61_spill] sm:$0xff] %v9943_v35  ;;  %v4401_v40 = vunpack.c.l.bf16 %v4389_v26 }
 0x2d3   : > { %15588 = vst [vmem:[#allocation133_spill] sm:$0xff] %v9953_v6  ;;  %v4418_v32 = vmul.f32 %v4402_v0, %v9851_v60  ;;  %v15593_v0 = vld [vmem:[#allocation71_spill] sm:$0xff] }
 0x2d6   : > { %v1188_v2 = vpop.f32.mrf.mxu3 }
 0x2d7   : > { %v1189_v26 = vadd.f32 %v9458_v9, %v1188_v2  ;;  %v3956_v2 = vsel %vm14937_vm15, %v9494_v21, %v9581_v17 }
 0x2d8   : > { %v9905_v53 = vld [vmem:[#allocation1] sm:$0xff] }
 0x2d9   : > { %15571 = vst [vmem:[#allocation131_spill] sm:$0xff] %v9905_v53  ;;  %v1182_v53 = vadd.f32 %v9458_v9, %v1181_v55 }
 0x2da   : > { %3531 = vst [vmem:[#allocation1] ss:$9 sm:$0xff] %v15572_v13  ;;  %v9920_v13 = vadd.s32 6, %v9489_v46  ;;  %7697 = vmatmul.msk.bf16.gmra.mxu1 %vm1117_vm4, %v4428_v24  ;;  %v9947_v24 = vunpack.c.l.bf16 %v1204_v1 }
 0x2db   : > { %3532 = vst [vmem:[#allocation1 + $0x1] ss:$9 sm:$0xff] %v15574_v30  ;;  %v1203_v55 = vpack.c.bf16 %v1182_v53, %v1182_v53 }
 0x2dc   : > { %3533 = vst [vmem:[#allocation1 + $0x2] ss:$9 sm:$0xff] %v15575_v12  ;;  %7675 = vmatmul.msk.bf16.gmra.mxu3 %vm1117_vm4, %v4034_v48  ;;  %vm14961_vm6 = vcmp.lt.s32.totalorder %v9920_v13, 1 }
 0x2dd   : > { %3534 = vst [vmem:[#allocation1 + $0x3] ss:$9 sm:$0xff] %v15576_v20  ;;  %v3979_v48 = vsel %vm14961_vm6, %v9515_v45, %v9494_v21  ;;  %v9945_v38 = vunpack.c.l.bf16 %v1203_v55 }
 0x2de   : > { %3535 = vst [vmem:[#allocation1 + $0x4] ss:$9 sm:$0xff] %v15577_v27  ;;  %v4009_v10 = vunpack.c.l.bf16 %v3979_v48  ;;  %v4010_v33 = vunpack.c.h.bf16 %v3979_v48  ;;  %v15591_v48 = vld [vmem:[#allocation70_spill] sm:$0xff] }
 0x2df   : > { %3536 = vst [vmem:[#allocation1 + $0x5] ss:$9 sm:$0xff] %v15578_v37 }
 0x2e0   : > { %15579 = vst [vmem:[#allocation59_spill] sm:$0xff] %v9920_v13  ;;  %v4025_v55 = vmul.f32 %v4009_v10, %v9945_v38  ;;  %v4026_v1 = vmul.f32 %v4010_v33, %v9947_v24  ;;  %v15595_v33 = vld [vmem:[#allocation74_spill] sm:$0xff]  ;;  %v15611_v13 = vld [vmem:[#allocation99_spill] sm:$0xff] }
 0x2e1   : > { %3537 = vst [vmem:[#allocation1 + $0x6] ss:$9 sm:$0xff] %v15580_v41  ;;  %v9959_v41 = vpop.f32.mrf.mxu1 }
 0x2e2   : > { %3538 = vst [vmem:[#allocation1 + $0x7] ss:$9 sm:$0xff] %v15581_v23  ;;  %v4417_v23 = vmul.f32 %v4401_v40, %v9849_v44  ;;  %v4035_v40 = vpack.c.bf16 %v4026_v1, %v4025_v55  ;;  %v15592_v44 = vld [vmem:[#allocation73_spill] sm:$0xff]  ;;  %v3980_v55 = vsel %vm14903_vm12, %v9515_v45, %v3956_v2  ;;  %v15597_v1 = vld [vmem:[#allocation79_spill] sm:$0xff] }
 0x2e3   : > { %15585 = vst [vmem:[#allocation62_spill] sm:$0xff] %v9945_v38 }
 0x2e4   : > { %15586 = vst [vmem:[#allocation65_spill] sm:$0xff] %v9947_v24  ;;  %v4429_v46 = vpack.c.bf16 %v4418_v32, %v4417_v23  ;;  %v1206_v23 = vpack.c.bf16 %v1189_v26, %v1189_v26  ;;  %v15600_v26 = vld [vmem:[#allocation80_spill] sm:$0xff] }
 0x2e5   : > { %15589 = vst [vmem:[#allocation134_spill] sm:$0xff] %v9959_v41  ;;  %v4011_v41 = vunpack.c.l.bf16 %v3980_v55 }
 0x2e9   : > { %v9949_v53 = vld [vmem:[#allocation1] sm:$0xff] }
 0x2ea   : > { %15587 = vst [vmem:[#allocation132_spill] sm:$0xff] %v9949_v53  ;;  %v1187_v53 = vadd.f32 %v9458_v9, %v1186_v51  ;;  %7698 = vmatmul.msk.bf16.gmra.mxu1 %vm1117_vm4, %v4429_v46  ;;  %v4383_v9 = vsel %vm3115_vm14, %v9581_v17, %v9494_v21  ;;  %v15594_v51 = vld [vmem:[#allocation72_spill] sm:$0xff] }
 0x2eb   : > { %3541 = vst [vmem:[#allocation1] ss:$9 sm:$0xff] %v9943_v35  ;;  %v15596_v46 = vld [vmem:[#allocation76_spill] sm:$0xff]  ;;  %v4390_v32 = vsel %vm3107_vm13, %v9603_v28, %v4383_v9 }
 0x2ec   : > { %7676 = vmatmul.msk.bf16.gmra.mxu3 %vm1117_vm4, %v4035_v40  ;;  %v1205_v10 = vpack.c.bf16 %v1187_v53, %v1187_v53  ;;  %v9992_v53 = vunpack.c.l.bf16 %v1206_v23  ;;  %v9995_v40 = vpop.f32.mrf.mxu1  ;;  %v4403_v21 = vunpack.c.l.bf16 %v4390_v32  ;;  %v4404_v60 = vunpack.c.h.bf16 %v4390_v32 }
 0x2ed   : > { %15601 = vst [vmem:[#allocation72_spill] sm:$0xff] %v9995_v40 }
 0x2ee   : > { %15599 = vst [vmem:[#allocation71_spill] sm:$0xff] %v9992_v53  ;;  %v4419_v9 = vmul.f32 %v4403_v21, %v9901_v50  ;;  %v4420_v47 = vmul.f32 %v4404_v60, %v9903_v31  ;;  %v4391_v21 = vsel %vm14961_vm6, %v9603_v28, %v9581_v17  ;;  %v15605_v60 = vld [vmem:[#allocation90_spill] sm:$0xff]  ;;  %v15610_v50 = vld [vmem:[#allocation96_spill] sm:$0xff] }
 0x2f0   : > { %v4430_v40 = vpack.c.bf16 %v4420_v47, %v4419_v9  ;;  %v4406_v47 = vunpack.c.h.bf16 %v4391_v21  ;;  %v15607_v9 = vld [vmem:[#allocation89_spill] sm:$0xff] }
 0x2f2   : > { %v9963_v35 = vld [vmem:[#allocation1] sm:$0xff] }
 0x2f3   : > { %15590 = vst [vmem:[#allocation135_spill] sm:$0xff] %v9963_v35  ;;  %v4012_v35 = vunpack.c.h.bf16 %v3980_v55  ;;  %v4405_v55 = vunpack.c.l.bf16 %v4391_v21 }
 0x2f4   : > { %3543 = vst [vmem:[#allocation1] ss:$9 sm:$0xff] %v15591_v48  ;;  %v9990_v48 = vunpack.c.l.bf16 %v1205_v10  ;;  %v15602_v10 = vld [vmem:[#allocation77_spill] sm:$0xff]  ;;  %v10007_v32 = vpop.f32.mrf.mxu1 }
 0x2f5   : > { %3544 = vst [vmem:[#allocation1 + $0x1] ss:$9 sm:$0xff] %v15592_v44  ;;  %v4028_v2 = vmul.f32 %v4012_v35, %v9992_v53  ;;  %v15606_v35 = vld [vmem:[#allocation85_spill] sm:$0xff] }
 0x2f6   : > { %3545 = vst [vmem:[#allocation1 + $0x2] ss:$9 sm:$0xff] %v15593_v0  ;;  %v4027_v45 = vmul.f32 %v4011_v41, %v9990_v48 }
 0x2f7   : > { %3546 = vst [vmem:[#allocation1 + $0x3] ss:$9 sm:$0xff] %v15594_v51 }
 0x2f8   : > { %3547 = vst [vmem:[#allocation1 + $0x4] ss:$9 sm:$0xff] %v15595_v33 }
 0x2f9   : > { %3548 = vst [vmem:[#allocation1 + $0x5] ss:$9 sm:$0xff] %v15596_v46 }
 0x2fa   : > { %3549 = vst [vmem:[#allocation1 + $0x6] ss:$9 sm:$0xff] %v15597_v1  ;;  %v10002_v1 = vrot.slane %v15602_v10, 3  ;;  %7699 = vmatmul.msk.bf16.gmra.mxu1 %vm1117_vm4, %v4430_v40  ;;  %v4421_v40 = vmul.f32 %v4405_v55, %v9945_v38  ;;  %v15622_v38 = vld [vmem:[#allocation15_spill] sm:$0xff] }
 0x2fb   : > { %15598 = vst [vmem:[#allocation70_spill] sm:$0xff] %v9990_v48 }
 0x2fc   : > { %3550 = vst [vmem:[#allocation1 + $0x7] ss:$9 sm:$0xff] %v15600_v26  ;;  %v4036_v26 = vpack.c.bf16 %v4028_v2, %v4027_v45  ;;  %v15608_v45 = vld [vmem:[#allocation91_spill] sm:$0xff]  ;;  %v4422_v2 = vmul.f32 %v4406_v47, %v9947_v24 }
 0x2fd   : > { %15603 = vst [vmem:[#allocation74_spill] sm:$0xff] %v10002_v1 }
 0x2fe   : > { %15604 = vst [vmem:[#allocation76_spill] sm:$0xff] %v10007_v32  ;;  %7677 = vmatmul.msk.bf16.gmra.mxu3 %vm1117_vm4, %v4036_v26  ;;  %v10022_v26 = vpop.f32.mrf.mxu1  ;;  %v4431_v10 = vpack.c.bf16 %v4422_v2, %v4421_v40  ;;  %v10050_v40 = vrot.slane %v9668_v11, 1 }
 0x300   : > { %15613 = vst [vmem:[#allocation85_spill] sm:$0xff] %v10050_v40 }
 0x303   : > { %v10004_v23 = vld [vmem:[#allocation1] sm:$0xff] }
 0x304   : > { %3553 = vst [vmem:[#allocation1] ss:$9 sm:$0xff] %v10002_v1 }
 0x306   : > { %v10032_v31 = vpop.f32.mrf.mxu1 }
 0x307   : > { %15609 = vst [vmem:[#allocation77_spill] sm:$0xff] %v10032_v31  ;;  %v15643_v31 = vld [vmem:[#allocation35_spill] sm:$0xff] }
 0x30a   : > { %7700 = vmatmul.msk.bf16.gmra.mxu1 %vm1117_vm4, %v4431_v10 }
 0x30b   : > { %v10015_v41 = vld [vmem:[#allocation1] sm:$0xff] }
 0x30c   : > { %3555 = vst [vmem:[#allocation1] ss:$9 sm:$0xff] %v15605_v60 }
 0x30d   : > { %3556 = vst [vmem:[#allocation1 + $0x1] ss:$9 sm:$0xff] %v15606_v35 }
 0x30e   : > { %3557 = vst [vmem:[#allocation1 + $0x2] ss:$9 sm:$0xff] %v15607_v9  ;;  %v10039_v55 = vpop.f32.mrf.mxu1 }
 0x30f   : > { %3558 = vst [vmem:[#allocation1 + $0x3] ss:$9 sm:$0xff] %v15608_v45 }
 0x310   : > { %3559 = vst [vmem:[#allocation1 + $0x4] ss:$9 sm:$0xff] %v9561_v19 }
 0x311   : > { %3560 = vst [vmem:[#allocation1 + $0x5] ss:$9 sm:$0xff] %v9567_v5 }
 0x312   : > { %3561 = vst [vmem:[#allocation1 + $0x6] ss:$9 sm:$0xff] %v9569_v3 }
 0x313   : > { %3562 = vst [vmem:[#allocation1 + $0x7] ss:$9 sm:$0xff] %v9571_v22 }
 0x316   : > { %v10047_v47 = vpop.f32.mrf.mxu1 }
 0x317   : > { %15612 = vst [vmem:[#allocation90_spill] sm:$0xff] %v10047_v47  ;;  %v15638_v47 = vld [vmem:[#allocation23_spill] sm:$0xff] }
 0x31a   : > { %v10030_v21 = vld [vmem:[#allocation1] sm:$0xff] }
 0x31b   : > { %3564 = vst [vmem:[#allocation1] ss:$9 sm:$0xff] %v15610_v50 }
 0x31e   : > { %v10055_v10 = vpop.f32.mrf.mxu1 }
 0x31f   : > { %15614 = vst [vmem:[#allocation89_spill] sm:$0xff] %v10055_v10  ;;  %v15632_v10 = vld [vmem:[#allocation22_spill] sm:$0xff] }
 0x322   : > { %v10035_v32 = vld [vmem:[#allocation1] sm:$0xff] }
 0x323   : > { %3566 = vst [vmem:[#allocation1] ss:$9 sm:$0xff] %v15611_v13 }
 0x324   : > { %3567 = vst [vmem:[#allocation1 + $0x1] ss:$9 sm:$0xff] %v9624_v62 }
 0x325   : > { %3568 = vst [vmem:[#allocation1 + $0x2] ss:$9 sm:$0xff] %v9631_v39 }
 0x326   : > { %3569 = vst [vmem:[#allocation1 + $0x3] ss:$9 sm:$0xff] %v9650_v7  ;;  %v10067_v11 = vpop.f32.mrf.mxu1 }
 0x327   : > { %3570 = vst [vmem:[#allocation1 + $0x4] ss:$9 sm:$0xff] %v9655_v18 }
 0x328   : > { %3571 = vst [vmem:[#allocation1 + $0x5] ss:$9 sm:$0xff] %v9657_v42 }
 0x329   : > { %3572 = vst [vmem:[#allocation1 + $0x6] ss:$9 sm:$0xff] %v9659_v36 }
 0x32a   : > { %3573 = vst [vmem:[#allocation1 + $0x7] ss:$9 sm:$0xff] %v9665_v63 }
 0x331   : > { %v10052_v2 = vld [vmem:[#allocation1] sm:$0xff] }
 0x332   : > { %3576 = vst [vmem:[#allocation1] ss:$9 sm:$0xff] %v10050_v40 }
 0x339   : > { %v10057_v13 = vld [vmem:[#allocation1] sm:$0xff] }
 0x33a   : > { %15615 = vst [vmem:[#allocation91_spill] sm:$0xff] %v10057_v13  ;;  %v15644_v13 = vld [vmem:[#allocation36_spill] sm:$0xff] }
 0x33b   : > { %3769 = vst [vmem:[#allocation1] ss:$9 sm:$0xff] %v9064_v52 }
 0x33c   : > { %3771 = vst [vmem:[#allocation1 + $0x1] ss:$9 sm:$0xff] %v9066_v14  ;;  %v10075_v14 = vpop.f32.mrf.mxu1 }
 0x33d   : > { %3773 = vst [vmem:[#allocation1 + $0x2] ss:$9 sm:$0xff] %v9069_v8  ;;  %v15618_v8 = vld [vmem:[#allocation14_spill] sm:$0xff] }
 0x33e   : > { %3775 = vst [vmem:[#allocation1 + $0x3] ss:$9 sm:$0xff] %v9077_v58  ;;  %v15619_v58 = vld [vmem:[#allocation109_spill] sm:$0xff] }
 0x33f   : > { %3777 = vst [vmem:[#allocation1 + $0x4] ss:$9 sm:$0xff] %v9079_v49 }
 0x340   : > { %3779 = vst [vmem:[#allocation1 + $0x5] ss:$9 sm:$0xff] %v9083_v57 }
 0x341   : > { %3781 = vst [vmem:[#allocation1 + $0x6] ss:$9 sm:$0xff] %v9086_v59 }
 0x342   : > { %3783 = vst [vmem:[#allocation1 + $0x7] ss:$9 sm:$0xff] %v9058_v15 }
 0x343   : > { %15617 = vst [vmem:[#allocation137_spill] sm:$0xff] %v10075_v14 }
 0x344   : > { %v10081_v49 = vpop.f32.mrf.mxu1 }
 0x345   : > { %15620 = vst [vmem:[#allocation14_spill] sm:$0xff] %v10081_v49 }
 0x349   : > { %v10069_v24 = vld [vmem:[#allocation1] sm:$0xff] }
 0x34a   : > { %15616 = vst [vmem:[#allocation136_spill] sm:$0xff] %v10069_v24  ;;  %v15626_v24 = vld [vmem:[#allocation19_spill] sm:$0xff] }
 0x34b   : > { %3785 = vst [vmem:[#allocation1] ss:$9 sm:$0xff] %v9103_v43 }
 0x34c   : > { %3786 = vst [vmem:[#allocation1 + $0x1] ss:$9 sm:$0xff] %v9106_v29  ;;  %v15623_v29 = vld [vmem:[#allocation16_spill] sm:$0xff]  ;;  %v1796_v15 = vpop.f32.mrf.mxu1 }
 0x34d   : > { %3787 = vst [vmem:[#allocation1 + $0x2] ss:$9 sm:$0xff] %v9115_v54  ;;  %v15624_v54 = vld [vmem:[#allocation17_spill] sm:$0xff]  ;;  %v3382_v15 = vshrl.u32 %v15605_v60, 16 }
 0x34e   : > { %3788 = vst [vmem:[#allocation1 + $0x3] ss:$9 sm:$0xff] %v9117_v16  ;;  %v15625_v16 = vld [vmem:[#allocation18_spill] sm:$0xff]  ;;  %v15645_v60 = vld [vmem:[#allocation37_spill] sm:$0xff] }
 0x34f   : > { %3789 = vst [vmem:[#allocation1 + $0x4] ss:$9 sm:$0xff] %v9120_v61  ;;  %v15627_v61 = vld [vmem:[#allocation20_spill] sm:$0xff] }
 0x350   : > { %3790 = vst [vmem:[#allocation1 + $0x5] ss:$9 sm:$0xff] %v9123_v56  ;;  %v15628_v56 = vld [vmem:[#allocation21_spill] sm:$0xff] }
 0x351   : > { %3791 = vst [vmem:[#allocation1 + $0x6] ss:$9 sm:$0xff] %v15618_v8 }
 0x352   : > { %3792 = vst [vmem:[#allocation1 + $0x7] ss:$9 sm:$0xff] %v15619_v58  ;;  %v15629_v58 = vld [vmem:[#allocation112_spill] sm:$0xff] }
 0x359   : > { %v10083_v57 = vld [vmem:[#allocation1] sm:$0xff] }
 0x35a   : > { %15621 = vst [vmem:[#allocation138_spill] sm:$0xff] %v10083_v57  ;;  %v15631_v57 = vld [vmem:[#allocation25_spill] sm:$0xff] }
 0x35b   : > { %3794 = vst [vmem:[#allocation1] ss:$9 sm:$0xff] %v15622_v38 }
 0x35c   : > { %3795 = vst [vmem:[#allocation1 + $0x1] ss:$9 sm:$0xff] %v15623_v29  ;;  %v15633_v29 = vld [vmem:[#allocation24_spill] sm:$0xff] }
 0x35d   : > { %3796 = vst [vmem:[#allocation1 + $0x2] ss:$9 sm:$0xff] %v15624_v54  ;;  %v15634_v54 = vld [vmem:[#allocation26_spill] sm:$0xff] }
 0x35e   : > { %3797 = vst [vmem:[#allocation1 + $0x3] ss:$9 sm:$0xff] %v15625_v16  ;;  %v15635_v16 = vld [vmem:[#allocation27_spill] sm:$0xff] }
 0x35f   : > { %3798 = vst [vmem:[#allocation1 + $0x4] ss:$9 sm:$0xff] %v15626_v24  ;;  %v15636_v24 = vld [vmem:[#allocation28_spill] sm:$0xff] }
 0x360   : > { %3799 = vst [vmem:[#allocation1 + $0x5] ss:$9 sm:$0xff] %v15627_v61  ;;  %v15637_v61 = vld [vmem:[#allocation29_spill] sm:$0xff] }
 0x361   : > { %3800 = vst [vmem:[#allocation1 + $0x6] ss:$9 sm:$0xff] %v15628_v56 }
 0x362   : > { %3801 = vst [vmem:[#allocation1 + $0x7] ss:$9 sm:$0xff] %v15629_v58  ;;  %v3383_v58 = vpack.i.b16 %v3382_v15, %v3382_v15 }
 0x369   : > { %v10093_v14 = vld [vmem:[#allocation1] sm:$0xff] }
 0x36a   : > { %15630 = vst [vmem:[#allocation16_spill] sm:$0xff] %v10093_v14  ;;  %v3156_v14 = vpack.i.b16 %v9571_v22, %v9571_v22 }
 0x36b   : > { %3803 = vst [vmem:[#allocation1] ss:$9 sm:$0xff] %v15631_v57 }
 0x36c   : > { %3804 = vst [vmem:[#allocation1 + $0x1] ss:$9 sm:$0xff] %v15632_v10  ;;  %v3158_v10 = vperm.slane %v3156_v14, 0  ;;  %v15647_v14 = vld [vmem:[#allocation39_spill] sm:$0xff] }
 0x36d   : > { %3805 = vst [vmem:[#allocation1 + $0x2] ss:$9 sm:$0xff] %v15633_v29  ;;  %v15640_v29 = vld [vmem:[#allocation31_spill] sm:$0xff] }
 0x36e   : > { %3806 = vst [vmem:[#allocation1 + $0x3] ss:$9 sm:$0xff] %v15634_v54  ;;  %v15641_v54 = vld [vmem:[#allocation32_spill] sm:$0xff] }
 0x36f   : > { %3807 = vst [vmem:[#allocation1 + $0x4] ss:$9 sm:$0xff] %v15635_v16  ;;  %v15642_v16 = vld [vmem:[#allocation104_spill] sm:$0xff] }
 0x370   : > { %3808 = vst [vmem:[#allocation1 + $0x5] ss:$9 sm:$0xff] %v15636_v24  ;;  %v3344_v24 = vsel %vm9446_vm5, %v3158_v10, %v15642_v16 }
 0x371   : > { %3809 = vst [vmem:[#allocation1 + $0x6] ss:$9 sm:$0xff] %v15637_v61 }
 0x372   : > { %3810 = vst [vmem:[#allocation1 + $0x7] ss:$9 sm:$0xff] %v15638_v47  ;;  %v3385_v47 = vperm.slane %v3383_v58, 0 }
 0x374   : > { %v10118_v15 = vsel %vm9477_vm8, %v3385_v47, %v3344_v24 }
 0x375   : > { %15646 = vst [vmem:[#allocation18_spill] sm:$0xff] %v10118_v15 }
 0x379   : > { %v10106_v49 = vld [vmem:[#allocation1] sm:$0xff] }
 0x37a   : > { %15639 = vst [vmem:[#allocation17_spill] sm:$0xff] %v10106_v49  ;;  %v15648_v49 = vld [vmem:[#allocation40_spill] sm:$0xff] }
 0x37b   : > { %3812 = vst [vmem:[#allocation1] ss:$9 sm:$0xff] %v15640_v29 }
 0x37c   : > { %3813 = vst [vmem:[#allocation1 + $0x1] ss:$9 sm:$0xff] %v15641_v54  ;;  %v15649_v54 = vld [vmem:[#allocation41_spill] sm:$0xff] }
 0x37d   : > { %3814 = vst [vmem:[#allocation1 + $0x2] ss:$9 sm:$0xff] %v15643_v31  ;;  %v4384_v31 = vsel %vm14937_vm15, %v9581_v17, %v10118_v15  ;;  %v15653_v17 = vld [vmem:[#allocation47_spill] sm:$0xff]  ;;  %v15654_v15 = vld [vmem:[#allocation48_spill] sm:$0xff] }
 0x37e   : > { %3815 = vst [vmem:[#allocation1 + $0x3] ss:$9 sm:$0xff] %v15644_v13  ;;  %v4392_v13 = vsel %vm14903_vm12, %v9603_v28, %v4384_v31  ;;  %v15655_v31 = vld [vmem:[#allocation49_spill] sm:$0xff]  ;;  %vm15008_vm12 = vsmask.f32 7424 }
 0x37f   : > { %3816 = vst [vmem:[#allocation1 + $0x4] ss:$9 sm:$0xff] %v15645_v60  ;;  %v4407_v58 = vunpack.c.l.bf16 %v4392_v13  ;;  %v4408_v10 = vunpack.c.h.bf16 %v4392_v13  ;;  %v15656_v13 = vld [vmem:[#allocation50_spill] sm:$0xff] }
 0x380   : > { %3817 = vst [vmem:[#allocation1 + $0x5] ss:$9 sm:$0xff] %v15647_v14  ;;  %v15651_v14 = vld [vmem:[#allocation43_spill] sm:$0xff] }
 0x381   : > { %3818 = vst [vmem:[#allocation1 + $0x6] ss:$9 sm:$0xff] %v15648_v49  ;;  %v4423_v47 = vmul.f32 %v4407_v58, %v9990_v48  ;;  %v4424_v16 = vmul.f32 %v4408_v10, %v9992_v53  ;;  %v15657_v58 = vld [vmem:[#allocation53_spill] sm:$0xff] }
 0x382   : > { %3819 = vst [vmem:[#allocation1 + $0x7] ss:$9 sm:$0xff] %v15649_v54  ;;  %v15652_v54 = vld [vmem:[#allocation44_spill] sm:$0xff] }
 0x383   : > { %v4432_v60 = vpack.c.bf16 %v4424_v16, %v4423_v47 }
 0x385   : > { %7701 = vmatmul.msk.bf16.gmra.mxu1 %vm1117_vm4, %v4432_v60 }
 0x389   : > { %v10132_v24 = vld [vmem:[#allocation1] sm:$0xff] }
 0x38a   : > { %15650 = vst [vmem:[#allocation19_spill] sm:$0xff] %v10132_v24 }
 0x38b   : > { %3821 = vst [vmem:[#allocation1] ss:$9 sm:$0xff] %v15651_v14 }
 0x38c   : > { %3822 = vst [vmem:[#allocation1 + $0x1] ss:$9 sm:$0xff] %v15652_v54  ;;  %v15661_v54 = vld [vmem:[#allocation61_spill] sm:$0xff] }
 0x38d   : > { %3823 = vst [vmem:[#allocation1 + $0x2] ss:$9 sm:$0xff] %v15653_v17  ;;  %v15659_v17 = vld [vmem:[#allocation64_spill] sm:$0xff] }
 0x38e   : > { %3824 = vst [vmem:[#allocation1 + $0x3] ss:$9 sm:$0xff] %v15654_v15  ;;  %v15660_v15 = vld [vmem:[#allocation66_spill] sm:$0xff] }
 0x38f   : > { %3825 = vst [vmem:[#allocation1 + $0x4] ss:$9 sm:$0xff] %v15655_v31 }
 0x390   : > { %3826 = vst [vmem:[#allocation1 + $0x5] ss:$9 sm:$0xff] %v15656_v13 }
 0x391   : > { %3827 = vst [vmem:[#allocation1 + $0x6] ss:$9 sm:$0xff] %v15657_v58 }
 0x392   : > { %3828 = vst [vmem:[#allocation1 + $0x7] ss:$9 sm:$0xff] %v9871_v25  ;;  %v15704_v25 = vld [vmem:[#allocation84_spill] sm:$0xff] }
 0x399   : > { %v10143_v10 = vld [vmem:[#allocation1] sm:$0xff] }
 0x39a   : > { %15658 = vst [vmem:[#allocation20_spill] sm:$0xff] %v10143_v10 }
 0x39b   : > { %3830 = vst [vmem:[#allocation1] ss:$9 sm:$0xff] %v15574_v30 }
 0x39c   : > { %3831 = vst [vmem:[#allocation1 + $0x1] ss:$9 sm:$0xff] %v15575_v12  ;;  %v15663_v12 = vld [vmem:[#allocation79_spill] sm:$0xff] }
 0x39d   : > { %3832 = vst [vmem:[#allocation1 + $0x2] ss:$9 sm:$0xff] %v15576_v20 }
 0x39e   : > { %3833 = vst [vmem:[#allocation1 + $0x3] ss:$9 sm:$0xff] %v15577_v27  ;;  %v15664_v27 = vld [vmem:[#allocation80_spill] sm:$0xff] }
 0x39f   : > { %3834 = vst [vmem:[#allocation1 + $0x4] ss:$9 sm:$0xff] %v15578_v37  ;;  %v10169_v37 = vld [vmem:[%s14650_s9] ss:$0 sm:$0xff]  ;;  %v3442_v24 = vshrl.u32 %v15664_v27, 16 }
 0x3a0   : > { %3835 = vst [vmem:[#allocation1 + $0x5] ss:$9 sm:$0xff] %v15659_v17  ;;  %v15671_v17 = vld [vmem:[#allocation72_spill] sm:$0xff]  ;;  %v1777_v53 = vadd.f32 %v10169_v37, %v10022_v26 }
 0x3a1   : > { %3836 = vst [vmem:[#allocation1 + $0x6] ss:$9 sm:$0xff] %v15660_v15 }
 0x3a2   : > { %3837 = vst [vmem:[#allocation1 + $0x7] ss:$9 sm:$0xff] %v15661_v54  ;;  %v10284_v26 = vpack.c.bf16 %v1777_v53, %v1777_v53  ;;  %v15731_v54 = vld [vmem:[#allocation108_spill] sm:$0xff] }
 0x3a4   : > { %15694 = vst [vmem:[#allocation53_spill] sm:$0xff] %v10284_v26 }
 0x3a9   : > { %v10153_v47 = vld [vmem:[#allocation1] sm:$0xff] }
 0x3aa   : > { %15662 = vst [vmem:[#allocation21_spill] sm:$0xff] %v10153_v47  ;;  %v15712_v47 = vld [vmem:[#allocation54_spill] sm:$0xff] }
 0x3ab   : > { %3839 = vst [vmem:[#allocation1] ss:$9 sm:$0xff] %v15592_v44 }
 0x3ac   : > { %3840 = vst [vmem:[#allocation1 + $0x1] ss:$9 sm:$0xff] %v15593_v0  ;;  %v15666_v0 = vld [vmem:[#allocation60_spill] sm:$0xff] }
 0x3ad   : > { %3841 = vst [vmem:[#allocation1 + $0x2] ss:$9 sm:$0xff] %v15594_v51  ;;  %v1767_v51 = vadd.f32 %v10169_v37, %v15666_v0 }
 0x3ae   : > { %3842 = vst [vmem:[#allocation1 + $0x3] ss:$9 sm:$0xff] %v15595_v33 }
 0x3af   : > { %3843 = vst [vmem:[#allocation1 + $0x4] ss:$9 sm:$0xff] %v15596_v46  ;;  %v10175_v33 = vpack.c.bf16 %v1767_v51, %v1767_v51 }
 0x3b0   : > { %3844 = vst [vmem:[#allocation1 + $0x5] ss:$9 sm:$0xff] %v15663_v12 }
 0x3b1   : > { %3845 = vst [vmem:[#allocation1 + $0x6] ss:$9 sm:$0xff] %v15664_v27  ;;  %v10180_v46 = vrot.slane %v10175_v33, 3  ;;  %v10368_v27 = vpack.i.b16 %v3442_v24, %v3442_v24  ;;  %v15721_v24 = vld [vmem:[#allocation110_spill] sm:$0xff] }
 0x3b2   : > { %3846 = vst [vmem:[#allocation1 + $0x7] ss:$9 sm:$0xff] %v10002_v1 }
 0x3b3   : > { %v10187_v16 = vsel %vm1267_vm0, %v10175_v33, %v10180_v46 }
 0x3b4   : > { %15667 = vst [vmem:[#allocation22_spill] sm:$0xff] %v10187_v16 }
 0x3b9   : > { %v10163_v20 = vld [vmem:[#allocation1] sm:$0xff] }
 0x3ba   : > { %15665 = vst [vmem:[#allocation25_spill] sm:$0xff] %v10163_v20 }
 0x3bb   : > { %3848 = vst [vmem:[#allocation1] ss:$9 sm:$0xff] %v15606_v35 }
 0x3bc   : > { %3849 = vst [vmem:[#allocation1 + $0x1] ss:$9 sm:$0xff] %v15607_v9  ;;  %v15668_v9 = vld [vmem:[#allocation30_spill] sm:$0xff] }
 0x3bd   : > { %3850 = vst [vmem:[#allocation1 + $0x2] ss:$9 sm:$0xff] %v15608_v45  ;;  %v1740_v45 = vadd.f32 %v10169_v37, %v15668_v9 }
 0x3be   : > { %3851 = vst [vmem:[#allocation1 + $0x3] ss:$9 sm:$0xff] %v9561_v19 }
 0x3bf   : > { %3852 = vst [vmem:[#allocation1 + $0x4] ss:$9 sm:$0xff] %v9567_v5  ;;  %v1798_v5 = vpack.c.bf16 %v1740_v45, %v1740_v45 }
 0x3c0   : > { %3853 = vst [vmem:[#allocation1 + $0x5] ss:$9 sm:$0xff] %v9569_v3  ;;  %v15670_v3 = vld [vmem:[#allocation38_spill] sm:$0xff] }
 0x3c1   : > { %3854 = vst [vmem:[#allocation1 + $0x6] ss:$9 sm:$0xff] %v9571_v22  ;;  %v1742_v60 = vadd.f32 %v10169_v37, %v15670_v3  ;;  %v1844_v31 = vrot.slane %v1798_v5, 3 }
 0x3c2   : > { %3855 = vst [vmem:[#allocation1 + $0x7] ss:$9 sm:$0xff] %v15610_v50 }
 0x3c3   : > { %v1799_v13 = vpack.c.bf16 %v1742_v60, %v1742_v60  ;;  %v1870_v12 = vsel %vm1271_vm1, %v1798_v5, %v1844_v31  ;;  %v10215_v51 = vsel %vm1267_vm0, %v1798_v5, %v1844_v31 }
 0x3c4   : > { %15674 = vst [vmem:[#allocation28_spill] sm:$0xff] %v10215_v51  ;;  %v10217_v9 = vrot.slane %v1870_v12, 1  ;;  %v15680_v12 = vld [vmem:[#allocation55_spill] sm:$0xff] }
 0x3c5   : > { %v1845_v0 = vrot.slane %v1799_v13, 3  ;;  %v1747_v28 = vadd.f32 %v10169_v37, %v15680_v12  ;;  %v15685_v12 = vld [vmem:[#allocation51_spill] sm:$0xff] }
 0x3c6   : > { %15675 = vst [vmem:[#allocation29_spill] sm:$0xff] %v10217_v9 }
 0x3c9   : > { %v10192_v19 = vld [vmem:[#allocation1] sm:$0xff] }
 0x3ca   : > { %15669 = vst [vmem:[#allocation24_spill] sm:$0xff] %v10192_v19 }
 0x3cb   : > { %3857 = vst [vmem:[#allocation1] ss:$9 sm:$0xff] %v9624_v62  ;;  %v15733_v62 = vld [vmem:[#allocation114_spill] sm:$0xff] }
 0x3cc   : > { %3858 = vst [vmem:[#allocation1 + $0x1] ss:$9 sm:$0xff] %v9631_v39  ;;  %v1772_v39 = vadd.f32 %v10169_v37, %v15671_v17  ;;  %v1882_v17 = vsel %vm1271_vm1, %v1799_v13, %v1845_v0 }
 0x3cd   : > { %3859 = vst [vmem:[#allocation1 + $0x2] ss:$9 sm:$0xff] %v9650_v7 }
 0x3ce   : > { %3860 = vst [vmem:[#allocation1 + $0x3] ss:$9 sm:$0xff] %v9655_v18  ;;  %v10206_v7 = vpack.c.bf16 %v1772_v39, %v1772_v39  ;;  %v1873_v18 = vsel %vm1275_vm2, %v1798_v5, %v1844_v31 }
 0x3cf   : > { %3861 = vst [vmem:[#allocation1 + $0x4] ss:$9 sm:$0xff] %v9657_v42  ;;  %v10226_v60 = vrot.slane %v1873_v18, 2  ;;  %v10239_v18 = vsel %vm1267_vm0, %v1799_v13, %v1845_v0 }
 0x3d0   : > { %3862 = vst [vmem:[#allocation1 + $0x5] ss:$9 sm:$0xff] %v9659_v36  ;;  %v10211_v42 = vrot.slane %v10206_v7, 3  ;;  %v1876_v36 = vsel %vm1279_vm3, %v1798_v5, %v1844_v31  ;;  %v1885_v5 = vsel %vm1275_vm2, %v1799_v13, %v1845_v0  ;;  %v1888_v31 = vsel %vm1279_vm3, %v1799_v13, %v1845_v0  ;;  %v15686_v13 = vld [vmem:[#allocation46_spill] sm:$0xff] }
 0x3d1   : > { %3863 = vst [vmem:[#allocation1 + $0x6] ss:$9 sm:$0xff] %v9665_v63  ;;  %v10230_v39 = vrot.slane %v1876_v36, 3  ;;  %v10244_v36 = vrot.slane %v1885_v5, 2  ;;  %v10247_v16 = vrot.slane %v1888_v31, 3  ;;  %v1894_v0 = vsel %vm1271_vm1, %v15686_v13, %v15685_v12 }
 0x3d2   : > { %3864 = vst [vmem:[#allocation1 + $0x7] ss:$9 sm:$0xff] %v10050_v40  ;;  %v10224_v3 = vsel %vm1271_vm1, %v10206_v7, %v10211_v42  ;;  %v1897_v5 = vsel %vm1275_vm2, %v15686_v13, %v15685_v12  ;;  %v1900_v31 = vsel %vm1279_vm3, %v15686_v13, %v15685_v12  ;;  %v10261_v40 = vrot.slane %v1894_v0, 1  ;;  %v15693_v0 = vld [vmem:[#allocation69_spill] sm:$0xff] }
 0x3d3   : > { %15672 = vst [vmem:[#allocation26_spill] sm:$0xff] %v10206_v7  ;;  %v10270_v48 = vrot.slane %v1900_v31, 3  ;;  %v3414_v7 = vshrl.u32 %v9086_v59, 16 }
 0x3d4   : > { %15673 = vst [vmem:[#allocation27_spill] sm:$0xff] %v10211_v42 }
 0x3d5   : > { %15677 = vst [vmem:[#allocation32_spill] sm:$0xff] %v10224_v3  ;;  %v10241_v3 = vrot.slane %v1882_v17, 1 }
 0x3d6   : > { %15678 = vst [vmem:[#allocation104_spill] sm:$0xff] %v10226_v60 }
 0x3d7   : > { %15679 = vst [vmem:[#allocation35_spill] sm:$0xff] %v10230_v39 }
 0x3d8   : > { %15681 = vst [vmem:[#allocation36_spill] sm:$0xff] %v10239_v18 }
 0x3d9   : > { %v10219_v45 = vld [vmem:[#allocation1] sm:$0xff]  ;;  %15682 = vst [vmem:[#allocation37_spill] sm:$0xff] %v10241_v3 }
 0x3da   : > { %15676 = vst [vmem:[#allocation31_spill] sm:$0xff] %v10219_v45  ;;  %v1801_v45 = vpack.c.bf16 %v1747_v28, %v1747_v28  ;;  %v10263_v28 = vrot.slane %v1897_v5, 2  ;;  %v1752_v5 = vadd.f32 %v10169_v37, %v15693_v0  ;;  %v15699_v0 = vld [vmem:[#allocation63_spill] sm:$0xff] }
 0x3db   : > { %5311 = vst [vmem:[#allocation1] ss:$9 sm:$0xff] %v10215_v51 }
 0x3dc   : > { %5314 = vst [vmem:[#allocation1 + $0x1] ss:$9 sm:$0xff] %v10217_v9  ;;  %v1847_v17 = vrot.slane %v1801_v45, 3  ;;  %v15730_v9 = vld [vmem:[#allocation113_spill] sm:$0xff] }
 0x3dd   : > { %5317 = vst [vmem:[#allocation1 + $0x2] ss:$9 sm:$0xff] %v10226_v60  ;;  %v15729_v60 = vld [vmem:[#allocation111_spill] sm:$0xff]  ;;  %v3601_v51 = vshll.u32 %v15730_v9, 16 }
 0x3de   : > { %5320 = vst [vmem:[#allocation1 + $0x3] ss:$9 sm:$0xff] %v10230_v39  ;;  %v1906_v19 = vsel %vm1271_vm1, %v1801_v45, %v1847_v17  ;;  %v1909_v20 = vsel %vm1275_vm2, %v1801_v45, %v1847_v17  ;;  %v1912_v10 = vsel %vm1279_vm3, %v1801_v45, %v1847_v17  ;;  %v10277_v12 = vsel %vm1267_vm0, %v1801_v45, %v1847_v17  ;;  %v15698_v17 = vld [vmem:[#allocation67_spill] sm:$0xff] }
 0x3df   : > { %15683 = vst [vmem:[#allocation39_spill] sm:$0xff] %v10244_v36  ;;  %v10279_v13 = vrot.slane %v1906_v19, 1  ;;  %v10286_v31 = vrot.slane %v1909_v20, 2  ;;  %v10293_v45 = vrot.slane %v10284_v26, 3  ;;  %v3418_v19 = vshrl.u32 %v15618_v8, 16  ;;  %v15702_v8 = vld [vmem:[#allocation87_spill] sm:$0xff] }
 0x3e0   : > { %5322 = vst [vmem:[#allocation1 + $0x4] ss:$9 sm:$0xff] %v10239_v18  ;;  %v10300_v53 = vsel %vm1267_vm0, %v15699_v0, %v15698_v17  ;;  %v1803_v20 = vpack.c.bf16 %v1752_v5, %v1752_v5  ;;  %v3705_v5 = vpack.i.b16 %v15622_v38, %v15622_v38  ;;  %v15727_v18 = vld [vmem:[#allocation107_spill] sm:$0xff] }
 0x3e1   : > { %15684 = vst [vmem:[#allocation40_spill] sm:$0xff] %v10247_v16  ;;  %v3581_v39 = vshll.u32 %v15727_v18, 16 }
 0x3e2   : > { %5325 = vst [vmem:[#allocation1 + $0x5] ss:$9 sm:$0xff] %v10241_v3  ;;  %v10330_v1 = vperm.slane %v3705_v5, 0 }
 0x3e3   : > { %5328 = vst [vmem:[#allocation1 + $0x6] ss:$9 sm:$0xff] %v10244_v36 }
 0x3e4   : > { %5330 = vst [vmem:[#allocation1 + $0x7] ss:$9 sm:$0xff] %v10247_v16  ;;  %v15705_v16 = vld [vmem:[#allocation81_spill] sm:$0xff] }
 0x3e5   : > { %15687 = vst [vmem:[#allocation43_spill] sm:$0xff] %v10261_v40 }
 0x3e6   : > { %15688 = vst [vmem:[#allocation44_spill] sm:$0xff] %v10263_v28 }
 0x3e7   : > { %15690 = vst [vmem:[#allocation48_spill] sm:$0xff] %v10270_v48 }
 0x3e8   : > { %15691 = vst [vmem:[#allocation49_spill] sm:$0xff] %v10277_v12 }
 0x3e9   : > { %15692 = vst [vmem:[#allocation50_spill] sm:$0xff] %v10279_v13 }
 0x3ea   : > { %15695 = vst [vmem:[#allocation64_spill] sm:$0xff] %v10286_v31 }
 0x3eb   : > { %v10266_v50 = vld [vmem:[#allocation1] sm:$0xff]  ;;  %15697 = vst [vmem:[#allocation79_spill] sm:$0xff] %v10293_v45 }
 0x3ec   : > { %15689 = vst [vmem:[#allocation47_spill] sm:$0xff] %v10266_v50  ;;  %v10289_v50 = vrot.slane %v1912_v10, 3  ;;  %v10306_v10 = vsel %vm1275_vm2, %v10284_v26, %v10293_v45  ;;  %v3605_v26 = vshll.u32 %v15733_v62, 16  ;;  %v3589_v62 = vshrl.u32 %v15721_v24, 16 }
 0x3ed   : > { %5333 = vst [vmem:[#allocation1] ss:$9 sm:$0xff] %v10261_v40 }
 0x3ee   : > { %5335 = vst [vmem:[#allocation1 + $0x1] ss:$9 sm:$0xff] %v10263_v28 }
 0x3ef   : > { %5337 = vst [vmem:[#allocation1 + $0x2] ss:$9 sm:$0xff] %v10270_v48  ;;  %v10314_v48 = vpack.i.b16 %v3418_v19, %v3418_v19 }
 0x3f0   : > { %5338 = vst [vmem:[#allocation1 + $0x3] ss:$9 sm:$0xff] %v10277_v12  ;;  %v3702_v12 = vpack.i.b16 %v9103_v43, %v9103_v43  ;;  %v3595_v43 = vshll.u32 %v15729_v60, 16 }
 0x3f1   : > { %15696 = vst [vmem:[#allocation66_spill] sm:$0xff] %v10289_v50 }
 0x3f2   : > { %5340 = vst [vmem:[#allocation1 + $0x4] ss:$9 sm:$0xff] %v10279_v13  ;;  %v3422_v13 = vshrl.u32 %v15628_v56, 16  ;;  %v3438_v56 = vshrl.u32 %v15660_v15, 16  ;;  %v10327_v40 = vperm.slane %v3702_v12, 0  ;;  %v10339_v15 = vsel %vm1267_vm0, %v15705_v16, %v15704_v25 }
 0x3f3   : > { %5342 = vst [vmem:[#allocation1 + $0x5] ss:$9 sm:$0xff] %v10286_v31  ;;  %v1757_v31 = vadd.f32 %v10169_v37, %v15702_v8  ;;  %v1924_v8 = vsel %vm1279_vm3, %v15699_v0, %v15698_v17  ;;  %v3426_v12 = vshrl.u32 %v15637_v61, 16  ;;  %v1762_v61 = vadd.f32 %v10169_v37, %v15712_v47 }
 0x3f4   : > { %15700 = vst [vmem:[#allocation80_spill] sm:$0xff] %v10300_v53  ;;  %v10321_v28 = vpack.i.b16 %v3422_v13, %v3422_v13  ;;  %v1948_v47 = vsel %vm1279_vm3, %v15705_v16, %v15704_v25  ;;  %v3597_v59 = vrot.slane %v3595_v43, 1  ;;  %v3607_v43 = vrot.slane %v3605_v26, 1 }
 0x3f5   : > { %5344 = vst [vmem:[#allocation1 + $0x6] ss:$9 sm:$0xff] %v10289_v50  ;;  %v1849_v50 = vrot.slane %v1803_v20, 3 }
 0x3f6   : > { %15701 = vst [vmem:[#allocation60_spill] sm:$0xff] %v10306_v10  ;;  %v1921_v10 = vsel %vm1275_vm2, %v15699_v0, %v15698_v17  ;;  %v10346_v17 = vrot.slane %v1924_v8, 3 }
 0x3f7   : > { %5345 = vst [vmem:[#allocation1 + $0x7] ss:$9 sm:$0xff] %v10300_v53  ;;  %v1805_v53 = vpack.c.bf16 %v1757_v31, %v1757_v31  ;;  %v10332_v38 = vrot.slane %v1921_v10, 2  ;;  %v1930_v13 = vsel %vm1271_vm1, %v1803_v20, %v1849_v50  ;;  %v3717_v31 = vpack.i.b16 %v15574_v30, %v15574_v30 }
 0x3f8   : > { %15706 = vst [vmem:[#allocation38_spill] sm:$0xff] %v10339_v15  ;;  %v1933_v0 = vsel %vm1275_vm2, %v1803_v20, %v1849_v50  ;;  %v10351_v10 = vpack.i.b16 %v3438_v56, %v3438_v56  ;;  %v1936_v5 = vsel %vm1279_vm3, %v1803_v20, %v1849_v50  ;;  %v10360_v8 = vrot.slane %v1930_v13, 1 }
 0x3f9   : > { %15703 = vst [vmem:[#allocation30_spill] sm:$0xff] %v10332_v38  ;;  %v1851_v19 = vrot.slane %v1805_v53, 3  ;;  %v3720_v56 = vpack.i.b16 %v15592_v44, %v15592_v44  ;;  %v10378_v13 = vperm.slane %v3717_v31, 0  ;;  %v10380_v3 = vrot.slane %v1936_v5, 3 }
 0x3fa   : > { %15708 = vst [vmem:[#allocation55_spill] sm:$0xff] %v10346_v17  ;;  %v3591_v44 = vshll.u32 %v15721_v24, 16  ;;  %v3585_v30 = vshll.u32 %v15731_v54, 16 }
 0x3fb   : > { %15710 = vst [vmem:[#allocation46_spill] sm:$0xff] %v10360_v8  ;;  %v1957_v31 = vsel %vm1275_vm2, %v1805_v53, %v1851_v19  ;;  %v1960_v5 = vsel %vm1279_vm3, %v1805_v53, %v1851_v19 }
 0x3fc   : > { %15713 = vst [vmem:[#allocation67_spill] sm:$0xff] %v10380_v3  ;;  %v3593_v45 = vrot.slane %v3591_v44, 1  ;;  %v3603_v44 = vrot.slane %v3601_v51, 1 }
 0x3fe   : > { %v10341_v36 = vld [vmem:[#allocation1] sm:$0xff] }
 0x3ff   : > { %15707 = vst [vmem:[#allocation72_spill] sm:$0xff] %v10341_v36  ;;  %v10358_v36 = vsel %vm1267_vm0, %v1803_v20, %v1849_v50  ;;  %v10375_v50 = vpack.i.b16 %v3426_v12, %v3426_v12  ;;  %v3446_v12 = vshrl.u32 %v9571_v22, 16  ;;  %v10397_v20 = vperm.slane %v3720_v56, 0 }
 0x400   : > { %5358 = vst [vmem:[#allocation1 + $0x6] ss:$9 sm:$0xff] %v10339_v15  ;;  %v1942_v15 = vsel %vm1271_vm1, %v15705_v16, %v15704_v25  ;;  %v1807_v16 = vpack.c.bf16 %v1762_v61, %v1762_v61  ;;  %v10403_v22 = vrot.slane %v1948_v47, 3  ;;  %v10413_v56 = vrot.slane %v1960_v5, 3  ;;  %v15724_v47 = vld [vmem:[#allocation98_spill] sm:$0xff] }
 0x401   : > { %5348 = vst [vmem:[#allocation1] ss:$9 sm:$0xff] %v10332_v38  ;;  %v10370_v38 = vrot.slane %v1933_v0, 2  ;;  %v1954_v0 = vsel %vm1271_vm1, %v1805_v53, %v1851_v19  ;;  %v10418_v61 = vpack.i.b16 %v3446_v12, %v3446_v12 }
 0x402   : > { %15709 = vst [vmem:[#allocation51_spill] sm:$0xff] %v10358_v36  ;;  %v1853_v5 = vrot.slane %v1807_v16, 3 }
 0x403   : > { %5350 = vst [vmem:[#allocation1 + $0x1] ss:$9 sm:$0xff] %v10346_v17  ;;  %v10384_v17 = vrot.slane %v1942_v15, 1  ;;  %v1782_v15 = vadd.f32 %v10169_v37, %v10039_v55  ;;  %v10411_v55 = vrot.slane %v1957_v31, 2 }
 0x404   : > { %15711 = vst [vmem:[#allocation69_spill] sm:$0xff] %v10370_v38  ;;  %v1978_v54 = vsel %vm1271_vm1, %v1807_v16, %v1853_v5 }
 0x405   : > { %5351 = vst [vmem:[#allocation1 + $0x2] ss:$9 sm:$0xff] %v10358_v36  ;;  %v10416_v25 = vpack.c.bf16 %v1782_v15, %v1782_v15 }
 0x406   : > { %5353 = vst [vmem:[#allocation1 + $0x3] ss:$9 sm:$0xff] %v10360_v8  ;;  %v10408_v8 = vrot.slane %v1954_v0, 1 }
 0x407   : > { %15714 = vst [vmem:[#allocation63_spill] sm:$0xff] %v10384_v17  ;;  %v10432_v15 = vrot.slane %v10416_v25, 3 }
 0x408   : > { %5355 = vst [vmem:[#allocation1 + $0x4] ss:$9 sm:$0xff] %v10370_v38  ;;  %v10406_v38 = vsel %vm1267_vm0, %v1805_v53, %v1851_v19  ;;  %v15726_v19 = vld [vmem:[#allocation135_spill] sm:$0xff] }
 0x409   : > { %5357 = vst [vmem:[#allocation1 + $0x5] ss:$9 sm:$0xff] %v10380_v3  ;;  %v15718_v3 = vld [vmem:[#allocation132_spill] sm:$0xff]  ;;  %v3645_v0 = vshll.u32 %v15726_v19, 16 }
 0x40a   : > { %5359 = vst [vmem:[#allocation1 + $0x7] ss:$9 sm:$0xff] %v10384_v17  ;;  %v3641_v36 = vshll.u32 %v15718_v3, 16  ;;  %v15725_v17 = vld [vmem:[#allocation95_spill] sm:$0xff]  ;;  %v3639_v60 = vshrl.u32 %v15718_v3, 16 }
 0x40b   : > { %15715 = vst [vmem:[#allocation87_spill] sm:$0xff] %v10403_v22  ;;  %v1966_v53 = vsel %vm1271_vm1, %v15725_v17, %v15724_v47  ;;  %v10428_v31 = vsel %vm1267_vm0, %v15725_v17, %v15724_v47  ;;  %v1969_v12 = vsel %vm1275_vm2, %v15725_v17, %v15724_v47  ;;  %v10449_v17 = vsel %vm1279_vm3, %v10416_v25, %v10432_v15 }
 0x40c   : > { %15716 = vst [vmem:[#allocation84_spill] sm:$0xff] %v10406_v38  ;;  %v3643_v19 = vrot.slane %v3641_v36, 1  ;;  %v10439_v6 = vrot.slane %v1966_v53, 1  ;;  %v3583_v36 = vrot.slane %v3581_v39, 1  ;;  %v10451_v47 = vrot.slane %v1969_v12, 2 }
 0x40d   : > { %15717 = vst [vmem:[#allocation81_spill] sm:$0xff] %v10408_v8  ;;  %v3579_v53 = vshrl.u32 %v15727_v18, 16  ;;  %v3599_v39 = vshrl.u32 %v15730_v9, 16  ;;  %v3594_v12 = vor.u32 %v3593_v45, %v3589_v62  ;;  %v10466_v18 = vsel %vm1267_vm0, %v1807_v16, %v1853_v5 }
 0x40e   : > { %15719 = vst [vmem:[#allocation54_spill] sm:$0xff] %v10411_v55  ;;  %v3644_v3 = vor.u32 %v3643_v19, %v3639_v60 }
 0x40f   : > { %15720 = vst [vmem:[#allocation132_spill] sm:$0xff] %v10413_v56  ;;  %v3584_v19 = vor.u32 %v3583_v36, %v3579_v53  ;;  %v3598_v9 = vsel %vm15008_vm12, %v3594_v12, %v3597_v59  ;;  %v3604_v45 = vor.u32 %v3603_v44, %v3599_v39  ;;  %v10477_v36 = vrot.slane %v1978_v54, 1  ;;  %v15746_v12 = vld [vmem:[#allocation127_spill] sm:$0xff] }
 0x410   : > { %15722 = vst [vmem:[#allocation110_spill] sm:$0xff] %v10416_v25  ;;  %v15737_v25 = vld [vmem:[#allocation56_spill] sm:$0xff]  ;;  %v15744_v54 = vperm.slane %v10314_v48, 0 }
 0x411   : > { %15723 = vst [vmem:[#allocation139_spill] sm:$0xff] %v10418_v61  ;;  %v10444_v42 = vld [vmem:[#allocation1] sm:$0xff]  ;;  %v3647_v61 = vrot.slane %v3645_v0, 1  ;;  %v3587_v0 = vrot.slane %v3585_v30, 1  ;;  %v1765_v24 = vadd.f32 %v10169_v37, %v15737_v25  ;;  %v1984_v30 = vsel %vm1279_vm3, %v1807_v16, %v1853_v5 }
 0x412   : > { %15728 = vst [vmem:[#allocation98_spill] sm:$0xff] %v10428_v31  ;;  %v3430_v25 = vshrl.u32 %v15648_v49, 16  ;;  %v3608_v49 = vsel %vm15008_vm12, %v3604_v45, %v3607_v43 }
 0x413   : > { %15732 = vst [vmem:[#allocation95_spill] sm:$0xff] %v10439_v6  ;;  %v3648_v51 = vsel %vm15008_vm12, %v3644_v3, %v3647_v61  ;;  %v3588_v26 = vsel %vm15008_vm12, %v3584_v19, %v3587_v0  ;;  %v15739_v61 = vld [vmem:[#allocation122_spill] sm:$0xff]  ;;  %v10486_v3 = vrot.slane %v1984_v30, 3  ;;  %v1808_v44 = vpack.c.bf16 %v1765_v24, %v1765_v24  ;;  %v15745_v0 = vld [vmem:[#allocation45_spill] sm:$0xff]  ;;  %v15747_v19 = vld [vmem:[#allocation115_spill] sm:$0xff] }
 0x414   : > { %15734 = vst [vmem:[#allocation135_spill] sm:$0xff] %v10444_v42  ;;  %v1981_v42 = vsel %vm1275_vm2, %v1807_v16, %v1853_v5  ;;  %v3621_v60 = vshll.u32 %v15739_v61, 16  ;;  %v15742_v16 = vperm.slane %v10351_v10, 0  ;;  %v3625_v39 = vshll.u32 %v15745_v0, 16 }
 0x415   : > { %15735 = vst [vmem:[#allocation107_spill] sm:$0xff] %v10449_v17  ;;  %v3415_v17 = vpack.i.b16 %v3414_v7, %v3414_v7  ;;  %v3699_v7 = vpack.i.b16 %v9064_v52, %v9064_v52  ;;  %v10479_v62 = vrot.slane %v1981_v42, 2  ;;  %v3690_v42 = vsel %vm9446_vm5, %v15744_v54, %v3598_v9 }
 0x416   : > { %15736 = vst [vmem:[#allocation111_spill] sm:$0xff] %v10451_v47  ;;  %v3695_v5 = vsel %vm9446_vm5, %v15742_v16, %v3648_v51  ;;  %v3651_v51 = vshll.u32 %v10004_v23, 16  ;;  %v3431_v43 = vpack.i.b16 %v3430_v25, %v3430_v25  ;;  %v3623_v48 = vrot.slane %v3621_v60, 1 }
 0x417   : > { %5362 = vst [vmem:[#allocation1] ss:$9 sm:$0xff] %v10403_v22  ;;  %v3417_v59 = vperm.slane %v3415_v17, 0  ;;  %v3701_v10 = vperm.slane %v3699_v7, 0  ;;  %v3631_v17 = vshll.u32 %v15746_v12, 16  ;;  %v10502_v24 = vsel %vm9477_vm8, %v10378_v13, %v3695_v5 }
 0x418   : > { %5363 = vst [vmem:[#allocation1 + $0x1] ss:$9 sm:$0xff] %v10406_v38  ;;  %v3611_v30 = vshll.u32 %v15747_v19, 16  ;;  %v15748_v9 = vperm.slane %v10321_v28, 0  ;;  %v10512_v45 = vsel %vm9477_vm8, %v10327_v40, %v3690_v42  ;;  %v1854_v13 = vrot.slane %v1808_v44, 3 }
 0x419   : > { %5365 = vst [vmem:[#allocation1 + $0x2] ss:$9 sm:$0xff] %v10408_v8  ;;  %v3689_v53 = vsel %vm9446_vm5, %v3417_v59, %v3588_v26  ;;  %v15749_v26 = vld [vmem:[#allocation131_spill] sm:$0xff]  ;;  %v3655_v59 = vshll.u32 %v10015_v41, 16  ;;  %v3619_v60 = vshrl.u32 %v15739_v61, 16  ;;  %v3711_v54 = vpack.i.b16 %v15640_v29, %v15640_v29 }
 0x41a   : > { %5367 = vst [vmem:[#allocation1 + $0x3] ss:$9 sm:$0xff] %v10411_v55  ;;  %v3691_v7 = vsel %vm9446_vm5, %v15748_v9, %v3608_v49  ;;  %v3635_v16 = vshll.u32 %v15749_v26, 16  ;;  %v3729_v25 = vsel %vm9477_vm8, %v3701_v10, %v3689_v53  ;;  %v3627_v49 = vrot.slane %v3625_v39, 1 }
 0x41b   : > { %15738 = vst [vmem:[#allocation113_spill] sm:$0xff] %v10466_v18  ;;  %v4122_v5 = vsel %vm3110_vm9, %v10502_v24, %v3729_v25  ;;  %v3633_v40 = vrot.slane %v3631_v17, 1  ;;  %v3653_v42 = vrot.slane %v3651_v51, 1  ;;  %v3433_v0 = vperm.slane %v3431_v43, 0 }
 0x41c   : > { %5369 = vst [vmem:[#allocation1 + $0x4] ss:$9 sm:$0xff] %v10413_v56  ;;  %v4129_v41 = vsel %vm3102_vm10, %v10512_v45, %v4122_v5  ;;  %v3624_v9 = vor.u32 %v3623_v48, %v3619_v60  ;;  %v3629_v10 = vshrl.u32 %v15746_v12, 16  ;;  %v3649_v39 = vshrl.u32 %v10004_v23, 16  ;;  %v15753_v48 = vld [vmem:[#allocation134_spill] sm:$0xff] }
 0x41d   : > { %5370 = vst [vmem:[#allocation1 + $0x5] ss:$9 sm:$0xff] %v10428_v31  ;;  %v4137_v53 = vunpack.c.l.bf16 %v4129_v41  ;;  %v4138_v61 = vunpack.c.h.bf16 %v4129_v41  ;;  %v1990_v25 = vsel %vm1271_vm1, %v1808_v44, %v1854_v13  ;;  %v3657_v17 = vrot.slane %v3655_v59, 1 }
 0x41e   : > { %15740 = vst [vmem:[#allocation108_spill] sm:$0xff] %v10477_v36  ;;  %v15752_v51 = vshrl.u32 %v15657_v58, 16  ;;  %v1993_v43 = vsel %vm1275_vm2, %v1808_v44, %v1854_v13  ;;  %v1770_v60 = vadd.f32 %v10169_v37, %v15753_v48  ;;  %v3628_v12 = vsel %vm15008_vm12, %v3624_v9, %v3627_v49 }
 0x41f   : > { %15741 = vst [vmem:[#allocation114_spill] sm:$0xff] %v10479_v62  ;;  %v10542_v23 = vsel %vm1267_vm0, %v1808_v44, %v1854_v13  ;;  %v1996_v41 = vsel %vm1279_vm3, %v1808_v44, %v1854_v13  ;;  %v3654_v58 = vor.u32 %v3653_v42, %v3649_v39  ;;  %v3714_v59 = vpack.i.b16 %v15651_v14, %v15651_v14 }
 0x420   : > { %5372 = vst [vmem:[#allocation1 + $0x6] ss:$9 sm:$0xff] %v10439_v6  ;;  %v3435_v5 = vpack.i.b16 %v15752_v51, %v15752_v51  ;;  %v10548_v51 = vrot.slane %v1990_v25, 1  ;;  %v10554_v9 = vrot.slane %v1993_v43, 2  ;;  %v3693_v13 = vsel %vm9446_vm5, %v3433_v0, %v3628_v12 }
 0x421   : > { %15743 = vst [vmem:[#allocation56_spill] sm:$0xff] %v10486_v3  ;;  %v3658_v44 = vsel %vm15008_vm12, %v3654_v58, %v3657_v17  ;;  %v3613_v39 = vrot.slane %v3611_v30, 1  ;;  %v3713_v25 = vperm.slane %v3711_v54, 0  ;;  %v3661_v0 = vshll.u32 %v10030_v21, 16  ;;  %v15763_v58 = vld [vmem:[#allocation123_spill] sm:$0xff] }
 0x422   : > { %5373 = vst [vmem:[#allocation1 + $0x7] ss:$9 sm:$0xff] %v10451_v47  ;;  %v3637_v47 = vrot.slane %v3635_v16, 1  ;;  %v3634_v16 = vor.u32 %v3633_v40, %v3629_v10  ;;  %v3437_v42 = vperm.slane %v3435_v5, 0  ;;  %v10560_v10 = vrot.slane %v1996_v41, 3 }
 0x423   : > { %15754 = vst [vmem:[#allocation45_spill] sm:$0xff] %v10542_v23  ;;  %v15760_v5 = vperm.slane %v10368_v27, 0  ;;  %v10576_v54 = vsel %vm9477_vm8, %v3713_v25, %v3693_v13  ;;  %v15762_v27 = vld [vmem:[#allocation93_spill] sm:$0xff]  ;;  %v4123_v41 = vsel %vm3111_vm11, %v10502_v24, %v10512_v45  ;;  %vm15764_vm15 = vcmp.lt.s32.totalorder %v15763_v58, 1 }
 0x424   : > { %15755 = vst [vmem:[#allocation127_spill] sm:$0xff] %v10548_v51  ;;  %v3638_v40 = vsel %vm15008_vm12, %v3634_v16, %v3637_v47  ;;  %v3609_v47 = vshrl.u32 %v15747_v19, 16  ;;  %v3716_v19 = vperm.slane %v3714_v59, 0  ;;  %v10582_v16 = vsel %vm9477_vm8, %v10330_v1, %v3691_v7 }
 0x425   : > { %15758 = vst [vmem:[#allocation115_spill] sm:$0xff] %v10554_v9  ;;  %v3694_v17 = vsel %vm9446_vm5, %v3437_v42, %v3638_v40  ;;  %v3696_v30 = vsel %vm9446_vm5, %v15760_v5, %v3658_v44  ;;  %v2005_v7 = vsel %vm1275_vm2, %v10175_v33, %v10180_v46  ;;  %v3659_v25 = vshrl.u32 %v10030_v21, 16  ;;  %v15768_v21 = vld [vmem:[#allocation59_spill] sm:$0xff] }
 0x426   : > { %15759 = vst [vmem:[#allocation131_spill] sm:$0xff] %v10560_v10  ;;  %v3614_v59 = vor.u32 %v3613_v39, %v3609_v47  ;;  %v10598_v1 = vsel %vm9477_vm8, %v3716_v19, %v3694_v17  ;;  %v10606_v44 = vsel %vm9477_vm8, %v10397_v20, %v3696_v30  ;;  %v3665_v47 = vshll.u32 %v10035_v32, 16 }
 0x427   : > { %v4127_v39 = vsel %vm3115_vm14, %v10502_v24, %v10598_v1  ;;  %v2008_v5 = vsel %vm1279_vm3, %v10175_v33, %v10180_v46  ;;  %v10636_v32 = vsel %vm14961_vm6, %v10512_v45, %v10502_v24  ;;  %vm15791_vm6 = vcmp.lt.s32.totalorder %v15762_v27, 1 }
 0x428   : > { %v10630_v30 = vsel %vm3107_vm13, %v10512_v45, %v4127_v39 }
 0x429   : > { %v10527_v26 = vld [vmem:[#allocation1] sm:$0xff] }
 0x42a   : > { %15751 = vst [vmem:[#allocation122_spill] sm:$0xff] %v10527_v26  ;;  %v15756_v26 = vld [vmem:[#allocation88_spill] sm:$0xff] }
 0x42b   : > { %5375 = vst [vmem:[#allocation1] ss:$9 sm:$0xff] %v10466_v18  ;;  %v4153_v48 = vmul.f32 %v4137_v53, %v15756_v26  ;;  %v1810_v53 = vpack.c.bf16 %v1770_v60, %v1770_v60  ;;  %v15761_v60 = vld [vmem:[#allocation119_spill] sm:$0xff] }
 0x42c   : > { %5377 = vst [vmem:[#allocation1 + $0x1] ss:$9 sm:$0xff] %v10477_v36  ;;  %v15757_v36 = vld [vmem:[#allocation92_spill] sm:$0xff]  ;;  %v3615_v12 = vshll.u32 %v15761_v60, 16 }
 0x42d   : > { %5379 = vst [vmem:[#allocation1 + $0x2] ss:$9 sm:$0xff] %v10479_v62  ;;  %v4154_v49 = vmul.f32 %v4138_v61, %v15757_v36  ;;  %v1856_v40 = vrot.slane %v1810_v53, 3 }
 0x42e   : > { %5381 = vst [vmem:[#allocation1 + $0x3] ss:$9 sm:$0xff] %v10486_v3  ;;  %v3617_v61 = vrot.slane %v3615_v12, 1 }
 0x42f   : > { %5382 = vst [vmem:[#allocation1 + $0x4] ss:$9 sm:$0xff] %v10542_v23  ;;  %v4169_v43 = vpack.c.bf16 %v4154_v49, %v4153_v48  ;;  %v4126_v48 = vsel %vm14938_vm7, %v10502_v24, %v10576_v54  ;;  %v2002_v49 = vsel %vm1271_vm1, %v10175_v33, %v10180_v46  ;;  %vm15766_vm7 = vcmp.lt.s32.totalorder %v15762_v27, 1 }
 0x430   : > { %5384 = vst [vmem:[#allocation1 + $0x5] ss:$9 sm:$0xff] %v10548_v51  ;;  %v10611_v13 = vsel %vm15764_vm15, %v10512_v45, %v4126_v48  ;;  %v4130_v20 = vsel %vm15766_vm7, %v10512_v45, %v4123_v41  ;;  %v10622_v17 = vrot.slane %v2002_v49, 1  ;;  %v2014_v19 = vsel %vm1271_vm1, %v1810_v53, %v1856_v40  ;;  %v15771_v41 = vld [vmem:[#allocation76_spill] sm:$0xff] }
 0x431   : > { %5386 = vst [vmem:[#allocation1 + $0x6] ss:$9 sm:$0xff] %v10554_v9  ;;  %7678 = vmatmul.msk.bf16.vlgmr.msrb.gmra.mxu0 %vm1117_vm4, %v4169_v43  ;;  %v3663_v43 = vrot.slane %v3661_v0, 1  ;;  %v10638_v0 = vrot.slane %v2005_v7, 2  ;;  %v2017_v60 = vsel %vm1275_vm2, %v1810_v53, %v1856_v40  ;;  %v4506_v33 = vsel %vm3110_vm9, %v10606_v44, %v10512_v45 }
 0x432   : > { %5387 = vst [vmem:[#allocation1 + $0x7] ss:$9 sm:$0xff] %v10560_v10  ;;  %v1775_v48 = vadd.f32 %v10169_v37, %v15771_v41  ;;  %v4139_v49 = vunpack.c.l.bf16 %v4130_v20  ;;  %v4140_v39 = vunpack.c.h.bf16 %v4130_v20  ;;  %v4513_v7 = vsel %vm3102_vm10, %v10582_v16, %v4506_v33 }
 0x433   : > { %15767 = vst [vmem:[#allocation134_spill] sm:$0xff] %v10622_v17  ;;  %v10653_v10 = vrot.slane %v2008_v5, 3  ;;  %v4521_v9 = vunpack.c.l.bf16 %v4513_v7  ;;  %v4522_v51 = vunpack.c.h.bf16 %v4513_v7  ;;  %v3667_v23 = vrot.slane %v3665_v47, 1 }
 0x434   : > { %15769 = vst [vmem:[#allocation88_spill] sm:$0xff] %v10638_v0  ;;  %v3664_v3 = vor.u32 %v3663_v43, %v3659_v25  ;;  %v2020_v20 = vsel %vm1279_vm3, %v1810_v53, %v1856_v40  ;;  %v10662_v41 = vrot.slane %v2014_v19, 1  ;;  %v10664_v12 = vrot.slane %v2017_v60, 2  ;;  %v15776_v43 = vld [vmem:[#allocation100_spill] sm:$0xff] }
 0x435   : > { %15772 = vst [vmem:[#allocation119_spill] sm:$0xff] %v10653_v10  ;;  %v4537_v5 = vmul.f32 %v4521_v9, %v15756_v26  ;;  %v4538_v33 = vmul.f32 %v4522_v51, %v15757_v36  ;;  %v1812_v25 = vpack.c.bf16 %v1775_v48, %v1775_v48  ;;  %v1790_v47 = vadd.f32 %v10169_v37, %v10067_v11 }
 0x436   : > { %15774 = vst [vmem:[#allocation140_spill] sm:$0xff] %v10662_v41  ;;  %v4155_v7 = vmul.f32 %v4139_v49, %v15776_v43  ;;  %v3618_v19 = vsel %vm15008_vm12, %v3614_v59, %v3617_v61  ;;  %v10675_v60 = vrot.slane %v2020_v20, 3  ;;  %v15779_v51 = vpack.i.b16 %v15631_v57, %v15631_v57 }
 0x437   : > { %15775 = vst [vmem:[#allocation141_spill] sm:$0xff] %v10664_v12  ;;  %v4553_v9 = vpack.c.bf16 %v4538_v33, %v4537_v5  ;;  %v3668_v11 = vsel %vm15008_vm12, %v3664_v3, %v3667_v23  ;;  %v10684_v49 = vpack.c.bf16 %v1790_v47, %v1790_v47  ;;  %v15780_v61 = vpack.i.b16 %v15606_v35, %v15606_v35  ;;  %v15782_v5 = vld [vmem:[#allocation27_spill] sm:$0xff]  ;;  %v15783_v33 = vld [vmem:[#allocation26_spill] sm:$0xff] }
 0x438   : > { %15778 = vst [vmem:[#allocation100_spill] sm:$0xff] %v10675_v60  ;;  %v3710_v48 = vperm.slane %v15779_v51, 0  ;;  %v10694_v51 = vsel %vm1267_vm0, %v15783_v33, %v15782_v5  ;;  %v1858_v23 = vrot.slane %v1812_v25, 3  ;;  %vm15786_vm15 = vcmp.gt.s32.totalorder %v15763_v58, 14 }
 0x439   : > { %v10646_v46 = vld [vmem:[#allocation1] sm:$0xff]  ;;  %v3725_v59 = vperm.slane %v15780_v61, 0  ;;  %7702 = vmatmul.msk.bf16.vlgmr.msrb.gmra.mxu2 %vm1117_vm4, %v4553_v9  ;;  %v10705_v47 = vrot.slane %v10684_v49, 3 }
 0x43a   : > { %15770 = vst [vmem:[#allocation92_spill] sm:$0xff] %v10646_v46  ;;  %v10658_v46 = vsel %vm1267_vm0, %v1810_v53, %v1856_v40  ;;  %v3671_v40 = vshll.u32 %v10052_v2, 16 }
 0x43b   : > { %5390 = vst [vmem:[#allocation1] ss:$9 sm:$0xff] %v10622_v17  ;;  %v10761_v17 = vsel %vm1267_vm0, %v1812_v25, %v1858_v23 }
 0x43c   : > { %5392 = vst [vmem:[#allocation1 + $0x1] ss:$9 sm:$0xff] %v10638_v0  ;;  %v15777_v0 = vld [vmem:[#allocation101_spill] sm:$0xff]  ;;  %v3673_v9 = vrot.slane %v3671_v40, 1 }
 0x43d   : > { %15773 = vst [vmem:[#allocation76_spill] sm:$0xff] %v10658_v46  ;;  %v4156_v53 = vmul.f32 %v4140_v39, %v15777_v0  ;;  %v15781_v39 = vld [vmem:[#allocation139_spill] sm:$0xff] }
 0x43e   : > { %5394 = vst [vmem:[#allocation1 + $0x2] ss:$9 sm:$0xff] %v10653_v10  ;;  %v3449_v20 = vperm.slane %v15781_v39, 0  ;;  %v15785_v39 = vshrl.u32 %v9665_v63, 16  ;;  %v15792_v63 = vld [vmem:[#allocation77_spill] sm:$0xff] }
 0x43f   : > { %5395 = vst [vmem:[#allocation1 + $0x3] ss:$9 sm:$0xff] %v10658_v46  ;;  %v3429_v46 = vperm.slane %v10375_v50, 0  ;;  %v4507_v50 = vsel %vm3111_vm11, %v10606_v44, %v10582_v16  ;;  %v4170_v61 = vpack.c.bf16 %v4156_v53, %v4155_v7  ;;  %v15789_v7 = vld [vmem:[#allocation116_spill] sm:$0xff] }
 0x440   : > { %5397 = vst [vmem:[#allocation1 + $0x4] ss:$9 sm:$0xff] %v10662_v41  ;;  %v10720_v41 = vsel %vm1267_vm0, %v10684_v49, %v10705_v47  ;;  %vm15790_vm7 = vcmp.gt.s32.totalorder %v15789_v7, 14  ;;  %v4514_v40 = vsel %vm15791_vm6, %v10582_v16, %v4507_v50  ;;  %v2038_v50 = vsel %vm1271_vm1, %v1812_v25, %v1858_v23 }
 0x441   : > { %5399 = vst [vmem:[#allocation1 + $0x5] ss:$9 sm:$0xff] %v10664_v12  ;;  %v3692_v3 = vsel %vm9446_vm5, %v3429_v46, %v3618_v19  ;;  %v3697_v12 = vsel %vm9446_vm5, %v3449_v20, %v3668_v11  ;;  %v4510_v46 = vsel %vm15786_vm15, %v10606_v44, %v10598_v1  ;;  %v15787_v19 = vld [vmem:[#allocation91_spill] sm:$0xff]  ;;  %7679 = vmatmul.msk.bf16.gmra.mxu0 %vm1117_vm4, %v4170_v61  ;;  %v3669_v11 = vshrl.u32 %v10052_v2, 16 }
 0x442   : > { %5401 = vst [vmem:[#allocation1 + $0x6] ss:$9 sm:$0xff] %v10675_v60  ;;  %v3451_v60 = vpack.i.b16 %v15785_v39, %v15785_v39  ;;  %v4124_v53 = vsel %vm15790_vm7, %v10502_v24, %v10582_v16  ;;  %v10733_v20 = vsel %vm9477_vm8, %v3710_v48, %v3692_v3  ;;  %v2029_v39 = vsel %vm1275_vm2, %v15783_v33, %v15782_v5 }
 0x443   : > { %15784 = vst [vmem:[#allocation101_spill] sm:$0xff] %v10694_v51  ;;  %v2032_v61 = vsel %vm1279_vm3, %v15783_v33, %v15782_v5  ;;  %v1780_v2 = vadd.f32 %v10169_v37, %v15792_v63  ;;  %vm15793_vm6 = vcmp.lt.s32.totalorder %v15763_v58, 1  ;;  %v3674_v3 = vor.u32 %v3673_v9, %v3669_v11 }
 0x444   : > { %5402 = vst [vmem:[#allocation1 + $0x7] ss:$9 sm:$0xff] %v10694_v51  ;;  %v3675_v51 = vshll.u32 %v15787_v19, 16  ;;  %v10743_v19 = vsel %vm9477_vm8, %v3725_v59, %v3697_v12  ;;  %v10751_v48 = vsel %vm15793_vm6, %v10582_v16, %v4510_v46  ;;  %vm15794_vm15 = vcmp.lt.s32.totalorder %v15789_v7, 1 }
 0x445   : > { %15788 = vst [vmem:[#allocation139_spill] sm:$0xff] %v10720_v41  ;;  %v4131_v41 = vsel %vm15794_vm15, %v10512_v45, %v4124_v53  ;;  %v4523_v5 = vunpack.c.l.bf16 %v4514_v40  ;;  %v4524_v33 = vunpack.c.h.bf16 %v4514_v40  ;;  %v10756_v12 = vrot.slane %v2029_v39, 2 }
 0x446   : > { %v3677_v10 = vrot.slane %v3675_v51, 1  ;;  %v10758_v59 = vrot.slane %v2032_v61, 3  ;;  %15797 = vst [vmem:[#allocation91_spill] sm:$0xff] %v10761_v17  ;;  %v10765_v62 = vrot.slane %v2038_v50, 1  ;;  %v2041_v9 = vsel %vm1275_vm2, %v1812_v25, %v1858_v23 }
 0x447   : > { %15795 = vst [vmem:[#allocation27_spill] sm:$0xff] %v10756_v12  ;;  %v2044_v46 = vsel %vm1279_vm3, %v1812_v25, %v1858_v23  ;;  %v4890_v51 = vsel %vm3110_vm9, %v10743_v19, %v10582_v16  ;;  %v1814_v53 = vpack.c.bf16 %v1780_v2, %v1780_v2  ;;  %v4141_v40 = vunpack.c.l.bf16 %v4131_v41  ;;  %v15802_v2 = vld [vmem:[#allocation53_spill] sm:$0xff] }
 0x448   : > { %15796 = vst [vmem:[#allocation26_spill] sm:$0xff] %v10758_v59  ;;  %v4142_v11 = vunpack.c.h.bf16 %v4131_v41  ;;  %v4897_v39 = vsel %vm3102_vm10, %v10733_v20, %v4890_v51  ;;  %v4539_v61 = vmul.f32 %v4523_v5, %v15776_v43  ;;  %v4540_v25 = vmul.f32 %v4524_v33, %v15777_v0 }
 0x449   : > { %15799 = vst [vmem:[#allocation142_spill] sm:$0xff] %v10765_v62  ;;  %v4905_v23 = vunpack.c.l.bf16 %v4897_v39  ;;  %v4906_v50 = vunpack.c.h.bf16 %v4897_v39  ;;  %v3678_v18 = vsel %vm15008_vm12, %v3674_v3, %v3677_v10  ;;  %v10787_v6 = vrot.slane %v2044_v46, 3  ;;  %v15804_v39 = vld [vmem:[#allocation117_spill] sm:$0xff] }
 0x44a   : > { %v3453_v51 = vperm.slane %v3451_v60, 0  ;;  %v4554_v46 = vpack.c.bf16 %v4540_v25, %v4539_v61  ;;  %v15808_v61 = vld [vmem:[#allocation102_spill] sm:$0xff]  ;;  %vm15809_vm6 = vcmp.gt.s32.totalorder %v15763_v58, 14 }
 0x44b   : > { %v10763_v63 = vld [vmem:[#allocation1] sm:$0xff]  ;;  %v4921_v5 = vmul.f32 %v4905_v23, %v15756_v26  ;;  %v4922_v33 = vmul.f32 %v4906_v50, %v15757_v36 }
 0x44c   : > { %15798 = vst [vmem:[#allocation77_spill] sm:$0xff] %v10763_v63  ;;  %v10780_v63 = vrot.slane %v2041_v9, 2  ;;  %v1860_v9 = vrot.slane %v1814_v53, 3  ;;  %v10805_v60 = vsel %vm9446_vm5, %v3453_v51, %v3678_v18  ;;  %7703 = vmatmul.msk.bf16.gmra.mxu2 %vm1117_vm4, %v4554_v46  ;;  %v4891_v18 = vsel %vm3111_vm11, %v10743_v19, %v10733_v20 }
 0x44d   : > { %5405 = vst [vmem:[#allocation1] ss:$9 sm:$0xff] %v10756_v12  ;;  %v15801_v12 = vld [vmem:[#allocation79_spill] sm:$0xff]  ;;  %v4937_v23 = vpack.c.bf16 %v4922_v33, %v4921_v5  ;;  %v15811_v33 = vld [vmem:[#allocation34_spill] sm:$0xff] }
 0x44e   : > { %5407 = vst [vmem:[#allocation1 + $0x1] ss:$9 sm:$0xff] %v10758_v59  ;;  %v2050_v41 = vsel %vm1271_vm1, %v15802_v2, %v15801_v12  ;;  %v15805_v59 = vld [vmem:[#allocation118_spill] sm:$0xff]  ;;  %v10799_v10 = vsel %vm1267_vm0, %v15802_v2, %v15801_v12  ;;  %v2062_v25 = vsel %vm1271_vm1, %v1814_v53, %v1860_v9  ;;  %vm15812_vm15 = vcmp.gt.s32.totalorder %v15811_v33, 14 }
 0x44f   : > { %15800 = vst [vmem:[#allocation143_spill] sm:$0xff] %v10780_v63  ;;  %v4158_v31 = vmul.f32 %v4142_v11, %v15805_v59  ;;  %v10801_v3 = vrot.slane %v2050_v41, 1  ;;  %7726 = vmatmul.msk.bf16.vlgmr.msra.gmra.mxu1 %vm1117_vm4, %v4937_v23  ;;  %v4508_v11 = vsel %vm15790_vm7, %v10606_v44, %v10733_v20  ;;  %v4894_v41 = vsel %vm15809_vm6, %v10743_v19, %v10502_v24  ;;  %v15815_v23 = vld [vmem:[#allocation14_spill] sm:$0xff] }
 0x450   : > { %5408 = vst [vmem:[#allocation1 + $0x2] ss:$9 sm:$0xff] %v10761_v17  ;;  %v4157_v17 = vmul.f32 %v4141_v40, %v15804_v39  ;;  %v2056_v40 = vsel %vm1279_vm3, %v15802_v2, %v15801_v12  ;;  %v3726_v12 = vpack.i.b16 %v15808_v61, %v15808_v61  ;;  %v4511_v2 = vsel %vm3115_vm14, %v10606_v44, %v10502_v24 }
 0x451   : > { %15803 = vst [vmem:[#allocation79_spill] sm:$0xff] %v10787_v6  ;;  %v10833_v5 = vrot.slane %v2056_v40, 3  ;;  %v4125_v51 = vsel %vm15812_vm15, %v10502_v24, %v10733_v20  ;;  %vm15813_vm7 = vcmp.lt.s32.totalorder %v15763_v58, 1  ;;  %v10850_v46 = vsel %vm1267_vm0, %v1814_v53, %v1860_v9 }
 0x452   : > { %5410 = vst [vmem:[#allocation1 + $0x3] ss:$9 sm:$0xff] %v10765_v62  ;;  %v4171_v50 = vpack.c.bf16 %v4158_v31, %v4157_v17  ;;  %v10842_v31 = vsel %vm3107_vm13, %v10582_v16, %v4511_v2  ;;  %v10847_v17 = vsel %vm15813_vm7, %v10733_v20, %v4894_v41  ;;  %v1795_v40 = vadd.f32 %v10169_v37, %v15815_v23 }
 0x453   : > { %5412 = vst [vmem:[#allocation1 + $0x4] ss:$9 sm:$0xff] %v10780_v63  ;;  %vm15816_vm6 = vcmp.lt.s32.totalorder %v15789_v7, 1  ;;  %vm15817_vm15 = vcmp.lt.s32.totalorder %v15762_v27, 1  ;;  %v2065_v41 = vsel %vm1275_vm2, %v1814_v53, %v1860_v9  ;;  %v15819_v63 = vld [vmem:[#allocation133_spill] sm:$0xff] }
 0x454   : > { %5414 = vst [vmem:[#allocation1 + $0x5] ss:$9 sm:$0xff] %v10787_v6  ;;  %7680 = vmatmul.msk.bf16.gmra.mxu0 %vm1117_vm4, %v4171_v50  ;;  %v4898_v2 = vsel %vm15817_vm15, %v10733_v20, %v4891_v18  ;;  %v2068_v6 = vsel %vm1279_vm3, %v1814_v53, %v1860_v9  ;;  %vm15820_vm7 = vcmp.gt.s32.totalorder %v15819_v63, 14  ;;  %v15821_v50 = vld [vmem:[#allocation90_spill] sm:$0xff]  ;;  %v10871_v56 = vpack.c.bf16 %v1795_v40, %v1795_v40 }
 0x455   : > { %15806 = vst [vmem:[#allocation53_spill] sm:$0xff] %v10799_v10  ;;  %v4128_v23 = vsel %vm15820_vm7, %v10502_v24, %v10606_v44  ;;  %v1785_v62 = vadd.f32 %v10169_v37, %v15821_v50  ;;  %vm15823_vm15 = vcmp.lt.s32.totalorder %v15819_v63, 1  ;;  %v4908_v55 = vunpack.c.h.bf16 %v4898_v2 }
 0x456   : > { %15807 = vst [vmem:[#allocation117_spill] sm:$0xff] %v10801_v3  ;;  %v10879_v18 = vsel %vm15823_vm15, %v10512_v45, %v4128_v23  ;;  %v10883_v24 = vrot.slane %v2065_v41, 2  ;;  %vm15826_vm7 = vcmp.lt.s32.totalorder %v15768_v21, 1  ;;  %v15829_v23 = vld [vmem:[#allocation89_spill] sm:$0xff]  ;;  %v15830_v22 = vrot.slane %v10871_v56, 3 }
 0x457   : > { %5415 = vst [vmem:[#allocation1 + $0x6] ss:$9 sm:$0xff] %v10799_v10  ;;  %v10861_v10 = vrot.slane %v2062_v25, 1  ;;  %v4907_v25 = vunpack.c.l.bf16 %v4898_v2  ;;  %v15828_v2 = vld [vmem:[#allocation110_spill] sm:$0xff]  ;;  %v1787_v50 = vadd.f32 %v10169_v37, %v15829_v23  ;;  %v1816_v38 = vpack.c.bf16 %v1785_v62, %v1785_v62 }
 0x458   : > { %5416 = vst [vmem:[#allocation1 + $0x7] ss:$9 sm:$0xff] %v10801_v3  ;;  %v4515_v3 = vsel %vm15816_vm6, %v10582_v16, %v4508_v11  ;;  %vm15822_vm6 = vcmp.lt.s32.totalorder %v15811_v33, 1  ;;  %v2074_v41 = vsel %vm1271_vm1, %v15828_v2, %v10432_v15  ;;  %v10923_v62 = vsel %vm1267_vm0, %v15828_v2, %v10432_v15 }
 0x459   : > { %15810 = vst [vmem:[#allocation118_spill] sm:$0xff] %v10833_v5  ;;  %v4132_v11 = vsel %vm15822_vm6, %v10512_v45, %v4125_v51  ;;  %v4525_v53 = vunpack.c.l.bf16 %v4515_v3  ;;  %v4526_v9 = vunpack.c.h.bf16 %v4515_v3  ;;  %v10890_v51 = vsel %vm15826_vm7, %v10582_v16, %v10606_v44 }
 0x45a   : > { %15814 = vst [vmem:[#allocation144_spill] sm:$0xff] %v10850_v46  ;;  %v4895_v45 = vsel %vm3115_vm14, %v10743_v19, %v10606_v44  ;;  %v10897_v3 = vrot.slane %v2068_v6, 3  ;;  %v4143_v40 = vunpack.c.l.bf16 %v4132_v11  ;;  %v10912_v6 = vsel %vm1271_vm1, %v10871_v56, %v15830_v22 }
 0x45b   : > { %15818 = vst [vmem:[#allocation14_spill] sm:$0xff] %v10861_v10  ;;  %v4541_v61 = vmul.f32 %v4525_v53, %v15804_v39  ;;  %v4542_v37 = vmul.f32 %v4526_v9, %v15805_v59  ;;  %v4923_v23 = vmul.f32 %v4907_v25, %v15776_v43  ;;  %v10928_v22 = vsel %vm3107_vm13, %v10733_v20, %v4895_v45 }
 0x45c   : > { %15825 = vst [vmem:[#allocation145_spill] sm:$0xff] %v10883_v24  ;;  %vm15833_vm6 = vcmp.gt.s32.totalorder %v15819_v63, 14  ;;  %v3728_v53 = vperm.slane %v3726_v12, 0  ;;  %v1817_v25 = vpack.c.bf16 %v1787_v50, %v1787_v50  ;;  %v10951_v12 = vsel %vm15826_vm7, %v10733_v20, %v10743_v19 }
 0x45d   : > { %15827 = vst [vmem:[#allocation146_spill] sm:$0xff] %v10897_v3  ;;  %vm15840_vm7 = vcmp.gt.s32.totalorder %v15819_v63, 14  ;;  %vm15841_vm12 = vcmp.lt.s32.totalorder %v15819_v63, 1 }
 0x45e   : > { %15831 = vst [vmem:[#allocation110_spill] sm:$0xff] %v10912_v6  ;;  %v15837_v6 = vld [vmem:[#allocation121_spill] sm:$0xff] }
 0x45f   : > { %v10881_v8 = vld [vmem:[#allocation1] sm:$0xff]  ;;  %15832 = vst [vmem:[#allocation89_spill] sm:$0xff] %v10923_v62 }
 0x460   : > { %15824 = vst [vmem:[#allocation90_spill] sm:$0xff] %v10881_v8  ;;  %v2077_v8 = vsel %vm1275_vm2, %v15828_v2, %v10432_v15  ;;  %v15836_v15 = vld [vmem:[#allocation120_spill] sm:$0xff] }
 0x461   : > { %5419 = vst [vmem:[#allocation1] ss:$9 sm:$0xff] %v10833_v5  ;;  %v4144_v5 = vunpack.c.h.bf16 %v4132_v11  ;;  %v4512_v11 = vsel %vm15833_vm6, %v10606_v44, %v10743_v19  ;;  %v10937_v9 = vrot.slane %v2077_v8, 2  ;;  %v4159_v2 = vmul.f32 %v4143_v40, %v15836_v15 }
 0x462   : > { %5420 = vst [vmem:[#allocation1 + $0x1] ss:$9 sm:$0xff] %v10850_v46  ;;  %v4924_v46 = vmul.f32 %v4908_v55, %v15777_v0  ;;  %v10935_v55 = vrot.slane %v2074_v41, 1  ;;  %v3738_v8 = vsel %vm9477_vm8, %v3728_v53, %v10805_v60  ;;  %v1862_v40 = vrot.slane %v1816_v38, 3 }
 0x463   : > { %5422 = vst [vmem:[#allocation1 + $0x2] ss:$9 sm:$0xff] %v10861_v10  ;;  %v4160_v45 = vmul.f32 %v4144_v5, %v15837_v6  ;;  %v4555_v41 = vpack.c.bf16 %v4542_v37, %v4541_v61  ;;  %vm15838_vm6 = vcmp.gt.s32.totalorder %v15811_v33, 14  ;;  %v4896_v61 = vsel %vm15840_vm7, %v10743_v19, %v3738_v8 }
 0x464   : > { %5424 = vst [vmem:[#allocation1 + $0x3] ss:$9 sm:$0xff] %v10883_v24  ;;  %v10945_v24 = vsel %vm15823_vm15, %v10582_v16, %v4512_v11  ;;  %v4938_v5 = vpack.c.bf16 %v4924_v46, %v4923_v23  ;;  %v4509_v50 = vsel %vm15838_vm6, %v10606_v44, %v10576_v54  ;;  %vm15839_vm15 = vcmp.gt.s32.totalorder %v15789_v7, 14 }
 0x465   : > { %5426 = vst [vmem:[#allocation1 + $0x4] ss:$9 sm:$0xff] %v10897_v3  ;;  %7704 = vmatmul.msk.bf16.gmra.mxu2 %vm1117_vm4, %v4555_v41  ;;  %v4892_v60 = vsel %vm15839_vm15, %v10743_v19, %v10576_v54  ;;  %v1863_v46 = vrot.slane %v1817_v25, 3  ;;  %v4172_v37 = vpack.c.bf16 %v4160_v45, %v4159_v2  ;;  %v10974_v23 = vsel %vm15841_vm12, %v10733_v20, %v4896_v61 }
 0x466   : > { %15834 = vst [vmem:[#allocation147_spill] sm:$0xff] %v10935_v55  ;;  %7727 = vmatmul.msk.bf16.gmra.mxu1 %vm1117_vm4, %v4938_v5  ;;  %v2086_v11 = vsel %vm1271_vm1, %v1816_v38, %v1862_v40  ;;  %vm15842_vm6 = vcmp.lt.s32.totalorder %v15811_v33, 1  ;;  %vm15843_vm15 = vcmp.lt.s32.totalorder %v15789_v7, 1  ;;  %v2089_v53 = vsel %vm1275_vm2, %v1816_v38, %v1862_v40 }
 0x467   : > { %15835 = vst [vmem:[#allocation148_spill] sm:$0xff] %v10937_v9  ;;  %7681 = vmatmul.msk.bf16.gmra.mxu0 %vm1117_vm4, %v4172_v37  ;;  %v4516_v44 = vsel %vm15842_vm6, %v10582_v16, %v4509_v50  ;;  %v4899_v54 = vsel %vm15843_vm15, %v10733_v20, %v4892_v60  ;;  %v10986_v2 = vsel %vm1267_vm0, %v1816_v38, %v1862_v40  ;;  %v10988_v45 = vrot.slane %v2086_v11, 1  ;;  %vm15857_vm7 = vmmov %vm15842_vm6 }
 0x468   : > { %5427 = vst [vmem:[#allocation1 + $0x5] ss:$9 sm:$0xff] %v10923_v62  ;;  %v2092_v8 = vsel %vm1279_vm3, %v1816_v38, %v1862_v40  ;;  %v2098_v41 = vsel %vm1271_vm1, %v1817_v25, %v1863_v46  ;;  %v4527_v61 = vunpack.c.l.bf16 %v4516_v44  ;;  %v4528_v37 = vunpack.c.h.bf16 %v4516_v44 }
 0x469   : > { %5429 = vst [vmem:[#allocation1 + $0x6] ss:$9 sm:$0xff] %v10935_v55  ;;  %v4909_v16 = vunpack.c.l.bf16 %v4899_v54  ;;  %v4910_v50 = vunpack.c.h.bf16 %v4899_v54  ;;  %v10997_v60 = vrot.slane %v2092_v8, 3  ;;  %v11001_v11 = vsel %vm1267_vm0, %v1817_v25, %v1863_v46  ;;  %v8203_v54 = vld [vmem:[%s14650_s9] ss:$0 sm:$0xff] }
 0x46a   : > { %5430 = vst [vmem:[#allocation1 + $0x7] ss:$9 sm:$0xff] %v10937_v9  ;;  %v10994_v9 = vrot.slane %v2089_v53, 2  ;;  %v2101_v38 = vsel %vm1275_vm2, %v1817_v25, %v1863_v46  ;;  %v2104_v40 = vsel %vm1279_vm3, %v1817_v25, %v1863_v46  ;;  %v11006_v44 = vrot.slane %v2098_v41, 1  ;;  %v15851_v53 = vld [vmem:[#allocation137_spill] sm:$0xff] }
 0x46b   : > { %15844 = vst [vmem:[#allocation120_spill] sm:$0xff] %v10986_v2  ;;  %v1792_v8 = vadd.f32 %v8203_v54, %v15851_v53  ;;  %v4544_v25 = vmul.f32 %v4528_v37, %v15837_v6  ;;  %v4925_v46 = vmul.f32 %v4909_v16, %v15804_v39  ;;  %v4926_v41 = vmul.f32 %v4910_v50, %v15805_v59  ;;  %v15854_v54 = vld [vmem:[#allocation42_spill] sm:$0xff] }
 0x46c   : > { %15845 = vst [vmem:[#allocation121_spill] sm:$0xff] %v10988_v45  ;;  %v11022_v55 = vrot.slane %v2104_v40, 3  ;;  %vm15856_vm12 = vcmp.gt.s32.totalorder %v15811_v33, 14  ;;  %v2116_v40 = vsel %vm1279_vm3, %v10684_v49, %v10705_v47  ;;  %vm15932_vm6 = vcmp.gt.s32.totalorder %v15789_v7, 14 }
 0x46d   : > { %15847 = vst [vmem:[#allocation150_spill] sm:$0xff] %v10994_v9  ;;  %v4939_v16 = vpack.c.bf16 %v4926_v41, %v4925_v46  ;;  %v4893_v50 = vsel %vm15856_vm12, %v10743_v19, %v10598_v1  ;;  %v11054_v46 = vrot.slane %v2116_v40, 3  ;;  %v11077_v40 = vpop.f32.mrf.mxu1  ;;  %vm15935_vm12 = vcmp.lt.s32.totalorder %v15768_v21, 1 }
 0x46e   : > { %15848 = vst [vmem:[#allocation151_spill] sm:$0xff] %v10997_v60  ;;  %v4900_v1 = vsel %vm15857_vm7, %v10733_v20, %v4893_v50  ;;  %v4530_v20 = vunpack.c.h.bf16 %v10751_v48  ;;  %vm15936_vm7 = vcmp.lt.s32.totalorder %v15789_v7, 1 }
 0x46f   : > { %15849 = vst [vmem:[#allocation152_spill] sm:$0xff] %v11001_v11 }
 0x470   : > { %15850 = vst [vmem:[#allocation153_spill] sm:$0xff] %v11006_v44 }
 0x471   : > { %v10992_v5 = vld [vmem:[#allocation1] sm:$0xff]  ;;  %15853 = vst [vmem:[#allocation154_spill] sm:$0xff] %v11022_v55 }
 0x472   : > { %15846 = vst [vmem:[#allocation149_spill] sm:$0xff] %v10992_v5  ;;  %v4145_v5 = vunpack.c.l.bf16 %v10611_v13 }
 0x473   : > { %5432 = vst [vmem:[#allocation1] ss:$9 sm:$0xff] %v10986_v2  ;;  %v4543_v2 = vmul.f32 %v4527_v61, %v15836_v15  ;;  %v15855_v61 = vld [vmem:[#allocation125_spill] sm:$0xff] }
 0x474   : > { %5434 = vst [vmem:[#allocation1 + $0x1] ss:$9 sm:$0xff] %v10988_v45  ;;  %v4146_v45 = vunpack.c.h.bf16 %v10611_v13  ;;  %v1819_v13 = vpack.c.bf16 %v1792_v8, %v1792_v8  ;;  %v4161_v53 = vmul.f32 %v4145_v5, %v15854_v54 }
 0x475   : > { %5436 = vst [vmem:[#allocation1 + $0x2] ss:$9 sm:$0xff] %v10994_v9  ;;  %v11019_v9 = vrot.slane %v2101_v38, 2  ;;  %v4556_v37 = vpack.c.bf16 %v4544_v25, %v4543_v2  ;;  %v2110_v38 = vsel %vm1271_vm1, %v10684_v49, %v10705_v47 }
 0x476   : > { %5438 = vst [vmem:[#allocation1 + $0x3] ss:$9 sm:$0xff] %v10997_v60  ;;  %v4162_v60 = vmul.f32 %v4146_v45, %v15855_v61  ;;  %7728 = vmatmul.msk.bf16.gmra.mxu1 %vm1117_vm4, %v4939_v16  ;;  %v2113_v45 = vsel %vm1275_vm2, %v10684_v49, %v10705_v47  ;;  %v1865_v5 = vrot.slane %v1819_v13, 3  ;;  %v11048_v19 = vrot.slane %v2110_v38, 1 }
 0x477   : > { %15852 = vst [vmem:[#allocation137_spill] sm:$0xff] %v11019_v9  ;;  %7705 = vmatmul.msk.bf16.gmra.mxu2 %vm1117_vm4, %v4556_v37  ;;  %v11050_v8 = vrot.slane %v2113_v45, 2  ;;  %v4529_v47 = vunpack.c.l.bf16 %v10751_v48  ;;  %v4912_v37 = vunpack.c.h.bf16 %v4900_v1  ;;  %v4148_v48 = vunpack.c.h.bf16 %v10630_v30 }
 0x478   : > { %5439 = vst [vmem:[#allocation1 + $0x4] ss:$9 sm:$0xff] %v11001_v11  ;;  %v4173_v2 = vpack.c.bf16 %v4162_v60, %v4161_v53  ;;  %v2122_v60 = vsel %vm1271_vm1, %v1819_v13, %v1865_v5  ;;  %v2125_v41 = vsel %vm1275_vm2, %v1819_v13, %v1865_v5  ;;  %v2128_v49 = vsel %vm1279_vm3, %v1819_v13, %v1865_v5  ;;  %v15918_v11 = vld [vmem:[#allocation49_spill] sm:$0xff] }
 0x479   : > { %5441 = vst [vmem:[#allocation1 + $0x5] ss:$9 sm:$0xff] %v11006_v44  ;;  %v4911_v53 = vunpack.c.l.bf16 %v4900_v1  ;;  %v11065_v16 = vsel %vm1267_vm0, %v1819_v13, %v1865_v5  ;;  %v11067_v50 = vrot.slane %v2122_v60, 1  ;;  %v11069_v38 = vrot.slane %v2125_v41, 2  ;;  %v15895_v44 = vld [vmem:[#allocation58_spill] sm:$0xff] }
 0x47a   : > { %5443 = vst [vmem:[#allocation1 + $0x6] ss:$9 sm:$0xff] %v11019_v9  ;;  %7682 = vmatmul.msk.bf16.gmra.mxu0 %vm1117_vm4, %v4173_v2  ;;  %v11071_v45 = vrot.slane %v2128_v49, 3  ;;  %v4147_v2 = vunpack.c.l.bf16 %v10630_v30  ;;  %v4545_v1 = vmul.f32 %v4529_v47, %v15854_v54  ;;  %v4546_v13 = vmul.f32 %v4530_v20, %v15855_v61  ;;  %v15869_v49 = vld [vmem:[#allocation129_spill] sm:$0xff] }
 0x47b   : > { %5444 = vst [vmem:[#allocation1 + $0x7] ss:$9 sm:$0xff] %v11022_v55  ;;  %v4927_v5 = vmul.f32 %v4911_v53, %v15836_v15  ;;  %v4928_v60 = vmul.f32 %v4912_v37, %v15837_v6  ;;  %v15867_v41 = vrot.slane %v10871_v56, 3  ;;  %v15890_v55 = vld [vmem:[#allocation136_spill] sm:$0xff]  ;;  %v15892_v9 = vld [vmem:[#allocation65_spill] sm:$0xff]  ;;  %vm15905_vm1 = vcmp.lt.s32.totalorder %v15763_v58, 1 }
 0x47c   : > { %15858 = vst [vmem:[#allocation42_spill] sm:$0xff] %v11048_v19  ;;  %v4163_v47 = vmul.f32 %v4147_v2, %v15869_v49  ;;  %v4557_v53 = vpack.c.bf16 %v4546_v13, %v4545_v1  ;;  %v3886_v2 = vshrl.u32 %v9064_v52, 16  ;;  %v15876_v1 = vld [vmem:[#allocation28_spill] sm:$0xff]  ;;  %v15877_v13 = vld [vmem:[#allocation29_spill] sm:$0xff]  ;;  %vm15911_vm2 = vcmp.lt.s32.totalorder %v15762_v27, 1  ;;  %vm15933_vm15 = vmmov %vm15905_vm1 }
 0x47d   : > { %15859 = vst [vmem:[#allocation125_spill] sm:$0xff] %v11050_v8  ;;  %v11089_v30 = vsel %vm1267_vm0, %v10871_v56, %v15867_v41  ;;  %v4940_v37 = vpack.c.bf16 %v4928_v60, %v4927_v5  ;;  %v4531_v5 = vunpack.c.l.bf16 %v10842_v31  ;;  %v4532_v60 = vunpack.c.h.bf16 %v10842_v31 }
 0x47e   : > { %15861 = vst [vmem:[#allocation156_spill] sm:$0xff] %v11054_v46  ;;  %v3887_v31 = vpack.i.b16 %v3886_v2, %v3886_v2  ;;  %v15886_v2 = vld [vmem:[#allocation21_spill] sm:$0xff]  ;;  %vm15902_vm0 = vcmp.gt.s32.totalorder %v15763_v58, 14 }
 0x47f   : > { %15862 = vst [vmem:[#allocation157_spill] sm:$0xff] %v11065_v16  ;;  %vm15928_vm3 = vmmov %vm15902_vm0 }
 0x480   : > { %15863 = vst [vmem:[#allocation158_spill] sm:$0xff] %v11067_v50 }
 0x481   : > { %15864 = vst [vmem:[#allocation159_spill] sm:$0xff] %v11069_v38 }
 0x482   : > { %v11052_v25 = vld [vmem:[#allocation1] sm:$0xff]  ;;  %15865 = vst [vmem:[#allocation160_spill] sm:$0xff] %v11071_v45 }
 0x483   : > { %15860 = vst [vmem:[#allocation155_spill] sm:$0xff] %v11052_v25  ;;  %v11094_v25 = vpop.f32.mrf.mxu3 }
 0x484   : > { %5447 = vst [vmem:[#allocation1] ss:$9 sm:$0xff] %v11048_v19  ;;  %v15885_v19 = vld [vmem:[#allocation37_spill] sm:$0xff] }
 0x485   : > { %5449 = vst [vmem:[#allocation1 + $0x1] ss:$9 sm:$0xff] %v11050_v8  ;;  %v15884_v8 = vld [vmem:[#allocation36_spill] sm:$0xff] }
 0x486   : > { %5451 = vst [vmem:[#allocation1 + $0x2] ss:$9 sm:$0xff] %v11054_v46  ;;  %7729 = vmatmul.msk.bf16.gmra.mxu1 %vm1117_vm4, %v4940_v37  ;;  %v15880_v37 = vld [vmem:[#allocation104_spill] sm:$0xff] }
 0x487   : > { %5452 = vst [vmem:[#allocation1 + $0x3] ss:$9 sm:$0xff] %v11065_v16  ;;  %7706 = vmatmul.msk.bf16.gmra.mxu2 %vm1117_vm4, %v4557_v53  ;;  %v15879_v53 = vld [vmem:[#allocation13_spill] sm:$0xff] }
 0x488   : > { %5454 = vst [vmem:[#allocation1 + $0x4] ss:$9 sm:$0xff] %v11067_v50  ;;  %v3890_v52 = vshrl.u32 %v15879_v53, 16  ;;  %v15882_v50 = vld [vmem:[#allocation35_spill] sm:$0xff]  ;;  %v4547_v53 = vmul.f32 %v4531_v5, %v15869_v49  ;;  %v15889_v5 = vld [vmem:[#allocation40_spill] sm:$0xff] }
 0x489   : > { %15866 = vst [vmem:[#allocation161_spill] sm:$0xff] %v11077_v40  ;;  %v15870_v40 = vld [vmem:[#allocation130_spill] sm:$0xff] }
 0x48a   : > { %5456 = vst [vmem:[#allocation1 + $0x5] ss:$9 sm:$0xff] %v11069_v38  ;;  %v4164_v20 = vmul.f32 %v4148_v48, %v15870_v40  ;;  %v15872_v38 = vld [vmem:[#allocation57_spill] sm:$0xff] }
 0x48b   : > { %5458 = vst [vmem:[#allocation1 + $0x6] ss:$9 sm:$0xff] %v11071_v45  ;;  %v3910_v56 = vshrl.u32 %v15872_v38, 16  ;;  %v15875_v48 = vld [vmem:[#allocation61_spill] sm:$0xff]  ;;  %v4914_v38 = vunpack.c.h.bf16 %v10847_v17  ;;  %v11120_v16 = vpop.f32.mrf.mxu3 }
 0x48c   : > { %15868 = vst [vmem:[#allocation162_spill] sm:$0xff] %v11089_v30  ;;  %v4174_v45 = vpack.c.bf16 %v4164_v20, %v4163_v47  ;;  %v15878_v47 = vld [vmem:[#allocation12_spill] sm:$0xff] }
 0x48d   : > { %5459 = vst [vmem:[#allocation1 + $0x7] ss:$9 sm:$0xff] %v11089_v30  ;;  %v11102_v30 = vpop.f32.mrf.mxu1  ;;  %v3739_v20 = vpack.i.b16 %v15878_v47, %v15878_v47  ;;  %v4150_v47 = vunpack.c.h.bf16 %v10636_v32 }
 0x48e   : > { %15871 = vst [vmem:[#allocation129_spill] sm:$0xff] %v11094_v25  ;;  %7683 = vmatmul.msk.bf16.gmra.mxu0 %vm1117_vm4, %v4174_v45  ;;  %v3757_v25 = vpack.i.b16 %v15875_v48, %v15875_v48  ;;  %v4913_v45 = vunpack.c.l.bf16 %v10847_v17  ;;  %v15881_v48 = vld [vmem:[#allocation109_spill] sm:$0xff]  ;;  %v4149_v17 = vunpack.c.l.bf16 %v10636_v32 }
 0x48f   : > { %15874 = vst [vmem:[#allocation57_spill] sm:$0xff] %v11102_v30  ;;  %v3742_v30 = vpack.i.b16 %v15881_v48, %v15881_v48  ;;  %v4930_v48 = vmul.f32 %v4914_v38, %v15855_v61  ;;  %v15888_v32 = vld [vmem:[#allocation41_spill] sm:$0xff] }
 0x490   : > { %15883 = vst [vmem:[#allocation61_spill] sm:$0xff] %v11120_v16  ;;  %v3759_v46 = vperm.slane %v3757_v25, 0  ;;  %v3891_v16 = vpack.i.b16 %v3890_v52, %v3890_v52 }
 0x492   : > { %v3882_v25 = vsel %vm9446_vm5, %v3759_v46, %v15886_v2  ;;  %v4166_v46 = vmul.f32 %v4150_v47, %v15892_v9  ;;  %v15893_v2 = vld [vmem:[#allocation138_spill] sm:$0xff] }
 0x494   : > { %v11100_v41 = vld [vmem:[#allocation1] sm:$0xff] }
 0x495   : > { %15873 = vst [vmem:[#allocation130_spill] sm:$0xff] %v11100_v41  ;;  %v3911_v41 = vpack.i.b16 %v3910_v56, %v3910_v56  ;;  %v4929_v56 = vmul.f32 %v4913_v45, %v15854_v54  ;;  %v3889_v45 = vperm.slane %v3887_v31, 0 }
 0x496   : > { %5571 = vst [vmem:[#allocation1] ss:$9 sm:$0xff] %v15876_v1 }
 0x497   : > { %5573 = vst [vmem:[#allocation1 + $0x1] ss:$9 sm:$0xff] %v15877_v13  ;;  %v3744_v13 = vperm.slane %v3742_v30, 0  ;;  %v3913_v1 = vperm.slane %v3911_v41, 0  ;;  %v4941_v31 = vpack.c.bf16 %v4930_v48, %v4929_v56  ;;  %v15898_v56 = vld [vmem:[#allocation19_spill] sm:$0xff] }
 0x498   : > { %5575 = vst [vmem:[#allocation1 + $0x2] ss:$9 sm:$0xff] %v15880_v37  ;;  %v4548_v37 = vmul.f32 %v4532_v60, %v15870_v40  ;;  %v3902_v60 = vshrl.u32 %v15640_v29, 16 }
 0x499   : > { %5577 = vst [vmem:[#allocation1 + $0x3] ss:$9 sm:$0xff] %v15882_v50  ;;  %v3741_v50 = vperm.slane %v3739_v20, 0  ;;  %v15891_v20 = vld [vmem:[#allocation62_spill] sm:$0xff]  ;;  %v3877_v30 = vsel %vm9446_vm5, %v3744_v13, %v15893_v2  ;;  %v11148_v41 = vsel %vm9477_vm8, %v3913_v1, %v3882_v25  ;;  %7730 = vmatmul.msk.bf16.gmra.mxu1 %vm1117_vm4, %v4941_v31  ;;  %v4533_v2 = vunpack.c.l.bf16 %v10890_v51 }
 0x49a   : > { %5579 = vst [vmem:[#allocation1 + $0x4] ss:$9 sm:$0xff] %v15884_v8  ;;  %v15887_v8 = vld [vmem:[#allocation39_spill] sm:$0xff]  ;;  %v4165_v52 = vmul.f32 %v4149_v17, %v15891_v20  ;;  %v4558_v29 = vpack.c.bf16 %v4548_v37, %v4547_v53  ;;  %v3903_v13 = vpack.i.b16 %v3902_v60, %v3902_v60  ;;  %v15899_v60 = vld [vmem:[#allocation73_spill] sm:$0xff]  ;;  %v4915_v31 = vunpack.c.l.bf16 %v10928_v22 }
 0x49b   : > { %5581 = vst [vmem:[#allocation1 + $0x5] ss:$9 sm:$0xff] %v15885_v19  ;;  %v3751_v19 = vpack.i.b16 %v15888_v32, %v15888_v32  ;;  %v3876_v38 = vsel %vm9446_vm5, %v3741_v50, %v15890_v55  ;;  %v11150_v32 = vpop.f32.mrf.mxu1  ;;  %v3754_v55 = vpack.i.b16 %v15895_v44, %v15895_v44  ;;  %v11166_v44 = vpop.f32.mrf.mxu3 }
 0x49c   : > { %5583 = vst [vmem:[#allocation1 + $0x6] ss:$9 sm:$0xff] %v15887_v8  ;;  %v3893_v8 = vperm.slane %v3891_v16, 0  ;;  %v3926_v50 = vsel %vm9477_vm8, %v3889_v45, %v3876_v38  ;;  %7707 = vmatmul.msk.bf16.gmra.mxu2 %vm1117_vm4, %v4558_v29  ;;  %v4175_v17 = vpack.c.bf16 %v4166_v46, %v4165_v52  ;;  %v3906_v16 = vshrl.u32 %v15651_v14, 16  ;;  %v15900_v14 = vld [vmem:[#allocation52_spill] sm:$0xff] }
 0x49d   : > { %5585 = vst [vmem:[#allocation1 + $0x7] ss:$9 sm:$0xff] %v15889_v5  ;;  %v3753_v5 = vperm.slane %v3751_v19, 0  ;;  %v4250_v19 = vsel %vm3110_vm9, %v11148_v41, %v3926_v50  ;;  %v3756_v25 = vperm.slane %v3754_v55, 0  ;;  %v3914_v45 = vshrl.u32 %v15899_v60, 16  ;;  %v15901_v55 = vld [vmem:[#allocation74_spill] sm:$0xff] }
 0x49e   : > { %15894 = vst [vmem:[#allocation12_spill] sm:$0xff] %v11150_v32  ;;  %v11160_v1 = vsel %vm9477_vm8, %v3893_v8, %v3877_v30  ;;  %7684 = vmatmul.msk.bf16.gmra.mxu0 %vm1117_vm4, %v4175_v17  ;;  %v3905_v38 = vperm.slane %v3903_v13, 0  ;;  %v3907_v30 = vpack.i.b16 %v3906_v16, %v3906_v16  ;;  %v4534_v29 = vunpack.c.h.bf16 %v10890_v51  ;;  %v15903_v16 = vld [vmem:[#allocation15_spill] sm:$0xff] }
 0x49f   : > { %15896 = vst [vmem:[#allocation13_spill] sm:$0xff] %v11166_v44  ;;  %v4257_v37 = vsel %vm3102_vm10, %v11160_v1, %v4250_v19  ;;  %v3880_v48 = vsel %vm9446_vm5, %v3753_v5, %v15898_v56  ;;  %v4916_v50 = vunpack.c.h.bf16 %v10928_v22  ;;  %v3760_v13 = vpack.i.b16 %v15901_v55, %v15901_v55  ;;  %v15915_v32 = vld [vmem:[#allocation71_spill] sm:$0xff] }
 0x4a0   : > { %v4265_v53 = vunpack.c.l.bf16 %v4257_v37  ;;  %v4266_v8 = vunpack.c.h.bf16 %v4257_v37  ;;  %v11187_v5 = vsel %vm9477_vm8, %v3905_v38, %v3880_v48  ;;  %v3894_v37 = vshrl.u32 %v15903_v16, 16  ;;  %v15908_v16 = vld [vmem:[#allocation112_spill] sm:$0xff] }
 0x4a1   : > { %v4254_v19 = vsel %vm15902_vm0, %v11148_v41, %v11187_v5  ;;  %v3915_v51 = vpack.i.b16 %v3914_v45, %v3914_v45  ;;  %v4151_v48 = vunpack.c.l.bf16 %v10879_v18  ;;  %v4152_v60 = vunpack.c.h.bf16 %v10879_v18 }
 0x4a2   : > { %v4281_v52 = vmul.f32 %v4265_v53, %v15756_v26  ;;  %v4282_v46 = vmul.f32 %v4266_v8, %v15757_v36  ;;  %v11201_v22 = vsel %vm15905_vm1, %v11160_v1, %v4254_v19  ;;  %v15906_v8 = vld [vmem:[#allocation20_spill] sm:$0xff]  ;;  %v4251_v45 = vsel %vm3111_vm11, %v11148_v41, %v11160_v1 }
 0x4a3   : > { %v11196_v53 = vpop.f32.mrf.mxu1  ;;  %v3881_v56 = vsel %vm9446_vm5, %v3756_v25, %v15906_v8  ;;  %v3909_v38 = vperm.slane %v3907_v30, 0  ;;  %v4931_v55 = vmul.f32 %v4915_v31, %v15869_v49  ;;  %v4932_v25 = vmul.f32 %v4916_v50, %v15870_v40  ;;  %v11226_v30 = vpop.f32.mrf.mxu3  ;;  %v15912_v50 = vld [vmem:[#allocation25_spill] sm:$0xff] }
 0x4a4   : > { %v11171_v47 = vld [vmem:[#allocation1] sm:$0xff]  ;;  %v4297_v17 = vpack.c.bf16 %v4282_v46, %v4281_v52  ;;  %15904 = vst [vmem:[#allocation21_spill] sm:$0xff] %v11196_v53  ;;  %v4549_v52 = vmul.f32 %v4533_v2, %v15891_v20  ;;  %v4550_v46 = vmul.f32 %v4534_v29, %v15892_v9  ;;  %v3762_v19 = vperm.slane %v3760_v13, 0 }
 0x4a5   : > { %15897 = vst [vmem:[#allocation109_spill] sm:$0xff] %v11171_v47  ;;  %v11221_v18 = vsel %vm9477_vm8, %v3909_v38, %v3881_v56  ;;  %v3745_v8 = vpack.i.b16 %v15908_v16, %v15908_v16  ;;  %v15909_v53 = vld [vmem:[#allocation43_spill] sm:$0xff]  ;;  %v4258_v2 = vsel %vm15911_vm2, %v11160_v1, %v4251_v45  ;;  %v3895_v31 = vpack.i.b16 %v3894_v37, %v3894_v37  ;;  %v15913_v56 = vld [vmem:[#allocation44_spill] sm:$0xff]  ;;  %v15914_v38 = vld [vmem:[#allocation70_spill] sm:$0xff] }
 0x4a6   : > { %5587 = vst [vmem:[#allocation1] ss:$9 sm:$0xff] %v15900_v14  ;;  %7686 = vmatmul.msk.bf16.vlgmr.msra.gmra.mxu3 %vm1117_vm4, %v4297_v17  ;;  %v4255_v29 = vsel %vm3115_vm14, %v11148_v41, %v11221_v18  ;;  %v3883_v13 = vsel %vm9446_vm5, %v3762_v19, %v15912_v50  ;;  %v4167_v16 = vmul.f32 %v4151_v48, %v15914_v38  ;;  %v3917_v47 = vperm.slane %v3915_v51, 0  ;;  %v15916_v45 = vld [vmem:[#allocation48_spill] sm:$0xff]  ;;  %v15919_v51 = vld [vmem:[#allocation50_spill] sm:$0xff] }
 0x4a7   : > { %15910 = vst [vmem:[#allocation136_spill] sm:$0xff] %v11226_v30  ;;  %v3918_v30 = vshrl.u32 %v15606_v35, 16  ;;  %v4559_v44 = vpack.c.bf16 %v4550_v46, %v4549_v52  ;;  %v4942_v14 = vpack.c.bf16 %v4932_v25, %v4931_v55  ;;  %v4267_v62 = vunpack.c.l.bf16 %v4258_v2  ;;  %v15921_v46 = vld [vmem:[#allocation64_spill] sm:$0xff]  ;;  %v15923_v50 = vld [vmem:[#allocation66_spill] sm:$0xff] }
 0x4a8   : > { %v4268_v19 = vunpack.c.h.bf16 %v4258_v2  ;;  %v11249_v48 = vsel %vm3107_vm13, %v11160_v1, %v4255_v29  ;;  %v11253_v35 = vsel %vm9477_vm8, %v3917_v47, %v3883_v13  ;;  %v3897_v25 = vperm.slane %v3895_v31, 0  ;;  %v15922_v29 = vld [vmem:[#allocation16_spill] sm:$0xff] }
 0x4a9   : > { %7731 = vmatmul.msk.bf16.gmra.mxu1 %vm1117_vm4, %v4942_v14  ;;  %v3898_v2 = vshrl.u32 %v15631_v57, 16  ;;  %v15925_v14 = vld [vmem:[#allocation80_spill] sm:$0xff]  ;;  %v4634_v57 = vsel %vm3110_vm9, %v11253_v35, %v11160_v1  ;;  %vm15940_vm2 = vcmp.gt.s32.totalorder %v15819_v63, 14 }
 0x4aa   : > { %v15926_v31 = vld [vmem:[#allocation24_spill] sm:$0xff] }
 0x4ab   : > { %v11266_v13 = vpop.f32.mrf.mxu1 }
 0x4ac   : > { %7708 = vmatmul.msk.bf16.gmra.mxu2 %vm1117_vm4, %v4559_v44  ;;  %15924 = vst [vmem:[#allocation62_spill] sm:$0xff] %v11266_v13  ;;  %v3899_v13 = vpack.i.b16 %v3898_v2, %v3898_v2 }
 0x4ad   : > { %v11217_v17 = vld [vmem:[#allocation1] sm:$0xff] }
 0x4ae   : > { %15907 = vst [vmem:[#allocation41_spill] sm:$0xff] %v11217_v17  ;;  %v4168_v17 = vmul.f32 %v4152_v60, %v15915_v32  ;;  %v3747_v60 = vperm.slane %v3745_v8, 0  ;;  %v3919_v8 = vpack.i.b16 %v3918_v30, %v3918_v30 }
 0x4af   : > { %5589 = vst [vmem:[#allocation1] ss:$9 sm:$0xff] %v15909_v53  ;;  %v15917_v53 = vld [vmem:[#allocation96_spill] sm:$0xff] }
 0x4b0   : > { %5590 = vst [vmem:[#allocation1 + $0x1] ss:$9 sm:$0xff] %v15913_v56  ;;  %v3763_v37 = vpack.i.b16 %v15917_v53, %v15917_v53  ;;  %v15920_v53 = vld [vmem:[#allocation23_spill] sm:$0xff]  ;;  %v4176_v55 = vpack.c.bf16 %v4168_v17, %v4167_v16  ;;  %v3878_v47 = vsel %vm9446_vm5, %v3747_v60, %v15922_v29  ;;  %v4284_v17 = vmul.f32 %v4268_v19, %v15777_v0 }
 0x4b1   : > { %5591 = vst [vmem:[#allocation1 + $0x2] ss:$9 sm:$0xff] %v15916_v45  ;;  %v3748_v52 = vpack.i.b16 %v15920_v53, %v15920_v53  ;;  %v4283_v53 = vmul.f32 %v4267_v62, %v15776_v43  ;;  %v4535_v60 = vunpack.c.l.bf16 %v10945_v24  ;;  %v4536_v62 = vunpack.c.h.bf16 %v10945_v24  ;;  %v15931_v24 = vld [vmem:[#allocation17_spill] sm:$0xff] }
 0x4b2   : > { %5592 = vst [vmem:[#allocation1 + $0x3] ss:$9 sm:$0xff] %v15918_v11  ;;  %v3765_v44 = vperm.slane %v3763_v37, 0  ;;  %7685 = vmatmul.msk.bf16.gmra.mxu0 %vm1117_vm4, %v4176_v55  ;;  %v11281_v37 = vsel %vm9477_vm8, %v3897_v25, %v3878_v47  ;;  %v11284_v55 = vpop.f32.mrf.mxu3  ;;  %v4918_v29 = vunpack.c.h.bf16 %v10951_v12  ;;  %v4638_v25 = vsel %vm15928_vm3, %v11253_v35, %v11221_v18  ;;  %v15929_v47 = vld [vmem:[#allocation68_spill] sm:$0xff]  ;;  %v15939_v45 = vld [vmem:[#allocation85_spill] sm:$0xff] }
 0x4b3   : > { %5593 = vst [vmem:[#allocation1 + $0x4] ss:$9 sm:$0xff] %v15919_v51  ;;  %v3750_v30 = vperm.slane %v3748_v52, 0  ;;  %v4641_v19 = vsel %vm3102_vm10, %v11281_v37, %v4634_v57  ;;  %v4917_v52 = vunpack.c.l.bf16 %v10951_v12  ;;  %v4252_v12 = vsel %vm15932_vm6, %v11148_v41, %v11281_v37  ;;  %vm15944_vm6 = vmmov %vm15935_vm12 }
 0x4b4   : > { %5594 = vst [vmem:[#allocation1 + $0x5] ss:$9 sm:$0xff] %v15921_v46  ;;  %v3884_v16 = vsel %vm9446_vm5, %v3765_v44, %v15926_v31  ;;  %v3921_v44 = vperm.slane %v3919_v8, 0  ;;  %v4298_v31 = vpack.c.bf16 %v4284_v17, %v4283_v53  ;;  %v11309_v2 = vsel %vm15933_vm15, %v11281_v37, %v4638_v25  ;;  %vm15945_vm15 = vmmov %vm15940_vm2 }
 0x4b5   : > { %5595 = vst [vmem:[#allocation1 + $0x6] ss:$9 sm:$0xff] %v15923_v50  ;;  %v3879_v50 = vsel %vm9446_vm5, %v3750_v30, %v15931_v24  ;;  %v4551_v53 = vmul.f32 %v4535_v60, %v15914_v38  ;;  %v4649_v17 = vunpack.c.l.bf16 %v4641_v19  ;;  %v4650_v57 = vunpack.c.h.bf16 %v4641_v19  ;;  %v11332_v19 = vpop.f32.mrf.mxu1 }
 0x4b6   : > { %5596 = vst [vmem:[#allocation1 + $0x7] ss:$9 sm:$0xff] %v15925_v14  ;;  %v11313_v8 = vsel %vm9477_vm8, %v3921_v44, %v3884_v16  ;;  %7687 = vmatmul.msk.bf16.gmra.mxu3 %vm1117_vm4, %v4298_v31  ;;  %v4933_v24 = vmul.f32 %v4917_v52, %v15891_v20  ;;  %v4934_v46 = vmul.f32 %v4918_v29, %v15892_v9  ;;  %v3901_v44 = vperm.slane %v3899_v13, 0  ;;  %v15938_v29 = vld [vmem:[#allocation102_spill] sm:$0xff] }
 0x4b7   : > { %15927 = vst [vmem:[#allocation65_spill] sm:$0xff] %v11284_v55  ;;  %v11297_v55 = vrot.slane %v15929_v47, 1  ;;  %v4552_v47 = vmul.f32 %v4536_v62, %v15915_v32  ;;  %v11326_v16 = vsel %vm15935_vm12, %v11160_v1, %v11148_v41  ;;  %v4259_v60 = vsel %vm15936_vm7, %v11160_v1, %v4252_v12  ;;  %v15952_v14 = vld [vmem:[#allocation46_spill] sm:$0xff] }
 0x4b8   : > { %15937 = vst [vmem:[#allocation19_spill] sm:$0xff] %v11332_v19  ;;  %v4639_v62 = vsel %vm3115_vm14, %v11253_v35, %v11148_v41  ;;  %v5022_v52 = vsel %vm15902_vm0, %v11313_v8, %v11148_v41  ;;  %v3922_v13 = vshrl.u32 %v15938_v29, 16  ;;  %v11345_v31 = vsel %vm9477_vm8, %v3901_v44, %v3879_v50  ;;  %vm15955_vm0 = vmmov %vm15944_vm6 }
 0x4b9   : > { %15930 = vst [vmem:[#allocation138_spill] sm:$0xff] %v11297_v55  ;;  %v4665_v25 = vmul.f32 %v4649_v17, %v15756_v26  ;;  %v4666_v12 = vmul.f32 %v4650_v57, %v15757_v36  ;;  %v11352_v19 = vsel %vm3107_vm13, %v11281_v37, %v4639_v62  ;;  %v4943_v51 = vpack.c.bf16 %v4934_v46, %v4933_v24 }
 0x4ba   : > { %v4269_v11 = vunpack.c.l.bf16 %v4259_v60  ;;  %v11357_v29 = vsel %vm15905_vm1, %v11345_v31, %v5022_v52  ;;  %v3766_v50 = vpack.i.b16 %v15939_v45, %v15939_v45  ;;  %v4270_v44 = vunpack.c.h.bf16 %v4259_v60  ;;  %v11365_v57 = vpop.f32.mrf.mxu3 }
 0x4bb   : > { %v4256_v17 = vsel %vm15940_vm2, %v11148_v41, %v11253_v35  ;;  %15941 = vst [vmem:[#allocation73_spill] sm:$0xff] %v11365_v57  ;;  %7732 = vmatmul.msk.bf16.gmra.mxu1 %vm1117_vm4, %v4943_v51  ;;  %v5018_v46 = vsel %vm3110_vm9, %v11313_v8, %v11281_v37  ;;  %vm15942_vm3 = vcmp.lt.s32.totalorder %v15819_v63, 1  ;;  %v11385_v51 = vsel %vm15944_vm6, %v11281_v37, %v11253_v35 }
 0x4bc   : > { %v11376_v45 = vsel %vm15942_vm3, %v11160_v1, %v4256_v17  ;;  %v4285_v60 = vmul.f32 %v4269_v11, %v15804_v39  ;;  %v4640_v62 = vsel %vm15945_vm15, %v11253_v35, %v11313_v8  ;;  %v3768_v52 = vperm.slane %v3766_v50, 0  ;;  %v11396_v11 = vpop.f32.mrf.mxu0  ;;  %vm15949_vm12 = vmmov %vm15942_vm3 }
 0x4bd   : > { %v11317_v30 = vld [vmem:[#allocation1] sm:$0xff]  ;;  %15947 = vst [vmem:[#allocation15_spill] sm:$0xff] %v11396_v11  ;;  %v5025_v17 = vsel %vm3102_vm10, %v11345_v31, %v5018_v46  ;;  %v4919_v46 = vunpack.c.l.bf16 %v10974_v23  ;;  %vm15954_vm7 = vcmp.lt.s32.totalorder %v15762_v27, 1  ;;  %vm15959_vm1 = vcmp.gt.s32.totalorder %v15811_v33, 14  ;;  %v16105_v27 = vld [vmem:[#allocation30_spill] sm:$0xff] }
 0x4be   : > { %15934 = vst [vmem:[#allocation58_spill] sm:$0xff] %v11317_v30  ;;  %v4560_v30 = vpack.c.bf16 %v4552_v47, %v4551_v53  ;;  %v4681_v53 = vpack.c.bf16 %v4666_v12, %v4665_v25  ;;  %v3923_v47 = vpack.i.b16 %v3922_v13, %v3922_v13  ;;  %v15946_v13 = vld [vmem:[#allocation30_spill] sm:$0xff]  ;;  %v4286_v25 = vmul.f32 %v4270_v44, %v15805_v59  ;;  %v15951_v11 = vld [vmem:[#allocation51_spill] sm:$0xff] }
 0x4bf   : > { %5599 = vst [vmem:[#allocation1] ss:$9 sm:$0xff] %v11297_v55  ;;  %v4635_v12 = vsel %vm3111_vm11, %v11253_v35, %v11281_v37  ;;  %v11416_v44 = vsel %vm15949_vm12, %v11281_v37, %v4640_v62  ;;  %v4920_v55 = vunpack.c.h.bf16 %v10974_v23  ;;  %v5033_v42 = vunpack.c.l.bf16 %v5025_v17  ;;  %vm15970_vm12 = vmmov %vm15954_vm7 }
 0x4c0   : > { %7709 = vmatmul.msk.bf16.gmra.mxu2 %vm1117_vm4, %v4560_v30  ;;  %v5023_v30 = vsel %vm3115_vm14, %v11313_v8, %v11253_v35  ;;  %v4642_v62 = vsel %vm15954_vm7, %v11281_v37, %v4635_v12  ;;  %v4299_v23 = vpack.c.bf16 %v4286_v25, %v4285_v60  ;;  %v4253_v21 = vsel %vm15959_vm1, %v11148_v41, %v11345_v31 }
 0x4c1   : > { %v11411_v50 = vsel %vm3107_vm13, %v11345_v31, %v5023_v30  ;;  %v11425_v30 = vpop.f32.mrf.mxu1  ;;  %v4651_v12 = vunpack.c.l.bf16 %v4642_v62  ;;  %v4936_v25 = vmul.f32 %v4920_v55, %v15915_v32  ;;  %vm15963_vm6 = vcmp.lt.s32.totalorder %v15811_v33, 1  ;;  %v16103_v33 = vld [vmem:[#allocation52_spill] sm:$0xff] }
 0x4c2   : > { %7710 = vmatmul.msk.bf16.vlgmr.msra.gmra.mxu0 %vm1117_vm4, %v4681_v53  ;;  %v15950_v53 = vld [vmem:[#allocation31_spill] sm:$0xff]  ;;  %15953 = vst [vmem:[#allocation20_spill] sm:$0xff] %v11425_v30  ;;  %v11448_v60 = vpop.f32.mrf.mxu3  ;;  %vm15969_vm15 = vcmp.gt.s32.totalorder %v15789_v7, 14  ;;  %vm15972_vm7 = vcmp.lt.s32.totalorder %v15789_v7, 1 }
 0x4c3   : > { %v3885_v57 = vsel %vm9446_vm5, %v3768_v52, %v15950_v53  ;;  %v11434_v52 = vsel %vm15955_vm0, %v11345_v31, %v11313_v8  ;;  %v15956_v53 = vld [vmem:[#allocation69_spill] sm:$0xff]  ;;  %15961 = vst [vmem:[#allocation112_spill] sm:$0xff] %v11448_v60  ;;  %v4667_v55 = vmul.f32 %v4651_v12, %v15776_v43  ;;  %vm15983_vm0 = vmmov %vm15969_vm15 }
 0x4c6   : > { %v11378_v24 = vld [vmem:[#allocation1] sm:$0xff]  ;;  %7688 = vmatmul.msk.bf16.gmra.mxu3 %vm1117_vm4, %v4299_v23  ;;  %v4260_v23 = vsel %vm15963_vm6, %v11160_v1, %v4253_v21  ;;  %v5019_v21 = vsel %vm3111_vm11, %v11313_v8, %v11345_v31 }
 0x4c7   : > { %15943 = vst [vmem:[#allocation74_spill] sm:$0xff] %v11378_v24  ;;  %v15948_v24 = vld [vmem:[#allocation55_spill] sm:$0xff]  ;;  %v4272_v60 = vunpack.c.h.bf16 %v4260_v23 }
 0x4c8   : > { %5601 = vst [vmem:[#allocation1] ss:$9 sm:$0xff] %v15946_v13  ;;  %v5034_v13 = vunpack.c.h.bf16 %v5025_v17  ;;  %v4652_v17 = vunpack.c.h.bf16 %v4642_v62 }
 0x4c9   : > { %5602 = vst [vmem:[#allocation1 + $0x1] ss:$9 sm:$0xff] %v15948_v24  ;;  %v3925_v24 = vperm.slane %v3923_v47, 0  ;;  %v15957_v47 = vld [vmem:[#allocation67_spill] sm:$0xff] }
 0x4ca   : > { %5603 = vst [vmem:[#allocation1 + $0x2] ss:$9 sm:$0xff] %v15951_v11  ;;  %v4935_v11 = vmul.f32 %v4919_v46, %v15914_v38  ;;  %v11456_v46 = vpop.f32.mrf.mxu0 }
 0x4cb   : > { %5604 = vst [vmem:[#allocation1 + $0x3] ss:$9 sm:$0xff] %v15952_v14  ;;  %v3935_v30 = vsel %vm9477_vm8, %v3925_v24, %v3885_v57  ;;  %v15958_v14 = vld [vmem:[#allocation38_spill] sm:$0xff]  ;;  %v5049_v57 = vmul.f32 %v5033_v42, %v15756_v26  ;;  %v5050_v24 = vmul.f32 %v5034_v13, %v15757_v36  ;;  %v4668_v42 = vmul.f32 %v4652_v17, %v15777_v0 }
 0x4cc   : > { %5605 = vst [vmem:[#allocation1 + $0x4] ss:$9 sm:$0xff] %v15956_v53  ;;  %v15960_v53 = vld [vmem:[#allocation63_spill] sm:$0xff]  ;;  %v5024_v62 = vsel %vm15940_vm2, %v11313_v8, %v3935_v30  ;;  %v4944_v13 = vpack.c.bf16 %v4936_v25, %v4935_v11  ;;  %v15964_v30 = vld [vmem:[#allocation86_spill] sm:$0xff]  ;;  %v4288_v25 = vmul.f32 %v4272_v60, %v15837_v6  ;;  %vm15986_vm2 = vmmov %vm15972_vm7 }
 0x4cd   : > { %5606 = vst [vmem:[#allocation1 + $0x5] ss:$9 sm:$0xff] %v15957_v47  ;;  %v11461_v41 = vsel %vm15942_vm3, %v11345_v31, %v5024_v62  ;;  %v4271_v47 = vunpack.c.l.bf16 %v4260_v23  ;;  %v11469_v34 = vrot.slane %v15964_v30, 2  ;;  %v4682_v11 = vpack.c.bf16 %v4668_v42, %v4667_v55  ;;  %v15974_v30 = vld [vmem:[#allocation87_spill] sm:$0xff]  ;;  %vm15987_vm3 = vmmov %vm15963_vm6 }
 0x4ce   : > { %5607 = vst [vmem:[#allocation1 + $0x6] ss:$9 sm:$0xff] %v15958_v14  ;;  %v5065_v14 = vpack.c.bf16 %v5050_v24, %v5049_v57  ;;  %v5026_v57 = vsel %vm15970_vm12, %v11345_v31, %v5019_v21  ;;  %v11494_v24 = vpop.f32.mrf.mxu3  ;;  %vm15994_vm6 = vmmov %vm15959_vm1 }
 0x4cf   : > { %5608 = vst [vmem:[#allocation1 + $0x7] ss:$9 sm:$0xff] %v15960_v53  ;;  %v4287_v17 = vmul.f32 %v4271_v47, %v15836_v15  ;;  %v5035_v23 = vunpack.c.l.bf16 %v5026_v57  ;;  %v5036_v55 = vunpack.c.h.bf16 %v5026_v57  ;;  %v15978_v57 = vld [vmem:[#allocation54_spill] sm:$0xff] }
 0x4d0   : > { %15962 = vst [vmem:[#allocation25_spill] sm:$0xff] %v11456_v46  ;;  %v11471_v46 = vpop.f32.mrf.mxu1  ;;  %7733 = vmatmul.msk.bf16.gmra.mxu1 %vm1117_vm4, %v4944_v13  ;;  %7734 = vmatmul.msk.bf16.vlgmr.msra.gmra.mxu2 %vm1117_vm4, %v5065_v14  ;;  %v4636_v14 = vsel %vm15969_vm15, %v11253_v35, %v11345_v31  ;;  %vm16000_vm15 = vmmov %vm15987_vm3 }
 0x4d1   : > { %15965 = vst [vmem:[#allocation70_spill] sm:$0xff] %v11469_v34  ;;  %v4643_v62 = vsel %vm15972_vm7, %v11281_v37, %v4636_v14  ;;  %v4300_v47 = vpack.c.bf16 %v4288_v25, %v4287_v17  ;;  %v5052_v21 = vmul.f32 %v5036_v55, %v15777_v0  ;;  %v15977_v14 = vld [vmem:[#allocation81_spill] sm:$0xff]  ;;  %v4273_v55 = vunpack.c.l.bf16 %v11201_v22  ;;  %vm16061_vm7 = vmmov %vm15983_vm0 }
 0x4d2   : > { %15966 = vst [vmem:[#allocation71_spill] sm:$0xff] %v11471_v46  ;;  %v11482_v12 = vpop.f32.mrf.mxu0  ;;  %7711 = vmatmul.msk.bf16.gmra.mxu0 %vm1117_vm4, %v4682_v11  ;;  %v4653_v60 = vunpack.c.l.bf16 %v4643_v62  ;;  %v4654_v13 = vunpack.c.h.bf16 %v4643_v62  ;;  %v5051_v11 = vmul.f32 %v5035_v23, %v15776_v43  ;;  %v15975_v46 = vld [vmem:[#allocation84_spill] sm:$0xff]  ;;  %v15981_v23 = vld [vmem:[#allocation98_spill] sm:$0xff] }
 0x4d3   : > { %15968 = vst [vmem:[#allocation23_spill] sm:$0xff] %v11482_v12 }
 0x4d4   : > { %15971 = vst [vmem:[#allocation16_spill] sm:$0xff] %v11494_v24  ;;  %v4669_v17 = vmul.f32 %v4653_v60, %v15804_v39  ;;  %v4670_v25 = vmul.f32 %v4654_v13, %v15805_v59  ;;  %v4274_v24 = vunpack.c.h.bf16 %v11201_v22  ;;  %v5020_v60 = vsel %vm15983_vm0, %v11313_v8, %v11187_v5  ;;  %v15984_v13 = vld [vmem:[#allocation111_spill] sm:$0xff]  ;;  %vm16065_vm0 = vmmov %vm15986_vm2 }
 0x4d6   : > { %v11479_v1 = vld [vmem:[#allocation1] sm:$0xff]  ;;  %7689 = vmatmul.msk.bf16.gmra.mxu3 %vm1117_vm4, %v4300_v47  ;;  %v15979_v47 = vld [vmem:[#allocation132_spill] sm:$0xff]  ;;  %v11513_v62 = vpop.f32.mrf.mxu3  ;;  %v4290_v22 = vmul.f32 %v4274_v24, %v15855_v61 }
 0x4d7   : > { %15967 = vst [vmem:[#allocation96_spill] sm:$0xff] %v11479_v1 }
 0x4d8   : > { %5611 = vst [vmem:[#allocation1] ss:$9 sm:$0xff] %v11469_v34 }
 0x4d9   : > { %15980 = vst [vmem:[#allocation17_spill] sm:$0xff] %v11513_v62  ;;  %v16021_v62 = vld [vmem:[#allocation100_spill] sm:$0xff] }
 0x4da   : > { %v11506_v1 = vpop.f32.mrf.mxu0 }
 0x4db   : > { %15976 = vst [vmem:[#allocation68_spill] sm:$0xff] %v11506_v1  ;;  %v15982_v1 = vld [vmem:[#allocation95_spill] sm:$0xff] }
 0x4df   : > { %v11499_v42 = vld [vmem:[#allocation1] sm:$0xff] }
 0x4e0   : > { %15973 = vst [vmem:[#allocation24_spill] sm:$0xff] %v11499_v42  ;;  %v5066_v42 = vpack.c.bf16 %v5052_v21, %v5051_v11  ;;  %v4289_v11 = vmul.f32 %v4273_v55, %v15854_v54  ;;  %v5027_v21 = vsel %vm15986_vm2, %v11345_v31, %v5020_v60  ;;  %vm16076_vm2 = vmmov %vm15987_vm3 }
 0x4e1   : > { %5613 = vst [vmem:[#allocation1] ss:$9 sm:$0xff] %v15974_v30 }
 0x4e2   : > { %5614 = vst [vmem:[#allocation1 + $0x1] ss:$9 sm:$0xff] %v15975_v46  ;;  %7735 = vmatmul.msk.bf16.gmra.mxu2 %vm1117_vm4, %v5066_v42  ;;  %v4637_v42 = vsel %vm15959_vm1, %v11253_v35, %v11187_v5  ;;  %v4301_v55 = vpack.c.bf16 %v4290_v22, %v4289_v11 }
 0x4e3   : > { %5615 = vst [vmem:[#allocation1 + $0x2] ss:$9 sm:$0xff] %v15977_v14  ;;  %v11545_v14 = vpop.f32.mrf.mxu3 }
 0x4e4   : > { %5616 = vst [vmem:[#allocation1 + $0x3] ss:$9 sm:$0xff] %v15978_v57  ;;  %v11525_v57 = vpop.f32.mrf.mxu0 }
 0x4e5   : > { %5617 = vst [vmem:[#allocation1 + $0x4] ss:$9 sm:$0xff] %v15979_v47  ;;  %v4683_v47 = vpack.c.bf16 %v4670_v25, %v4669_v17  ;;  %v4644_v17 = vsel %vm15987_vm3, %v11281_v37, %v4637_v42  ;;  %v5037_v25 = vunpack.c.l.bf16 %v5027_v21  ;;  %vm16092_vm3 = vcmp.gt.s32.totalorder %v15763_v58, 14 }
 0x4e6   : > { %5618 = vst [vmem:[#allocation1 + $0x5] ss:$9 sm:$0xff] %v15981_v23  ;;  %7690 = vmatmul.msk.bf16.gmra.mxu3 %vm1117_vm4, %v4301_v55  ;;  %v4655_v5 = vunpack.c.l.bf16 %v4644_v17  ;;  %v4656_v35 = vunpack.c.h.bf16 %v4644_v17  ;;  %v15995_v17 = vld [vmem:[#allocation113_spill] sm:$0xff]  ;;  %v15996_v55 = vld [vmem:[#allocation108_spill] sm:$0xff] }
 0x4e7   : > { %5619 = vst [vmem:[#allocation1 + $0x6] ss:$9 sm:$0xff] %v15982_v1  ;;  %7712 = vmatmul.msk.bf16.gmra.mxu0 %vm1117_vm4, %v4683_v47  ;;  %v5038_v1 = vunpack.c.h.bf16 %v5027_v21  ;;  %v15988_v47 = vld [vmem:[#allocation103_spill] sm:$0xff]  ;;  %v5053_v60 = vmul.f32 %v5037_v25, %v15804_v39 }
 0x4e8   : > { %5620 = vst [vmem:[#allocation1 + $0x7] ss:$9 sm:$0xff] %v15984_v13  ;;  %v11541_v23 = vrot.slane %v15988_v47, 3  ;;  %v4671_v21 = vmul.f32 %v4655_v5, %v15836_v15  ;;  %v4672_v11 = vmul.f32 %v4656_v35, %v15837_v6  ;;  %v4275_v47 = vunpack.c.l.bf16 %v11249_v48  ;;  %v15998_v35 = vld [vmem:[#allocation114_spill] sm:$0xff] }
 0x4e9   : > { %15985 = vst [vmem:[#allocation102_spill] sm:$0xff] %v11525_v57  ;;  %v5054_v37 = vmul.f32 %v5038_v1, %v15805_v59  ;;  %v5021_v1 = vsel %vm15994_vm6, %v11313_v8, %v11221_v18  ;;  %v16001_v8 = vld [vmem:[#allocation56_spill] sm:$0xff]  ;;  %vm16100_vm6 = vcmp.lt.s32.totalorder %v15763_v58, 1  ;;  %v5855_v57 = vpack.i.b16 %v16103_v33, %v16103_v33 }
 0x4ea   : > { %15989 = vst [vmem:[#allocation85_spill] sm:$0xff] %v11541_v23  ;;  %v4684_v25 = vpack.c.bf16 %v4672_v11, %v4671_v21  ;;  %v5028_v18 = vsel %vm16000_vm15, %v11345_v31, %v5021_v1  ;;  %v16002_v21 = vld [vmem:[#allocation45_spill] sm:$0xff]  ;;  %v16003_v11 = vld [vmem:[#allocation127_spill] sm:$0xff]  ;;  %v11585_v31 = vpop.f32.mrf.mxu2  ;;  %vm16127_vm15 = vcmp.gt.s32.totalorder %v15819_v63, 14 }
 0x4eb   : > { %15991 = vst [vmem:[#allocation86_spill] sm:$0xff] %v11545_v14  ;;  %v5067_v22 = vpack.c.bf16 %v5054_v37, %v5053_v60  ;;  %v11566_v5 = vpop.f32.mrf.mxu3  ;;  %v11846_v58 = vperm.slane %v5855_v57, 0 }
 0x4ec   : > { %v11551_v42 = vpop.f32.mrf.mxu0  ;;  %15997 = vst [vmem:[#allocation103_spill] sm:$0xff] %v11566_v5 }
 0x4ed   : > { %15992 = vst [vmem:[#allocation87_spill] sm:$0xff] %v11551_v42  ;;  %v16039_v42 = vld [vmem:[#allocation142_spill] sm:$0xff] }
 0x4ee   : > { %16006 = vst [vmem:[#allocation108_spill] sm:$0xff] %v11585_v31  ;;  %v16010_v31 = vld [vmem:[#allocation22_spill] sm:$0xff] }
 0x4ef   : > { %v11543_v24 = vld [vmem:[#allocation1] sm:$0xff]  ;;  %16110 = vst [vmem:[#allocation191_spill] sm:$0xff] %v11846_v58  ;;  %v16114_v58 = vld [vmem:[#allocation138_spill] sm:$0xff] }
 0x4f0   : > { %15990 = vst [vmem:[#allocation31_spill] sm:$0xff] %v11543_v24  ;;  %v4276_v24 = vunpack.c.h.bf16 %v11249_v48  ;;  %v4291_v48 = vmul.f32 %v4275_v47, %v15869_v49  ;;  %v4658_v47 = vunpack.c.h.bf16 %v11309_v2 }
 0x4f1   : > { %5623 = vst [vmem:[#allocation1] ss:$9 sm:$0xff] %v11541_v23 }
 0x4f2   : > { %7736 = vmatmul.msk.bf16.gmra.mxu2 %vm1117_vm4, %v5067_v22  ;;  %v4292_v37 = vmul.f32 %v4276_v24, %v15870_v40  ;;  %v5039_v22 = vunpack.c.l.bf16 %v5028_v18  ;;  %v4657_v24 = vunpack.c.l.bf16 %v11309_v2  ;;  %v4278_v2 = vunpack.c.h.bf16 %v11326_v16 }
 0x4f4   : > { %v11569_v60 = vpop.f32.mrf.mxu0  ;;  %v4302_v5 = vpack.c.bf16 %v4292_v37, %v4291_v48  ;;  %v5055_v1 = vmul.f32 %v5039_v22, %v15836_v15  ;;  %v4673_v48 = vmul.f32 %v4657_v24, %v15854_v54  ;;  %v4674_v37 = vmul.f32 %v4658_v47, %v15855_v61 }
 0x4f5   : > { %15999 = vst [vmem:[#allocation113_spill] sm:$0xff] %v11569_v60  ;;  %v4294_v24 = vmul.f32 %v4278_v2, %v15892_v9  ;;  %v5041_v47 = vunpack.c.l.bf16 %v11357_v29  ;;  %v4660_v2 = vunpack.c.h.bf16 %v11352_v19 }
 0x4f6   : > { %7691 = vmatmul.msk.bf16.gmra.mxu3 %vm1117_vm4, %v4302_v5 }
 0x4f7   : > { %7713 = vmatmul.msk.bf16.gmra.mxu0 %vm1117_vm4, %v4684_v25  ;;  %v16005_v25 = vld [vmem:[#allocation131_spill] sm:$0xff] }
 0x4f8   : > { %v11557_v14 = vld [vmem:[#allocation1] sm:$0xff] }
 0x4f9   : > { %15993 = vst [vmem:[#allocation84_spill] sm:$0xff] %v11557_v14  ;;  %v16004_v14 = vld [vmem:[#allocation115_spill] sm:$0xff] }
 0x4fa   : > { %5625 = vst [vmem:[#allocation1] ss:$9 sm:$0xff] %v15995_v17 }
 0x4fb   : > { %5626 = vst [vmem:[#allocation1 + $0x1] ss:$9 sm:$0xff] %v15996_v55 }
 0x4fc   : > { %5627 = vst [vmem:[#allocation1 + $0x2] ss:$9 sm:$0xff] %v15998_v35  ;;  %v5040_v35 = vunpack.c.h.bf16 %v5028_v18  ;;  %v11591_v18 = vpop.f32.mrf.mxu0 }
 0x4fd   : > { %5628 = vst [vmem:[#allocation1 + $0x3] ss:$9 sm:$0xff] %v16001_v8  ;;  %v4277_v8 = vunpack.c.l.bf16 %v11326_v16 }
 0x4fe   : > { %5629 = vst [vmem:[#allocation1 + $0x4] ss:$9 sm:$0xff] %v16002_v21  ;;  %v5056_v21 = vmul.f32 %v5040_v35, %v15837_v6  ;;  %v4685_v35 = vpack.c.bf16 %v4674_v37, %v4673_v48  ;;  %v16015_v48 = vld [vmem:[#allocation134_spill] sm:$0xff]  ;;  %v16016_v37 = vld [vmem:[#allocation88_spill] sm:$0xff] }
 0x4ff   : > { %5630 = vst [vmem:[#allocation1 + $0x5] ss:$9 sm:$0xff] %v16003_v11  ;;  %v11589_v11 = vpop.f32.mrf.mxu3  ;;  %v4293_v22 = vmul.f32 %v4277_v8, %v15891_v20  ;;  %v4659_v8 = vunpack.c.l.bf16 %v11352_v19 }
 0x500   : > { %5631 = vst [vmem:[#allocation1 + $0x6] ss:$9 sm:$0xff] %v16004_v14  ;;  %v5068_v14 = vpack.c.bf16 %v5056_v21, %v5055_v1  ;;  %v5042_v1 = vunpack.c.h.bf16 %v11357_v29 }
 0x501   : > { %5632 = vst [vmem:[#allocation1 + $0x7] ss:$9 sm:$0xff] %v16005_v25 }
 0x502   : > { %16007 = vst [vmem:[#allocation163_spill] sm:$0xff] %v11589_v11  ;;  %7737 = vmatmul.msk.bf16.gmra.mxu2 %vm1117_vm4, %v5068_v14  ;;  %v11604_v11 = vpop.f32.mrf.mxu2  ;;  %v4303_v14 = vpack.c.bf16 %v4294_v24, %v4293_v22  ;;  %v5058_v29 = vmul.f32 %v5042_v1, %v15855_v61  ;;  %v16020_v22 = vld [vmem:[#allocation141_spill] sm:$0xff]  ;;  %v4675_v24 = vmul.f32 %v4659_v8, %v15869_v49  ;;  %v4280_v1 = vunpack.c.h.bf16 %v11376_v45 }
 0x503   : > { %16008 = vst [vmem:[#allocation164_spill] sm:$0xff] %v11591_v18 }
 0x504   : > { %16011 = vst [vmem:[#allocation166_spill] sm:$0xff] %v11604_v11  ;;  %v5057_v11 = vmul.f32 %v5041_v47, %v15854_v54  ;;  %v4279_v47 = vunpack.c.l.bf16 %v11376_v45  ;;  %v5043_v45 = vunpack.c.l.bf16 %v11411_v50 }
 0x506   : > { %7692 = vmatmul.msk.bf16.gmra.mxu3 %vm1117_vm4, %v4303_v14  ;;  %v4676_v14 = vmul.f32 %v4660_v2, %v15870_v40  ;;  %v5069_v19 = vpack.c.bf16 %v5058_v29, %v5057_v11  ;;  %v4295_v2 = vmul.f32 %v4279_v47, %v15914_v38  ;;  %v16026_v11 = vld [vmem:[#allocation32_spill] sm:$0xff]  ;;  %v16030_v47 = vld [vmem:[#allocation97_spill] sm:$0xff] }
 0x507   : > { %7714 = vmatmul.msk.bf16.gmra.mxu0 %vm1117_vm4, %v4685_v35  ;;  %v11606_v21 = vpop.f32.mrf.mxu3  ;;  %v16017_v35 = vld [vmem:[#allocation119_spill] sm:$0xff]  ;;  %v11642_v29 = vrot.slane %v16026_v11, 1 }
 0x508   : > { %v11595_v5 = vld [vmem:[#allocation1] sm:$0xff]  ;;  %16012 = vst [vmem:[#allocation167_spill] sm:$0xff] %v11606_v21  ;;  %v16019_v21 = vld [vmem:[#allocation140_spill] sm:$0xff]  ;;  %v4686_v8 = vpack.c.bf16 %v4676_v14, %v4675_v24  ;;  %v4661_v24 = vunpack.c.l.bf16 %v11385_v51  ;;  %v4662_v14 = vunpack.c.h.bf16 %v11385_v51 }
 0x509   : > { %16009 = vst [vmem:[#allocation165_spill] sm:$0xff] %v11595_v5  ;;  %v11612_v5 = vpop.f32.mrf.mxu0 }
 0x50a   : > { %5634 = vst [vmem:[#allocation1] ss:$9 sm:$0xff] %v16010_v31  ;;  %v4678_v51 = vmul.f32 %v4662_v14, %v15892_v9 }
 0x50b   : > { %16014 = vst [vmem:[#allocation169_spill] sm:$0xff] %v11612_v5  ;;  %v11628_v5 = vpop.f32.mrf.mxu2 }
 0x50c   : > { %16022 = vst [vmem:[#allocation134_spill] sm:$0xff] %v11628_v5  ;;  %v5044_v5 = vunpack.c.h.bf16 %v11411_v50  ;;  %v5059_v50 = vmul.f32 %v5043_v45, %v15869_v49  ;;  %v16037_v45 = vld [vmem:[#allocation26_spill] sm:$0xff] }
 0x50d   : > { %16027 = vst [vmem:[#allocation32_spill] sm:$0xff] %v11642_v29 }
 0x511   : > { %v11610_v16 = vld [vmem:[#allocation1] sm:$0xff] }
 0x512   : > { %16013 = vst [vmem:[#allocation168_spill] sm:$0xff] %v11610_v16  ;;  %v16018_v16 = vld [vmem:[#allocation76_spill] sm:$0xff]  ;;  %7738 = vmatmul.msk.bf16.gmra.mxu2 %vm1117_vm4, %v5069_v19 }
 0x513   : > { %5636 = vst [vmem:[#allocation1] ss:$9 sm:$0xff] %v16015_v48 }
 0x514   : > { %5637 = vst [vmem:[#allocation1 + $0x1] ss:$9 sm:$0xff] %v16016_v37 }
 0x515   : > { %5638 = vst [vmem:[#allocation1 + $0x2] ss:$9 sm:$0xff] %v16017_v35  ;;  %v16023_v35 = vld [vmem:[#allocation101_spill] sm:$0xff] }
 0x516   : > { %5639 = vst [vmem:[#allocation1 + $0x3] ss:$9 sm:$0xff] %v16018_v16  ;;  %v11633_v16 = vpop.f32.mrf.mxu3 }
 0x517   : > { %5640 = vst [vmem:[#allocation1 + $0x4] ss:$9 sm:$0xff] %v16019_v21  ;;  %7715 = vmatmul.msk.bf16.gmra.mxu0 %vm1117_vm4, %v4686_v8 }
 0x518   : > { %5641 = vst [vmem:[#allocation1 + $0x5] ss:$9 sm:$0xff] %v16020_v22  ;;  %v11636_v22 = vpop.f32.mrf.mxu0 }
 0x519   : > { %5642 = vst [vmem:[#allocation1 + $0x6] ss:$9 sm:$0xff] %v16021_v62  ;;  %v4296_v62 = vmul.f32 %v4280_v1, %v15915_v32  ;;  %v16031_v1 = vld [vmem:[#allocation18_spill] sm:$0xff] }
 0x51a   : > { %5643 = vst [vmem:[#allocation1 + $0x7] ss:$9 sm:$0xff] %v16023_v35  ;;  %v4762_v8 = vsel %vm3110_vm9, %v16031_v1, %v16030_v47  ;;  %v16036_v47 = vld [vmem:[#allocation27_spill] sm:$0xff] }
 0x51b   : > { %16024 = vst [vmem:[#allocation170_spill] sm:$0xff] %v11633_v16  ;;  %v4304_v19 = vpack.c.bf16 %v4296_v62, %v4295_v2  ;;  %v11649_v16 = vpop.f32.mrf.mxu2  ;;  %v16034_v2 = vld [vmem:[#allocation33_spill] sm:$0xff] }
 0x51c   : > { %16025 = vst [vmem:[#allocation171_spill] sm:$0xff] %v11636_v22 }
 0x51d   : > { %16029 = vst [vmem:[#allocation173_spill] sm:$0xff] %v11649_v16  ;;  %7693 = vmatmul.msk.bf16.gmra.mxu3 %vm1117_vm4, %v4304_v19  ;;  %v4769_v19 = vsel %vm3102_vm10, %v16034_v2, %v4762_v8  ;;  %v4677_v16 = vmul.f32 %v4661_v24, %v15891_v20  ;;  %v16041_v24 = vld [vmem:[#allocation143_spill] sm:$0xff] }
 0x51e   : > { %v11658_v11 = vpop.f32.mrf.mxu3  ;;  %v4778_v60 = vunpack.c.h.bf16 %v4769_v19 }
 0x51f   : > { %16032 = vst [vmem:[#allocation97_spill] sm:$0xff] %v11658_v11  ;;  %v4777_v11 = vunpack.c.l.bf16 %v4769_v19 }
 0x520   : > { %v11662_v62 = vpop.f32.mrf.mxu0  ;;  %v4794_v14 = vmul.f32 %v4778_v60, %v15757_v36  ;;  %v4664_v36 = vunpack.c.h.bf16 %v11416_v44  ;;  %v4763_v60 = vsel %vm3111_vm11, %v16031_v1, %v16034_v2 }
 0x521   : > { %v11644_v21 = vld [vmem:[#allocation1] sm:$0xff]  ;;  %16033 = vst [vmem:[#allocation18_spill] sm:$0xff] %v11662_v62  ;;  %v4687_v62 = vpack.c.bf16 %v4678_v51, %v4677_v16  ;;  %v16046_v16 = vld [vmem:[#allocation117_spill] sm:$0xff]  ;;  %v5045_v51 = vunpack.c.l.bf16 %v11434_v52 }
 0x522   : > { %16028 = vst [vmem:[#allocation172_spill] sm:$0xff] %v11644_v21  ;;  %v5060_v21 = vmul.f32 %v5044_v5, %v15870_v40  ;;  %v16038_v5 = vld [vmem:[#allocation91_spill] sm:$0xff] }
 0x523   : > { %5646 = vst [vmem:[#allocation1] ss:$9 sm:$0xff] %v11642_v29  ;;  %v11676_v8 = vpop.f32.mrf.mxu2 }
 0x524   : > { %v5070_v18 = vpack.c.bf16 %v5060_v21, %v5059_v50  ;;  %16040 = vst [vmem:[#allocation27_spill] sm:$0xff] %v11676_v8  ;;  %v4793_v21 = vmul.f32 %v4777_v11, %v15756_v26  ;;  %v16042_v50 = vld [vmem:[#allocation79_spill] sm:$0xff]  ;;  %v4663_v26 = vunpack.c.l.bf16 %v11416_v44  ;;  %v5061_v11 = vmul.f32 %v5045_v51, %v15891_v20 }
 0x525   : > { %v4770_v44 = vsel %vm15970_vm12, %v16034_v2, %v4763_v60  ;;  %v4680_v8 = vmul.f32 %v4664_v36, %v15915_v32  ;;  %v16055_v36 = vld [vmem:[#allocation118_spill] sm:$0xff] }
 0x526   : > { %7739 = vmatmul.msk.bf16.gmra.mxu2 %vm1117_vm4, %v5070_v18  ;;  %v11683_v19 = vpop.f32.mrf.mxu3  ;;  %v16044_v18 = vld [vmem:[#allocation53_spill] sm:$0xff] }
 0x527   : > { %7716 = vmatmul.msk.bf16.gmra.mxu0 %vm1117_vm4, %v4687_v62  ;;  %16043 = vst [vmem:[#allocation174_spill] sm:$0xff] %v11683_v19 }
 0x52a   : > { %v11669_v22 = vld [vmem:[#allocation1] sm:$0xff] }
 0x52b   : > { %16035 = vst [vmem:[#allocation33_spill] sm:$0xff] %v11669_v22  ;;  %v4780_v22 = vunpack.c.h.bf16 %v4770_v44 }
 0x52c   : > { %5648 = vst [vmem:[#allocation1] ss:$9 sm:$0xff] %v16036_v47 }
 0x52d   : > { %5649 = vst [vmem:[#allocation1 + $0x1] ss:$9 sm:$0xff] %v16037_v45  ;;  %v4796_v19 = vmul.f32 %v4780_v22, %v15777_v0  ;;  %v16060_v22 = vld [vmem:[#allocation124_spill] sm:$0xff] }
 0x52e   : > { %5650 = vst [vmem:[#allocation1 + $0x2] ss:$9 sm:$0xff] %v16038_v5  ;;  %v11686_v5 = vpop.f32.mrf.mxu0 }
 0x52f   : > { %5651 = vst [vmem:[#allocation1 + $0x3] ss:$9 sm:$0xff] %v16039_v42  ;;  %v4809_v42 = vpack.c.bf16 %v4794_v14, %v4793_v21  ;;  %v11705_v21 = vpop.f32.mrf.mxu3  ;;  %v4679_v14 = vmul.f32 %v4663_v26, %v15914_v38 }
 0x530   : > { %5652 = vst [vmem:[#allocation1 + $0x4] ss:$9 sm:$0xff] %v16041_v24  ;;  %v5046_v24 = vunpack.c.h.bf16 %v11434_v52  ;;  %v11703_v52 = vpop.f32.mrf.mxu2 }
 0x531   : > { %5653 = vst [vmem:[#allocation1 + $0x5] ss:$9 sm:$0xff] %v16042_v50  ;;  %7718 = vmatmul.msk.bf16.vlgmr.msrb.gmra.mxu3 %vm1117_vm4, %v4809_v42 }
 0x532   : > { %5654 = vst [vmem:[#allocation1 + $0x6] ss:$9 sm:$0xff] %v16044_v18  ;;  %v5062_v62 = vmul.f32 %v5046_v24, %v15892_v9  ;;  %v16047_v18 = vld [vmem:[#allocation60_spill] sm:$0xff] }
 0x533   : > { %16045 = vst [vmem:[#allocation175_spill] sm:$0xff] %v11686_v5  ;;  %v11701_v50 = vrot.slane %v16047_v18, 2  ;;  %v4779_v18 = vunpack.c.l.bf16 %v4770_v44  ;;  %v5048_v44 = vunpack.c.h.bf16 %v11461_v41 }
 0x534   : > { %5655 = vst [vmem:[#allocation1 + $0x7] ss:$9 sm:$0xff] %v16046_v16  ;;  %v5071_v24 = vpack.c.bf16 %v5062_v62, %v5061_v11  ;;  %v5047_v62 = vunpack.c.l.bf16 %v11461_v41 }
 0x535   : > { %16048 = vst [vmem:[#allocation60_spill] sm:$0xff] %v11701_v50  ;;  %v4795_v60 = vmul.f32 %v4779_v18, %v15776_v43  ;;  %v16058_v43 = vld [vmem:[#allocation145_spill] sm:$0xff]  ;;  %v16063_v18 = vld [vmem:[#allocation147_spill] sm:$0xff] }
 0x536   : > { %16049 = vst [vmem:[#allocation176_spill] sm:$0xff] %v11703_v52  ;;  %v11715_v51 = vpop.f32.mrf.mxu0  ;;  %7740 = vmatmul.msk.bf16.gmra.mxu2 %vm1117_vm4, %v5071_v24  ;;  %v4688_v52 = vpack.c.bf16 %v4680_v8, %v4679_v14  ;;  %v16057_v24 = vld [vmem:[#allocation144_spill] sm:$0xff]  ;;  %v5063_v41 = vmul.f32 %v5047_v62, %v15914_v38  ;;  %v5064_v14 = vmul.f32 %v5048_v44, %v15915_v32  ;;  %v16068_v62 = vld [vmem:[#allocation107_spill] sm:$0xff] }
 0x537   : > { %16050 = vst [vmem:[#allocation177_spill] sm:$0xff] %v11705_v21  ;;  %v4810_v8 = vpack.c.bf16 %v4796_v19, %v4795_v60  ;;  %v16062_v19 = vld [vmem:[#allocation89_spill] sm:$0xff]  ;;  %v11755_v44 = vrot.slane %v16068_v62, 3 }
 0x538   : > { %16052 = vst [vmem:[#allocation179_spill] sm:$0xff] %v11715_v51  ;;  %7717 = vmatmul.msk.bf16.gmra.mxu0 %vm1117_vm4, %v4688_v52  ;;  %v11726_v11 = vpop.f32.mrf.mxu2  ;;  %v4764_v52 = vsel %vm16061_vm7, %v16031_v1, %v16060_v22  ;;  %v16088_v51 = vld [vmem:[#allocation29_spill] sm:$0xff]  ;;  %vm16136_vm7 = vcmp.lt.s32.totalorder %v15819_v63, 1  ;;  %v6018_v63 = vshrl.u32 %v15996_v55, 16 }
 0x539   : > { %16056 = vst [vmem:[#allocation118_spill] sm:$0xff] %v11726_v11 }
 0x53a   : > { %16069 = vst [vmem:[#allocation107_spill] sm:$0xff] %v11755_v44 }
 0x53b   : > { %v11710_v42 = vld [vmem:[#allocation1] sm:$0xff] }
 0x53c   : > { %16051 = vst [vmem:[#allocation178_spill] sm:$0xff] %v11710_v42  ;;  %v11721_v42 = vpop.f32.mrf.mxu3 }
 0x53d   : > { %5658 = vst [vmem:[#allocation1] ss:$9 sm:$0xff] %v11701_v50 }
 0x53e   : > { %16053 = vst [vmem:[#allocation180_spill] sm:$0xff] %v11721_v42  ;;  %v11733_v0 = vpop.f32.mrf.mxu0  ;;  %v6006_v42 = vshrl.u32 %v15913_v56, 16 }
 0x53f   : > { %16059 = vst [vmem:[#allocation182_spill] sm:$0xff] %v11733_v0 }
 0x541   : > { %7719 = vmatmul.msk.bf16.gmra.mxu3 %vm1117_vm4, %v4810_v8  ;;  %v4771_v8 = vsel %vm16065_vm0, %v16034_v2, %v4764_v52 }
 0x542   : > { %v4781_v22 = vunpack.c.l.bf16 %v4771_v8  ;;  %v4782_v11 = vunpack.c.h.bf16 %v4771_v8 }
 0x544   : > { %v11723_v26 = vld [vmem:[#allocation1] sm:$0xff]  ;;  %v11745_v60 = vpop.f32.mrf.mxu3 }
 0x545   : > { %16054 = vst [vmem:[#allocation181_spill] sm:$0xff] %v11723_v26  ;;  %v4798_v26 = vmul.f32 %v4782_v11, %v15805_v59 }
 0x546   : > { %5660 = vst [vmem:[#allocation1] ss:$9 sm:$0xff] %v16055_v36 }
 0x547   : > { %5661 = vst [vmem:[#allocation1 + $0x1] ss:$9 sm:$0xff] %v16057_v24 }
 0x548   : > { %5662 = vst [vmem:[#allocation1 + $0x2] ss:$9 sm:$0xff] %v10861_v10  ;;  %v5072_v10 = vpack.c.bf16 %v5064_v14, %v5063_v41  ;;  %v16073_v14 = vld [vmem:[#allocation128_spill] sm:$0xff] }
 0x549   : > { %5663 = vst [vmem:[#allocation1 + $0x3] ss:$9 sm:$0xff] %v16058_v43  ;;  %v16066_v43 = vld [vmem:[#allocation148_spill] sm:$0xff] }
 0x54a   : > { %5664 = vst [vmem:[#allocation1 + $0x4] ss:$9 sm:$0xff] %v10897_v3  ;;  %v11751_v3 = vpop.f32.mrf.mxu2  ;;  %7741 = vmatmul.msk.bf16.gmra.mxu2 %vm1117_vm4, %v5072_v10  ;;  %v4765_v10 = vsel %vm15959_vm1, %v16031_v1, %v16073_v14  ;;  %v16082_v14 = vld [vmem:[#allocation152_spill] sm:$0xff]  ;;  %vm16231_vm1 = vmmov %vm16092_vm3 }
 0x54b   : > { %5665 = vst [vmem:[#allocation1 + $0x5] ss:$9 sm:$0xff] %v16062_v19  ;;  %v11757_v19 = vpop.f32.mrf.mxu0  ;;  %v4772_v59 = vsel %vm16076_vm2, %v16034_v2, %v4765_v10 }
 0x54c   : > { %5666 = vst [vmem:[#allocation1 + $0x6] ss:$9 sm:$0xff] %v16063_v18  ;;  %v4797_v18 = vmul.f32 %v4781_v22, %v15804_v39  ;;  %v11763_v52 = vpop.f32.mrf.mxu3  ;;  %v16077_v39 = vld [vmem:[#allocation120_spill] sm:$0xff]  ;;  %v4783_v22 = vunpack.c.l.bf16 %v4772_v59 }
 0x54d   : > { %16064 = vst [vmem:[#allocation124_spill] sm:$0xff] %v11745_v60 }
 0x54e   : > { %5667 = vst [vmem:[#allocation1 + $0x7] ss:$9 sm:$0xff] %v16066_v43  ;;  %v4811_v41 = vpack.c.bf16 %v4798_v26, %v4797_v18  ;;  %v16079_v26 = vld [vmem:[#allocation121_spill] sm:$0xff]  ;;  %v16080_v18 = vld [vmem:[#allocation150_spill] sm:$0xff]  ;;  %v4799_v10 = vmul.f32 %v4783_v22, %v15836_v15  ;;  %v5815_v22 = vpack.i.b16 %v16088_v51, %v16088_v51 }
 0x54f   : > { %16067 = vst [vmem:[#allocation183_spill] sm:$0xff] %v11751_v3  ;;  %v16081_v3 = vld [vmem:[#allocation151_spill] sm:$0xff] }
 0x550   : > { %16070 = vst [vmem:[#allocation184_spill] sm:$0xff] %v11757_v19  ;;  %v16085_v19 = vld [vmem:[#allocation154_spill] sm:$0xff] }
 0x551   : > { %16072 = vst [vmem:[#allocation186_spill] sm:$0xff] %v11763_v52  ;;  %7720 = vmatmul.msk.bf16.gmra.mxu3 %vm1117_vm4, %v4811_v41  ;;  %v4784_v41 = vunpack.c.h.bf16 %v4772_v59  ;;  %v16087_v52 = vld [vmem:[#allocation28_spill] sm:$0xff]  ;;  %v6002_v59 = vshrl.u32 %v16088_v51, 16 }
 0x553   : > { %v11779_v11 = vpop.f32.mrf.mxu0 }
 0x554   : > { %v11773_v62 = vpop.f32.mrf.mxu3  ;;  %16078 = vst [vmem:[#allocation120_spill] sm:$0xff] %v11779_v11 }
 0x555   : > { %v11761_v0 = vld [vmem:[#allocation1] sm:$0xff]  ;;  %16075 = vst [vmem:[#allocation187_spill] sm:$0xff] %v11773_v62  ;;  %v4800_v62 = vmul.f32 %v4784_v41, %v15837_v6 }
 0x556   : > { %16071 = vst [vmem:[#allocation185_spill] sm:$0xff] %v11761_v0  ;;  %v16084_v0 = vld [vmem:[#allocation137_spill] sm:$0xff] }
 0x557   : > { %5670 = vst [vmem:[#allocation1] ss:$9 sm:$0xff] %v11755_v44 }
 0x55b   : > { %v11794_v60 = vpop.f32.mrf.mxu0 }
 0x55c   : > { %v11790_v11 = vpop.f32.mrf.mxu3  ;;  %16089 = vst [vmem:[#allocation28_spill] sm:$0xff] %v11794_v60 }
 0x55d   : > { %16086 = vst [vmem:[#allocation188_spill] sm:$0xff] %v11790_v11  ;;  %v16098_v11 = vld [vmem:[#allocation139_spill] sm:$0xff] }
 0x55e   : > { %v11771_v8 = vld [vmem:[#allocation1] sm:$0xff] }
 0x55f   : > { %16074 = vst [vmem:[#allocation128_spill] sm:$0xff] %v11771_v8  ;;  %v16083_v8 = vld [vmem:[#allocation153_spill] sm:$0xff] }
 0x560   : > { %5672 = vst [vmem:[#allocation1] ss:$9 sm:$0xff] %v16077_v39 }
 0x561   : > { %5673 = vst [vmem:[#allocation1 + $0x1] ss:$9 sm:$0xff] %v16079_v26 }
 0x562   : > { %5674 = vst [vmem:[#allocation1 + $0x2] ss:$9 sm:$0xff] %v16080_v18  ;;  %v5481_v18 = vshrl.u32 %v16087_v52, 16  ;;  %v11806_v52 = vpack.i.b16 %v6002_v59, %v6002_v59 }
 0x563   : > { %5675 = vst [vmem:[#allocation1 + $0x3] ss:$9 sm:$0xff] %v16081_v3  ;;  %v4812_v3 = vpack.c.bf16 %v4800_v62, %v4799_v10 }
 0x564   : > { %5676 = vst [vmem:[#allocation1 + $0x4] ss:$9 sm:$0xff] %v16082_v14  ;;  %v16090_v14 = vld [vmem:[#allocation40_spill] sm:$0xff]  ;;  %v11802_v15 = vpack.i.b16 %v5481_v18, %v5481_v18  ;;  %v11816_v60 = vpop.f32.mrf.mxu3  ;;  %v16101_v18 = vld [vmem:[#allocation43_spill] sm:$0xff] }
 0x565   : > { %5677 = vst [vmem:[#allocation1 + $0x5] ss:$9 sm:$0xff] %v16083_v8  ;;  %v5531_v5 = vshrl.u32 %v16090_v14, 16  ;;  %7721 = vmatmul.msk.bf16.gmra.mxu3 %vm1117_vm4, %v4812_v3  ;;  %v5275_v62 = vpack.i.b16 %v16090_v14, %v16090_v14  ;;  %v16097_v3 = vld [vmem:[#allocation99_spill] sm:$0xff]  ;;  %v5485_v59 = vshrl.u32 %v16101_v18, 16 }
 0x566   : > { %5678 = vst [vmem:[#allocation1 + $0x6] ss:$9 sm:$0xff] %v16084_v0  ;;  %v16091_v0 = vld [vmem:[#allocation83_spill] sm:$0xff]  ;;  %v3386_v8 = vshrl.u32 %v16097_v3, 16  ;;  %v5818_v3 = vpack.i.b16 %v15913_v56, %v15913_v56  ;;  %v16107_v56 = vld [vmem:[#allocation80_spill] sm:$0xff] }
 0x567   : > { %5679 = vst [vmem:[#allocation1 + $0x7] ss:$9 sm:$0xff] %v16085_v19  ;;  %v4766_v6 = vsel %vm16092_vm3, %v16031_v1, %v16091_v0  ;;  %v11812_v10 = vpack.i.b16 %v5531_v5, %v5531_v5  ;;  %v11833_v18 = vperm.slane %v5275_v62, 0  ;;  %v11837_v5 = vpack.i.b16 %v5485_v59, %v5485_v59 }
 0x568   : > { %16093 = vst [vmem:[#allocation29_spill] sm:$0xff] %v11802_v15  ;;  %v4773_v0 = vsel %vm16100_vm6, %v16034_v2, %v4766_v6  ;;  %v3387_v28 = vpack.i.b16 %v3386_v8, %v3386_v8  ;;  %v11839_v15 = vpack.i.b16 %v6006_v42, %v6006_v42  ;;  %v5278_v62 = vpack.i.b16 %v16107_v56, %v16107_v56  ;;  %v16112_v8 = vld [vmem:[#allocation106_spill] sm:$0xff] }
 0x569   : > { %16094 = vst [vmem:[#allocation40_spill] sm:$0xff] %v11806_v52  ;;  %v4785_v6 = vunpack.c.l.bf16 %v4773_v0  ;;  %v4786_v12 = vunpack.c.h.bf16 %v4773_v0  ;;  %v16111_v0 = vld [vmem:[#allocation55_spill] sm:$0xff] }
 0x56a   : > { %16096 = vst [vmem:[#allocation189_spill] sm:$0xff] %v11812_v10  ;;  %v6010_v7 = vshrl.u32 %v16111_v0, 16  ;;  %v5821_v57 = vpack.i.b16 %v16111_v0, %v16111_v0  ;;  %v16115_v10 = vld [vmem:[#allocation42_spill] sm:$0xff]  ;;  %v16373_v0 = vld [vmem:[#allocation165_spill] sm:$0xff] }
 0x56b   : > { %16099 = vst [vmem:[#allocation99_spill] sm:$0xff] %v11816_v60  ;;  %v11830_v60 = vperm.slane %v5815_v22, 0  ;;  %v11842_v22 = vpop.f32.mrf.mxu0 }
 0x56c   : > { %16108 = vst [vmem:[#allocation30_spill] sm:$0xff] %v11842_v22  ;;  %v5858_v22 = vpack.i.b16 %v16114_v58, %v16114_v58  ;;  %v11891_v58 = vperm.slane %v5278_v62, 0 }
 0x56d   : > { %16104 = vst [vmem:[#allocation43_spill] sm:$0xff] %v11830_v60  ;;  %v11844_v60 = vperm.slane %v5818_v3, 0  ;;  %v4802_v3 = vmul.f32 %v4786_v12, %v15855_v61  ;;  %v5493_v61 = vshrl.u32 %v15974_v30, 16  ;;  %v16117_v12 = vld [vmem:[#allocation125_spill] sm:$0xff] }
 0x56e   : > { %v11808_v41 = vld [vmem:[#allocation1] sm:$0xff]  ;;  %v16121_v30 = vld [vmem:[#allocation157_spill] sm:$0xff] }
 0x56f   : > { %16095 = vst [vmem:[#allocation83_spill] sm:$0xff] %v11808_v41  ;;  %v16102_v41 = vld [vmem:[#allocation105_spill] sm:$0xff] }
 0x570   : > { %5681 = vst [vmem:[#allocation1] ss:$9 sm:$0xff] %v16098_v11  ;;  %v3159_v21 = vpack.i.b16 %v16102_v41, %v16102_v41  ;;  %v5489_v41 = vshrl.u32 %v16105_v27, 16  ;;  %v5535_v11 = vshrl.u32 %v16107_v56, 16  ;;  %v5539_v27 = vshrl.u32 %v15960_v53, 16  ;;  %v11866_v56 = vpop.f32.mrf.mxu3 }
 0x571   : > { %16106 = vst [vmem:[#allocation105_spill] sm:$0xff] %v11839_v15 }
 0x572   : > { %v3161_v33 = vperm.slane %v3159_v21, 0  ;;  %16109 = vst [vmem:[#allocation190_spill] sm:$0xff] %v11844_v60  ;;  %v4801_v21 = vmul.f32 %v4785_v6, %v15854_v54  ;;  %v11859_v52 = vpack.i.b16 %v5489_v41, %v5489_v41  ;;  %v3389_v60 = vperm.slane %v3387_v28, 0 }
 0x573   : > { %16116 = vst [vmem:[#allocation42_spill] sm:$0xff] %v11866_v56  ;;  %v11870_v54 = vpack.i.b16 %v5535_v11, %v5535_v11  ;;  %v11874_v6 = vpack.i.b16 %v6010_v7, %v6010_v7  ;;  %v5282_v41 = vpack.i.b16 %v15960_v53, %v15960_v53  ;;  %v5861_v28 = vpack.i.b16 %v11469_v34, %v11469_v34  ;;  %v16122_v7 = vld [vmem:[#allocation94_spill] sm:$0xff] }
 0x574   : > { %v3345_v42 = vsel %vm9446_vm5, %v3161_v33, %v16112_v8  ;;  %v11883_v8 = vpack.i.b16 %v5539_v27, %v5539_v27  ;;  %v6014_v11 = vshrl.u32 %v15975_v46, 16  ;;  %v4813_v15 = vpack.c.bf16 %v4802_v3, %v4801_v21  ;;  %v16126_v3 = vld [vmem:[#allocation159_spill] sm:$0xff]  ;;  %v16128_v27 = vld [vmem:[#allocation160_spill] sm:$0xff] }
 0x575   : > { %16118 = vst [vmem:[#allocation192_spill] sm:$0xff] %v11874_v6  ;;  %v3413_v33 = vsel %vm9477_vm8, %v3389_v60, %v3345_v42  ;;  %v4767_v53 = vsel %vm3115_vm14, %v16031_v1, %v16122_v7  ;;  %v16125_v60 = vld [vmem:[#allocation158_spill] sm:$0xff]  ;;  %v11900_v42 = vpack.i.b16 %v5493_v61, %v5493_v61  ;;  %v5543_v21 = vshrl.u32 %v15984_v13, 16 }
 0x576   : > { %7722 = vmatmul.msk.bf16.gmra.mxu3 %vm1117_vm4, %v4813_v15  ;;  %v4768_v62 = vsel %vm16127_vm15, %v16031_v1, %v3413_v33  ;;  %v5824_v7 = vpack.i.b16 %v15975_v46, %v15975_v46  ;;  %v4774_v61 = vsel %vm3107_vm13, %v16034_v2, %v4767_v53  ;;  %v11918_v15 = vperm.slane %v5861_v28, 0  ;;  %v16131_v33 = vld [vmem:[#allocation162_spill] sm:$0xff] }
 0x577   : > { %v11855_v59 = vld [vmem:[#allocation1] sm:$0xff]  ;;  %v5864_v53 = vpack.i.b16 %v11541_v23, %v11541_v23  ;;  %v5497_v28 = vshrl.u32 %v15995_v17, 16  ;;  %v11940_v6 = vpack.i.b16 %v5543_v21, %v5543_v21  ;;  %v11946_v23 = vpop.f32.mrf.mxu1 }
 0x578   : > { %16113 = vst [vmem:[#allocation106_spill] sm:$0xff] %v11855_v59  ;;  %v16119_v59 = vld [vmem:[#allocation156_spill] sm:$0xff]  ;;  %v11934_v34 = vpop.f32.mrf.mxu3 }
 0x579   : > { %5683 = vst [vmem:[#allocation1] ss:$9 sm:$0xff] %v16115_v10  ;;  %v11952_v21 = vperm.slane %v5864_v53, 0 }
 0x57a   : > { %5684 = vst [vmem:[#allocation1 + $0x1] ss:$9 sm:$0xff] %v16117_v12  ;;  %v11896_v12 = vperm.slane %v5858_v22, 0  ;;  %v11909_v22 = vperm.slane %v5282_v41, 0  ;;  %v16133_v41 = vld [vmem:[#allocation59_spill] sm:$0xff] }
 0x57b   : > { %5685 = vst [vmem:[#allocation1 + $0x2] ss:$9 sm:$0xff] %v16119_v59  ;;  %v11894_v59 = vperm.slane %v5821_v57, 0  ;;  %v11923_v57 = vpop.f32.mrf.mxu0  ;;  %vm16134_vm12 = vcmp.lt.s32.totalorder %v16133_v41, 1  ;;  %v16141_v41 = vld [vmem:[#allocation110_spill] sm:$0xff] }
 0x57c   : > { %5686 = vst [vmem:[#allocation1 + $0x3] ss:$9 sm:$0xff] %v16121_v30 }
 0x57d   : > { %16124 = vst [vmem:[#allocation94_spill] sm:$0xff] %v11896_v12  ;;  %v11942_v12 = vperm.slane %v5824_v7, 0  ;;  %v5547_v7 = vshrl.u32 %v16005_v25, 16 }
 0x57e   : > { %5687 = vst [vmem:[#allocation1 + $0x4] ss:$9 sm:$0xff] %v16125_v60  ;;  %v4775_v60 = vsel %vm16134_vm12, %v16034_v2, %v16031_v1  ;;  %v4788_v1 = vunpack.c.h.bf16 %v4774_v61 }
 0x57f   : > { %5688 = vst [vmem:[#allocation1 + $0x5] ss:$9 sm:$0xff] %v16126_v3  ;;  %v11920_v3 = vpack.i.b16 %v6014_v11, %v6014_v11  ;;  %v4776_v11 = vsel %vm16136_vm7, %v16034_v2, %v4768_v62  ;;  %v4789_v17 = vunpack.c.l.bf16 %v4775_v60 }
 0x580   : > { %5689 = vst [vmem:[#allocation1 + $0x6] ss:$9 sm:$0xff] %v16128_v27  ;;  %v5286_v27 = vpack.i.b16 %v15984_v13, %v15984_v13  ;;  %v4790_v13 = vunpack.c.h.bf16 %v4775_v60  ;;  %v4791_v2 = vunpack.c.l.bf16 %v4776_v11  ;;  %v4792_v62 = vunpack.c.h.bf16 %v4776_v11 }
 0x581   : > { %16129 = vst [vmem:[#allocation193_spill] sm:$0xff] %v11918_v15  ;;  %v4787_v15 = vunpack.c.l.bf16 %v4774_v61  ;;  %v11954_v61 = vpack.i.b16 %v5497_v28, %v5497_v28  ;;  %v11961_v60 = vrot.slane %v16141_v41, 1  ;;  %v11971_v28 = vmul.f32 %v4789_v17, %v15891_v20  ;;  %v11992_v20 = vpop.f32.mrf.mxu3 }
 0x582   : > { %16130 = vst [vmem:[#allocation194_spill] sm:$0xff] %v11920_v3  ;;  %v11950_v30 = vperm.slane %v5286_v27, 0  ;;  %v4804_v3 = vmul.f32 %v4788_v1, %v15870_v40  ;;  %v5501_v27 = vshrl.u32 %v16015_v48, 16  ;;  %v5551_v41 = vshrl.u32 %v16023_v35, 16 }
 0x583   : > { %5690 = vst [vmem:[#allocation1 + $0x7] ss:$9 sm:$0xff] %v16131_v33  ;;  %v11981_v40 = vmul.f32 %v4791_v2, %v15914_v38  ;;  %v6022_v38 = vshrl.u32 %v16016_v37, 16  ;;  %v5293_v2 = vpack.i.b16 %v16023_v35, %v16023_v35  ;;  %v5833_v48 = vpack.i.b16 %v16037_v45, %v16037_v45 }
 0x584   : > { %16132 = vst [vmem:[#allocation195_spill] sm:$0xff] %v11923_v57  ;;  %v5827_v57 = vpack.i.b16 %v15996_v55, %v15996_v55  ;;  %v12000_v17 = vpack.i.b16 %v5501_v27, %v5501_v27 }
 0x585   : > { %16135 = vst [vmem:[#allocation196_spill] sm:$0xff] %v11934_v34  ;;  %v4803_v34 = vmul.f32 %v4787_v15, %v15869_v49  ;;  %v11984_v49 = vmul.f32 %v4792_v62, %v15915_v32  ;;  %v6026_v15 = vshrl.u32 %v16037_v45, 16  ;;  %v11998_v32 = vpop.f32.mrf.mxu0  ;;  %v5509_v62 = vshrl.u32 %v16055_v36, 16 }
 0x586   : > { %16137 = vst [vmem:[#allocation197_spill] sm:$0xff] %v11942_v12  ;;  %v11957_v12 = vpop.f32.mrf.mxu2  ;;  %v11965_v11 = vperm.slane %v5827_v57, 0  ;;  %v11987_v57 = vpack.i.b16 %v5547_v7, %v5547_v7  ;;  %v12007_v7 = vpack.i.b16 %v5551_v41, %v5551_v41  ;;  %v5555_v36 = vshrl.u32 %v16046_v16, 16 }
 0x587   : > { %16138 = vst [vmem:[#allocation198_spill] sm:$0xff] %v11946_v23  ;;  %v11976_v23 = vpack.i.b16 %v6018_v63, %v6018_v63  ;;  %v5505_v63 = vshrl.u32 %v16036_v47, 16  ;;  %v4814_v1 = vpack.c.bf16 %v4804_v3, %v4803_v34  ;;  %v12021_v47 = vpop.f32.mrf.mxu1  ;;  %v12027_v45 = vpack.i.b16 %v6026_v15, %v6026_v15 }
 0x588   : > { %16139 = vst [vmem:[#allocation199_spill] sm:$0xff] %v11952_v21  ;;  %v11974_v21 = vmul.f32 %v4790_v13, %v15892_v9  ;;  %v5867_v9 = vpack.i.b16 %v16010_v31, %v16010_v31  ;;  %v5830_v13 = vpack.i.b16 %v16016_v37, %v16016_v37  ;;  %v5870_v37 = vpack.i.b16 %v11642_v29, %v11642_v29 }
 0x589   : > { %16140 = vst [vmem:[#allocation200_spill] sm:$0xff] %v11957_v12  ;;  %v12018_v35 = vpack.i.b16 %v5505_v63, %v5505_v63  ;;  %v5297_v29 = vpack.i.b16 %v16046_v16, %v16046_v16  ;;  %7723 = vmatmul.msk.bf16.gmra.mxu3 %vm1117_vm4, %v4814_v1  ;;  %v12033_v3 = vperm.slane %v5293_v2, 0  ;;  %v12035_v63 = vpack.i.b16 %v5509_v62, %v5509_v62  ;;  %v12057_v15 = vpop.f32.mrf.mxu3  ;;  %v16165_v12 = vld [vmem:[#allocation36_spill] sm:$0xff] }
 0x58a   : > { %16142 = vst [vmem:[#allocation110_spill] sm:$0xff] %v11961_v60  ;;  %v11968_v53 = vld [vmem:[#allocation1] sm:$0xff]  ;;  %v12016_v27 = vperm.slane %v5867_v9, 0  ;;  %v12023_v41 = vperm.slane %v5830_v13, 0  ;;  %v5873_v34 = vpack.i.b16 %v11701_v50, %v11701_v50  ;;  %v12046_v16 = vperm.slane %v5870_v37, 0 }
 0x58b   : > { %16143 = vst [vmem:[#allocation201_spill] sm:$0xff] %v11965_v11  ;;  %v12025_v11 = vpack.i.b16 %v6022_v38, %v6022_v38  ;;  %v6030_v1 = vshrl.u32 %v16057_v24, 16  ;;  %v5508_v2 = vperm.slane %v12018_v35, 0  ;;  %v12051_v62 = vpack.i.b16 %v5555_v36, %v5555_v36 }
 0x58c   : > { %16144 = vst [vmem:[#allocation202_spill] sm:$0xff] %v11976_v23  ;;  %v5836_v9 = vpack.i.b16 %v16057_v24, %v16057_v24  ;;  %v5559_v50 = vshrl.u32 %v16066_v43, 16  ;;  %v5299_v36 = vperm.slane %v5297_v29, 0  ;;  %v16162_v24 = vld [vmem:[#allocation35_spill] sm:$0xff]  ;;  %v5513_v37 = vshrl.u32 %v16077_v39, 16 }
 0x58d   : > { %5693 = vst [vmem:[#allocation1] ss:$9 sm:$0xff] %v11961_v60  ;;  %v12078_v31 = vpack.i.b16 %v6030_v1, %v6030_v1  ;;  %v5876_v29 = vpack.i.b16 %v11755_v44, %v11755_v44  ;;  %v16173_v1 = vld [vmem:[#allocation39_spill] sm:$0xff] }
 0x58e   : > { %16145 = vst [vmem:[#allocation203_spill] sm:$0xff] %v11987_v57  ;;  %v12041_v38 = vpop.f32.mrf.mxu2 }
 0x58f   : > { %16146 = vst [vmem:[#allocation204_spill] sm:$0xff] %v11992_v20  ;;  %v16274_v20 = vld [vmem:[#allocation55_spill] sm:$0xff] }
 0x590   : > { %16147 = vst [vmem:[#allocation205_spill] sm:$0xff] %v12007_v7  ;;  %v16264_v7 = vld [vmem:[#allocation164_spill] sm:$0xff] }
 0x591   : > { %16148 = vst [vmem:[#allocation206_spill] sm:$0xff] %v12016_v27  ;;  %v12044_v27 = vperm.slane %v5833_v48, 0  ;;  %v16160_v48 = vld [vmem:[#allocation47_spill] sm:$0xff] }
 0x592   : > { %16149 = vst [vmem:[#allocation207_spill] sm:$0xff] %v12021_v47  ;;  %v5512_v47 = vperm.slane %v12035_v63, 0  ;;  %v12095_v63 = vperm.slane %v5836_v9, 0  ;;  %v5517_v9 = vshrl.u32 %v16115_v10, 16 }
 0x593   : > { %16150 = vst [vmem:[#allocation208_spill] sm:$0xff] %v12023_v41  ;;  %v16158_v41 = vld [vmem:[#allocation104_spill] sm:$0xff] }
 0x594   : > { %16151 = vst [vmem:[#allocation209_spill] sm:$0xff] %v12025_v11  ;;  %v12039_v13 = vld [vmem:[#allocation1] sm:$0xff]  ;;  %v16233_v11 = vld [vmem:[#allocation68_spill] sm:$0xff] }
 0x595   : > { %16152 = vst [vmem:[#allocation210_spill] sm:$0xff] %v12027_v45  ;;  %v16175_v45 = vperm.slane %v11859_v52, 0  ;;  %v16177_v52 = vld [vmem:[#allocation52_spill] sm:$0xff] }
 0x596   : > { %16153 = vst [vmem:[#allocation211_spill] sm:$0xff] %v12039_v13  ;;  %v16296_v13 = vld [vmem:[#allocation63_spill] sm:$0xff] }
 0x597   : > { %16154 = vst [vmem:[#allocation212_spill] sm:$0xff] %v12041_v38  ;;  %v16163_v38 = vld [vmem:[#allocation135_spill] sm:$0xff] }
 0x598   : > { %16155 = vst [vmem:[#allocation213_spill] sm:$0xff] %v12044_v27 }
 0x599   : > { %16156 = vst [vmem:[#allocation214_spill] sm:$0xff] %v12046_v16  ;;  %v16161_v16 = vld [vmem:[#allocation72_spill] sm:$0xff] }
 0x59a   : > { %5885 = vst [vmem:[#allocation1] ss:$9 sm:$0xff] %v16088_v51  ;;  %v5472_v35 = vsel %vm9446_vm5, %v11891_v58, %v16161_v16  ;;  %v5301_v58 = vpack.i.b16 %v16066_v43, %v16066_v43  ;;  %v6034_v16 = vshrl.u32 %v16079_v26, 16  ;;  %v16174_v51 = vld [vmem:[#allocation122_spill] sm:$0xff] }
 0x59b   : > { %16157 = vst [vmem:[#allocation215_spill] sm:$0xff] %v12051_v62 }
 0x59c   : > { %5887 = vst [vmem:[#allocation1 + $0x1] ss:$9 sm:$0xff] %v16158_v41  ;;  %v5473_v41 = vsel %vm9446_vm5, %v11909_v22, %v16163_v38  ;;  %v12086_v22 = vpop.f32.mrf.mxu0  ;;  %v12097_v38 = vpack.i.b16 %v5559_v50, %v5559_v50  ;;  %v5514_v50 = vpack.i.b16 %v5513_v37, %v5513_v37  ;;  %v12124_v10 = vpack.i.b16 %v6034_v16, %v6034_v16  ;;  %v16188_v16 = vld [vmem:[#allocation139_spill] sm:$0xff] }
 0x59d   : > { %16159 = vst [vmem:[#allocation104_spill] sm:$0xff] %v12057_v15  ;;  %v12074_v15 = vperm.slane %v5873_v34, 0  ;;  %v16169_v34 = vperm.slane %v11837_v5, 0  ;;  %v12108_v5 = vsel %vm9477_vm8, %v16175_v45, %v5473_v41  ;;  %v5303_v41 = vperm.slane %v5301_v58, 0  ;;  %v12138_v45 = vpop.f32.mrf.mxu3 }
 0x59e   : > { %5889 = vst [vmem:[#allocation1 + $0x2] ss:$9 sm:$0xff] %v16162_v24  ;;  %v16167_v24 = vld [vmem:[#allocation37_spill] sm:$0xff]  ;;  %v5290_v58 = vpack.i.b16 %v16005_v25, %v16005_v25  ;;  %v16265_v25 = vld [vmem:[#allocation16_spill] sm:$0xff] }
 0x59f   : > { %16164 = vst [vmem:[#allocation47_spill] sm:$0xff] %v12074_v15  ;;  %v12092_v39 = vsel %vm9477_vm8, %v16169_v34, %v5472_v35  ;;  %v5563_v35 = vshrl.u32 %v16085_v19, 16  ;;  %v5839_v34 = vpack.i.b16 %v16079_v26, %v16079_v26  ;;  %v16183_v15 = vld [vmem:[#allocation90_spill] sm:$0xff]  ;;  %v12136_v26 = vpop.f32.mrf.mxu2 }
 0x5a0   : > { %5891 = vst [vmem:[#allocation1 + $0x3] ss:$9 sm:$0xff] %v16165_v12  ;;  %v12122_v12 = vperm.slane %v5876_v29, 0 }
 0x5a1   : > { %16166 = vst [vmem:[#allocation72_spill] sm:$0xff] %v12078_v31  ;;  %v12142_v29 = vpack.i.b16 %v5563_v35, %v5563_v35  ;;  %v16192_v35 = vld [vmem:[#allocation149_spill] sm:$0xff] }
 0x5a2   : > { %5893 = vst [vmem:[#allocation1 + $0x4] ss:$9 sm:$0xff] %v16167_v24  ;;  %v5474_v24 = vsel %vm9446_vm5, %v11950_v30, %v16174_v51  ;;  %v5567_v30 = vshrl.u32 %v16131_v33, 16  ;;  %v12119_v51 = vpop.f32.mrf.mxu1 }
 0x5a3   : > { %16168 = vst [vmem:[#allocation35_spill] sm:$0xff] %v12086_v22 }
 0x5a4   : > { %16170 = vst [vmem:[#allocation135_spill] sm:$0xff] %v12092_v39  ;;  %v12152_v31 = vpack.i.b16 %v5567_v30, %v5567_v30  ;;  %v16201_v30 = vld [vmem:[#allocation44_spill] sm:$0xff] }
 0x5a5   : > { %16171 = vst [vmem:[#allocation36_spill] sm:$0xff] %v12095_v63  ;;  %v16251_v63 = vld [vmem:[#allocation113_spill] sm:$0xff] }
 0x5a6   : > { %16172 = vst [vmem:[#allocation37_spill] sm:$0xff] %v12097_v38  ;;  %v16257_v38 = vperm.slane %v12000_v17, 0  ;;  %v16262_v17 = vld [vmem:[#allocation41_spill] sm:$0xff] }
 0x5a7   : > { %5895 = vst [vmem:[#allocation1 + $0x5] ss:$9 sm:$0xff] %v16173_v1  ;;  %v5305_v1 = vpack.i.b16 %v16085_v19, %v16085_v19  ;;  %v5477_v19 = vsel %vm9446_vm5, %v5299_v36, %v16183_v15  ;;  %v5516_v15 = vperm.slane %v5514_v50, 0  ;;  %v12150_v36 = vperm.slane %v5839_v34, 0 }
 0x5a8   : > { %16176 = vst [vmem:[#allocation39_spill] sm:$0xff] %v12108_v5  ;;  %v5882_v34 = vpack.i.b16 %v11961_v60, %v11961_v60  ;;  %v16234_v60 = vld [vmem:[#allocation136_spill] sm:$0xff] }
 0x5a9   : > { %5897 = vst [vmem:[#allocation1 + $0x6] ss:$9 sm:$0xff] %v16090_v14  ;;  %v16181_v14 = vperm.slane %v11900_v42, 0  ;;  %v12144_v42 = vpack.i.b16 %v5517_v9, %v5517_v9  ;;  %v5478_v9 = vsel %vm9446_vm5, %v5303_v41, %v16192_v35 }
 0x5aa   : > { %5899 = vst [vmem:[#allocation1 + $0x7] ss:$9 sm:$0xff] %v16177_v52  ;;  %v5307_v52 = vperm.slane %v5305_v1, 0 }
 0x5ab   : > { %16178 = vst [vmem:[#allocation122_spill] sm:$0xff] %v12119_v51  ;;  %v12130_v37 = vsel %vm9477_vm8, %v16181_v14, %v5474_v24  ;;  %v5879_v24 = vpack.i.b16 %v16188_v16, %v16188_v16  ;;  %v5308_v14 = vpack.i.b16 %v16131_v33, %v16131_v33  ;;  %v16193_v16 = vld [vmem:[#allocation125_spill] sm:$0xff]  ;;  %v16194_v33 = vld [vmem:[#allocation155_spill] sm:$0xff] }
 0x5ac   : > { %16179 = vst [vmem:[#allocation52_spill] sm:$0xff] %v12122_v12  ;;  %v12156_v12 = vsel %vm9477_vm8, %v5508_v2, %v5477_v19  ;;  %v5842_v43 = vpack.i.b16 %v16193_v16, %v16193_v16  ;;  %v5479_v50 = vsel %vm9446_vm5, %v5307_v52, %v16194_v33  ;;  %v6038_v1 = vshrl.u32 %v16193_v16, 16  ;;  %v16226_v16 = vld [vmem:[#allocation13_spill] sm:$0xff] }
 0x5ad   : > { %16180 = vst [vmem:[#allocation216_spill] sm:$0xff] %v12124_v10  ;;  %v5292_v19 = vperm.slane %v5290_v58, 0  ;;  %v12172_v41 = vperm.slane %v5879_v24, 0  ;;  %v12174_v35 = vperm.slane %v5308_v14, 0  ;;  %v12178_v10 = vpop.f32.mrf.mxu0  ;;  %v16199_v33 = vpack.c.bf16 %v11974_v21, %v11971_v28  ;;  %v16203_v14 = vld [vmem:[#allocation29_spill] sm:$0xff]  ;;  %v16205_v28 = vld [vmem:[#allocation92_spill] sm:$0xff] }
 0x5ae   : > { %16182 = vst [vmem:[#allocation217_spill] sm:$0xff] %v12130_v37  ;;  %v12186_v52 = vsel %vm9477_vm8, %v5512_v47, %v5478_v9  ;;  %v16202_v24 = vsel %vm9446_vm5, %v11833_v18, %v16160_v48  ;;  %v16204_v2 = vperm.slane %v16203_v14, 0  ;;  %v12204_v47 = vsel %vm9477_vm8, %v5516_v15, %v5479_v50  ;;  %v16209_v18 = vld [vmem:[#allocation48_spill] sm:$0xff]  ;;  %v12221_v15 = vpop.f32.mrf.mxu1  ;;  %v16215_v50 = vld [vmem:[#allocation15_spill] sm:$0xff] }
 0x5af   : > { %16184 = vst [vmem:[#allocation90_spill] sm:$0xff] %v12136_v26  ;;  %7724 = vmatmul.msk.bf16.gmra.mxu3 %vm1117_vm4, %v16199_v33  ;;  %v5475_v33 = vsel %vm9446_vm5, %v5292_v19, %v16205_v28  ;;  %v12210_v58 = vperm.slane %v5842_v43, 0  ;;  %v16212_v19 = vld [vmem:[#allocation49_spill] sm:$0xff]  ;;  %v12219_v14 = vpack.i.b16 %v6038_v1, %v6038_v1  ;;  %v16220_v1 = vld [vmem:[#allocation116_spill] sm:$0xff]  ;;  %v16230_v9 = vld [vmem:[#allocation123_spill] sm:$0xff] }
 0x5b0   : > { %16185 = vst [vmem:[#allocation218_spill] sm:$0xff] %v12138_v45  ;;  %v5521_v21 = vsel %vm9477_vm8, %v16204_v2, %v16202_v24  ;;  %v12216_v24 = vperm.slane %v5882_v34, 0  ;;  %v16216_v28 = vld [vmem:[#allocation129_spill] sm:$0xff]  ;;  %vm16221_vm0 = vcmp.gt.s32.totalorder %v16220_v1, 14  ;;  %vm16242_vm3 = vcmp.lt.s32.totalorder %v16220_v1, 1  ;;  %v16252_v45 = vld [vmem:[#allocation112_spill] sm:$0xff] }
 0x5b1   : > { %16186 = vst [vmem:[#allocation219_spill] sm:$0xff] %v12142_v29  ;;  %v12176_v44 = vld [vmem:[#allocation1] sm:$0xff]  ;;  %v6100_v2 = vsel %vm3110_vm9, %v12156_v12, %v5521_v21  ;;  %v16217_v43 = vld [vmem:[#allocation93_spill] sm:$0xff]  ;;  %v16219_v21 = vperm.slane %v11954_v61, 0  ;;  %v6482_v29 = vsel %vm3111_vm11, %v12186_v52, %v12108_v5  ;;  %vm16247_vm15 = vmmov %vm16221_vm0 }
 0x5b2   : > { %16187 = vst [vmem:[#allocation220_spill] sm:$0xff] %v12144_v42  ;;  %v16236_v61 = vld [vmem:[#allocation65_spill] sm:$0xff]  ;;  %vm16239_vm2 = vcmp.lt.s32.totalorder %v16217_v43, 1 }
 0x5b3   : > { %16189 = vst [vmem:[#allocation221_spill] sm:$0xff] %v12150_v36  ;;  %v5525_v34 = vsel %vm9477_vm8, %v16219_v21, %v5475_v33  ;;  %v12247_v33 = vpop.f32.mrf.mxu3  ;;  %v12252_v21 = vsel %vm3102_vm10, %v12092_v39, %v6100_v2  ;;  %v16235_v36 = vld [vmem:[#allocation102_spill] sm:$0xff]  ;;  %v16238_v26 = vld [vmem:[#allocation73_spill] sm:$0xff]  ;;  %vm16255_vm7 = vmmov %vm16239_vm2 }
 0x5b4   : > { %16190 = vst [vmem:[#allocation222_spill] sm:$0xff] %v12152_v31  ;;  %v6104_v42 = vsel %vm16231_vm1, %v12156_v12, %v5525_v34 }
 0x5b5   : > { %16191 = vst [vmem:[#allocation223_spill] sm:$0xff] %v12156_v12  ;;  %v12290_v23 = vsel %vm16100_vm6, %v12092_v39, %v6104_v42  ;;  %v16250_v42 = vld [vmem:[#allocation109_spill] sm:$0xff] }
 0x5b6   : > { %16195 = vst [vmem:[#allocation149_spill] sm:$0xff] %v12172_v41  ;;  %v16224_v41 = vld [vmem:[#allocation61_spill] sm:$0xff]  ;;  %v12348_v51 = vpop.f32.mrf.mxu1 }
 0x5b7   : > { %16196 = vst [vmem:[#allocation155_spill] sm:$0xff] %v12174_v35  ;;  %v16222_v35 = vld [vmem:[#allocation64_spill] sm:$0xff] }
 0x5b8   : > { %16197 = vst [vmem:[#allocation224_spill] sm:$0xff] %v12176_v44  ;;  %v12245_v44 = vpop.f32.mrf.mxu2 }
 0x5b9   : > { %16198 = vst [vmem:[#allocation225_spill] sm:$0xff] %v12178_v10  ;;  %v12308_v10 = vpop.f32.mrf.mxu0 }
 0x5ba   : > { %16200 = vst [vmem:[#allocation226_spill] sm:$0xff] %v12186_v52 }
 0x5bb   : > { %5901 = vst [vmem:[#allocation1] ss:$9 sm:$0xff] %v16201_v30  ;;  %v16218_v30 = vld [vmem:[#allocation50_spill] sm:$0xff] }
 0x5bc   : > { %16206 = vst [vmem:[#allocation44_spill] sm:$0xff] %v12204_v47 }
 0x5bd   : > { %16208 = vst [vmem:[#allocation29_spill] sm:$0xff] %v12210_v58  ;;  %v16241_v58 = vld [vmem:[#allocation80_spill] sm:$0xff] }
 0x5be   : > { %5902 = vst [vmem:[#allocation1 + $0x1] ss:$9 sm:$0xff] %v16209_v18  ;;  %v6101_v18 = vsel %vm3111_vm11, %v12156_v12, %v12092_v39 }
 0x5bf   : > { %16211 = vst [vmem:[#allocation92_spill] sm:$0xff] %v12216_v24  ;;  %v16223_v24 = vld [vmem:[#allocation25_spill] sm:$0xff]  ;;  %v12267_v2 = vsel %vm16239_vm2, %v12092_v39, %v6101_v18  ;;  %v16244_v18 = vld [vmem:[#allocation138_spill] sm:$0xff]  ;;  %vm16266_vm2 = vmmov %vm16247_vm15 }
 0x5c0   : > { %5903 = vst [vmem:[#allocation1 + $0x2] ss:$9 sm:$0xff] %v16212_v19  ;;  %v6102_v19 = vsel %vm16221_vm0, %v12156_v12, %v12108_v5  ;;  %vm16258_vm0 = vmmov %vm16242_vm3  ;;  %v12362_v62 = vpop.f32.mrf.mxu2 }
 0x5c1   : > { %16213 = vst [vmem:[#allocation48_spill] sm:$0xff] %v12219_v14  ;;  %v16246_v14 = vld [vmem:[#allocation77_spill] sm:$0xff] }
 0x5c2   : > { %16214 = vst [vmem:[#allocation49_spill] sm:$0xff] %v12221_v15  ;;  %v5476_v31 = vsel %vm9446_vm5, %v12033_v3, %v16246_v14  ;;  %v16248_v15 = vld [vmem:[#allocation34_spill] sm:$0xff]  ;;  %v12318_v14 = vsel %vm16255_vm7, %v12108_v5, %v6482_v29  ;;  %v6863_v29 = vsel %vm3111_vm11, %v12204_v47, %v12130_v37 }
 0x5c3   : > { %5904 = vst [vmem:[#allocation1 + $0x3] ss:$9 sm:$0xff] %v16218_v30  ;;  %v16225_v30 = vld [vmem:[#allocation23_spill] sm:$0xff]  ;;  %vm16249_vm12 = vcmp.gt.s32.totalorder %v16248_v15, 14  ;;  %vm16260_vm1 = vcmp.lt.s32.totalorder %v16248_v15, 1 }
 0x5c4   : > { %5905 = vst [vmem:[#allocation1 + $0x4] ss:$9 sm:$0xff] %v16222_v35  ;;  %v16232_v35 = vld [vmem:[#allocation66_spill] sm:$0xff]  ;;  %vm16276_vm6 = vmmov %vm16249_vm12  ;;  %v16321_v15 = vld [vmem:[#allocation163_spill] sm:$0xff] }
 0x5c5   : > { %16227 = vst [vmem:[#allocation15_spill] sm:$0xff] %v12245_v44  ;;  %v16237_v44 = vld [vmem:[#allocation87_spill] sm:$0xff] }
 0x5c6   : > { %16228 = vst [vmem:[#allocation129_spill] sm:$0xff] %v12247_v33  ;;  %v12282_v33 = vsel %vm16242_vm3, %v12092_v39, %v6102_v19  ;;  %v12364_v19 = vpop.f32.mrf.mxu3  ;;  %vm16272_vm3 = vmmov %vm16255_vm7  ;;  %vm16295_vm7 = vsmask.f32 7424 }
 0x5c7   : > { %16229 = vst [vmem:[#allocation50_spill] sm:$0xff] %v12252_v21  ;;  %v5697_v21 = vshll.u32 %v16250_v42, 16  ;;  %v12374_v57 = vsel %vm16272_vm3, %v12130_v37, %v6863_v29  ;;  %vm16312_vm3 = vcmp.lt.s32.totalorder %v16230_v9, 1 }
 0x5c8   : > { %5906 = vst [vmem:[#allocation1 + $0x5] ss:$9 sm:$0xff] %v16232_v35  ;;  %v6481_v35 = vsel %vm3110_vm9, %v12186_v52, %v12092_v39 }
 0x5c9   : > { %16240 = vst [vmem:[#allocation64_spill] sm:$0xff] %v12267_v2  ;;  %v12313_v3 = vsel %vm3102_vm10, %v12108_v5, %v6481_v35  ;;  %v6862_v35 = vsel %vm3110_vm9, %v12204_v47, %v12108_v5  ;;  %v5699_v27 = vrot.slane %v5697_v21, 1 }
 0x5ca   : > { %5907 = vst [vmem:[#allocation1 + $0x6] ss:$9 sm:$0xff] %v16241_v58  ;;  %v6484_v58 = vsel %vm16249_vm12, %v12186_v52, %v5525_v34  ;;  %v12369_v21 = vsel %vm3102_vm10, %v12130_v37, %v6862_v35  ;;  %v6103_v35 = vsel %vm16276_vm6, %v12156_v12, %v12130_v37  ;;  %vm16284_vm12 = vmmov %vm16260_vm1 }
 0x5cb   : > { %16243 = vst [vmem:[#allocation66_spill] sm:$0xff] %v12282_v33 }
 0x5cc   : > { %5908 = vst [vmem:[#allocation1 + $0x7] ss:$9 sm:$0xff] %v16244_v18  ;;  %v6483_v18 = vsel %vm16247_vm15, %v12186_v52, %v12130_v37  ;;  %vm16279_vm15 = vmmov %vm16258_vm0 }
 0x5cd   : > { %16245 = vst [vmem:[#allocation80_spill] sm:$0xff] %v12290_v23  ;;  %v12340_v2 = vsel %vm16258_vm0, %v12108_v5, %v6483_v18  ;;  %v5695_v23 = vshrl.u32 %v16250_v42, 16  ;;  %v16275_v18 = vpack.c.bf16 %v11984_v49, %v11981_v40  ;;  %v16278_v42 = vld [vmem:[#allocation74_spill] sm:$0xff]  ;;  %v16289_v49 = vld [vmem:[#allocation17_spill] sm:$0xff]  ;;  %vm16299_vm0 = vcmp.gt.s32.totalorder %v16230_v9, 14 }
 0x5ce   : > { %16253 = vst [vmem:[#allocation138_spill] sm:$0xff] %v12308_v10  ;;  %v12327_v10 = vsel %vm9477_vm8, %v16257_v38, %v5476_v31  ;;  %v12345_v31 = vsel %vm16260_vm1, %v12108_v5, %v6484_v58  ;;  %v5701_v38 = vshll.u32 %v16262_v17, 16  ;;  %v6864_v58 = vsel %vm16266_vm2, %v12204_v47, %v5525_v34  ;;  %v16268_v17 = vld [vmem:[#allocation58_spill] sm:$0xff]  ;;  %vm16300_vm1 = vmmov %vm16276_vm6 }
 0x5cf   : > { %16254 = vst [vmem:[#allocation77_spill] sm:$0xff] %v12313_v3  ;;  %7725 = vmatmul.msk.bf16.gmra.mxu3 %vm1117_vm4, %v16275_v18  ;;  %v6105_v29 = vsel %vm3115_vm14, %v12156_v12, %v12327_v10  ;;  %v5711_v34 = vshll.u32 %v16278_v42, 16  ;;  %v12397_v40 = vsel %vm16279_vm15, %v12130_v37, %v6864_v58  ;;  %v16281_v18 = vld [vmem:[#allocation46_spill] sm:$0xff]  ;;  %v16283_v42 = vld [vmem:[#allocation96_spill] sm:$0xff]  ;;  %v12409_v58 = vsel %vm16284_vm12, %v12092_v39, %v6103_v35  ;;  %vm16306_vm2 = vmmov %vm16295_vm7 }
 0x5d0   : > { %16256 = vst [vmem:[#allocation109_spill] sm:$0xff] %v12318_v14  ;;  %v5703_v3 = vrot.slane %v5701_v38, 1  ;;  %v5700_v14 = vor.u32 %v5699_v27, %v5695_v23  ;;  %v5717_v38 = vshll.u32 %v16283_v42, 16  ;;  %v12414_v23 = vsel %vm3107_vm13, %v12092_v39, %v6105_v29  ;;  %v16287_v27 = vld [vmem:[#allocation67_spill] sm:$0xff]  ;;  %v16294_v29 = vld [vmem:[#allocation24_spill] sm:$0xff]  ;;  %v16297_v35 = vld [vmem:[#allocation70_spill] sm:$0xff] }
 0x5d1   : > { %16259 = vst [vmem:[#allocation227_spill] sm:$0xff] %v12340_v2  ;;  %v12421_v2 = vpop.f32.mrf.mxu0  ;;  %v5705_v1 = vshrl.u32 %v16268_v17, 16  ;;  %v5721_v43 = vshll.u32 %v16294_v29, 16  ;;  %v5713_v48 = vrot.slane %v5711_v34, 1  ;;  %v16302_v29 = vld [vmem:[#allocation189_spill] sm:$0xff]  ;;  %vm16314_vm6 = vmmov %vm16284_vm12  ;;  %v16340_v9 = vld [vmem:[#allocation182_spill] sm:$0xff] }
 0x5d2   : > { %16261 = vst [vmem:[#allocation228_spill] sm:$0xff] %v12345_v31  ;;  %vm16316_vm15 = vmmov %vm16299_vm0 }
 0x5d3   : > { %16263 = vst [vmem:[#allocation41_spill] sm:$0xff] %v12348_v51  ;;  %v12359_v22 = vld [vmem:[#allocation1] sm:$0xff]  ;;  %v5707_v51 = vshll.u32 %v16268_v17, 16  ;;  %v12435_v17 = vpop.f32.mrf.mxu1  ;;  %vm16323_vm12 = vmmov %vm16306_vm2 }
 0x5d4   : > { %16267 = vst [vmem:[#allocation229_spill] sm:$0xff] %v12359_v22  ;;  %v12463_v22 = vpop.f32.mrf.mxu3 }
 0x5d5   : > { %16269 = vst [vmem:[#allocation58_spill] sm:$0xff] %v12362_v62  ;;  %v5723_v62 = vrot.slane %v5721_v43, 1 }
 0x5d6   : > { %16270 = vst [vmem:[#allocation230_spill] sm:$0xff] %v12364_v19  ;;  %v5709_v19 = vrot.slane %v5707_v51, 1  ;;  %v5715_v51 = vshrl.u32 %v16283_v42, 16  ;;  %v16317_v42 = vld [vmem:[#allocation180_spill] sm:$0xff] }
 0x5d7   : > { %16271 = vst [vmem:[#allocation231_spill] sm:$0xff] %v12369_v21  ;;  %v16293_v21 = vld [vmem:[#allocation38_spill] sm:$0xff] }
 0x5d8   : > { %16273 = vst [vmem:[#allocation232_spill] sm:$0xff] %v12374_v57  ;;  %v5710_v57 = vor.u32 %v5709_v19, %v5705_v1  ;;  %v16304_v1 = vld [vmem:[#allocation18_spill] sm:$0xff]  ;;  %v16305_v19 = vld [vmem:[#allocation103_spill] sm:$0xff] }
 0x5d9   : > { %5910 = vst [vmem:[#allocation1] ss:$9 sm:$0xff] %v16274_v20  ;;  %v16277_v20 = vld [vmem:[#allocation51_spill] sm:$0xff] }
 0x5da   : > { %5911 = vst [vmem:[#allocation1 + $0x1] ss:$9 sm:$0xff] %v16277_v20  ;;  %v16282_v20 = vld [vmem:[#allocation69_spill] sm:$0xff] }
 0x5db   : > { %16280 = vst [vmem:[#allocation55_spill] sm:$0xff] %v12397_v40 }
 0x5dc   : > { %5912 = vst [vmem:[#allocation1 + $0x2] ss:$9 sm:$0xff] %v16281_v18  ;;  %v16288_v18 = vld [vmem:[#allocation169_spill] sm:$0xff] }
 0x5dd   : > { %5913 = vst [vmem:[#allocation1 + $0x3] ss:$9 sm:$0xff] %v16282_v20  ;;  %v16291_v20 = vld [vmem:[#allocation86_spill] sm:$0xff] }
 0x5de   : > { %16285 = vst [vmem:[#allocation51_spill] sm:$0xff] %v12409_v58  ;;  %v16307_v58 = vld [vmem:[#allocation177_spill] sm:$0xff] }
 0x5df   : > { %16286 = vst [vmem:[#allocation74_spill] sm:$0xff] %v12414_v23  ;;  %v5714_v23 = vsel %vm16306_vm2, %v5710_v57, %v5713_v48  ;;  %v6866_v48 = vsel %vm16316_vm15, %v12204_v47, %v12156_v12 }
 0x5e0   : > { %5914 = vst [vmem:[#allocation1 + $0x4] ss:$9 sm:$0xff] %v16287_v27  ;;  %v5704_v27 = vsel %vm16295_vm7, %v5700_v14, %v5703_v3  ;;  %v6485_v3 = vsel %vm16299_vm0, %v12186_v52, %v12327_v10  ;;  %v16301_v14 = vld [vmem:[#allocation31_spill] sm:$0xff]  ;;  %vm16325_vm7 = vmmov %vm16312_vm3 }
 0x5e1   : > { %16292 = vst [vmem:[#allocation46_spill] sm:$0xff] %v12421_v2  ;;  %v5727_v34 = vshll.u32 %v16301_v14, 16  ;;  %v16303_v2 = vperm.slane %v16302_v29, 0  ;;  %v12461_v29 = vpop.f32.mrf.mxu2  ;;  %v12469_v33 = vsel %vm16312_vm3, %v12108_v5, %v6485_v3  ;;  %v16333_v3 = vld [vmem:[#allocation179_spill] sm:$0xff]  ;;  %vm16346_vm0 = vmmov %vm16306_vm2 }
 0x5e2   : > { %5915 = vst [vmem:[#allocation1 + $0x5] ss:$9 sm:$0xff] %v16293_v21  ;;  %v5719_v21 = vrot.slane %v5717_v38, 1  ;;  %vm16394_vm2 = vmmov %vm16346_vm0 }
 0x5e3   : > { %5916 = vst [vmem:[#allocation1 + $0x6] ss:$9 sm:$0xff] %v16296_v13  ;;  %v6865_v13 = vsel %vm16300_vm1, %v12204_v47, %v12327_v10  ;;  %v12450_v38 = vsel %vm9446_vm5, %v16303_v2, %v5704_v27  ;;  %v16308_v10 = vmax.f32 %v16216_v28, %v16215_v50  ;;  %v16311_v2 = vld [vmem:[#allocation84_spill] sm:$0xff]  ;;  %v5729_v40 = vrot.slane %v5727_v34, 1  ;;  %vm16402_vm3 = vmmov %vm16346_vm0 }
 0x5e4   : > { %5917 = vst [vmem:[#allocation1 + $0x7] ss:$9 sm:$0xff] %v16297_v35  ;;  %v5731_v27 = vshll.u32 %v16311_v2, 16  ;;  %v12474_v57 = vsel %vm16314_vm6, %v12130_v37, %v6865_v13  ;;  %v5720_v43 = vor.u32 %v5719_v21, %v5715_v51  ;;  %v16322_v51 = vld [vmem:[#allocation43_spill] sm:$0xff]  ;;  %v5725_v34 = vshrl.u32 %v16301_v14, 16  ;;  %v16341_v14 = vld [vmem:[#allocation170_spill] sm:$0xff]  ;;  %vm16405_vm6 = vmmov %vm16346_vm0 }
 0x5e5   : > { %16298 = vst [vmem:[#allocation69_spill] sm:$0xff] %v12435_v17  ;;  %v5162_v17 = vmax.f32 %v16308_v10, %v16307_v58  ;;  %v16318_v10 = vmax.f32 %v16224_v41, %v16223_v24  ;;  %v16328_v58 = vld [vmem:[#allocation124_spill] sm:$0xff]  ;;  %v16329_v21 = vmax.f32 %v16226_v16, %v16225_v30  ;;  %v16336_v30 = vld [vmem:[#allocation81_spill] sm:$0xff]  ;;  %v16350_v24 = vld [vmem:[#allocation98_spill] sm:$0xff] }
 0x5e6   : > { %16309 = vst [vmem:[#allocation96_spill] sm:$0xff] %v12461_v29  ;;  %v16319_v29 = vperm.slane %v11870_v54, 0  ;;  %v12502_v54 = vsel %vm16325_vm7, %v12130_v37, %v6866_v48  ;;  %vm16432_vm15 = vmmov %vm16346_vm0 }
 0x5e7   : > { %16310 = vst [vmem:[#allocation67_spill] sm:$0xff] %v12463_v22  ;;  %v5163_v2 = vmax.f32 %v16318_v10, %v16317_v42  ;;  %v16320_v22 = vld [vmem:[#allocation175_spill] sm:$0xff]  ;;  %v5724_v10 = vsel %vm16323_vm12, %v5720_v43, %v5723_v62  ;;  %v16324_v42 = vld [vmem:[#allocation161_spill] sm:$0xff]  ;;  %v5164_v31 = vmax.f32 %v16329_v21, %v16328_v58  ;;  %v12511_v62 = vpop.f32.mrf.mxu0  ;;  %v16331_v43 = vld [vmem:[#allocation190_spill] sm:$0xff]  ;;  %v5730_v21 = vor.u32 %v5729_v40, %v5725_v34 }
 0x5e8   : > { %16313 = vst [vmem:[#allocation38_spill] sm:$0xff] %v12469_v33  ;;  %v5806_v13 = vsel %vm9446_vm5, %v16319_v29, %v5714_v23  ;;  %v5178_v35 = vmax.f32 %v5162_v17, %v16324_v42  ;;  %v5733_v29 = vrot.slane %v5731_v27, 1  ;;  %v16335_v27 = vld [vmem:[#allocation57_spill] sm:$0xff]  ;;  %v16337_v58 = vperm.slane %v11883_v8, 0  ;;  %v16342_v40 = vld [vmem:[#allocation108_spill] sm:$0xff]  ;;  %v16343_v8 = vld [vmem:[#allocation186_spill] sm:$0xff] }
 0x5e9   : > { %16315 = vst [vmem:[#allocation24_spill] sm:$0xff] %v12474_v57  ;;  %v12518_v48 = vsel %vm9477_vm8, %v16331_v43, %v5806_v13  ;;  %v5179_v42 = vmax.f32 %v5163_v2, %v16335_v27  ;;  %v6486_v13 = vsel %vm3115_vm14, %v12186_v52, %v12156_v12  ;;  %v16338_v43 = vld [vmem:[#allocation54_spill] sm:$0xff]  ;;  %v12535_v2 = vpop.f32.mrf.mxu1  ;;  %v6867_v17 = vsel %vm3115_vm14, %v12204_v47, %v12186_v52  ;;  %v16345_v57 = vld [vmem:[#allocation132_spill] sm:$0xff]  ;;  %v16368_v52 = vld [vmem:[#allocation187_spill] sm:$0xff] }
 0x5ea   : > { %16326 = vst [vmem:[#allocation63_spill] sm:$0xff] %v12502_v54  ;;  %v12540_v34 = vmax.f32 %v5178_v35, %v16342_v40  ;;  %v16353_v47 = vld [vmem:[#allocation166_spill] sm:$0xff]  ;;  %vm16448_vm12 = vmmov %vm16346_vm0 }
 0x5eb   : > { %v12504_v23 = vld [vmem:[#allocation1] sm:$0xff]  ;;  %16330 = vst [vmem:[#allocation31_spill] sm:$0xff] %v12511_v62  ;;  %v16357_v40 = vld [vmem:[#allocation178_spill] sm:$0xff] }
 0x5ec   : > { %16327 = vst [vmem:[#allocation70_spill] sm:$0xff] %v12504_v23  ;;  %v16334_v23 = vld [vmem:[#allocation167_spill] sm:$0xff] }
 0x5ed   : > { %5919 = vst [vmem:[#allocation1] ss:$9 sm:$0xff] %v15975_v46  ;;  %v5807_v46 = vsel %vm9446_vm5, %v16337_v58, %v5724_v10  ;;  %v16344_v58 = vmax.f32 %v16234_v60, %v16233_v11  ;;  %v16365_v11 = vld [vmem:[#allocation172_spill] sm:$0xff]  ;;  %v16366_v60 = vperm.slane %v11940_v6, 0 }
 0x5ee   : > { %16332 = vst [vmem:[#allocation189_spill] sm:$0xff] %v12518_v48 }
 0x5ef   : > { %5920 = vst [vmem:[#allocation1 + $0x1] ss:$9 sm:$0xff] %v16336_v30  ;;  %v5165_v10 = vmax.f32 %v16344_v58, %v16343_v8  ;;  %v12560_v58 = vsel %vm9477_vm8, %v11894_v59, %v5807_v46  ;;  %v12562_v8 = vpop.f32.mrf.mxu2  ;;  %v5757_v30 = vshll.u32 %v16357_v40, 16  ;;  %v16374_v59 = vld [vmem:[#allocation28_spill] sm:$0xff]  ;;  %v12622_v6 = vpop.f32.mrf.mxu0 }
 0x5f0   : > { %5921 = vst [vmem:[#allocation1 + $0x2] ss:$9 sm:$0xff] %v16338_v43  ;;  %v5734_v43 = vsel %vm16346_vm0, %v5730_v21, %v5733_v29  ;;  %v12567_v29 = vpop.f32.mrf.mxu3  ;;  %v16361_v21 = vld [vmem:[#allocation59_spill] sm:$0xff] }
 0x5f1   : > { %16339 = vst [vmem:[#allocation84_spill] sm:$0xff] %v12535_v2  ;;  %v16349_v2 = vld [vmem:[#allocation12_spill] sm:$0xff]  ;;  %vm16362_vm1 = vcmp.lt.s32.totalorder %v16361_v21, 1  ;;  %v5808_v33 = vsel %vm9446_vm5, %v16366_v60, %v5734_v43  ;;  %v16372_v21 = vld [vmem:[#allocation134_spill] sm:$0xff]  ;;  %v16376_v43 = vmax.f32 %v16238_v26, %v16237_v44  ;;  %v12637_v16 = vpop.f32.mrf.mxu1 }
 0x5f2   : > { %5922 = vst [vmem:[#allocation1 + $0x3] ss:$9 sm:$0xff] %v16345_v57  ;;  %v5180_v35 = vmax.f32 %v5164_v31, %v16349_v2  ;;  %v12565_v57 = vmax.f32 %v5179_v42, %v16353_v47  ;;  %v12573_v31 = vsel %vm3107_vm13, %v12108_v5, %v6486_v13  ;;  %v12582_v42 = vsel %vm3107_vm13, %v12130_v37, %v6867_v17  ;;  %v16364_v13 = vld [vmem:[#allocation111_spill] sm:$0xff]  ;;  %v16367_v2 = vld [vmem:[#allocation21_spill] sm:$0xff]  ;;  %v16381_v60 = vld [vmem:[#allocation168_spill] sm:$0xff] }
 0x5f3   : > { %5923 = vst [vmem:[#allocation1 + $0x4] ss:$9 sm:$0xff] %v16350_v24  ;;  %v16356_v24 = vld [vmem:[#allocation95_spill] sm:$0xff]  ;;  %v12588_v54 = vsel %vm16362_vm1, %v12092_v39, %v12156_v12  ;;  %v5181_v5 = vmax.f32 %v5165_v10, %v16367_v2  ;;  %v16369_v17 = vmax.f32 %v16236_v61, %v16235_v36  ;;  %v16370_v47 = vld [vmem:[#allocation85_spill] sm:$0xff]  ;;  %v16375_v10 = vld [vmem:[#allocation188_spill] sm:$0xff] }
 0x5f4   : > { %16351 = vst [vmem:[#allocation43_spill] sm:$0xff] %v12560_v58  ;;  %v16371_v39 = vld [vmem:[#allocation181_spill] sm:$0xff]  ;;  %v5167_v36 = vmax.f32 %v16376_v43, %v16375_v10  ;;  %vm16468_vm1 = vmmov %vm16394_vm2 }
 0x5f5   : > { %16352 = vst [vmem:[#allocation190_spill] sm:$0xff] %v12562_v8  ;;  %v5166_v37 = vmax.f32 %v16369_v17, %v16368_v52  ;;  %v5761_v12 = vshll.u32 %v16371_v39, 16  ;;  %v5737_v8 = vshll.u32 %v16373_v0, 16  ;;  %v16377_v39 = vld [vmem:[#allocation33_spill] sm:$0xff]  ;;  %v16384_v17 = vld [vmem:[#allocation99_spill] sm:$0xff] }
 0x5f6   : > { %16354 = vst [vmem:[#allocation81_spill] sm:$0xff] %v12567_v29  ;;  %v5751_v52 = vshll.u32 %v16377_v39, 16  ;;  %v16378_v61 = vld [vmem:[#allocation197_spill] sm:$0xff]  ;;  %v16382_v29 = vld [vmem:[#allocation62_spill] sm:$0xff]  ;;  %v16385_v39 = vmax.f32 %v16252_v45, %v16251_v63 }
 0x5f7   : > { %16355 = vst [vmem:[#allocation54_spill] sm:$0xff] %v12573_v31  ;;  %v12620_v2 = vsel %vm9477_vm8, %v16378_v61, %v5808_v33  ;;  %v5182_v44 = vmax.f32 %v5166_v37, %v16382_v29  ;;  %v16383_v43 = vld [vmem:[#allocation173_spill] sm:$0xff]  ;;  %v5763_v26 = vrot.slane %v5761_v12, 1  ;;  %v5739_v61 = vrot.slane %v5737_v8, 1  ;;  %v16388_v37 = vld [vmem:[#allocation30_spill] sm:$0xff]  ;;  %v16389_v29 = vld [vmem:[#allocation19_spill] sm:$0xff] }
 0x5f8   : > { %5924 = vst [vmem:[#allocation1 + $0x5] ss:$9 sm:$0xff] %v16356_v24  ;;  %v5747_v24 = vshll.u32 %v16365_v11, 16  ;;  %v12627_v10 = vmax.f32 %v5181_v5, %v16383_v43  ;;  %v5183_v43 = vmax.f32 %v5167_v36, %v16389_v29  ;;  %v5753_v27 = vrot.slane %v5751_v52, 1  ;;  %v16390_v8 = vld [vmem:[#allocation128_spill] sm:$0xff]  ;;  %v12652_v5 = vpop.f32.mrf.mxu3 }
 0x5f9   : > { %16360 = vst [vmem:[#allocation132_spill] sm:$0xff] %v12582_v42  ;;  %v5771_v33 = vshll.u32 %v16390_v8, 16  ;;  %v16396_v52 = vmax.f32 %v16265_v25, %v16264_v7 }
 0x5fa   : > { %16363 = vst [vmem:[#allocation98_spill] sm:$0xff] %v12588_v54  ;;  %v5749_v46 = vrot.slane %v5747_v24, 1  ;;  %v5745_v54 = vshrl.u32 %v16365_v11, 16  ;;  %v12646_v11 = vpop.f32.mrf.mxu2 }
 0x5fb   : > { %5925 = vst [vmem:[#allocation1 + $0x6] ss:$9 sm:$0xff] %v16364_v13  ;;  %v12604_v13 = vmax.f32 %v5180_v35, %v16372_v21  ;;  %v5759_v35 = vrot.slane %v5757_v30, 1  ;;  %v5741_v21 = vshll.u32 %v16381_v60, 16  ;;  %v5168_v30 = vmax.f32 %v16385_v39, %v16384_v17  ;;  %v16386_v60 = vld [vmem:[#allocation185_spill] sm:$0xff]  ;;  %v16392_v17 = vld [vmem:[#allocation20_spill] sm:$0xff] }
 0x5fc   : > { %5926 = vst [vmem:[#allocation1 + $0x7] ss:$9 sm:$0xff] %v16370_v47  ;;  %v5755_v47 = vshrl.u32 %v16357_v40, 16  ;;  %v5767_v24 = vshll.u32 %v16386_v60, 16  ;;  %v5735_v39 = vshrl.u32 %v16373_v0, 16  ;;  %v5750_v31 = vor.u32 %v5749_v46, %v5745_v54  ;;  %v16395_v0 = vld [vmem:[#allocation42_spill] sm:$0xff] }
 0x5fd   : > { %16379 = vst [vmem:[#allocation95_spill] sm:$0xff] %v12620_v2  ;;  %v5743_v40 = vrot.slane %v5741_v21, 1  ;;  %v5184_v45 = vmax.f32 %v5168_v30, %v16392_v17  ;;  %v5169_v21 = vmax.f32 %v16396_v52, %v16395_v0  ;;  %v16398_v54 = vmax.f32 %v16289_v49, %v16288_v18  ;;  %v16399_v30 = vld [vmem:[#allocation114_spill] sm:$0xff]  ;;  %v16400_v17 = vld [vmem:[#allocation195_spill] sm:$0xff]  ;;  %v16403_v18 = vld [vmem:[#allocation176_spill] sm:$0xff] }
 0x5fe   : > { %16380 = vst [vmem:[#allocation178_spill] sm:$0xff] %v12622_v6  ;;  %v5760_v63 = vor.u32 %v5759_v35, %v5755_v47  ;;  %v16397_v47 = vld [vmem:[#allocation196_spill] sm:$0xff]  ;;  %v5740_v35 = vor.u32 %v5739_v61, %v5735_v39  ;;  %v5769_v8 = vrot.slane %v5767_v24, 1  ;;  %v5754_v52 = vsel %vm16402_vm3, %v5750_v31, %v5753_v27  ;;  %v16406_v39 = vld [vmem:[#allocation211_spill] sm:$0xff]  ;;  %v16407_v24 = vld [vmem:[#allocation45_spill] sm:$0xff] }
 0x5ff   : > { %16387 = vst [vmem:[#allocation111_spill] sm:$0xff] %v12637_v16  ;;  %v16393_v16 = vld [vmem:[#allocation27_spill] sm:$0xff]  ;;  %v5170_v46 = vmax.f32 %v16398_v54, %v16397_v47  ;;  %v12674_v54 = vmax.f32 %v5183_v43, %v16403_v18  ;;  %v5773_v47 = vrot.slane %v5771_v33, 1  ;;  %v16508_v6 = vld [vmem:[#allocation184_spill] sm:$0xff] }
 0x600   : > { %16391 = vst [vmem:[#allocation172_spill] sm:$0xff] %v12646_v11  ;;  %v12650_v41 = vmax.f32 %v5182_v44, %v16393_v16  ;;  %v5764_v36 = vsel %vm16394_vm2, %v5760_v63, %v5763_v26  ;;  %v5787_v44 = vshll.u32 %v11968_v53, 16  ;;  %v16401_v63 = vld [vmem:[#allocation56_spill] sm:$0xff]  ;;  %v5744_v61 = vsel %vm16405_vm6, %v5740_v35, %v5743_v40  ;;  %v16408_v26 = vld [vmem:[#allocation215_spill] sm:$0xff]  ;;  %v16413_v40 = vld [vmem:[#allocation198_spill] sm:$0xff] }
 0x601   : > { %16404 = vst [vmem:[#allocation85_spill] sm:$0xff] %v12674_v54  ;;  %v16409_v42 = vperm.slane %v16408_v26, 0  ;;  %v16410_v31 = vld [vmem:[#allocation127_spill] sm:$0xff]  ;;  %v5186_v35 = vmax.f32 %v5170_v46, %v16413_v40  ;;  %v16422_v46 = vld [vmem:[#allocation205_spill] sm:$0xff] }
 0x602   : > { %v16412_v0 = vld [vmem:[#allocation71_spill] sm:$0xff]  ;;  %v5789_v33 = vrot.slane %v5787_v44, 1  ;;  %v16424_v44 = vld [vmem:[#allocation213_spill] sm:$0xff] }
 0x603   : > { %v12643_v12 = vld [vmem:[#allocation1] sm:$0xff]  ;;  %v5811_v27 = vsel %vm9446_vm5, %v16409_v42, %v5764_v36  ;;  %v5185_v49 = vmax.f32 %v5169_v21, %v16412_v0  ;;  %v12696_v36 = vpop.f32.mrf.mxu1 }
 0x604   : > { %5928 = vst [vmem:[#allocation1] ss:$9 sm:$0xff] %v15996_v55  ;;  %v5765_v55 = vshrl.u32 %v16386_v60, 16  ;;  %v16417_v60 = vld [vmem:[#allocation115_spill] sm:$0xff] }
 0x605   : > { %5929 = vst [vmem:[#allocation1 + $0x1] ss:$9 sm:$0xff] %v16399_v30  ;;  %v5791_v30 = vshll.u32 %v16406_v39, 16  ;;  %v16414_v39 = vld [vmem:[#allocation118_spill] sm:$0xff]  ;;  %v16418_v26 = vld [vmem:[#allocation83_spill] sm:$0xff] }
 0x606   : > { %5930 = vst [vmem:[#allocation1 + $0x2] ss:$9 sm:$0xff] %v16401_v63  ;;  %v16411_v63 = vld [vmem:[#allocation35_spill] sm:$0xff]  ;;  %v12690_v7 = vmax.f32 %v5184_v45, %v16414_v39  ;;  %v5777_v25 = vshll.u32 %v16418_v26, 16  ;;  %v5770_v42 = vor.u32 %v5769_v8, %v5765_v55  ;;  %v16423_v45 = vperm.slane %v16422_v46, 0  ;;  %v16426_v8 = vld [vmem:[#allocation204_spill] sm:$0xff] }
 0x607   : > { %5931 = vst [vmem:[#allocation1 + $0x3] ss:$9 sm:$0xff] %v16407_v24  ;;  %v12692_v24 = vpop.f32.mrf.mxu0  ;;  %v16421_v43 = vld [vmem:[#allocation131_spill] sm:$0xff]  ;;  %v5793_v46 = vrot.slane %v5791_v30, 1 }
 0x608   : > { %5932 = vst [vmem:[#allocation1 + $0x4] ss:$9 sm:$0xff] %v16410_v31  ;;  %v16419_v31 = vld [vmem:[#allocation203_spill] sm:$0xff]  ;;  %v12707_v40 = vsel %vm9446_vm5, %v16423_v45, %v5754_v52  ;;  %v16430_v52 = vld [vmem:[#allocation22_spill] sm:$0xff] }
 0x609   : > { %16415 = vst [vmem:[#allocation181_spill] sm:$0xff] %v12690_v7  ;;  %v16420_v18 = vperm.slane %v16419_v31, 0  ;;  %v16427_v55 = vld [vmem:[#allocation171_spill] sm:$0xff]  ;;  %v16431_v45 = vld [vmem:[#allocation106_spill] sm:$0xff] }
 0x60a   : > { %16416 = vst [vmem:[#allocation165_spill] sm:$0xff] %v12692_v24  ;;  %v16428_v31 = vmax.f32 %v16291_v20, %v16427_v55  ;;  %v5781_v39 = vshll.u32 %v16431_v45, 16  ;;  %v16434_v16 = vld [vmem:[#allocation183_spill] sm:$0xff]  ;;  %v16440_v45 = vld [vmem:[#allocation104_spill] sm:$0xff] }
 0x60b   : > { %5933 = vst [vmem:[#allocation1 + $0x5] ss:$9 sm:$0xff] %v16417_v60  ;;  %v5809_v21 = vsel %vm9446_vm5, %v16420_v18, %v5744_v61  ;;  %v12712_v60 = vsel %vm9477_vm8, %v16424_v44, %v5811_v27  ;;  %v16429_v18 = vmax.f32 %v12540_v34, %v16374_v59  ;;  %v5774_v27 = vsel %vm16432_vm15, %v5770_v42, %v5773_v47  ;;  %v16438_v34 = vld [vmem:[#allocation201_spill] sm:$0xff] }
 0x60c   : > { %5934 = vst [vmem:[#allocation1 + $0x6] ss:$9 sm:$0xff] %v16421_v43  ;;  %v5171_v0 = vmax.f32 %v16428_v31, %v16426_v8  ;;  %v5785_v43 = vshrl.u32 %v11968_v53, 16  ;;  %v12729_v55 = vmax.f32 %v5185_v49, %v16434_v16  ;;  %v16436_v31 = vld [vmem:[#allocation200_spill] sm:$0xff]  ;;  %v12737_v53 = vsel %vm9477_vm8, %v16438_v34, %v5809_v21  ;;  %v12753_v21 = vpop.f32.mrf.mxu3  ;;  %v16446_v34 = vld [vmem:[#allocation207_spill] sm:$0xff]  ;;  %v12817_v16 = vpop.f32.mrf.mxu1 }
 0x60d   : > { %16425 = vst [vmem:[#allocation28_spill] sm:$0xff] %v12712_v60  ;;  %v5226_v61 = vmax.f32 %v16429_v18, %v12652_v5  ;;  %v12732_v8 = vmax.f32 %v5186_v35, %v16436_v31  ;;  %v5779_v18 = vrot.slane %v5777_v25, 1  ;;  %v16441_v47 = vmax.f32 %v16305_v19, %v16304_v1  ;;  %v16450_v31 = vld [vmem:[#allocation218_spill] sm:$0xff] }
 0x60e   : > { %5935 = vst [vmem:[#allocation1 + $0x7] ss:$9 sm:$0xff] %v16430_v52  ;;  %v5790_v30 = vor.u32 %v5789_v33, %v5785_v43  ;;  %v12739_v52 = vpop.f32.mrf.mxu2  ;;  %v16442_v49 = vsel %vm9477_vm8, %v16322_v51, %v12450_v38  ;;  %v16444_v33 = vld [vmem:[#allocation37_spill] sm:$0xff]  ;;  %v5187_v20 = vmax.f32 %v5171_v0, %v16446_v34  ;;  %v6228_v38 = vsel %vm3111_vm11, %v12712_v60, %v12518_v48 }
 0x60f   : > { %16435 = vst [vmem:[#allocation33_spill] sm:$0xff] %v12729_v55  ;;  %v5172_v42 = vmax.f32 %v16441_v47, %v16440_v45  ;;  %v6227_v29 = vsel %vm3110_vm9, %v12712_v60, %v16442_v49  ;;  %v16445_v25 = vperm.slane %v16444_v33, 0  ;;  %v5242_v47 = vmax.f32 %v5226_v61, %v12696_v36  ;;  %v16447_v45 = vld [vmem:[#allocation93_spill] sm:$0xff]  ;;  %v16455_v33 = vld [vmem:[#allocation36_spill] sm:$0xff] }
 0x610   : > { %16437 = vst [vmem:[#allocation197_spill] sm:$0xff] %v12732_v8  ;;  %v5794_v51 = vsel %vm16448_vm12, %v5790_v30, %v5793_v46  ;;  %v5775_v49 = vshrl.u32 %v16418_v26, 16  ;;  %v5783_v1 = vrot.slane %v5781_v39, 1  ;;  %v12776_v61 = vsel %vm3102_vm10, %v12518_v48, %v6227_v29  ;;  %v16453_v39 = vld [vmem:[#allocation116_spill] sm:$0xff]  ;;  %v16512_v8 = vld [vmem:[#allocation25_spill] sm:$0xff] }
 0x611   : > { %16439 = vst [vmem:[#allocation168_spill] sm:$0xff] %v12737_v53  ;;  %v5812_v43 = vsel %vm9446_vm5, %v16445_v25, %v5774_v27  ;;  %v16451_v27 = vmax.f32 %v16321_v15, %v16320_v22  ;;  %v16452_v46 = vmax.f32 %v12565_v57, %v16388_v37  ;;  %vm16454_vm7 = vcmp.gt.s32.totalorder %v16453_v39, 14  ;;  %v16459_v57 = vld [vmem:[#allocation222_spill] sm:$0xff] }
 0x612   : > { %v6229_v26 = vsel %vm16454_vm7, %v12712_v60, %v12560_v58  ;;  %v5780_v25 = vor.u32 %v5779_v18, %v5775_v49  ;;  %vm16458_vm0 = vcmp.lt.s32.totalorder %v16447_v45, 1  ;;  %vm16469_vm2 = vcmp.lt.s32.totalorder %v16453_v39, 1  ;;  %v16471_v49 = vld [vmem:[#allocation119_spill] sm:$0xff]  ;;  %v16475_v18 = vld [vmem:[#allocation129_spill] sm:$0xff]  ;;  %vm16483_vm3 = vmmov %vm16454_vm7 }
 0x613   : > { %v5173_v0 = vmax.f32 %v16451_v27, %v16450_v31  ;;  %v5227_v30 = vmax.f32 %v16452_v46, %v12753_v21  ;;  %v12789_v27 = vsel %vm9477_vm8, %v16455_v33, %v5812_v43  ;;  %v16457_v31 = vld [vmem:[#allocation122_spill] sm:$0xff]  ;;  %v12795_v29 = vsel %vm16458_vm0, %v12518_v48, %v6228_v38  ;;  %v16464_v43 = vld [vmem:[#allocation212_spill] sm:$0xff]  ;;  %vm16493_vm6 = vmmov %vm16458_vm0 }
 0x614   : > { %16456 = vst [vmem:[#allocation185_spill] sm:$0xff] %v12789_v27  ;;  %v5188_v22 = vmax.f32 %v5172_v42, %v16457_v31  ;;  %v16460_v46 = vperm.slane %v16459_v57, 0  ;;  %v12808_v33 = vmax.f32 %v5187_v20, %v16464_v43  ;;  %v12810_v42 = vpop.f32.mrf.mxu0  ;;  %v12813_v31 = vmax.f32 %v5242_v47, %v12739_v52  ;;  %v16467_v38 = vld [vmem:[#allocation88_spill] sm:$0xff]  ;;  %v16472_v43 = vld [vmem:[#allocation49_spill] sm:$0xff]  ;;  %vm16498_vm15 = vmmov %vm16469_vm2 }
 0x615   : > { %v12803_v34 = vld [vmem:[#allocation1] sm:$0xff]  ;;  %16466 = vst [vmem:[#allocation195_spill] sm:$0xff] %v12810_v42  ;;  %v5784_v57 = vsel %vm16468_vm1, %v5780_v25, %v5783_v1  ;;  %v12824_v20 = vsel %vm16469_vm2, %v12518_v48, %v6229_v26  ;;  %v5189_v47 = vmax.f32 %v5173_v0, %v16472_v43  ;;  %v6608_v1 = vsel %vm3110_vm9, %v12789_v27, %v12518_v48  ;;  %v16474_v26 = vld [vmem:[#allocation76_spill] sm:$0xff]  ;;  %v16477_v43 = vld [vmem:[#allocation90_spill] sm:$0xff] }
 0x616   : > { %v12801_v15 = vsel %vm9446_vm5, %v16460_v46, %v5794_v51  ;;  %16462 = vst [vmem:[#allocation128_spill] sm:$0xff] %v12803_v34  ;;  %v5243_v25 = vmax.f32 %v5227_v30, %v12817_v16  ;;  %v16476_v0 = vmax.f32 %v16334_v23, %v16333_v3  ;;  %v12844_v55 = vmax.f32 %v5188_v22, %v16477_v43  ;;  %v16479_v30 = vld [vmem:[#allocation140_spill] sm:$0xff]  ;;  %v16482_v51 = vld [vmem:[#allocation141_spill] sm:$0xff]  ;;  %v12860_v19 = vpop.f32.mrf.mxu2  ;;  %v16666_v34 = vld [vmem:[#allocation159_spill] sm:$0xff] }
 0x617   : > { %16461 = vst [vmem:[#allocation30_spill] sm:$0xff] %v12801_v15  ;;  %v16486_v22 = vmax.f32 %v16341_v14, %v16340_v9  ;;  %v16487_v15 = vld [vmem:[#allocation15_spill] sm:$0xff]  ;;  %v16490_v3 = vld [vmem:[#allocation221_spill] sm:$0xff]  ;;  %v16518_v39 = vld [vmem:[#allocation120_spill] sm:$0xff] }
 0x618   : > { %16465 = vst [vmem:[#allocation114_spill] sm:$0xff] %v12808_v33  ;;  %v12881_v46 = vmax.f32 %v5189_v47, %v16487_v15  ;;  %v16495_v47 = vld [vmem:[#allocation208_spill] sm:$0xff]  ;;  %v16507_v15 = vld [vmem:[#allocation97_spill] sm:$0xff] }
 0x619   : > { %5937 = vst [vmem:[#allocation1] ss:$9 sm:$0xff] %v16467_v38  ;;  %v16480_v38 = vld [vmem:[#allocation219_spill] sm:$0xff]  ;;  %v16509_v33 = vmax.f32 %v16507_v15, %v16508_v6  ;;  %v16520_v15 = vld [vmem:[#allocation96_spill] sm:$0xff] }
 0x61a   : > { %16470 = vst [vmem:[#allocation56_spill] sm:$0xff] %v12824_v20  ;;  %v16481_v7 = vperm.slane %v16480_v38, 0 }
 0x61b   : > { %5938 = vst [vmem:[#allocation1 + $0x1] ss:$9 sm:$0xff] %v16471_v49  ;;  %v5174_v49 = vmax.f32 %v16476_v0, %v16475_v18  ;;  %v6609_v0 = vsel %vm3111_vm11, %v12789_v27, %v12560_v58  ;;  %v16489_v18 = vld [vmem:[#allocation101_spill] sm:$0xff] }
 0x61c   : > { %5939 = vst [vmem:[#allocation1 + $0x2] ss:$9 sm:$0xff] %v16474_v26  ;;  %v5813_v44 = vsel %vm9446_vm5, %v16481_v7, %v5784_v57  ;;  %v6052_v26 = vsub.f32 %v16216_v28, %v12813_v31  ;;  %v6179_v7 = vsub.f32 %v16215_v50, %v12813_v31  ;;  %v12869_v28 = vsel %vm3102_vm10, %v12560_v58, %v6608_v1  ;;  %v16497_v1 = vld [vmem:[#allocation32_spill] sm:$0xff]  ;;  %v12922_v14 = vpop.f32.mrf.mxu0 }
 0x61d   : > { %16478 = vst [vmem:[#allocation211_spill] sm:$0xff] %v12844_v55  ;;  %v6610_v57 = vsel %vm16483_vm3, %v12789_v27, %v12620_v2  ;;  %v12884_v50 = vmax.f32 %v5243_v25, %v12860_v19  ;;  %v12891_v23 = vsel %vm9477_vm8, %v16490_v3, %v5813_v44  ;;  %v12903_v25 = vsel %vm9477_vm8, %v16495_v47, %v12707_v40 }
 0x61e   : > { %5940 = vst [vmem:[#allocation1 + $0x3] ss:$9 sm:$0xff] %v16479_v30  ;;  %v16484_v30 = vld [vmem:[#allocation100_spill] sm:$0xff]  ;;  %v6068_v3 = vmul.f32 1.442695, %v6052_v26 }
 0x61f   : > { %5941 = vst [vmem:[#allocation1 + $0x4] ss:$9 sm:$0xff] %v16482_v51  ;;  %v16485_v51 = vld [vmem:[#allocation230_spill] sm:$0xff]  ;;  %v6180_v20 = vsub.f32 %v16512_v8, %v12884_v50  ;;  %v16515_v8 = vmax.f32 %v12604_v13, %v16400_v17  ;;  %v16526_v13 = vld [vmem:[#allocation161_spill] sm:$0xff] }
 0x620   : > { %5942 = vst [vmem:[#allocation1 + $0x5] ss:$9 sm:$0xff] %v16484_v30  ;;  %v5175_v38 = vmax.f32 %v16486_v22, %v16485_v51  ;;  %v16492_v30 = vld [vmem:[#allocation41_spill] sm:$0xff]  ;;  %v12897_v22 = vsel %vm16493_vm6, %v12560_v58, %v6609_v0  ;;  %v6195_v0 = vmul.f32 1.442695, %v6179_v7  ;;  %7877 = vpow2.f32 %v6068_v3 }
 0x621   : > { %16488 = vst [vmem:[#allocation45_spill] sm:$0xff] %v12881_v46  ;;  %v5190_v43 = vmax.f32 %v5174_v49, %v16492_v30  ;;  %v12912_v49 = vsel %vm16498_vm15, %v12560_v58, %v6610_v57  ;;  %v16500_v51 = vld [vmem:[#allocation177_spill] sm:$0xff]  ;;  %v6989_v57 = vsel %vm3110_vm9, %v12891_v23, %v12560_v58  ;;  %v16506_v30 = vld [vmem:[#allocation67_spill] sm:$0xff]  ;;  %v6197_v55 = vmul.f32 1.442695, %v6180_v20  ;;  %v16529_v20 = vld [vmem:[#allocation180_spill] sm:$0xff] }
 0x622   : > { %5943 = vst [vmem:[#allocation1 + $0x6] ss:$9 sm:$0xff] %v16489_v18  ;;  %v6306_v9 = vsub.f32 %v16500_v51, %v12813_v31  ;;  %v16503_v18 = vld [vmem:[#allocation69_spill] sm:$0xff]  ;;  %v12930_v51 = vpop.f32.mrf.mxu3  ;;  %v5176_v62 = vmax.f32 %v16509_v33, %v16506_v30  ;;  %7879 = vpow2.f32 %v6195_v0  ;;  %v16537_v46 = vld [vmem:[#allocation190_spill] sm:$0xff] }
 0x623   : > { %16491 = vst [vmem:[#allocation215_spill] sm:$0xff] %v12891_v23  ;;  %v5191_v26 = vmax.f32 %v5175_v38, %v16503_v18  ;;  %v16505_v7 = vld [vmem:[#allocation61_spill] sm:$0xff]  ;;  %v16510_v38 = vld [vmem:[#allocation58_spill] sm:$0xff] }
 0x624   : > { %16494 = vst [vmem:[#allocation127_spill] sm:$0xff] %v12897_v22  ;;  %v6053_v44 = vsub.f32 %v16505_v7, %v12884_v50  ;;  %v12938_v18 = vmax.f32 %v5190_v43, %v16510_v38  ;;  %v6322_v33 = vmul.f32 1.442695, %v6306_v9  ;;  %v12954_v43 = vsel %vm3102_vm10, %v12620_v2, %v6989_v57  ;;  %v16516_v3 = vld [vmem:[#allocation81_spill] sm:$0xff]  ;;  %v16517_v23 = vld [vmem:[#allocation174_spill] sm:$0xff]  ;;  %v16522_v9 = vld [vmem:[#allocation123_spill] sm:$0xff] }
 0x625   : > { %16496 = vst [vmem:[#allocation35_spill] sm:$0xff] %v12903_v25  ;;  %v5228_v7 = vmax.f32 %v16515_v8, %v12930_v51  ;;  %v16519_v30 = vmax.f32 %v16517_v23, %v16518_v39  ;;  %vm16523_vm0 = vcmp.gt.s32.totalorder %v16522_v9, 14  ;;  %v6433_v8 = vsub.f32 %v16526_v13, %v12813_v31  ;;  %v16533_v23 = vld [vmem:[#allocation111_spill] sm:$0xff]  ;;  %v16558_v22 = vld [vmem:[#allocation13_spill] sm:$0xff] }
 0x626   : > { %5944 = vst [vmem:[#allocation1 + $0x7] ss:$9 sm:$0xff] %v16497_v1  ;;  %v16501_v1 = vld [vmem:[#allocation34_spill] sm:$0xff]  ;;  %v6070_v0 = vmul.f32 1.442695, %v6053_v44  ;;  %v6231_v57 = vsel %vm16523_vm0, %v12712_v60, %v12737_v53  ;;  %7881 = vpow2.f32 %v6322_v33  ;;  %v6307_v13 = vsub.f32 %v16529_v20, %v12884_v50  ;;  %v12994_v44 = vpop.eup %7877  ;;  %v16535_v20 = vld [vmem:[#allocation143_spill] sm:$0xff]  ;;  %vm16572_vm15 = vmmov %vm16523_vm0 }
 0x627   : > { %16499 = vst [vmem:[#allocation115_spill] sm:$0xff] %v12912_v49  ;;  %vm16502_vm12 = vcmp.gt.s32.totalorder %v16501_v1, 14  ;;  %vm16513_vm7 = vcmp.lt.s32.totalorder %v16501_v1, 1  ;;  %v5177_v6 = vmax.f32 %v16519_v30, %v16516_v3  ;;  %v16527_v30 = vld [vmem:[#allocation26_spill] sm:$0xff]  ;;  %vm16530_vm1 = vcmp.lt.s32.totalorder %v16522_v9, 1  ;;  %v16552_v1 = vld [vmem:[#allocation40_spill] sm:$0xff] }
 0x628   : > { %v6230_v47 = vsel %vm16502_vm12, %v12712_v60, %v12620_v2  ;;  %16504 = vst [vmem:[#allocation83_spill] sm:$0xff] %v12922_v14  ;;  %v16525_v2 = vld [vmem:[#allocation84_spill] sm:$0xff]  ;;  %v16532_v3 = vld [vmem:[#allocation142_spill] sm:$0xff]  ;;  %7883 = vpow2.f32 %v6070_v0  ;;  %vm16534_vm2 = vmmov %vm16502_vm12 }
 0x629   : > { %16511 = vst [vmem:[#allocation203_spill] sm:$0xff] %v12938_v18  ;;  %v12949_v40 = vsel %vm16513_vm7, %v12518_v48, %v6230_v47  ;;  %v12965_v47 = vmax.f32 %v5191_v26, %v16520_v15  ;;  %v5192_v24 = vmax.f32 %v5176_v62, %v16525_v2  ;;  %v12978_v26 = vpop.f32.mrf.mxu1  ;;  %v16528_v62 = vld [vmem:[#allocation91_spill] sm:$0xff]  ;;  %v5193_v2 = vmax.f32 %v5177_v6, %v16533_v23  ;;  %v16536_v15 = vld [vmem:[#allocation108_spill] sm:$0xff]  ;;  %vm16546_vm3 = vmmov %vm16513_vm7 }
 0x62a   : > { %16514 = vst [vmem:[#allocation131_spill] sm:$0xff] %v12949_v40  ;;  %v5244_v39 = vmax.f32 %v5228_v7, %v12978_v26  ;;  %v6611_v33 = vsel %vm16534_vm2, %v12789_v27, %v12737_v53  ;;  %v13003_v7 = vpop.eup %7879  ;;  %v6560_v42 = vsub.f32 %v16536_v15, %v12813_v31  ;;  %7885 = vpow2.f32 %v6197_v55  ;;  %v16539_v6 = vld [vmem:[#allocation79_spill] sm:$0xff]  ;;  %v16540_v0 = vld [vmem:[#allocation224_spill] sm:$0xff]  ;;  %v13016_v53 = vpop.f32.mrf.mxu2  ;;  %v16548_v14 = vld [vmem:[#allocation117_spill] sm:$0xff] }
 0x62b   : > { %16521 = vst [vmem:[#allocation205_spill] sm:$0xff] %v12965_v47  ;;  %v6242_v18 = vadd.f32 %v13003_v7, %v12994_v44  ;;  %v16551_v55 = vld [vmem:[#allocation60_spill] sm:$0xff]  ;;  %v13060_v54 = vpop.f32.mrf.mxu3  ;;  %vm16585_vm12 = vmmov %vm16530_vm1  ;;  %v16601_v9 = vld [vmem:[#allocation134_spill] sm:$0xff] }
 0x62c   : > { %v13033_v40 = vmax.f32 %v5244_v39, %v13016_v53  ;;  %v13049_v39 = vpop.eup %7881  ;;  %v6576_v49 = vmul.f32 1.442695, %v6560_v42  ;;  %v16557_v42 = vld [vmem:[#allocation94_spill] sm:$0xff] }
 0x62d   : > { %v12971_v38 = vld [vmem:[#allocation1] sm:$0xff]  ;;  %16550 = vst [vmem:[#allocation222_spill] sm:$0xff] %v13049_v39 }
 0x62e   : > { %16524 = vst [vmem:[#allocation213_spill] sm:$0xff] %v12971_v38  ;;  %v6054_v45 = vsub.f32 %v16558_v22, %v13033_v40  ;;  %v16561_v22 = vld [vmem:[#allocation105_spill] sm:$0xff] }
 0x62f   : > { %5946 = vst [vmem:[#allocation1] ss:$9 sm:$0xff] %v16527_v30  ;;  %v12992_v30 = vsel %vm16530_vm1, %v12518_v48, %v6231_v57  ;;  %v6449_v57 = vmul.f32 1.442695, %v6433_v8  ;;  %v13020_v8 = vpop.f32.mrf.mxu0 }
 0x630   : > { %5947 = vst [vmem:[#allocation1 + $0x1] ss:$9 sm:$0xff] %v16528_v62  ;;  %v16541_v62 = vld [vmem:[#allocation191_spill] sm:$0xff] }
 0x631   : > { %16531 = vst [vmem:[#allocation22_spill] sm:$0xff] %v12992_v30  ;;  %v5992_v23 = vsel %vm9446_vm5, %v16541_v62, %v16540_v0  ;;  %v16545_v62 = vld [vmem:[#allocation57_spill] sm:$0xff]  ;;  %7887 = vpow2.f32 %v6449_v57 }
 0x632   : > { %5948 = vst [vmem:[#allocation1 + $0x2] ss:$9 sm:$0xff] %v16532_v3  ;;  %v13009_v3 = vmax.f32 %v5192_v24, %v16537_v46  ;;  %v13026_v24 = vsel %vm3115_vm14, %v12712_v60, %v12903_v25  ;;  %v6324_v46 = vmul.f32 1.442695, %v6307_v13  ;;  %v6434_v0 = vsub.f32 %v16545_v62, %v12884_v50  ;;  %v16554_v62 = vld [vmem:[#allocation166_spill] sm:$0xff]  ;;  %v16556_v57 = vld [vmem:[#allocation229_spill] sm:$0xff] }
 0x633   : > { %5949 = vst [vmem:[#allocation1 + $0x3] ss:$9 sm:$0xff] %v16535_v20  ;;  %v13038_v20 = vsel %vm16546_vm3, %v12560_v58, %v6611_v33  ;;  %v13046_v13 = vmax.f32 %v5193_v2, %v12646_v11  ;;  %v16553_v33 = vperm.slane %v16552_v1, 0  ;;  %v13062_v2 = vpop.eup %7883  ;;  %v6561_v11 = vsub.f32 %v16554_v62, %v12884_v50 }
 0x634   : > { %16538 = vst [vmem:[#allocation106_spill] sm:$0xff] %v13009_v3  ;;  %7889 = vpow2.f32 %v6324_v46  ;;  %v6369_v62 = vadd.f32 %v13049_v39, %v6242_v18  ;;  %v16560_v60 = vmax.f32 %v12627_v10, %v11998_v32  ;;  %v16563_v10 = vld [vmem:[#allocation226_spill] sm:$0xff]  ;;  %v16571_v39 = vld [vmem:[#allocation144_spill] sm:$0xff] }
 0x635   : > { %5950 = vst [vmem:[#allocation1 + $0x4] ss:$9 sm:$0xff] %v16539_v6  ;;  %v16544_v6 = vld [vmem:[#allocation53_spill] sm:$0xff]  ;;  %7891 = vpow2.f32 %v6576_v49  ;;  %v16675_v15 = vld [vmem:[#allocation222_spill] sm:$0xff] }
 0x636   : > { %16542 = vst [vmem:[#allocation201_spill] sm:$0xff] %v13020_v8  ;;  %v5229_v30 = vmax.f32 %v16560_v60, %v13060_v54  ;;  %v16564_v60 = vld [vmem:[#allocation39_spill] sm:$0xff] }
 0x637   : > { %5951 = vst [vmem:[#allocation1 + $0x5] ss:$9 sm:$0xff] %v16544_v6  ;;  %v6687_v6 = vsub.f32 %v16374_v59, %v12813_v31  ;;  %v6814_v59 = vsub.f32 %v12652_v5, %v12813_v31  ;;  %v5993_v5 = vsel %vm9446_vm5, %v16557_v42, %v16556_v57  ;;  %v16562_v57 = vperm.slane %v16561_v22, 0  ;;  %v16565_v42 = vld [vmem:[#allocation59_spill] sm:$0xff]  ;;  %v13113_v8 = vpop.f32.mrf.mxu0 }
 0x638   : > { %16547 = vst [vmem:[#allocation37_spill] sm:$0xff] %v13038_v20  ;;  %vm16566_vm6 = vcmp.lt.s32.totalorder %v16565_v42, 1  ;;  %v6072_v22 = vmul.f32 1.442695, %v6054_v45  ;;  %v16573_v45 = vld [vmem:[#allocation14_spill] sm:$0xff] }
 0x639   : > { %5952 = vst [vmem:[#allocation1 + $0x6] ss:$9 sm:$0xff] %v16548_v14  ;;  %v13056_v14 = vsel %vm9477_vm8, %v16553_v33, %v5992_v23  ;;  %v13069_v23 = vpop.eup %7885  ;;  %v6451_v33 = vmul.f32 1.442695, %v6434_v0  ;;  %v6703_v35 = vmul.f32 1.442695, %v6687_v6  ;;  %v6941_v0 = vsub.f32 %v12696_v36, %v12813_v31  ;;  %vm16599_vm7 = vmmov %vm16566_vm6 }
 0x63a   : > { %16549 = vst [vmem:[#allocation36_spill] sm:$0xff] %v13046_v13  ;;  %v6830_v46 = vmul.f32 1.442695, %v6814_v59  ;;  %v13092_v18 = vsel %vm9477_vm8, %v16562_v57, %v5993_v5  ;;  %v6243_v6 = vadd.f32 %v13069_v23, %v13062_v2  ;;  %v13100_v20 = vsel %vm16566_vm6, %v16564_v60, %v16563_v10  ;;  %v13102_v49 = vpop.eup %7887  ;;  %v13104_v59 = vpop.f32.mrf.mxu1  ;;  %v16602_v42 = vld [vmem:[#allocation194_spill] sm:$0xff]  ;;  %v16654_v13 = vld [vmem:[#allocation109_spill] sm:$0xff] }
 0x63b   : > { %5953 = vst [vmem:[#allocation1 + $0x7] ss:$9 sm:$0xff] %v16551_v55  ;;  %v16559_v55 = vld [vmem:[#allocation23_spill] sm:$0xff]  ;;  %v7068_v36 = vsub.f32 %v12739_v52, %v12813_v31  ;;  %7893 = vpow2.f32 %v6451_v33  ;;  %v6688_v5 = vsub.f32 %v16388_v37, %v12884_v50  ;;  %v5245_v10 = vmax.f32 %v5229_v30, %v13104_v59  ;;  %v13116_v47 = vpop.eup %7889  ;;  %v16575_v33 = vld [vmem:[#allocation193_spill] sm:$0xff] }
 0x63c   : > { %v6181_v1 = vsub.f32 %v16559_v55, %v13033_v40  ;;  %v6578_v55 = vmul.f32 1.442695, %v6561_v11  ;;  %16567 = vst [vmem:[#allocation88_spill] sm:$0xff] %v13100_v20  ;;  %v6496_v11 = vadd.f32 %v13102_v49, %v6369_v62  ;;  %7895 = vpow2.f32 %v6703_v35  ;;  %v16574_v35 = vld [vmem:[#allocation70_spill] sm:$0xff]  ;;  %v16580_v20 = vld [vmem:[#allocation192_spill] sm:$0xff] }
 0x63d   : > { %16568 = vst [vmem:[#allocation119_spill] sm:$0xff] %v13104_v59  ;;  %7897 = vpow2.f32 %v6830_v46  ;;  %v6957_v31 = vmul.f32 1.442695, %v6941_v0  ;;  %v6612_v37 = vsel %vm16572_vm15, %v12789_v27, %v12903_v25  ;;  %v5994_v30 = vsel %vm9446_vm5, %v16575_v33, %v16574_v35  ;;  %v7892_v46 = vpop.eup %7891  ;;  %v16577_v0 = vld [vmem:[#allocation145_spill] sm:$0xff]  ;;  %v13133_v59 = vpop.f32.mrf.mxu2  ;;  %v16578_v35 = vld [vmem:[#allocation146_spill] sm:$0xff] }
 0x63e   : > { %16569 = vst [vmem:[#allocation76_spill] sm:$0xff] %v13113_v8  ;;  %v6199_v60 = vmul.f32 1.442695, %v6181_v1  ;;  %v6370_v1 = vadd.f32 %v13116_v47, %v6243_v6  ;;  %7899 = vpow2.f32 %v6578_v55  ;;  %v6815_v25 = vsub.f32 %v12753_v21, %v12884_v50  ;;  %v16583_v21 = vld [vmem:[#allocation50_spill] sm:$0xff] }
 0x63f   : > { %16570 = vst [vmem:[#allocation140_spill] sm:$0xff] %v13116_v47  ;;  %7901 = vpow2.f32 %v6072_v22  ;;  %v6623_v6 = vadd.f32 %v7892_v46, %v6496_v11  ;;  %v7084_v55 = vmul.f32 1.442695, %v7068_v36  ;;  %v13141_v33 = vmax.f32 %v5245_v10, %v13133_v59  ;;  %v16589_v36 = vld [vmem:[#allocation147_spill] sm:$0xff] }
 0x640   : > { %7903 = vpow2.f32 %v6199_v60  ;;  %v16581_v47 = vperm.slane %v16580_v20, 0  ;;  %v16584_v22 = vunpack.c.l.bf16 %v16583_v21  ;;  %v13158_v60 = vsel %vm16585_vm12, %v12560_v58, %v6612_v37  ;;  %v16591_v37 = vld [vmem:[#allocation148_spill] sm:$0xff] }
 0x641   : > { %16586 = vst [vmem:[#allocation141_spill] sm:$0xff] %v13158_v60  ;;  %v13164_v10 = vsel %vm3107_vm13, %v12518_v48, %v13026_v24  ;;  %7905 = vpow2.f32 %v6957_v31  ;;  %v6832_v24 = vmul.f32 1.442695, %v6815_v25  ;;  %v6942_v8 = vsub.f32 %v12817_v16, %v12884_v50  ;;  %v16593_v31 = vld [vmem:[#allocation107_spill] sm:$0xff] }
 0x642   : > { %v13110_v57 = vld [vmem:[#allocation1] sm:$0xff]  ;;  %16587 = vst [vmem:[#allocation100_spill] sm:$0xff] %v13164_v10 }
 0x643   : > { %5955 = vst [vmem:[#allocation1] ss:$9 sm:$0xff] %v16571_v39  ;;  %v16576_v39 = vld [vmem:[#allocation124_spill] sm:$0xff]  ;;  %v16595_v25 = vld [vmem:[#allocation199_spill] sm:$0xff] }
 0x644   : > { %5956 = vst [vmem:[#allocation1 + $0x1] ss:$9 sm:$0xff] %v16573_v45  ;;  %v6308_v62 = vsub.f32 %v16576_v39, %v13033_v40  ;;  %v6705_v45 = vmul.f32 1.442695, %v6688_v5  ;;  %v13143_v39 = vpop.eup %7893  ;;  %v13150_v5 = vsel %vm9477_vm8, %v16581_v47, %v5994_v30  ;;  %v5995_v16 = vsel %vm9446_vm5, %v16595_v25, %v12643_v12  ;;  %v16657_v60 = vld [vmem:[#allocation127_spill] sm:$0xff] }
 0x645   : > { %5957 = vst [vmem:[#allocation1 + $0x2] ss:$9 sm:$0xff] %v16577_v0  ;;  %v16579_v0 = vld [vmem:[#allocation89_spill] sm:$0xff]  ;;  %v13166_v20 = vpop.eup %7895  ;;  %v6497_v47 = vadd.f32 %v13143_v39, %v6370_v1  ;;  %v7069_v25 = vsub.f32 %v12860_v19, %v12884_v50  ;;  %v16610_v19 = vunpack.c.l.bf16 %v12869_v28  ;;  %v16658_v38 = vunpack.c.l.bf16 %v16657_v60 }
 0x646   : > { %5958 = vst [vmem:[#allocation1 + $0x3] ss:$9 sm:$0xff] %v16578_v35  ;;  %v6147_v35 = vmul.f32 %v12994_v44, %v16584_v22  ;;  %v6326_v11 = vmul.f32 1.442695, %v6308_v62  ;;  %v16590_v44 = vld [vmem:[#allocation12_spill] sm:$0xff]  ;;  %v16592_v22 = vunpack.c.l.bf16 %v12776_v61  ;;  %7907 = vpow2.f32 %v6705_v45 }
 0x647   : > { %5959 = vst [vmem:[#allocation1 + $0x4] ss:$9 sm:$0xff] %v16579_v0  ;;  %v6435_v30 = vsub.f32 %v16590_v44, %v13033_v40  ;;  %v7898_v0 = vpop.eup %7897  ;;  %v6750_v1 = vadd.f32 %v13166_v20, %v6623_v6  ;;  %v16594_v62 = vld [vmem:[#allocation136_spill] sm:$0xff]  ;;  %7909 = vpow2.f32 %v7084_v55  ;;  %v16598_v6 = vld [vmem:[#allocation217_spill] sm:$0xff]  ;;  %v6959_v55 = vmul.f32 1.442695, %v6942_v8 }
 0x648   : > { %16582 = vst [vmem:[#allocation219_spill] sm:$0xff] %v13150_v5  ;;  %v6274_v52 = vmul.f32 %v13003_v7, %v16592_v22  ;;  %v6055_v44 = vsub.f32 %v16594_v62, %v13141_v33  ;;  %v16596_v7 = vld [vmem:[#allocation68_spill] sm:$0xff]  ;;  %7911 = vpow2.f32 %v6326_v11  ;;  %v13226_v50 = vmul.f32 %v7892_v46, %v16610_v19 }
 0x649   : > { %16588 = vst [vmem:[#allocation101_spill] sm:$0xff] %v13166_v20  ;;  %v6182_v45 = vsub.f32 %v16596_v7, %v13141_v33  ;;  %v16597_v22 = vld [vmem:[#allocation44_spill] sm:$0xff]  ;;  %v6562_v20 = vsub.f32 %v16601_v9, %v13033_v40  ;;  %7913 = vpow2.f32 %v6832_v24  ;;  %v6877_v9 = vadd.f32 %v7898_v0, %v6750_v1 }
 0x64a   : > { %5960 = vst [vmem:[#allocation1 + $0x5] ss:$9 sm:$0xff] %v16589_v36  ;;  %v13178_v36 = vpop.eup %7899  ;;  %v13205_v12 = vadd.f32 %v6274_v52, %v6147_v35  ;;  %v13220_v52 = vpop.f32.mrf.mxu0  ;;  %v6074_v35 = vmul.f32 1.442695, %v6055_v44  ;;  %v6689_v44 = vsub.f32 %v16400_v17, %v13033_v40  ;;  %v7086_v19 = vmul.f32 1.442695, %v7069_v25 }
 0x64b   : > { %5961 = vst [vmem:[#allocation1 + $0x6] ss:$9 sm:$0xff] %v16591_v37  ;;  %v13186_v48 = vpop.eup %7901  ;;  %v6624_v3 = vadd.f32 %v13178_v36, %v6497_v47  ;;  %v6453_v37 = vmul.f32 1.442695, %v6435_v30  ;;  %v16605_v47 = vld [vmem:[#allocation77_spill] sm:$0xff] }
 0x64c   : > { %5962 = vst [vmem:[#allocation1 + $0x7] ss:$9 sm:$0xff] %v16593_v31  ;;  %v13198_v31 = vsel %vm16599_vm7, %v16598_v6, %v16597_v22  ;;  %v13200_v62 = vpop.eup %7903  ;;  %v16603_v6 = vperm.slane %v16602_v42, 0  ;;  %v16606_v11 = vunpack.c.l.bf16 %v16605_v47  ;;  %v16612_v42 = vld [vmem:[#allocation231_spill] sm:$0xff]  ;;  %v6580_v1 = vmul.f32 1.442695, %v6562_v20 }
 0x64d   : > { %16600 = vst [vmem:[#allocation221_spill] sm:$0xff] %v13198_v31  ;;  %v7906_v7 = vpop.eup %7905  ;;  %v16613_v24 = vunpack.c.l.bf16 %v16612_v42  ;;  %7915 = vpow2.f32 %v6453_v37  ;;  %v16616_v20 = vld [vmem:[#allocation186_spill] sm:$0xff]  ;;  %v16617_v17 = vld [vmem:[#allocation121_spill] sm:$0xff]  ;;  %v16655_v31 = vunpack.c.l.bf16 %v16654_v13 }
 0x64e   : > { %v13213_v22 = vsel %vm9477_vm8, %v16603_v6, %v5995_v16  ;;  %v13218_v30 = vmul.f32 %v13102_v49, %v16606_v11  ;;  %16608 = vst [vmem:[#allocation177_spill] sm:$0xff] %v13220_v52  ;;  %v13222_v8 = vpop.eup %7907  ;;  %v6244_v16 = vadd.f32 %v13200_v62, %v13186_v48  ;;  %v6201_v6 = vmul.f32 1.442695, %v6182_v45  ;;  %v13237_v11 = vpop.f32.mrf.mxu3  ;;  %v16653_v52 = vld [vmem:[#allocation156_spill] sm:$0xff] }
 0x64f   : > { %16604 = vst [vmem:[#allocation208_spill] sm:$0xff] %v13213_v22  ;;  %v13230_v5 = vmul.f32 %v7898_v0, %v16613_v24  ;;  %v6751_v49 = vadd.f32 %v13222_v8, %v6624_v3  ;;  %v13239_v22 = vpop.eup %7909  ;;  %v7790_v0 = vld [vmem:[%s14653_s12 + $0x8] sm:$0xff]  ;;  %7917 = vpow2.f32 %v6959_v55  ;;  %v6309_v37 = vsub.f32 %v16616_v20, %v13141_v33 }
 0x650   : > { %16607 = vst [vmem:[#allocation32_spill] sm:$0xff] %v13218_v30  ;;  %v13250_v45 = vpop.eup %7911  ;;  %v7004_v24 = vadd.f32 %v7906_v7, %v6877_v9  ;;  %7919 = vpow2.f32 %v6074_v35  ;;  %v16621_v30 = vld [vmem:[#allocation150_spill] sm:$0xff]  ;;  %7285 = vmatpush.bf16.msrb.mxu0 %v7790_v0  ;;  %v16622_v20 = vunpack.c.h.bf16 %v12776_v61  ;;  %v6707_v9 = vmul.f32 1.442695, %v6689_v44  ;;  %v13286_v44 = vpop.f32.mrf.mxu1 }
 0x651   : > { %16609 = vst [vmem:[#allocation61_spill] sm:$0xff] %v13222_v8  ;;  %v7914_v25 = vpop.eup %7913  ;;  %7921 = vpow2.f32 %v6201_v6  ;;  %v6816_v61 = vsub.f32 %v12930_v51, %v13033_v40  ;;  %v6328_v35 = vmul.f32 1.442695, %v6309_v37 }
 0x652   : > { %16611 = vst [vmem:[#allocation25_spill] sm:$0xff] %v13226_v50  ;;  %v16620_v50 = vunpack.c.h.bf16 %v16583_v21  ;;  %v6275_v3 = vmul.f32 %v13069_v23, %v16622_v20  ;;  %7923 = vpow2.f32 %v6580_v1  ;;  %v16625_v23 = vld [vmem:[#allocation152_spill] sm:$0xff]  ;;  %v7131_v51 = vadd.f32 %v13239_v22, %v7004_v24  ;;  %v16630_v24 = vld [vmem:[#allocation154_spill] sm:$0xff] }
 0x653   : > { %16614 = vst [vmem:[#allocation161_spill] sm:$0xff] %v13230_v5  ;;  %v13241_v46 = vld [vmem:[#allocation1] sm:$0xff]  ;;  %v16618_v5 = vunpack.c.l.bf16 %v12954_v43  ;;  %7925 = vpow2.f32 %v7086_v19  ;;  %v13279_v0 = vpop.eup %7915  ;;  %v6943_v19 = vsub.f32 %v12978_v26, %v13033_v40  ;;  %v6834_v1 = vmul.f32 1.442695, %v6816_v61 }
 0x654   : > { %16615 = vst [vmem:[#allocation26_spill] sm:$0xff] %v13239_v22  ;;  %v6148_v55 = vmul.f32 %v13062_v2, %v16620_v50  ;;  %v16623_v2 = vmax.f32 %v12650_v41, %v16411_v63  ;;  %v16626_v50 = vld [vmem:[#allocation21_spill] sm:$0xff]  ;;  %7927 = vpow2.f32 %v6707_v9  ;;  %v16635_v9 = vunpack.c.h.bf16 %v12869_v28 }
 0x655   : > { %5964 = vst [vmem:[#allocation1] ss:$9 sm:$0xff] %v16617_v17  ;;  %v13255_v8 = vmul.f32 %v7906_v7, %v16618_v5  ;;  %v6371_v17 = vadd.f32 %v13250_v45, %v6244_v16  ;;  %v7789_v5 = vld [vmem:[%s14653_s12] sm:$0xff]  ;;  %v6436_v16 = vsub.f32 %v16626_v50, %v13141_v33  ;;  %v16627_v41 = vld [vmem:[#allocation153_spill] sm:$0xff]  ;;  %v7918_v20 = vpop.eup %7917  ;;  %7929 = vpow2.f32 %v6328_v35 }
 0x656   : > { %5965 = vst [vmem:[#allocation1 + $0x1] ss:$9 sm:$0xff] %v16621_v30  ;;  %v5230_v21 = vmax.f32 %v16623_v2, %v13237_v11  ;;  %v16624_v7 = vld [vmem:[#allocation151_spill] sm:$0xff]  ;;  %v6878_v30 = vadd.f32 %v7914_v25, %v6751_v49  ;;  %v16629_v2 = vld [vmem:[#allocation137_spill] sm:$0xff]  ;;  %7286 = vmatpush.bf16.msrb.mxu0 %v7789_v5  ;;  %v13298_v6 = vpop.eup %7919  ;;  %v13301_v26 = vadd.f32 %v6275_v3, %v6148_v55  ;;  %v13312_v3 = vpop.f32.mrf.mxu2  ;;  %v16634_v55 = vunpack.c.h.bf16 %v16605_v47 }
 0x657   : > { %16619 = vst [vmem:[#allocation91_spill] sm:$0xff] %v13255_v8  ;;  %v6455_v5 = vmul.f32 1.442695, %v6436_v16  ;;  %v13322_v61 = vmul.f32 %v13178_v36, %v16635_v9  ;;  %v6961_v16 = vmul.f32 1.442695, %v6943_v19  ;;  %7931 = vrcp.f32 %v7131_v51 }
 0x658   : > { %5966 = vst [vmem:[#allocation1 + $0x2] ss:$9 sm:$0xff] %v16624_v7  ;;  %v6498_v7 = vadd.f32 %v13279_v0, %v6371_v17  ;;  %v5246_v50 = vmax.f32 %v5230_v21, %v13286_v44  ;;  %v7005_v37 = vadd.f32 %v7918_v20, %v6878_v30  ;;  %v16631_v17 = vld [vmem:[#allocation139_spill] sm:$0xff]  ;;  %v16633_v21 = vld [vmem:[#allocation173_spill] sm:$0xff]  ;;  %v13317_v30 = vmul.f32 %v13143_v39, %v16634_v55  ;;  %v16638_v39 = vld [vmem:[#allocation210_spill] sm:$0xff] }
 0x659   : > { %5967 = vst [vmem:[#allocation1 + $0x3] ss:$9 sm:$0xff] %v16625_v23  ;;  %v7070_v23 = vsub.f32 %v13016_v53, %v13033_v40  ;;  %v16632_v53 = vld [vmem:[#allocation47_spill] sm:$0xff]  ;;  %v16639_v55 = vperm.slane %v16638_v39, 0  ;;  %7933 = vpow2.f32 %v6834_v1  ;;  %v16643_v1 = vld [vmem:[#allocation64_spill] sm:$0xff]  ;;  %v16647_v39 = vld [vmem:[#allocation65_spill] sm:$0xff]  ;;  %v13396_v10 = vmul.f32 %v13279_v0, %v16655_v31 }
 0x65a   : > { %5968 = vst [vmem:[#allocation1 + $0x4] ss:$9 sm:$0xff] %v16627_v41  ;;  %v5998_v40 = vsel %vm9446_vm5, %v16632_v53, %v13110_v57  ;;  %v6563_v41 = vsub.f32 %v16633_v21, %v13141_v33  ;;  %v16636_v57 = vunpack.c.h.bf16 %v16612_v42  ;;  %v13331_v47 = vmax.f32 %v5246_v50, %v13312_v3  ;;  %v16660_v31 = vld [vmem:[#allocation158_spill] sm:$0xff] }
 0x65b   : > { %5969 = vst [vmem:[#allocation1 + $0x5] ss:$9 sm:$0xff] %v16629_v2  ;;  %v13303_v2 = vpop.eup %7921  ;;  %v7088_v21 = vmul.f32 1.442695, %v7070_v23  ;;  %v13337_v28 = vsel %vm9477_vm8, %v16639_v55, %v5998_v40  ;;  %7935 = vpow2.f32 %v6455_v5  ;;  %v16644_v40 = vunpack.c.l.bf16 %v16643_v1 }
 0x65c   : > { %5970 = vst [vmem:[#allocation1 + $0x6] ss:$9 sm:$0xff] %v16630_v24  ;;  %v7924_v24 = vpop.eup %7923  ;;  %v13326_v35 = vmul.f32 %v7914_v25, %v16636_v57  ;;  %v6245_v42 = vadd.f32 %v13303_v2, %v13298_v6  ;;  %v16640_v25 = vunpack.c.h.bf16 %v12954_v43  ;;  %v6582_v19 = vmul.f32 1.442695, %v6563_v41 }
 0x65d   : > { %5971 = vst [vmem:[#allocation1 + $0x7] ss:$9 sm:$0xff] %v16631_v17  ;;  %v13328_v17 = vpop.eup %7925  ;;  %v6625_v53 = vadd.f32 %v7924_v24, %v6498_v7  ;;  %v6690_v7 = vsub.f32 %v11998_v32, %v13141_v33  ;;  %v6149_v9 = vmul.f32 %v13186_v48, %v16644_v40  ;;  %v16645_v43 = vunpack.c.l.bf16 %v12795_v29 }
 0x65e   : > { %16637 = vst [vmem:[#allocation180_spill] sm:$0xff] %v13328_v17  ;;  %v7132_v36 = vadd.f32 %v13328_v17, %v7005_v37  ;;  %v13344_v51 = vmul.f32 %v7918_v20, %v16640_v25  ;;  %v13348_v23 = vpop.eup %7927  ;;  %7937 = vpow2.f32 %v6961_v16  ;;  %v6354_v5 = vsel %vm3110_vm9, %v13337_v28, %v13056_v14  ;;  %v16648_v16 = vld [vmem:[#allocation102_spill] sm:$0xff]  ;;  %v16650_v14 = vld [vmem:[#allocation125_spill] sm:$0xff]  ;;  %v13385_v37 = vpop.f32.mrf.mxu3 }
 0x65f   : > { %v6276_v20 = vmul.f32 %v13200_v62, %v16645_v43  ;;  %v13360_v41 = vpop.eup %7929  ;;  %v6752_v57 = vadd.f32 %v13348_v23, %v6625_v53  ;;  %7939 = vpow2.f32 %v7088_v21  ;;  %v6056_v55 = vsub.f32 %v16647_v39, %v13331_v47  ;;  %v16651_v53 = vld [vmem:[#allocation93_spill] sm:$0xff] }
 0x660   : > { %16641 = vst [vmem:[#allocation142_spill] sm:$0xff] %v13344_v51  ;;  %7941 = vrcp.f32 %v7132_v36  ;;  %v6372_v48 = vadd.f32 %v13360_v41, %v6245_v42  ;;  %v6817_v62 = vsub.f32 %v13060_v54, %v13141_v33  ;;  %v6183_v40 = vsub.f32 %v16648_v16, %v13331_v47  ;;  %v13376_v43 = vpop.eup %7931  ;;  %v16652_v36 = vld [vmem:[#allocation119_spill] sm:$0xff]  ;;  %v16668_v51 = vld [vmem:[#allocation160_spill] sm:$0xff] }
 0x661   : > { %16649 = vst [vmem:[#allocation143_spill] sm:$0xff] %v13376_v43  ;;  %v6355_v21 = vsel %vm3111_vm11, %v13337_v28, %v13092_v18  ;;  %7943 = vpow2.f32 %v6582_v19  ;;  %v6709_v39 = vmul.f32 1.442695, %v6690_v7  ;;  %v6944_v42 = vsub.f32 %v16652_v36, %v13141_v33  ;;  %v7934_v54 = vpop.eup %7933  ;;  %v16656_v36 = vld [vmem:[#allocation157_spill] sm:$0xff] }
 0x662   : > { %v6361_v16 = vsel %vm3102_vm10, %v13092_v18, %v6354_v5  ;;  %v7071_v19 = vsub.f32 %v13133_v59, %v13141_v33  ;;  %v7936_v7 = vpop.eup %7935  ;;  %v6879_v50 = vadd.f32 %v7934_v54, %v6752_v57  ;;  %v6076_v43 = vmul.f32 1.442695, %v6056_v55  ;;  %v16659_v5 = vld [vmem:[#allocation28_spill] sm:$0xff] }
 0x663   : > { %vm16661_vm0 = vcmp.lt.s32.totalorder %v16651_v53, 1  ;;  %v6499_v33 = vadd.f32 %v7936_v7, %v6372_v48  ;;  %v6203_v0 = vmul.f32 1.442695, %v6183_v40  ;;  %7945 = vpow2.f32 %v6709_v39 }
 0x664   : > { %v13369_v25 = vld [vmem:[#allocation1] sm:$0xff]  ;;  %v6362_v59 = vsel %vm16661_vm0, %v13092_v18, %v6355_v21  ;;  %v6963_v49 = vmul.f32 1.442695, %v6944_v42  ;;  %v16669_v21 = vld [vmem:[#allocation232_spill] sm:$0xff]  ;;  %v7090_v17 = vmul.f32 1.442695, %v7071_v19  ;;  %v13437_v42 = vpop.f32.mrf.mxu1  ;;  %7947 = vpow2.f32 %v6076_v43  ;;  %vm16703_vm3 = vmmov %vm16661_vm0 }
 0x665   : > { %5973 = vst [vmem:[#allocation1] ss:$9 sm:$0xff] %v16650_v14  ;;  %v13391_v14 = vadd.f32 %v6276_v20, %v6149_v9  ;;  %v6613_v9 = vsel %vm3115_vm14, %v12789_v27, %v16659_v5  ;;  %v13409_v20 = vpop.eup %7937  ;;  %v6385_v27 = vunpack.c.l.bf16 %v6361_v16  ;;  %v6836_v5 = vmul.f32 1.442695, %v6817_v62  ;;  %v16673_v62 = vld [vmem:[#allocation162_spill] sm:$0xff] }
 0x666   : > { %5974 = vst [vmem:[#allocation1 + $0x1] ss:$9 sm:$0xff] %v16653_v52  ;;  %v13403_v52 = vmul.f32 %v7924_v24, %v16658_v38  ;;  %v16662_v38 = vld [vmem:[#allocation85_spill] sm:$0xff]  ;;  %v16670_v48 = vunpack.c.l.bf16 %v16669_v21  ;;  %v7006_v22 = vadd.f32 %v13409_v20, %v6879_v50  ;;  %v6388_v19 = vunpack.c.h.bf16 %v6362_v59  ;;  %v16678_v43 = vld [vmem:[#allocation62_spill] sm:$0xff] }
 0x667   : > { %5975 = vst [vmem:[#allocation1 + $0x2] ss:$9 sm:$0xff] %v16656_v36  ;;  %v16663_v24 = vld [vmem:[#allocation225_spill] sm:$0xff]  ;;  %v13419_v36 = vpop.eup %7939  ;;  %7949 = vpow2.f32 %v6203_v0  ;;  %v16677_v8 = vunpack.c.h.bf16 %v12795_v29 }
 0x668   : > { %5976 = vst [vmem:[#allocation1 + $0x3] ss:$9 sm:$0xff] %v16660_v31  ;;  %v16664_v57 = vmax.f32 %v16662_v38, %v16663_v24  ;;  %v13422_v31 = vpop.eup %7941  ;;  %v13427_v40 = vmul.f32 %v7934_v54, %v16670_v48  ;;  %v16671_v38 = vld [vmem:[#allocation187_spill] sm:$0xff]  ;;  %v16674_v54 = vld [vmem:[#allocation110_spill] sm:$0xff]  ;;  %7951 = vpow2.f32 %v6836_v5  ;;  %v7133_v29 = vadd.f32 %v13419_v36, %v7006_v22 }
 0x669   : > { %16665 = vst [vmem:[#allocation108_spill] sm:$0xff] %v13419_v36  ;;  %v7944_v39 = vpop.eup %7943  ;;  %7953 = vpow2.f32 %v6963_v49 }
 0x66a   : > { %v5231_v55 = vmax.f32 %v16664_v57, %v13385_v37  ;;  %5977 = vst [vmem:[#allocation1 + $0x4] ss:$9 sm:$0xff] %v16666_v34  ;;  %v6310_v57 = vsub.f32 %v16671_v38, %v13331_v47  ;;  %v13434_v34 = vsel %vm3107_vm13, %v12560_v58, %v6613_v9  ;;  %v6626_v48 = vadd.f32 %v7944_v39, %v6499_v33  ;;  %v13453_v0 = vpop.eup %7945 }
 0x66b   : > { %16667 = vst [vmem:[#allocation79_spill] sm:$0xff] %v13422_v31  ;;  %v6386_v31 = vunpack.c.h.bf16 %v6361_v16  ;;  %v6401_v9 = vmul.f32 %v16675_v15, %v6385_v27  ;;  %v16676_v58 = vunpack.c.h.bf16 %v16643_v1  ;;  %v6277_v16 = vmul.f32 %v13303_v2, %v16677_v8  ;;  %v13455_v27 = vpop.f32.mrf.mxu2  ;;  %v16679_v15 = vld [vmem:[#allocation140_spill] sm:$0xff]  ;;  %v7948_v5 = vpop.eup %7947 }
 0x66c   : > { %5978 = vst [vmem:[#allocation1 + $0x5] ss:$9 sm:$0xff] %v16668_v51  ;;  %v6387_v51 = vunpack.c.l.bf16 %v6362_v59  ;;  %v5247_v38 = vmax.f32 %v5231_v55, %v13437_v42  ;;  %v6330_v50 = vmul.f32 1.442695, %v6310_v57  ;;  %v6404_v8 = vmul.f32 %v13360_v41, %v6388_v19  ;;  %v16684_v41 = vld [vmem:[#allocation52_spill] sm:$0xff]  ;;  %v16685_v19 = vld [vmem:[#allocation27_spill] sm:$0xff] }
 0x66d   : > { %16672 = vst [vmem:[#allocation224_spill] sm:$0xff] %v13434_v34  ;;  %v6402_v1 = vmul.f32 %v16679_v15, %v6386_v31  ;;  %7955 = vpow2.f32 %v7090_v17  ;;  %v6417_v55 = vadd.f32 %v6401_v9, %v13205_v12  ;;  %v16681_v15 = vld [vmem:[#allocation219_spill] sm:$0xff]  ;;  %v7950_v49 = vpop.eup %7949  ;;  %v5999_v17 = vsel %vm9446_vm5, %v16684_v41, %v13241_v46  ;;  %v16690_v41 = vld [vmem:[#allocation72_spill] sm:$0xff] }
 0x66e   : > { %5979 = vst [vmem:[#allocation1 + $0x6] ss:$9 sm:$0xff] %v16673_v62  ;;  %v6150_v62 = vmul.f32 %v13298_v6, %v16676_v58  ;;  %v6403_v58 = vmul.f32 %v13250_v45, %v6387_v51  ;;  %v6753_v6 = vadd.f32 %v13453_v0, %v6626_v48  ;;  %v13463_v2 = vmax.f32 %v5247_v38, %v13455_v27  ;;  %v16682_v45 = vld [vmem:[#allocation116_spill] sm:$0xff]  ;;  %v7952_v48 = vpop.eup %7951 }
 0x66f   : > { %5980 = vst [vmem:[#allocation1 + $0x7] ss:$9 sm:$0xff] %v16674_v54  ;;  %v6437_v54 = vsub.f32 %v16678_v43, %v13331_v47  ;;  %v16680_v43 = vunpack.c.h.bf16 %v16654_v13  ;;  %vm16683_vm1 = vcmp.gt.s32.totalorder %v16682_v45, 14  ;;  %7957 = vpow2.f32 %v6330_v50  ;;  %v16688_v50 = vld [vmem:[#allocation73_spill] sm:$0xff] }
 0x670   : > { %v6293_v57 = vadd.f32 %v6277_v16, %v6150_v62  ;;  %v6356_v22 = vsel %vm16683_vm1, %v13337_v28, %v16681_v15  ;;  %v6564_v12 = vsub.f32 %v16685_v19, %v13331_v47  ;;  %v6418_v13 = vadd.f32 %v6402_v1, %v13301_v26  ;;  %vm16705_vm6 = vmmov %vm16683_vm1 }
 0x671   : > { %v6531_v31 = vmul.f32 %v7936_v7, %v16680_v43  ;;  %v6457_v51 = vmul.f32 1.442695, %v6437_v54  ;;  %v6419_v7 = vadd.f32 %v6403_v58, %v13391_v14  ;;  %7959 = vrcp.f32 %v7133_v29  ;;  %v13489_v43 = vpop.eup %7953  ;;  %v16693_v58 = vld [vmem:[#allocation87_spill] sm:$0xff] }
 0x672   : > { %v16686_v38 = vunpack.c.h.bf16 %v16657_v60  ;;  %v6420_v62 = vadd.f32 %v6404_v8, %v6293_v57  ;;  %v6880_v16 = vadd.f32 %v7952_v48, %v6753_v6  ;;  %vm16687_vm2 = vcmp.lt.s32.totalorder %v16682_v45, 1  ;;  %16689 = vst [vmem:[#allocation191_spill] sm:$0xff] %v13489_v43  ;;  %v16692_v60 = vld [vmem:[#allocation32_spill] sm:$0xff]  ;;  %v16716_v45 = vld [vmem:[#allocation61_spill] sm:$0xff] }
 0x673   : > { %v13485_v46 = vsel %vm16687_vm2, %v13092_v18, %v6356_v22  ;;  %v6057_v54 = vsub.f32 %v16688_v50, %v13463_v2  ;;  %v16691_v26 = vperm.slane %v16690_v41, 0  ;;  %v6246_v1 = vadd.f32 %v7950_v49, %v7948_v5  ;;  %v13500_v8 = vpop.eup %7955  ;;  %vm16712_vm15 = vmmov %vm16687_vm2 }
 0x674   : > { %v6658_v9 = vmul.f32 %v7944_v39, %v16686_v38  ;;  %v6544_v39 = vadd.f32 %v16692_v60, %v6417_v55  ;;  %v6184_v29 = vsub.f32 %v16693_v58, %v13463_v2  ;;  %16694 = vst [vmem:[#allocation53_spill] sm:$0xff] %v13500_v8  ;;  %v16695_v6 = vunpack.c.h.bf16 %v16669_v21  ;;  %v16696_v55 = vld [vmem:[#allocation66_spill] sm:$0xff] }
 0x675   : > { %v13495_v14 = vsel %vm9477_vm8, %v16691_v26, %v5999_v17  ;;  %7961 = vpow2.f32 %v6457_v51  ;;  %v6584_v22 = vmul.f32 1.442695, %v6564_v12  ;;  %v6691_v19 = vsub.f32 %v16411_v63, %v13331_v47  ;;  %v7958_v60 = vpop.eup %7957 }
 0x676   : > { %v13504_v57 = vmul.f32 %v7952_v48, %v16695_v6  ;;  %v6545_v17 = vadd.f32 %v13317_v30, %v6418_v13  ;;  %v6546_v38 = vadd.f32 %v13396_v10, %v6419_v7  ;;  %v16697_v50 = vunpack.c.l.bf16 %v16696_v55  ;;  %v16699_v30 = vld [vmem:[#allocation25_spill] sm:$0xff]  ;;  %v16700_v6 = vld [vmem:[#allocation56_spill] sm:$0xff] }
 0x677   : > { %v6389_v26 = vunpack.c.l.bf16 %v13485_v46  ;;  %v6735_v21 = vsel %vm3110_vm9, %v13495_v14, %v13092_v18  ;;  %v6547_v51 = vadd.f32 %v6531_v31, %v6420_v62  ;;  %v7007_v12 = vadd.f32 %v13489_v43, %v6880_v16  ;;  %v13518_v63 = vpop.eup %7959  ;;  %v13579_v43 = vpop.f32.mrf.mxu2 }
 0x678   : > { %v6151_v41 = vmul.f32 %v7948_v5, %v16697_v50  ;;  %v6078_v48 = vmul.f32 1.442695, %v6057_v54  ;;  %16698 = vst [vmem:[#allocation57_spill] sm:$0xff] %v13518_v63  ;;  %v13521_v13 = vadd.f32 %v16699_v30, %v6544_v39  ;;  %v6373_v10 = vadd.f32 %v7958_v60, %v6246_v1 }
 0x679   : > { %v6818_v5 = vsub.f32 %v13237_v11, %v13331_v47  ;;  %v6205_v7 = vmul.f32 1.442695, %v6184_v29  ;;  %v6736_v58 = vsel %vm3111_vm11, %v13495_v14, %v16681_v15  ;;  %v16701_v31 = vunpack.c.l.bf16 %v16700_v6  ;;  %v16702_v11 = vld [vmem:[#allocation188_spill] sm:$0xff] }
 0x67a   : > { %7963 = vpow2.f32 %v6584_v22  ;;  %v6711_v16 = vmul.f32 1.442695, %v6691_v19  ;;  %v6742_v54 = vsel %vm3102_vm10, %v16681_v15, %v6735_v21  ;;  %v6672_v39 = vadd.f32 %v13322_v61, %v6545_v17 }
 0x67b   : > { %v6278_v62 = vmul.f32 %v7950_v49, %v16701_v31  ;;  %v6673_v1 = vadd.f32 %v13403_v52, %v6546_v38  ;;  %v6311_v29 = vsub.f32 %v16702_v11, %v13463_v2  ;;  %v7962_v50 = vpop.eup %7961  ;;  %v6674_v30 = vadd.f32 %v6658_v9, %v6547_v51  ;;  %v13540_v49 = vpop.f32.mrf.mxu3  ;;  %v16704_v38 = vld [vmem:[#allocation208_spill] sm:$0xff]  ;;  %v16707_v51 = vld [vmem:[#allocation181_spill] sm:$0xff] }
 0x67c   : > { %v6405_v33 = vmul.f32 %v7958_v60, %v6389_v26  ;;  %v6945_v59 = vsub.f32 %v13286_v44, %v13331_v47  ;;  %7965 = vpow2.f32 %v6078_v48  ;;  %v6743_v22 = vsel %vm16703_vm3, %v16681_v15, %v6736_v58  ;;  %v16706_v60 = vld [vmem:[#allocation19_spill] sm:$0xff]  ;;  %v16708_v48 = vld [vmem:[#allocation138_spill] sm:$0xff] }
 0x67d   : > { %v6500_v19 = vadd.f32 %v7962_v50, %v6373_v10  ;;  %v6838_v61 = vmul.f32 1.442695, %v6818_v5  ;;  %7967 = vpow2.f32 %v6205_v7  ;;  %v6766_v52 = vunpack.c.l.bf16 %v6742_v54 }
 0x67e   : > { %v6294_v17 = vadd.f32 %v6278_v62, %v6151_v41  ;;  %7969 = vpow2.f32 %v6711_v16  ;;  %v6737_v9 = vsel %vm16705_vm6, %v13495_v14, %v16704_v38  ;;  %v7134_v44 = vadd.f32 %v13500_v8, %v7007_v12  ;;  %v16710_v16 = vld [vmem:[#allocation227_spill] sm:$0xff] }
 0x67f   : > { %v6332_v26 = vmul.f32 1.442695, %v6311_v29  ;;  %v6438_v21 = vsub.f32 %v16706_v60, %v13463_v2  ;;  %v16709_v10 = vmax.f32 %v16707_v51, %v16708_v48  ;;  %v6767_v58 = vunpack.c.h.bf16 %v6742_v54  ;;  %v13565_v51 = vpop.f32.mrf.mxu1 }
 0x680   : > { %v7964_v7 = vpop.eup %7963  ;;  %v6768_v41 = vunpack.c.l.bf16 %v6743_v22  ;;  %v6769_v31 = vunpack.c.h.bf16 %v6743_v22  ;;  %v6421_v62 = vadd.f32 %v6405_v33, %v6294_v17  ;;  %v16711_v11 = vunpack.c.l.bf16 %v16710_v16  ;;  %v16714_v33 = vld [vmem:[#allocation176_spill] sm:$0xff] }
 0x681   : > { %v5232_v5 = vmax.f32 %v16709_v10, %v13540_v49  ;;  %v6627_v63 = vadd.f32 %v7964_v7, %v6500_v19  ;;  %v13561_v12 = vsel %vm16712_vm15, %v16681_v15, %v6737_v9  ;;  %v7072_v29 = vsub.f32 %v13312_v3, %v13331_v47  ;;  %v16713_v10 = vld [vmem:[#allocation101_spill] sm:$0xff] }
 0x682   : > { %v6532_v34 = vmul.f32 %v7962_v50, %v16711_v11  ;;  %v7966_v60 = vpop.eup %7965  ;;  %v6782_v54 = vmul.f32 %v16713_v10, %v6766_v52  ;;  %7971 = vpow2.f32 %v6838_v61  ;;  %v6965_v22 = vmul.f32 1.442695, %v6945_v59  ;;  %v16715_v19 = vld [vmem:[#allocation149_spill] sm:$0xff] }
 0x683   : > { %v6565_v17 = vsub.f32 %v16714_v33, %v13463_v2  ;;  %v7968_v50 = vpop.eup %7967  ;;  %v6000_v9 = vsel %vm9446_vm5, %v16715_v19, %v13369_v25  ;;  %7973 = vpow2.f32 %v6332_v26  ;;  %v6459_v11 = vmul.f32 1.442695, %v6438_v21  ;;  %v16717_v25 = vld [vmem:[#allocation216_spill] sm:$0xff] }
 0x684   : > { %v5248_v3 = vmax.f32 %v5232_v5, %v13565_v51  ;;  %v7970_v47 = vpop.eup %7969  ;;  %v6783_v8 = vmul.f32 %v16716_v45, %v6767_v58  ;;  %v6784_v52 = vmul.f32 %v13348_v23, %v6768_v41  ;;  %v6785_v59 = vmul.f32 %v13453_v0, %v6769_v31 }
 0x685   : > { %7975 = vrcp.f32 %v7134_v44  ;;  %v6548_v61 = vadd.f32 %v6532_v34, %v6421_v62  ;;  %v6754_v10 = vadd.f32 %v7970_v47, %v6627_v63  ;;  %v6770_v33 = vunpack.c.l.bf16 %v13561_v12  ;;  %v13593_v44 = vpop.f32.mrf.mxu3  ;;  %v16719_v62 = vld [vmem:[#allocation115_spill] sm:$0xff] }
 0x686   : > { %v7092_v36 = vmul.f32 1.442695, %v7072_v29  ;;  %v16718_v26 = vperm.slane %v16717_v25, 0  ;;  %7977 = vpow2.f32 %v6965_v22  ;;  %v6247_v45 = vadd.f32 %v7968_v50, %v7966_v60  ;;  %v16729_v25 = vld [vmem:[#allocation161_spill] sm:$0xff] }
 0x687   : > { %v6692_v23 = vsub.f32 %v16663_v24, %v13463_v2  ;;  %v6798_v0 = vadd.f32 %v6782_v54, %v13521_v13  ;;  %7979 = vpow2.f32 %v6459_v11  ;;  %v6586_v34 = vmul.f32 1.442695, %v6565_v17 }
 0x688   : > { %v13585_v21 = vsel %vm9477_vm8, %v16718_v26, %v6000_v9  ;;  %v13591_v63 = vmax.f32 %v5248_v3, %v13579_v43  ;;  %v7972_v5 = vpop.eup %7971  ;;  %v6799_v58 = vadd.f32 %v6783_v8, %v6672_v39  ;;  %v6800_v41 = vadd.f32 %v6784_v52, %v6673_v1  ;;  %v16722_v39 = vld [vmem:[#allocation33_spill] sm:$0xff]  ;;  %v16723_v1 = vld [vmem:[#allocation46_spill] sm:$0xff] }
 0x689   : > { %v6801_v31 = vadd.f32 %v6785_v59, %v6674_v30  ;;  %v16720_v29 = vunpack.c.l.bf16 %v16719_v62  ;;  %v7974_v19 = vpop.eup %7973  ;;  %v7116_v24 = vsel %vm3110_vm9, %v13585_v21, %v16681_v15  ;;  %v6786_v13 = vmul.f32 %v7970_v47, %v6770_v33 }
 0x68a   : > { %v6881_v54 = vadd.f32 %v7972_v5, %v6754_v10  ;;  %7981 = vpow2.f32 %v7092_v36  ;;  %v6374_v9 = vadd.f32 %v7974_v19, %v6247_v45  ;;  %v6713_v11 = vmul.f32 1.442695, %v6692_v23  ;;  %v16727_v36 = vld [vmem:[#allocation112_spill] sm:$0xff]  ;;  %v16731_v23 = vld [vmem:[#allocation113_spill] sm:$0xff] }
 0x68b   : > { %v6659_v22 = vmul.f32 %v7964_v7, %v16720_v29  ;;  %v13601_v17 = vpop.eup %7975  ;;  %v6819_v8 = vsub.f32 %v13385_v37, %v13463_v2  ;;  %v16724_v30 = vmax.f32 %v16722_v39, %v16723_v1  ;;  %v16725_v3 = vunpack.c.h.bf16 %v16696_v55  ;;  %v13624_v29 = vpop.f32.mrf.mxu1 }
 0x68c   : > { %16721 = vst [vmem:[#allocation117_spill] sm:$0xff] %v13601_v17  ;;  %v16726_v59 = vunpack.c.h.bf16 %v16700_v6  ;;  %7983 = vpow2.f32 %v6586_v34  ;;  %v6058_v10 = vsub.f32 %v16727_v36, %v13591_v63  ;;  %v13615_v33 = vpop.eup %7977  ;;  %v6925_v26 = vadd.f32 %v16729_v25, %v6798_v0 }
 0x68d   : > { %v5233_v7 = vmax.f32 %v16724_v30, %v13593_v44  ;;  %v6152_v52 = vmul.f32 %v7966_v60, %v16725_v3  ;;  %16728 = vst [vmem:[#allocation60_spill] sm:$0xff] %v13615_v33  ;;  %v6926_v37 = vadd.f32 %v13326_v35, %v6799_v58  ;;  %v13620_v45 = vadd.f32 %v13427_v40, %v6800_v41  ;;  %v7980_v60 = vpop.eup %7979  ;;  %v16734_v3 = vld [vmem:[#allocation91_spill] sm:$0xff] }
 0x68e   : > { %v6279_v47 = vmul.f32 %v7968_v50, %v16726_v59  ;;  %v6185_v55 = vsub.f32 %v16731_v23, %v13591_v63  ;;  %v7123_v6 = vsel %vm3102_vm10, %v16704_v38, %v7116_v24  ;;  %v13630_v50 = vadd.f32 %v13504_v57, %v6801_v31 }
 0x68f   : > { %16730 = vst [vmem:[#allocation40_spill] sm:$0xff] %v13620_v45  ;;  %v7008_v0 = vadd.f32 %v13615_v33, %v6881_v54  ;;  %v6390_v35 = vunpack.c.h.bf16 %v13485_v46  ;;  %v6675_v34 = vadd.f32 %v6659_v22, %v6548_v61  ;;  %v6501_v40 = vadd.f32 %v7980_v60, %v6374_v9  ;;  %v13640_v46 = vpop.f32.mrf.mxu2  ;;  %v16735_v22 = vld [vmem:[#allocation55_spill] sm:$0xff]  ;;  %v16807_v45 = vld [vmem:[#allocation80_spill] sm:$0xff] }
 0x690   : > { %16732 = vst [vmem:[#allocation166_spill] sm:$0xff] %v13630_v50  ;;  %v6840_v58 = vmul.f32 1.442695, %v6819_v8  ;;  %v5249_v41 = vmax.f32 %v5233_v7, %v13624_v29  ;;  %v13635_v39 = vpop.eup %7981  ;;  %v6295_v30 = vadd.f32 %v6279_v47, %v6152_v52  ;;  %7985 = vpow2.f32 %v6713_v11  ;;  %v13645_v11 = vpop.f32.mrf.mxu3 }
 0x691   : > { %16733 = vst [vmem:[#allocation229_spill] sm:$0xff] %v13635_v39  ;;  %v6946_v32 = vsub.f32 %v13437_v42, %v13463_v2  ;;  %v6080_v24 = vmul.f32 1.442695, %v6058_v10  ;;  %v7052_v57 = vadd.f32 %v16734_v3, %v6925_v26  ;;  %v7147_v31 = vunpack.c.l.bf16 %v7123_v6  ;;  %v16737_v42 = vld [vmem:[#allocation99_spill] sm:$0xff]  ;;  %v16743_v3 = vld [vmem:[#allocation142_spill] sm:$0xff] }
 0x692   : > { %v7148_v59 = vunpack.c.h.bf16 %v7123_v6  ;;  %v6207_v54 = vmul.f32 1.442695, %v6185_v55  ;;  %v7984_v36 = vpop.eup %7983  ;;  %v6802_v61 = vadd.f32 %v6786_v13, %v6675_v34  ;;  %v16736_v9 = vunpack.c.l.bf16 %v16735_v22  ;;  %v16739_v6 = vld [vmem:[#allocation180_spill] sm:$0xff] }
 0x693   : > { %v7135_v7 = vadd.f32 %v13635_v39, %v7008_v0  ;;  %v6406_v52 = vmul.f32 %v7974_v19, %v6390_v35  ;;  %v6628_v47 = vadd.f32 %v7984_v36, %v6501_v40  ;;  %7987 = vpow2.f32 %v6840_v58  ;;  %v16740_v0 = vld [vmem:[#allocation197_spill] sm:$0xff]  ;;  %v16741_v35 = vld [vmem:[#allocation31_spill] sm:$0xff] }
 0x694   : > { %v6913_v8 = vmul.f32 %v7972_v5, %v16736_v9  ;;  %v6312_v10 = vsub.f32 %v16737_v42, %v13591_v63  ;;  %v13650_v25 = vmax.f32 %v5249_v41, %v13640_v46  ;;  %v6967_v23 = vmul.f32 1.442695, %v6946_v32  ;;  %v16738_v5 = vld [vmem:[#allocation26_spill] sm:$0xff]  ;;  %v13670_v42 = vpop.f32.mrf.mxu1 }
 0x695   : > { %v6422_v26 = vadd.f32 %v6406_v52, %v6295_v30  ;;  %v7073_v13 = vsub.f32 %v13455_v27, %v13463_v2  ;;  %7989 = vpow2.f32 %v6080_v24  ;;  %v7163_v55 = vmul.f32 %v16738_v5, %v7147_v31  ;;  %v16746_v27 = vld [vmem:[#allocation20_spill] sm:$0xff] }
 0x696   : > { %v7164_v19 = vmul.f32 %v16739_v6, %v7148_v59  ;;  %7991 = vpow2.f32 %v6207_v54  ;;  %v16742_v34 = vmax.f32 %v16740_v0, %v16741_v35  ;;  %v7986_v58 = vpop.eup %7985  ;;  %v7053_v41 = vadd.f32 %v16743_v3, %v6926_v37  ;;  %v16747_v54 = vld [vmem:[#allocation16_spill] sm:$0xff] }
 0x697   : > { %v13661_v9 = vadd.f32 %v6913_v8, %v6802_v61  ;;  %v16745_v30 = vunpack.c.h.bf16 %v16710_v16  ;;  %v6439_v2 = vsub.f32 %v16746_v27, %v13591_v63  ;;  %v6755_v24 = vadd.f32 %v7986_v58, %v6628_v47  ;;  %v16748_v61 = vld [vmem:[#allocation164_spill] sm:$0xff] }
 0x698   : > { %v5234_v40 = vmax.f32 %v16742_v34, %v13645_v11  ;;  %v6771_v31 = vunpack.c.h.bf16 %v13561_v12  ;;  %v6334_v59 = vmul.f32 1.442695, %v6312_v10  ;;  %v6059_v52 = vsub.f32 %v16747_v54, %v13650_v25  ;;  %v16750_v34 = vld [vmem:[#allocation206_spill] sm:$0xff]  ;;  %v16751_v3 = vld [vmem:[#allocation128_spill] sm:$0xff] }
 0x699   : > { %16744 = vst [vmem:[#allocation94_spill] sm:$0xff] %v13661_v9  ;;  %v6533_v32 = vmul.f32 %v7980_v60, %v16745_v30  ;;  %7993 = vpow2.f32 %v6967_v23  ;;  %v7094_v37 = vmul.f32 1.442695, %v7073_v13  ;;  %v6186_v8 = vsub.f32 %v16748_v61, %v13650_v25  ;;  %v7988_v16 = vpop.eup %7987  ;;  %v16753_v23 = vld [vmem:[#allocation202_spill] sm:$0xff] }
 0x69a   : > { %v7179_v60 = vadd.f32 %v7163_v55, %v7052_v57  ;;  %v7180_v6 = vadd.f32 %v7164_v19, %v7053_v41  ;;  %7995 = vrcp.f32 %v7135_v7  ;;  %v5250_v47 = vmax.f32 %v5234_v40, %v13670_v42  ;;  %v16756_v57 = vld [vmem:[#allocation34_spill] sm:$0xff] }
 0x69b   : > { %v6549_v5 = vadd.f32 %v6533_v32, %v6422_v26  ;;  %v7990_v0 = vpop.eup %7989  ;;  %v16749_v12 = vunpack.c.h.bf16 %v16719_v62  ;;  %v16752_v26 = vsel %vm9446_vm5, %v16750_v34, %v16751_v3  ;;  %v16754_v13 = vperm.slane %v16753_v23, 0  ;;  %v13694_v32 = vpop.f32.mrf.mxu2  ;;  %v16760_v3 = vld [vmem:[#allocation79_spill] sm:$0xff] }
 0x69c   : > { %vm16757_vm9 = vcmp.gt.s32.totalorder %v16756_v57, 14  ;;  %v6461_v55 = vmul.f32 1.442695, %v6439_v2  ;;  %v7992_v19 = vpop.eup %7991  ;;  %v6882_v62 = vadd.f32 %v7988_v16, %v6755_v24  ;;  %7997 = vpow2.f32 %v6334_v59  ;;  %v16768_v23 = vld [vmem:[#allocation71_spill] sm:$0xff] }
 0x69d   : > { %v6660_v10 = vmul.f32 %v7984_v36, %v16749_v12  ;;  %v13686_v30 = vsel %vm9477_vm8, %v16754_v13, %v16752_v26  ;;  %v6357_v7 = vsel %vm16757_vm9, %v13337_v28, %v16704_v38  ;;  %v16758_v36 = vld [vmem:[#allocation118_spill] sm:$0xff]  ;;  %v6082_v41 = vmul.f32 1.442695, %v6059_v52  ;;  %v16759_v12 = vld [vmem:[#allocation143_spill] sm:$0xff]  ;;  %vm16767_vm7 = vmmov %vm16757_vm9 }
 0x69e   : > { %16755 = vst [vmem:[#allocation13_spill] sm:$0xff] %v13686_v30  ;;  %v6566_v40 = vsub.f32 %v16758_v36, %v13591_v63  ;;  %v6787_v54 = vmul.f32 %v7986_v58, %v6771_v31  ;;  %7999 = vpow2.f32 %v7094_v37  ;;  %v6209_v61 = vmul.f32 1.442695, %v6186_v8  ;;  %v16762_v58 = vld [vmem:[#allocation123_spill] sm:$0xff] }
 0x69f   : > { %v6676_v27 = vadd.f32 %v6660_v10, %v6549_v5  ;;  %v13697_v34 = vmul.f32 %v16759_v12, %v7179_v60  ;;  %v13700_v26 = vmul.f32 %v16760_v3, %v7180_v6  ;;  %v6693_v2 = vsub.f32 %v16708_v48, %v13591_v63  ;;  %v13707_v59 = vpop.eup %7993  ;;  %v16764_v5 = vld [vmem:[#allocation42_spill] sm:$0xff]  ;;  %v13731_v36 = vld [vmem:[#allocation1] sm:$0xff] }
 0x6a0   : > { %v13705_v24 = vmax.f32 %v5250_v47, %v13694_v32  ;;  %16761 = vst [vmem:[#allocation23_spill] sm:$0xff] %v13707_v59  ;;  %v6248_v52 = vadd.f32 %v7992_v19, %v7990_v0  ;;  %vm16763_vm10 = vcmp.gt.s32.totalorder %v16762_v58, 14  ;;  %8001 = vpow2.f32 %v6461_v55  ;;  %v13717_v8 = vpop.eup %7995 }
 0x6a1   : > { %v13713_v31 = vsel %vm16763_vm10, %v13337_v28, %v13686_v30  ;;  %v6313_v37 = vsub.f32 %v16764_v5, %v13650_v25  ;;  %16765 = vst [vmem:[#allocation105_spill] sm:$0xff] %v13717_v8  ;;  %v7009_v48 = vadd.f32 %v13707_v59, %v6882_v62  ;;  %vm16766_vm12 = vcmp.lt.s32.totalorder %v16756_v57, 1  ;;  %v16770_v62 = vld [vmem:[#allocation51_spill] sm:$0xff]  ;;  %v16777_v59 = vld [vmem:[#allocation169_spill] sm:$0xff]  ;;  %vm16812_vm2 = vmmov %vm16763_vm10 }
 0x6a2   : > { %v13723_v60 = vsel %vm16766_vm12, %v13092_v18, %v6357_v7  ;;  %v6588_v6 = vmul.f32 1.442695, %v6566_v40  ;;  %8003 = vpow2.f32 %v6082_v41  ;;  %v6803_v47 = vadd.f32 %v6787_v54, %v6676_v27  ;;  %v7998_v55 = vpop.eup %7997  ;;  %16769 = vst [vmem:[#allocation144_spill] sm:$0xff] %v13731_v36  ;;  %v16772_v7 = vld [vmem:[#allocation131_spill] sm:$0xff]  ;;  %v16774_v27 = vld [vmem:[#allocation17_spill] sm:$0xff]  ;;  %vm16780_vm0 = vmmov %vm16766_vm12 }
 0x6a3   : > { %v6738_v10 = vsel %vm16767_vm7, %v13495_v14, %v13686_v30  ;;  %8005 = vpow2.f32 %v6209_v61  ;;  %v6440_v13 = vsub.f32 %v16768_v23, %v13650_v25  ;;  %v16771_v12 = vunpack.c.l.bf16 %v16770_v62 }
 0x6a4   : > { %v16773_v5 = vunpack.c.l.bf16 %v16772_v7  ;;  %v6715_v41 = vmul.f32 1.442695, %v6693_v2  ;;  %v6060_v54 = vsub.f32 %v16774_v27, %v13705_v24  ;;  %v13739_v8 = vpop.eup %7999  ;;  %v16776_v61 = vunpack.c.h.bf16 %v16735_v22 }
 0x6a5   : > { %v6153_v3 = vmul.f32 %v7990_v0, %v16771_v12  ;;  %16775 = vst [vmem:[#allocation14_spill] sm:$0xff] %v13739_v8  ;;  %v6375_v9 = vadd.f32 %v7998_v55, %v6248_v52  ;;  %v6336_v23 = vmul.f32 1.442695, %v6313_v37  ;;  %v6187_v33 = vsub.f32 %v16777_v59, %v13705_v24 }
 0x6a6   : > { %v6280_v40 = vmul.f32 %v7992_v19, %v16773_v5  ;;  %v6914_v39 = vmul.f32 %v7988_v16, %v16776_v61  ;;  %v7136_v30 = vadd.f32 %v13739_v8, %v7009_v48  ;;  %v6391_v0 = vunpack.c.l.bf16 %v13723_v60  ;;  %v8002_v2 = vpop.eup %8001  ;;  %v13762_v5 = vpop.f32.mrf.mxu3 }
 0x6a7   : > { %8007 = vpow2.f32 %v6588_v6  ;;  %v6820_v19 = vsub.f32 %v13540_v49, %v13591_v63  ;;  %v13758_v59 = vsel %vm16780_vm0, %v16681_v15, %v6738_v10  ;;  %v6463_v52 = vmul.f32 1.442695, %v6440_v13 }
 0x6a8   : > { %v13753_v16 = vadd.f32 %v6914_v39, %v6803_v47  ;;  %v8004_v37 = vpop.eup %8003  ;;  %v6296_v48 = vadd.f32 %v6280_v40, %v6153_v3  ;;  %8009 = vpow2.f32 %v6715_v41  ;;  %v6947_v49 = vsub.f32 %v13565_v51, %v13591_v63  ;;  %v16781_v39 = vld [vmem:[#allocation183_spill] sm:$0xff]  ;;  %v16782_v51 = vld [vmem:[#allocation196_spill] sm:$0xff]  ;;  %v16783_v41 = vld [vmem:[#allocation114_spill] sm:$0xff] }
 0x6a9   : > { %v6084_v6 = vmul.f32 1.442695, %v6060_v54  ;;  %v8006_v27 = vpop.eup %8005  ;;  %v6502_v61 = vadd.f32 %v8002_v2, %v6375_v9  ;;  %8011 = vpow2.f32 %v6336_v23  ;;  %v6567_v47 = vsub.f32 %v16781_v39, %v13650_v25  ;;  %v16784_v9 = vld [vmem:[#allocation178_spill] sm:$0xff] }
 0x6aa   : > { %16779 = vst [vmem:[#allocation70_spill] sm:$0xff] %v13753_v16  ;;  %v6211_v22 = vmul.f32 1.442695, %v6187_v33  ;;  %8013 = vrcp.f32 %v7136_v30  ;;  %v6407_v10 = vmul.f32 %v7998_v55, %v6391_v0  ;;  %v6842_v36 = vmul.f32 1.442695, %v6820_v19  ;;  %v13777_v19 = vpop.f32.mrf.mxu1 }
 0x6ab   : > { %v7074_v13 = vsub.f32 %v13579_v43, %v13591_v63  ;;  %v6772_v3 = vunpack.c.l.bf16 %v13758_v59  ;;  %8015 = vpow2.f32 %v6463_v52  ;;  %v6314_v40 = vsub.f32 %v16782_v51, %v13705_v24  ;;  %v16786_v52 = vld [vmem:[#allocation228_spill] sm:$0xff] }
 0x6ac   : > { %v16785_v54 = vmax.f32 %v16783_v41, %v16784_v9  ;;  %v6423_v39 = vadd.f32 %v6407_v10, %v6296_v48  ;;  %v6969_v33 = vmul.f32 1.442695, %v6947_v49  ;;  %v6249_v30 = vadd.f32 %v8006_v27, %v8004_v37 }
 0x6ad   : > { %v8008_v12 = vpop.eup %8007  ;;  %8017 = vpow2.f32 %v6084_v6  ;;  %v6590_v0 = vmul.f32 1.442695, %v6567_v47  ;;  %v6694_v43 = vsub.f32 %v16723_v1, %v13650_v25  ;;  %v16787_v51 = vunpack.c.l.bf16 %v16786_v52 }
 0x6ae   : > { %v5235_v23 = vmax.f32 %v16785_v54, %v13762_v5  ;;  %v6629_v55 = vadd.f32 %v8008_v12, %v6502_v61  ;;  %8019 = vpow2.f32 %v6211_v22  ;;  %v8010_v63 = vpop.eup %8009  ;;  %v7096_v41 = vmul.f32 1.442695, %v7074_v13  ;;  %v16788_v61 = vld [vmem:[#allocation198_spill] sm:$0xff] }
 0x6af   : > { %v6534_v57 = vmul.f32 %v8002_v2, %v16787_v51  ;;  %8021 = vpow2.f32 %v6842_v36  ;;  %v6392_v54 = vunpack.c.h.bf16 %v13723_v60  ;;  %v8012_v48 = vpop.eup %8011  ;;  %v6338_v6 = vmul.f32 1.442695, %v6314_v40  ;;  %v16790_v36 = vld [vmem:[#allocation214_spill] sm:$0xff]  ;;  %v16791_v2 = vld [vmem:[#allocation213_spill] sm:$0xff] }
 0x6b0   : > { %v6441_v47 = vsub.f32 %v16788_v61, %v13705_v24  ;;  %v5251_v1 = vmax.f32 %v5235_v23, %v13777_v19  ;;  %v13786_v22 = vpop.eup %8013  ;;  %8023 = vpow2.f32 %v6969_v33  ;;  %v6376_v8 = vadd.f32 %v8012_v48, %v6249_v30  ;;  %v16793_v60 = vld [vmem:[#allocation209_spill] sm:$0xff]  ;;  %v13801_v33 = vpop.f32.mrf.mxu2 }
 0x6b1   : > { %16789 = vst [vmem:[#allocation193_spill] sm:$0xff] %v13786_v22  ;;  %v6550_v10 = vadd.f32 %v6534_v57, %v6423_v39  ;;  %v16792_v13 = vsel %vm9446_vm5, %v16790_v36, %v16791_v2  ;;  %v16794_v51 = vperm.slane %v16793_v60, 0  ;;  %v8016_v49 = vpop.eup %8015  ;;  %v6756_v61 = vadd.f32 %v8010_v63, %v6629_v55  ;;  %v16795_v30 = vld [vmem:[#allocation37_spill] sm:$0xff] }
 0x6b2   : > { %8025 = vpow2.f32 %v6590_v0  ;;  %v6717_v23 = vmul.f32 1.442695, %v6694_v43  ;;  %v6821_v57 = vsub.f32 %v13593_v44, %v13650_v25  ;;  %v16796_v4 = vunpack.c.l.bf16 %v16795_v30  ;;  %v16799_v0 = vld [vmem:[#allocation200_spill] sm:$0xff] }
 0x6b3   : > { %v13797_v40 = vsel %vm9477_vm8, %v16794_v51, %v16792_v13  ;;  %v8018_v39 = vpop.eup %8017  ;;  %8027 = vpow2.f32 %v7096_v41  ;;  %v16797_v36 = vunpack.c.h.bf16 %v16770_v62  ;;  %v16798_v13 = vunpack.c.h.bf16 %v16772_v7 }
 0x6b4   : > { %v6661_v22 = vmul.f32 %v8008_v12, %v16796_v4  ;;  %v8020_v51 = vpop.eup %8019  ;;  %8029 = vpow2.f32 %v6338_v6  ;;  %v6465_v55 = vmul.f32 1.442695, %v6441_v47  ;;  %v6568_v43 = vsub.f32 %v16799_v0, %v13705_v24 }
 0x6b5   : > { %v6154_v2 = vmul.f32 %v8004_v37, %v16797_v36  ;;  %v6281_v60 = vmul.f32 %v8006_v27, %v16798_v13  ;;  %v13812_v44 = vmax.f32 %v5251_v1, %v13801_v33  ;;  %v8022_v56 = vpop.eup %8021  ;;  %v6788_v17 = vmul.f32 %v8010_v63, %v6772_v3  ;;  %v13844_v13 = vpop.f32.mrf.mxu3 }
 0x6b6   : > { %v6677_v16 = vadd.f32 %v6661_v22, %v6550_v10  ;;  %v6503_v4 = vadd.f32 %v8016_v49, %v6376_v8  ;;  %v13818_v12 = vsel %vm3115_vm14, %v13337_v28, %v13797_v40  ;;  %v6883_v7 = vadd.f32 %v8022_v56, %v6756_v61  ;;  %v13822_v41 = vpop.eup %8023  ;;  %v16801_v22 = vld [vmem:[#allocation86_spill] sm:$0xff] }
 0x6b7   : > { %8031 = vpow2.f32 %v6717_v23  ;;  %v6844_v37 = vmul.f32 1.442695, %v6821_v57  ;;  %v6948_v27 = vsub.f32 %v13624_v29, %v13650_v25  ;;  %v6297_v6 = vadd.f32 %v6281_v60, %v6154_v2  ;;  %v16803_v23 = vld [vmem:[#allocation24_spill] sm:$0xff] }
 0x6b8   : > { %v7075_v47 = vsub.f32 %v13640_v46, %v13650_v25  ;;  %v6250_v3 = vadd.f32 %v8020_v51, %v8018_v39  ;;  %v6695_v8 = vsub.f32 %v16741_v35, %v13705_v24  ;;  %v8026_v63 = vpop.eup %8025  ;;  %8033 = vpow2.f32 %v6465_v55  ;;  %v16806_v25 = vld [vmem:[#allocation171_spill] sm:$0xff] }
 0x6b9   : > { %v6592_v1 = vmul.f32 1.442695, %v6568_v43  ;;  %v6061_v10 = vsub.f32 %v16801_v22, %v13812_v44  ;;  %v7227_v61 = vpack.c.bf16 %v13700_v26, %v13697_v34  ;;  %v13832_v29 = vpop.eup %8027  ;;  %v16804_v57 = vunpack.c.l.bf16 %v16803_v23 }
 0x6ba   : > { %16802 = vst [vmem:[#allocation124_spill] sm:$0xff] %v13832_v29  ;;  %v6630_v2 = vadd.f32 %v8026_v63, %v6503_v4  ;;  %vm16805_vm1 = vcmp.lt.s32.totalorder %v16762_v58, 1  ;;  %v6188_v35 = vsub.f32 %v16806_v25, %v13812_v44  ;;  %v8030_v60 = vpop.eup %8029  ;;  %v6804_v55 = vadd.f32 %v6788_v17, %v6677_v16 }
 0x6bb   : > { %v6915_v36 = vmul.f32 %v8022_v56, %v16804_v57  ;;  %v13840_v46 = vsel %vm16805_vm1, %v13092_v18, %v13713_v31  ;;  %v6408_v34 = vmul.f32 %v8012_v48, %v6392_v54  ;;  %8035 = vpow2.f32 %v6844_v37  ;;  %7750 = vmatmul.msk.bf16.vlgmr.msrb.gmra.mxu0 %vm1117_vm4, %v7227_v61  ;;  %v16809_v54 = vld [vmem:[#allocation22_spill] sm:$0xff]  ;;  %vm16819_vm3 = vmmov %vm16805_vm1 }
 0x6bc   : > { %v6971_v26 = vmul.f32 1.442695, %v6948_v27  ;;  %v7010_v56 = vadd.f32 %v13822_v41, %v6883_v7  ;;  %v7098_v0 = vmul.f32 1.442695, %v7075_v47  ;;  %v6377_v43 = vadd.f32 %v8030_v60, %v6250_v3  ;;  %v13861_v3 = vpop.f32.mrf.mxu1 }
 0x6bd   : > { %v6719_v4 = vmul.f32 1.442695, %v6695_v8  ;;  %v8032_v22 = vpop.eup %8031  ;;  %v6424_v31 = vadd.f32 %v6408_v34, %v6297_v6  ;;  %8037 = vpow2.f32 %v6592_v1  ;;  %v6822_v57 = vsub.f32 %v13645_v11, %v13705_v24 }
 0x6be   : > { %v6086_v25 = vmul.f32 1.442695, %v6061_v10  ;;  %v6757_v50 = vadd.f32 %v8032_v22, %v6630_v2  ;;  %v16808_v17 = vunpack.c.l.bf16 %v16807_v45  ;;  %v16810_v48 = vunpack.c.l.bf16 %v16809_v54  ;;  %v8034_v61 = vpop.eup %8033 }
 0x6bf   : > { %v6213_v27 = vmul.f32 1.442695, %v6188_v35  ;;  %v16811_v7 = vunpack.c.h.bf16 %v16786_v52  ;;  %8039 = vpow2.f32 %v6971_v26  ;;  %v6393_v6 = vunpack.c.l.bf16 %v13840_v46  ;;  %v16814_v26 = vld [vmem:[#allocation211_spill] sm:$0xff] }
 0x6c0   : > { %v6155_v16 = vmul.f32 %v8018_v39, %v16808_v17  ;;  %v6282_v37 = vmul.f32 %v8020_v51, %v16810_v48  ;;  %v6739_v11 = vsel %vm16812_vm2, %v13495_v14, %v13797_v40  ;;  %v7137_v39 = vadd.f32 %v13832_v29, %v7010_v56  ;;  %v16813_v51 = vld [vmem:[#allocation204_spill] sm:$0xff]  ;;  %v16815_v17 = vld [vmem:[#allocation165_spill] sm:$0xff] }
 0x6c1   : > { %v6535_v47 = vmul.f32 %v8016_v49, %v16811_v7  ;;  %v6504_v8 = vadd.f32 %v8034_v61, %v6377_v43  ;;  %8041 = vpow2.f32 %v6719_v4  ;;  %v6315_v1 = vsub.f32 %v16813_v51, %v13812_v44  ;;  %v8036_v10 = vpop.eup %8035  ;;  %v16869_v29 = vld [vmem:[#allocation53_spill] sm:$0xff] }
 0x6c2   : > { %v6846_v49 = vmul.f32 1.442695, %v6822_v57  ;;  %v6949_v2 = vsub.f32 %v13670_v42, %v13705_v24  ;;  %8043 = vpow2.f32 %v6086_v25  ;;  %v6884_v35 = vadd.f32 %v8036_v10, %v6757_v50  ;;  %v13881_v50 = vpop.f32.mrf.mxu2 }
 0x6c3   : > { %v6551_v52 = vadd.f32 %v6535_v47, %v6424_v31  ;;  %v6298_v34 = vadd.f32 %v6282_v37, %v6155_v16  ;;  %8045 = vpow2.f32 %v6213_v27  ;;  %v16816_v48 = vmax.f32 %v16814_v26, %v16815_v17  ;;  %v8038_v43 = vpop.eup %8037  ;;  %v16820_v16 = vld [vmem:[#allocation207_spill] sm:$0xff]  ;;  %v13885_v27 = vpop.f32.mrf.mxu3 }
 0x6c4   : > { %v13872_v4 = vadd.f32 %v6915_v36, %v6804_v55  ;;  %v16818_v7 = vunpack.c.h.bf16 %v16795_v30  ;;  %8047 = vpow2.f32 %v7098_v0  ;;  %v13879_v42 = vsel %vm16819_vm3, %v16681_v15, %v6739_v11 }
 0x6c5   : > { %v5236_v56 = vmax.f32 %v16816_v48, %v13844_v13  ;;  %v6409_v31 = vmul.f32 %v8030_v60, %v6393_v6  ;;  %v6631_v57 = vadd.f32 %v8038_v43, %v6504_v8  ;;  %v6340_v25 = vmul.f32 1.442695, %v6315_v1  ;;  %v13887_v36 = vpop.eup %8039 }
 0x6c6   : > { %16817 = vst [vmem:[#allocation145_spill] sm:$0xff] %v13872_v4  ;;  %v6662_v51 = vmul.f32 %v8026_v63, %v16818_v7  ;;  %v6442_v37 = vsub.f32 %v16820_v16, %v13812_v44  ;;  %8049 = vpow2.f32 %v6846_v49  ;;  %v6973_v63 = vmul.f32 1.442695, %v6949_v2  ;;  %v16828_v16 = vld [vmem:[#allocation141_spill] sm:$0xff] }
 0x6c7   : > { %16821 = vst [vmem:[#allocation146_spill] sm:$0xff] %v13887_v36  ;;  %v7076_v55 = vsub.f32 %v13694_v32, %v13705_v24  ;;  %v8042_v0 = vpop.eup %8041  ;;  %8051 = vrcp.f32 %v7137_v39  ;;  %v7011_v47 = vadd.f32 %v13887_v36, %v6884_v35  ;;  %v6425_v60 = vadd.f32 %v6409_v31, %v6298_v34  ;;  %v16826_v35 = vld [vmem:[#allocation212_spill] sm:$0xff] }
 0x6c8   : > { %v6678_v30 = vadd.f32 %v6662_v51, %v6551_v52  ;;  %v5252_v6 = vmax.f32 %v5236_v56, %v13861_v3  ;;  %v8044_v11 = vpop.eup %8043  ;;  %v16822_v8 = vunpack.c.h.bf16 %v13758_v59  ;;  %v16823_v26 = vunpack.c.h.bf16 %v16803_v23  ;;  %v16824_v52 = vld [vmem:[#allocation38_spill] sm:$0xff] }
 0x6c9   : > { %v16825_v49 = vunpack.c.l.bf16 %v16824_v52  ;;  %v6774_v7 = vunpack.c.l.bf16 %v13879_v42  ;;  %v8046_v32 = vpop.eup %8045  ;;  %v6758_v24 = vadd.f32 %v8042_v0, %v6631_v57  ;;  %8053 = vpow2.f32 %v6340_v25 }
 0x6ca   : > { %v6789_v1 = vmul.f32 %v8032_v22, %v16822_v8  ;;  %v6916_v48 = vmul.f32 %v8036_v10, %v16823_v26  ;;  %v6467_v39 = vmul.f32 1.442695, %v6442_v37  ;;  %v6569_v34 = vsub.f32 %v16826_v35, %v13812_v44  ;;  %v13902_v56 = vpop.eup %8047  ;;  %v13906_v22 = vpop.f32.mrf.mxu1 }
 0x6cb   : > { %v6536_v2 = vmul.f32 %v8034_v61, %v16825_v49  ;;  %16827 = vst [vmem:[#allocation89_spill] sm:$0xff] %v13902_v56  ;;  %8055 = vpow2.f32 %v6973_v63  ;;  %v7100_v59 = vmul.f32 1.442695, %v7076_v55  ;;  %v6696_v23 = vsub.f32 %v16784_v9, %v13812_v44 }
 0x6cc   : > { %v6805_v51 = vadd.f32 %v6789_v1, %v6678_v30  ;;  %v7138_v61 = vadd.f32 %v13902_v56, %v7011_v47  ;;  %v6823_v31 = vsub.f32 %v13762_v5, %v13812_v44  ;;  %v13912_v57 = vmax.f32 %v5252_v6, %v13881_v50  ;;  %v8050_v25 = vpop.eup %8049 }
 0x6cd   : > { %v6552_v10 = vadd.f32 %v6536_v2, %v6425_v60  ;;  %v16829_v37 = vunpack.c.l.bf16 %v16828_v16  ;;  %v16830_v63 = vunpack.c.h.bf16 %v16807_v45  ;;  %v6251_v8 = vadd.f32 %v8046_v32, %v8044_v11  ;;  %v13920_v26 = vpop.eup %8051  ;;  %v16835_v45 = vld [vmem:[#allocation195_spill] sm:$0xff] }
 0x6ce   : > { %v16831_v9 = vunpack.c.h.bf16 %v16809_v54  ;;  %16832 = vst [vmem:[#allocation192_spill] sm:$0xff] %v13920_v26  ;;  %v6885_v47 = vadd.f32 %v8050_v25, %v6758_v24  ;;  %8057 = vpow2.f32 %v6467_v39  ;;  %v6594_v60 = vmul.f32 1.442695, %v6569_v34  ;;  %v13930_v54 = vpop.f32.mrf.mxu2  ;;  %v16837_v39 = vld [vmem:[#allocation103_spill] sm:$0xff] }
 0x6cf   : > { %v6663_v30 = vmul.f32 %v8038_v43, %v16829_v37  ;;  %v6156_v55 = vmul.f32 %v8044_v11, %v16830_v63  ;;  %v6950_v5 = vsub.f32 %v13777_v19, %v13812_v44  ;;  %v13924_v6 = vadd.f32 %v6916_v48, %v6805_v51  ;;  %v16834_v43 = vld [vmem:[#allocation45_spill] sm:$0xff]  ;;  %v8054_v35 = vpop.eup %8053  ;;  %v13934_v37 = vpop.f32.mrf.mxu3 }
 0x6d0   : > { %v6283_v1 = vmul.f32 %v8046_v32, %v16831_v9  ;;  %8059 = vpow2.f32 %v7100_v59  ;;  %v6721_v49 = vmul.f32 1.442695, %v6696_v23  ;;  %v16836_v2 = vmax.f32 %v16834_v43, %v16835_v45  ;;  %v16839_v23 = vld [vmem:[#allocation18_spill] sm:$0xff] }
 0x6d1   : > { %16833 = vst [vmem:[#allocation50_spill] sm:$0xff] %v13924_v6  ;;  %8061 = vrcp.f32 %v7138_v61  ;;  %v6679_v32 = vadd.f32 %v6663_v30, %v6552_v10  ;;  %v6848_v24 = vmul.f32 1.442695, %v6823_v31  ;;  %v6062_v34 = vsub.f32 %v16837_v39, %v13912_v57  ;;  %v13936_v19 = vpop.eup %8055  ;;  %v16840_v30 = vld [vmem:[#allocation203_spill] sm:$0xff] }
 0x6d2   : > { %v5237_v11 = vmax.f32 %v16836_v2, %v13885_v27  ;;  %16838 = vst [vmem:[#allocation147_spill] sm:$0xff] %v13936_v19  ;;  %v6299_v48 = vadd.f32 %v6283_v1, %v6156_v55  ;;  %v6378_v51 = vadd.f32 %v8054_v35, %v6251_v8  ;;  %v6394_v59 = vunpack.c.h.bf16 %v13840_v46  ;;  %v16841_v2 = vld [vmem:[#allocation83_spill] sm:$0xff] }
 0x6d3   : > { %v6189_v63 = vsub.f32 %v16839_v23, %v13912_v57  ;;  %v6790_v9 = vmul.f32 %v8042_v0, %v6774_v7  ;;  %v7012_v43 = vadd.f32 %v13936_v19, %v6885_v47  ;;  %8063 = vpow2.f32 %v6594_v60  ;;  %v16844_v47 = vld [vmem:[#allocation63_spill] sm:$0xff]  ;;  %v13955_v23 = vpop.f32.mrf.mxu1 }
 0x6d4   : > { %v6975_v61 = vmul.f32 1.442695, %v6950_v5  ;;  %v6410_v10 = vmul.f32 %v8054_v35, %v6394_v59  ;;  %8065 = vpow2.f32 %v6721_v49  ;;  %v5253_v31 = vmax.f32 %v5237_v11, %v13906_v22  ;;  %v8058_v8 = vpop.eup %8057 }
 0x6d5   : > { %v16842_v39 = vmax.f32 %v16840_v30, %v16841_v2  ;;  %v6806_v1 = vadd.f32 %v6790_v9, %v6679_v32  ;;  %8067 = vpow2.f32 %v6848_v24  ;;  %v7077_v46 = vsub.f32 %v13801_v33, %v13812_v44  ;;  %v16847_v33 = vld [vmem:[#allocation104_spill] sm:$0xff] }
 0x6d6   : > { %v6088_v0 = vmul.f32 1.442695, %v6062_v34  ;;  %v13949_v7 = vpop.eup %8059  ;;  %v16845_v60 = vunpack.c.l.bf16 %v16844_v47  ;;  %v6426_v49 = vadd.f32 %v6410_v10, %v6299_v48  ;;  %v6505_v35 = vadd.f32 %v8058_v8, %v6378_v51 }
 0x6d7   : > { %v5238_v55 = vmax.f32 %v16842_v39, %v13934_v37  ;;  %16843 = vst [vmem:[#allocation12_spill] sm:$0xff] %v13949_v7  ;;  %v6215_v11 = vmul.f32 1.442695, %v6189_v63  ;;  %v13953_v59 = vpop.eup %8061  ;;  %v7139_v30 = vadd.f32 %v13949_v7, %v7012_v43  ;;  %v6775_v32 = vunpack.c.h.bf16 %v13879_v42  ;;  %v16850_v43 = vld [vmem:[#allocation122_spill] sm:$0xff] }
 0x6d8   : > { %v6917_v5 = vmul.f32 %v8050_v25, %v16845_v60  ;;  %16846 = vst [vmem:[#allocation148_spill] sm:$0xff] %v13953_v59  ;;  %8069 = vpow2.f32 %v6975_v61  ;;  %v6316_v44 = vsub.f32 %v16847_v33, %v13912_v57  ;;  %v16848_v24 = vunpack.c.h.bf16 %v16824_v52  ;;  %v13981_v33 = vpop.f32.mrf.mxu2 }
 0x6d9   : > { %v13967_v25 = vsel %vm3107_vm13, %v13092_v18, %v13818_v12  ;;  %v13970_v48 = vmax.f32 %v5253_v31, %v13930_v54  ;;  %v5254_v51 = vmax.f32 %v5238_v55, %v13955_v23  ;;  %v8064_v63 = vpop.eup %8063  ;;  %v7102_v9 = vmul.f32 1.442695, %v7077_v46  ;;  %v16852_v12 = vld [vmem:[#allocation215_spill] sm:$0xff]  ;;  %v16853_v46 = vld [vmem:[#allocation90_spill] sm:$0xff] }
 0x6da   : > { %v6537_v34 = vmul.f32 %v8058_v8, %v16848_v24  ;;  %v13973_v42 = vadd.f32 %v6917_v5, %v6806_v1  ;;  %8071 = vpow2.f32 %v6088_v0  ;;  %v6443_v52 = vsub.f32 %v16850_v43, %v13912_v57  ;;  %v8066_v61 = vpop.eup %8065  ;;  %v16851_v8 = vld [vmem:[#allocation95_spill] sm:$0xff] }
 0x6db   : > { %v6632_v39 = vadd.f32 %v8064_v63, %v6505_v35  ;;  %8073 = vpow2.f32 %v6215_v11  ;;  %v6990_v31 = vsel %vm3111_vm11, %v16852_v12, %v16851_v8  ;;  %v8068_v60 = vpop.eup %8067  ;;  %v6342_v55 = vmul.f32 1.442695, %v6316_v44  ;;  %v16855_v11 = vld [vmem:[#allocation163_spill] sm:$0xff] }
 0x6dc   : > { %16849 = vst [vmem:[#allocation107_spill] sm:$0xff] %v13973_v42  ;;  %v6553_v10 = vadd.f32 %v6537_v34, %v6426_v49  ;;  %8075 = vrcp.f32 %v7139_v30  ;;  %v6570_v0 = vsub.f32 %v16853_v46, %v13912_v57  ;;  %v16854_v5 = vunpack.c.h.bf16 %v16828_v16  ;;  %v16856_v44 = vld [vmem:[#allocation175_spill] sm:$0xff] }
 0x6dd   : > { %v6697_v35 = vsub.f32 %v16815_v17, %v13912_v57  ;;  %v6063_v24 = vsub.f32 %v16855_v11, %v13970_v48  ;;  %v13993_v34 = vmax.f32 %v5254_v51, %v13981_v33  ;;  %v6791_v30 = vmul.f32 %v8066_v61, %v6775_v32 }
 0x6de   : > { %v6664_v49 = vmul.f32 %v8064_v63, %v16854_v5  ;;  %v13995_v43 = vpop.eup %8069  ;;  %8077 = vpow2.f32 %v7102_v9  ;;  %v6190_v1 = vsub.f32 %v16856_v44, %v13970_v48  ;;  %vm16857_vm6 = vcmp.lt.s32.totalorder %v16651_v53, 1 }
 0x6df   : > { %v6997_v16 = vsel %vm16857_vm6, %v16851_v8, %v6990_v31  ;;  %v6759_v46 = vadd.f32 %v8066_v61, %v6632_v39  ;;  %v16858_v17 = vunpack.c.h.bf16 %v16844_v47  ;;  %v6469_v11 = vmul.f32 1.442695, %v6443_v52  ;;  %v16859_v47 = vld [vmem:[#allocation167_spill] sm:$0xff]  ;;  %vm16862_vm15 = vmmov %vm16857_vm6 }
 0x6e0   : > { %v6680_v63 = vadd.f32 %v6664_v49, %v6553_v10  ;;  %v8072_v7 = vpop.eup %8071  ;;  %8079 = vpow2.f32 %v6342_v55  ;;  %v6596_v51 = vmul.f32 1.442695, %v6570_v0  ;;  %v6740_v32 = vsel %vm3115_vm14, %v13495_v14, %v13337_v28  ;;  %v16861_v0 = vld [vmem:[#allocation179_spill] sm:$0xff] }
 0x6e1   : > { %v6918_v5 = vmul.f32 %v8068_v60, %v16858_v17  ;;  %v7117_v9 = vsel %vm3111_vm11, %v13585_v21, %v16704_v38  ;;  %v8074_v31 = vpop.eup %8073  ;;  %v6723_v10 = vmul.f32 1.442695, %v6697_v35  ;;  %v6090_v61 = vmul.f32 1.442695, %v6063_v24 }
 0x6e2   : > { %v6064_v39 = vsub.f32 %v16859_v47, %v13993_v34  ;;  %v7022_v52 = vunpack.c.l.bf16 %v6997_v16  ;;  %v14014_v49 = vpop.eup %8075  ;;  %v6217_v55 = vmul.f32 1.442695, %v6190_v1  ;;  %v6191_v44 = vsub.f32 %v16861_v0, %v13993_v34 }
 0x6e3   : > { %16860 = vst [vmem:[#allocation136_spill] sm:$0xff] %v14014_v49  ;;  %v7023_v17 = vunpack.c.h.bf16 %v6997_v16  ;;  %v7124_v42 = vsel %vm16862_vm15, %v16704_v38, %v7117_v9  ;;  %v6807_v19 = vadd.f32 %v6791_v30, %v6680_v63  ;;  %v14024_v35 = vsel %vm3107_vm13, %v16681_v15, %v6740_v32  ;;  %v16864_v49 = vld [vmem:[#allocation218_spill] sm:$0xff]  ;;  %v16865_v16 = vld [vmem:[#allocation191_spill] sm:$0xff]  ;;  %v16866_v30 = vld [vmem:[#allocation40_spill] sm:$0xff] }
 0x6e4   : > { %v7038_v24 = vmul.f32 %v13409_v20, %v7022_v52  ;;  %v7149_v47 = vunpack.c.l.bf16 %v7124_v42  ;;  %v14027_v59 = vpop.eup %8077  ;;  %v6252_v1 = vadd.f32 %v8074_v31, %v8072_v7  ;;  %v6317_v0 = vsub.f32 %v16864_v49, %v13970_v48  ;;  %v16867_v9 = vld [vmem:[#allocation108_spill] sm:$0xff]  ;;  %v16868_v20 = vld [vmem:[#allocation166_spill] sm:$0xff]  ;;  %v16870_v49 = vld [vmem:[#allocation49_spill] sm:$0xff] }
 0x6e5   : > { %16863 = vst [vmem:[#allocation199_spill] sm:$0xff] %v14027_v59  ;;  %v7039_v26 = vmul.f32 %v16865_v16, %v7023_v17  ;;  %v7150_v58 = vunpack.c.h.bf16 %v7124_v42  ;;  %8081 = vpow2.f32 %v6090_v61  ;;  %v6092_v53 = vmul.f32 1.442695, %v6064_v39  ;;  %v16871_v61 = vld [vmem:[#allocation129_spill] sm:$0xff] }
 0x6e6   : > { %v7054_v63 = vadd.f32 %v7038_v24, %v16866_v30  ;;  %v7165_v62 = vmul.f32 %v16867_v9, %v7149_v47  ;;  %v8080_v32 = vpop.eup %8079  ;;  %8083 = vpow2.f32 %v6217_v55  ;;  %v6219_v56 = vmul.f32 1.442695, %v6191_v44  ;;  %v16876_v9 = vld [vmem:[#allocation74_spill] sm:$0xff] }
 0x6e7   : > { %v7055_v52 = vadd.f32 %v7039_v26, %v16868_v20  ;;  %v7166_v6 = vmul.f32 %v16869_v29, %v7150_v58  ;;  %v6886_v4 = vadd.f32 %v8068_v60, %v6759_v46  ;;  %8085 = vpow2.f32 %v6469_v11  ;;  %v16872_v26 = vld [vmem:[#allocation57_spill] sm:$0xff] }
 0x6e8   : > { %v6444_v36 = vsub.f32 %v16870_v49, %v13970_v48  ;;  %v7181_v17 = vadd.f32 %v7165_v62, %v7054_v63  ;;  %8087 = vpow2.f32 %v6596_v51  ;;  %v6344_v42 = vmul.f32 1.442695, %v6317_v0  ;;  %v16873_v62 = vld [vmem:[#allocation117_spill] sm:$0xff]  ;;  %v16874_v0 = vld [vmem:[#allocation15_spill] sm:$0xff] }
 0x6e9   : > { %v6318_v39 = vsub.f32 %v16871_v61, %v13993_v34  ;;  %v7182_v24 = vadd.f32 %v7166_v6, %v7055_v52  ;;  %v6824_v55 = vsub.f32 %v13844_v13, %v13912_v57  ;;  %8089 = vpow2.f32 %v6092_v53  ;;  %v16878_v52 = vld [vmem:[#allocation100_spill] sm:$0xff] }
 0x6ea   : > { %v7213_v58 = vmul.f32 %v16872_v26, %v7181_v17  ;;  %v6379_v29 = vadd.f32 %v8080_v32, %v6252_v1  ;;  %v6951_v60 = vsub.f32 %v13861_v3, %v13912_v57  ;;  %8091 = vpow2.f32 %v6219_v56  ;;  %v16875_v1 = vld [vmem:[#allocation41_spill] sm:$0xff] }
 0x6eb   : > { %v7214_v46 = vmul.f32 %v16873_v62, %v7182_v24  ;;  %v8082_v11 = vpop.eup %8081  ;;  %v7013_v51 = vadd.f32 %v13995_v43, %v6886_v4  ;;  %v7078_v6 = vsub.f32 %v13881_v50, %v13912_v57  ;;  %v6471_v44 = vmul.f32 1.442695, %v6444_v36 }
 0x6ec   : > { %v6571_v13 = vsub.f32 %v16874_v0, %v13970_v48  ;;  %v8084_v16 = vpop.eup %8083  ;;  %8093 = vpow2.f32 %v6344_v42  ;;  %v6346_v53 = vmul.f32 1.442695, %v6318_v39  ;;  %v6445_v30 = vsub.f32 %v16875_v1, %v13993_v34  ;;  %v16882_v0 = vld [vmem:[#allocation28_spill] sm:$0xff] }
 0x6ed   : > { %v7228_v3 = vpack.c.bf16 %v7214_v46, %v7213_v58  ;;  %v8086_v56 = vpop.eup %8085  ;;  %v14054_v63 = vadd.f32 %v6918_v5, %v6807_v19  ;;  %v16877_v20 = vunpack.c.l.bf16 %v16876_v9  ;;  %v16879_v49 = vunpack.c.l.bf16 %v16878_v52 }
 0x6ee   : > { %v6850_v36 = vmul.f32 1.442695, %v6824_v55  ;;  %v8088_v57 = vpop.eup %8087  ;;  %v6506_v17 = vadd.f32 %v8086_v56, %v6379_v29  ;;  %8095 = vpow2.f32 %v6723_v10  ;;  %v6977_v61 = vmul.f32 1.442695, %v6951_v60  ;;  %v16880_v55 = vld [vmem:[#allocation58_spill] sm:$0xff] }
 0x6ef   : > { %v6157_v4 = vmul.f32 %v8072_v7, %v16877_v20  ;;  %v6284_v50 = vmul.f32 %v8074_v31, %v16879_v49  ;;  %v6698_v42 = vsub.f32 %v16835_v45, %v13970_v48  ;;  %7751 = vmatmul.msk.bf16.gmra.mxu0 %vm1117_vm4, %v7228_v3  ;;  %v8090_v39 = vpop.eup %8089  ;;  %v7104_v24 = vmul.f32 1.442695, %v7078_v6 }
 0x6f0   : > { %v6253_v19 = vadd.f32 %v8084_v16, %v8082_v11  ;;  %8097 = vpow2.f32 %v6471_v44  ;;  %v6598_v5 = vmul.f32 1.442695, %v6571_v13  ;;  %v8092_v26 = vpop.eup %8091  ;;  %v14064_v7 = vadd.f32 %v14027_v59, %v7013_v51  ;;  %v16883_v51 = vld [vmem:[#allocation189_spill] sm:$0xff]  ;;  %v16884_v13 = vld [vmem:[#allocation59_spill] sm:$0xff] }
 0x6f1   : > { %8099 = vpow2.f32 %v6346_v53  ;;  %v6473_v31 = vmul.f32 1.442695, %v6445_v30  ;;  %v6572_v10 = vsub.f32 %v16880_v55, %v13993_v34  ;;  %v6300_v58 = vadd.f32 %v6284_v50, %v6157_v4 }
 0x6f2   : > { %8101 = vpow2.f32 %v6850_v36  ;;  %v6396_v45 = vunpack.c.h.bf16 %v13967_v25  ;;  %v8094_v60 = vpop.eup %8093  ;;  %v16881_v62 = vunpack.c.l.bf16 %v13967_v25  ;;  %v6633_v6 = vadd.f32 %v8088_v57, %v6506_v17  ;;  %v16887_v36 = vld [vmem:[#allocation54_spill] sm:$0xff] }
 0x6f3   : > { %v6725_v44 = vmul.f32 1.442695, %v6698_v42  ;;  %vm16885_vm11 = vcmp.lt.s32.totalorder %v16884_v13, 1  ;;  %v6380_v1 = vadd.f32 %v8094_v60, %v6253_v19  ;;  %8103 = vpow2.f32 %v6598_v5 }
 0x6f4   : > { %v6411_v46 = vmul.f32 %v8080_v32, %v16881_v62  ;;  %v14076_v53 = vsel %vm16885_vm11, %v16883_v51, %v16882_v0  ;;  %v6825_v30 = vsub.f32 %v13885_v27, %v13970_v48  ;;  %v6254_v3 = vadd.f32 %v8092_v26, %v8090_v39  ;;  %v8096_v20 = vpop.eup %8095  ;;  %vm16886_vm9 = vmmov %vm16885_vm11 }
 0x6f5   : > { %v14084_v25 = vsel %vm16886_vm9, %v13092_v18, %v13337_v28  ;;  %8105 = vpow2.f32 %v6473_v31  ;;  %v6600_v32 = vmul.f32 1.442695, %v6572_v10  ;;  %v6699_v4 = vsub.f32 %v16841_v2, %v13993_v34  ;;  %vm16906_vm10 = vmmov %vm16886_vm9 }
 0x6f6   : > { %v8098_v49 = vpop.eup %8097  ;;  %v6427_v50 = vadd.f32 %v6411_v46, %v6300_v58  ;;  %v16888_v17 = vunpack.c.l.bf16 %v16887_v36  ;;  %8107 = vpow2.f32 %v6977_v61  ;;  %v6270_v27 = vunpack.c.l.bf16 %v14076_v53  ;;  %vm16917_vm1 = vmmov %vm16886_vm9 }
 0x6f7   : > { %v8100_v19 = vpop.eup %8099  ;;  %v6760_v5 = vadd.f32 %v8096_v20, %v6633_v6  ;;  %v16889_v55 = vunpack.c.h.bf16 %v16876_v9  ;;  %v16890_v29 = vunpack.c.h.bf16 %v16878_v52  ;;  %v6952_v10 = vsub.f32 %v13906_v22, %v13970_v48 }
 0x6f8   : > { %v6538_v42 = vmul.f32 %v8086_v56, %v16888_v17  ;;  %v8102_v2 = vpop.eup %8101  ;;  %v6507_v47 = vadd.f32 %v8098_v49, %v6380_v1  ;;  %8109 = vpow2.f32 %v6725_v44  ;;  %v6852_v58 = vmul.f32 1.442695, %v6825_v30  ;;  %v16891_v56 = vld [vmem:[#allocation224_spill] sm:$0xff] }
 0x6f9   : > { %v6158_v62 = vmul.f32 %v8082_v11, %v16889_v55  ;;  %v6285_v31 = vmul.f32 %v8084_v16, %v16890_v29  ;;  %v6381_v46 = vadd.f32 %v8100_v19, %v6254_v3  ;;  %v16892_v61 = vunpack.c.l.bf16 %v16891_v56  ;;  %v8104_v11 = vpop.eup %8103  ;;  %v16893_v16 = vld [vmem:[#allocation98_spill] sm:$0xff] }
 0x6fa   : > { %8111 = vpow2.f32 %v6600_v32  ;;  %v6727_v59 = vmul.f32 1.442695, %v6699_v4  ;;  %v6826_v9 = vsub.f32 %v13934_v37, %v13993_v34  ;;  %v6554_v6 = vadd.f32 %v6538_v42, %v6427_v50  ;;  %v14107_v32 = vpop.f32.mrf.mxu3 }
 0x6fb   : > { %v6665_v17 = vmul.f32 %v8088_v57, %v16892_v61  ;;  %8113 = vpow2.f32 %v7104_v24  ;;  %v16894_v52 = vunpack.c.l.bf16 %v16893_v16  ;;  %v6286_v22 = vmul.f32 %v8092_v26, %v6270_v27  ;;  %v8106_v55 = vpop.eup %8105 }
 0x6fc   : > { %v16895_v44 = vunpack.c.l.bf16 %v14024_v35  ;;  %v6887_v30 = vadd.f32 %v8102_v2, %v6760_v5  ;;  %v6301_v3 = vadd.f32 %v6285_v31, %v6158_v62  ;;  %v7079_v57 = vsub.f32 %v13930_v54, %v13970_v48  ;;  %v14109_v4 = vpop.eup %8107  ;;  %v16897_v54 = vld [vmem:[#allocation205_spill] sm:$0xff] }
 0x6fd   : > { %v6159_v29 = vmul.f32 %v8090_v39, %v16894_v52  ;;  %16896 = vst [vmem:[#allocation68_spill] sm:$0xff] %v14109_v4  ;;  %v6634_v37 = vadd.f32 %v8104_v11, %v6507_v47  ;;  %8115 = vpow2.f32 %v6852_v58  ;;  %v6979_v24 = vmul.f32 1.442695, %v6952_v10  ;;  %v16898_v48 = vld [vmem:[#allocation201_spill] sm:$0xff] }
 0x6fe   : > { %v6792_v1 = vmul.f32 %v8096_v20, %v16895_v44  ;;  %v6508_v50 = vadd.f32 %v8106_v55, %v6381_v46  ;;  %v6412_v42 = vmul.f32 %v8094_v60, %v6396_v45  ;;  %8117 = vpow2.f32 %v6727_v59  ;;  %v8110_v20 = vpop.eup %8109 }
 0x6ff   : > { %v6854_v39 = vmul.f32 1.442695, %v6826_v9  ;;  %v6953_v26 = vsub.f32 %v13955_v23, %v13993_v34  ;;  %v6681_v27 = vadd.f32 %v6665_v17, %v6554_v6  ;;  %v6302_v5 = vadd.f32 %v6286_v22, %v6159_v29  ;;  %v14123_v9 = vpop.f32.mrf.mxu1  ;;  %v16901_v6 = vld [vmem:[#allocation132_spill] sm:$0xff] }
 0x700   : > { %v6397_v62 = vunpack.c.l.bf16 %v14084_v25  ;;  %v16899_v31 = vmax.f32 %v16897_v54, %v16898_v48  ;;  %v8112_v47 = vpop.eup %8111  ;;  %v7014_v10 = vadd.f32 %v14109_v4, %v6887_v30  ;;  %v6428_v58 = vadd.f32 %v6412_v42, %v6301_v3 }
 0x701   : > { %v7106_v45 = vmul.f32 1.442695, %v7079_v57  ;;  %v7080_v59 = vsub.f32 %v13981_v33, %v13993_v34  ;;  %v14121_v60 = vpop.eup %8113  ;;  %v6761_v23 = vadd.f32 %v8110_v20, %v6634_v37  ;;  %8119 = vpow2.f32 %v6979_v24  ;;  %v16904_v33 = vld [vmem:[#allocation185_spill] sm:$0xff]  ;;  %v16905_v34 = vld [vmem:[#allocation43_spill] sm:$0xff] }
 0x702   : > { %v5239_v61 = vmax.f32 %v16899_v31, %v14107_v32  ;;  %16900 = vst [vmem:[#allocation134_spill] sm:$0xff] %v14121_v60  ;;  %v6413_v46 = vmul.f32 %v8100_v19, %v6397_v62  ;;  %v6635_v17 = vadd.f32 %v8112_v47, %v6508_v50  ;;  %v16902_v52 = vunpack.c.l.bf16 %v16901_v6  ;;  %v14143_v31 = vpop.f32.mrf.mxu2 }
 0x703   : > { %v16903_v22 = vunpack.c.h.bf16 %v16887_v36  ;;  %8121 = vpow2.f32 %v6854_v39  ;;  %v6981_v30 = vmul.f32 1.442695, %v6953_v26  ;;  %v8116_v3 = vpop.eup %8115  ;;  %v6808_v57 = vadd.f32 %v6792_v1, %v6681_v27  ;;  %v16907_v39 = vld [vmem:[#allocation88_spill] sm:$0xff] }
 0x704   : > { %v6919_v29 = vmul.f32 %v8102_v2, %v16902_v52  ;;  %v6429_v42 = vadd.f32 %v6413_v46, %v6302_v5  ;;  %v14133_v37 = vsel %vm16906_vm10, %v16905_v34, %v16904_v33  ;;  %v5255_v19 = vmax.f32 %v5239_v61, %v14123_v9  ;;  %v8118_v24 = vpop.eup %8117  ;;  %v16909_v27 = vld [vmem:[#allocation168_spill] sm:$0xff] }
 0x705   : > { %v6539_v44 = vmul.f32 %v8098_v49, %v16903_v22  ;;  %v7141_v50 = vadd.f32 %v14121_v60, %v7014_v10  ;;  %8123 = vpow2.f32 %v7106_v45  ;;  %v7108_v36 = vmul.f32 1.442695, %v7080_v59  ;;  %v16910_v5 = vld [vmem:[#allocation116_spill] sm:$0xff] }
 0x706   : > { %v6888_v49 = vadd.f32 %v8116_v3, %v6761_v23  ;;  %v16908_v26 = vunpack.c.l.bf16 %v16907_v39  ;;  %v6762_v1 = vadd.f32 %v8118_v24, %v6635_v17  ;;  %vm16911_vm12 = vcmp.gt.s32.totalorder %v16910_v5, 14 }
 0x707   : > { %v6555_v2 = vadd.f32 %v6539_v44, %v6428_v58  ;;  %v6991_v54 = vsel %vm16911_vm12, %v16852_v12, %v16909_v27  ;;  %v16912_v61 = vunpack.c.h.bf16 %v16891_v56  ;;  %8125 = vpow2.f32 %v6981_v30  ;;  %v16914_v58 = vld [vmem:[#allocation13_spill] sm:$0xff]  ;;  %vm16915_vm0 = vmmov %vm16911_vm12  ;;  %v14154_v45 = vpop.eup %8119 }
 0x708   : > { %v6540_v62 = vmul.f32 %v8106_v55, %v16908_v26  ;;  %vm16913_vm7 = vcmp.lt.s32.totalorder %v16910_v5, 1  ;;  %v7118_v55 = vsel %vm16915_vm0, %v13585_v21, %v16914_v58  ;;  %16916 = vst [vmem:[#allocation194_spill] sm:$0xff] %v14154_v45  ;;  %v6651_v23 = vunpack.c.l.bf16 %v14133_v37  ;;  %v16920_v58 = vld [vmem:[#allocation23_spill] sm:$0xff] }
 0x709   : > { %v6666_v46 = vmul.f32 %v8104_v11, %v16912_v61  ;;  %v6998_v10 = vsel %vm16913_vm7, %v16851_v8, %v6991_v54  ;;  %v14161_v56 = vsel %vm16917_vm1, %v16681_v15, %v13495_v14  ;;  %v14164_v11 = vmax.f32 %v5255_v19, %v14143_v31  ;;  %v8122_v17 = vpop.eup %8121  ;;  %vm16918_vm2 = vmmov %vm16913_vm7  ;;  %v16919_v54 = vld [vmem:[#allocation60_spill] sm:$0xff] }
 0x70a   : > { %v6556_v59 = vadd.f32 %v6540_v62, %v6429_v42  ;;  %v7024_v22 = vunpack.c.l.bf16 %v6998_v10  ;;  %v7025_v44 = vunpack.c.h.bf16 %v6998_v10  ;;  %v7125_v30 = vsel %vm16918_vm2, %v16704_v38, %v7118_v55  ;;  %v16922_v55 = vld [vmem:[#allocation170_spill] sm:$0xff] }
 0x70b   : > { %v6682_v52 = vadd.f32 %v6666_v46, %v6555_v2  ;;  %v7015_v42 = vadd.f32 %v14154_v45, %v6888_v49  ;;  %v6667_v26 = vmul.f32 %v8112_v47, %v6651_v23  ;;  %v6889_v62 = vadd.f32 %v8122_v17, %v6762_v1  ;;  %v14170_v27 = vpop.eup %8123  ;;  %v14179_v47 = vpop.f32.mrf.mxu3  ;;  %v16924_v1 = vld [vmem:[#allocation94_spill] sm:$0xff] }
 0x70c   : > { %8127 = vpow2.f32 %v7108_v36  ;;  %v7040_v61 = vmul.f32 %v16919_v54, %v7024_v22  ;;  %v7041_v19 = vmul.f32 %v16920_v58, %v7025_v44  ;;  %v7151_v13 = vunpack.c.l.bf16 %v7125_v30  ;;  %v16925_v22 = vld [vmem:[#allocation70_spill] sm:$0xff]  ;;  %v16926_v44 = vld [vmem:[#allocation229_spill] sm:$0xff] }
 0x70d   : > { %v7152_v60 = vunpack.c.h.bf16 %v7125_v30  ;;  %v16921_v2 = vunpack.c.h.bf16 %v14024_v35  ;;  %v6683_v10 = vadd.f32 %v6667_v26, %v6556_v59  ;;  %v6778_v5 = vunpack.c.l.bf16 %v14161_v56  ;;  %v14181_v36 = vpop.eup %8125  ;;  %v16927_v30 = vld [vmem:[#allocation14_spill] sm:$0xff] }
 0x70e   : > { %v6065_v49 = vsub.f32 %v16922_v55, %v14164_v11  ;;  %16923 = vst [vmem:[#allocation77_spill] sm:$0xff] %v14181_v36  ;;  %v7056_v23 = vadd.f32 %v7040_v61, %v16924_v1  ;;  %v7057_v54 = vadd.f32 %v7041_v19, %v16925_v22  ;;  %v7167_v58 = vmul.f32 %v16926_v44, %v7151_v13  ;;  %v16937_v22 = vld [vmem:[#allocation96_spill] sm:$0xff] }
 0x70f   : > { %v6793_v46 = vmul.f32 %v8110_v20, %v16921_v2  ;;  %v7168_v4 = vmul.f32 %v16927_v30, %v7152_v60  ;;  %v7142_v20 = vadd.f32 %v14170_v27, %v7015_v42  ;;  %v6794_v59 = vmul.f32 %v8118_v24, %v6778_v5  ;;  %v16930_v60 = vld [vmem:[#allocation182_spill] sm:$0xff]  ;;  %v14202_v5 = vpop.f32.mrf.mxu1 }
 0x710   : > { %v7016_v26 = vadd.f32 %v14181_v36, %v6889_v62  ;;  %8129 = vrcp.f32 %v14064_v7  ;;  %v14190_v2 = vadd.f32 %v6919_v29, %v6808_v57  ;;  %v7183_v55 = vadd.f32 %v7167_v58, %v7056_v23  ;;  %v16931_v24 = vld [vmem:[#allocation230_spill] sm:$0xff]  ;;  %v16933_v29 = vld [vmem:[#allocation193_spill] sm:$0xff]  ;;  %v16961_v58 = vld [vmem:[#allocation220_spill] sm:$0xff] }
 0x711   : > { %v6809_v35 = vadd.f32 %v6793_v46, %v6682_v52  ;;  %v7184_v45 = vadd.f32 %v7168_v4, %v7057_v54  ;;  %8131 = vrcp.f32 %v7141_v50  ;;  %v16929_v61 = vunpack.c.h.bf16 %v16901_v6  ;;  %v16932_v46 = vld [vmem:[#allocation105_spill] sm:$0xff] }
 0x712   : > { %v14192_v15 = vpop.eup %8127  ;;  %v6810_v19 = vadd.f32 %v6794_v59, %v6683_v10  ;;  %v6192_v52 = vsub.f32 %v16930_v60, %v14164_v11  ;;  %v6094_v42 = vmul.f32 1.442695, %v6065_v49  ;;  %v6319_v62 = vsub.f32 %v16931_v24, %v14164_v11  ;;  %v16935_v10 = vld [vmem:[#allocation221_spill] sm:$0xff] }
 0x713   : > { %16928 = vst [vmem:[#allocation231_spill] sm:$0xff] %v14192_v15  ;;  %v6920_v13 = vmul.f32 %v8116_v3, %v16929_v61  ;;  %v7215_v7 = vmul.f32 %v16932_v46, %v7183_v55  ;;  %v7216_v57 = vmul.f32 %v16933_v29, %v7184_v45  ;;  %8133 = vrcp.f32 %v7142_v20  ;;  %v16934_v3 = vld [vmem:[#allocation69_spill] sm:$0xff]  ;;  %v14226_v61 = vpop.f32.mrf.mxu2  ;;  %v16940_v46 = vld [vmem:[#allocation76_spill] sm:$0xff] }
 0x714   : > { %v7143_v6 = vadd.f32 %v14192_v15, %v7016_v26  ;;  %v6446_v50 = vsub.f32 %v16934_v3, %v14164_v11  ;;  %v16936_v1 = vunpack.c.l.bf16 %v16935_v10  ;;  %v6573_v54 = vsub.f32 %v16937_v22, %v14164_v11  ;;  %v16942_v3 = vld [vmem:[#allocation35_spill] sm:$0xff] }
 0x715   : > { %v14204_v4 = vadd.f32 %v6920_v13, %v6809_v35  ;;  %v7229_v44 = vpack.c.bf16 %v7216_v57, %v7215_v7  ;;  %v6221_v45 = vmul.f32 1.442695, %v6192_v52  ;;  %v6700_v35 = vsub.f32 %v16898_v48, %v14164_v11  ;;  %v14231_v52 = vpop.f32.mrf.mxu3  ;;  %v16953_v26 = vld [vmem:[#allocation223_spill] sm:$0xff] }
 0x716   : > { %v6921_v49 = vmul.f32 %v8122_v17, %v16936_v1  ;;  %v14218_v20 = vpop.eup %8129  ;;  %8135 = vpow2.f32 %v6094_v42  ;;  %v6348_v17 = vmul.f32 1.442695, %v6319_v62  ;;  %v6475_v13 = vmul.f32 1.442695, %v6446_v50  ;;  %v16939_v62 = vld [vmem:[#allocation106_spill] sm:$0xff] }
 0x717   : > { %7752 = vmatmul.msk.bf16.gmra.mxu0 %vm1117_vm4, %v7229_v44  ;;  %v14224_v55 = vpop.eup %8131  ;;  %8137 = vrcp.f32 %v7143_v6  ;;  %v6827_v48 = vsub.f32 %v14107_v32, %v14164_v11  ;;  %v6954_v24 = vsub.f32 %v14123_v9, %v14164_v11  ;;  %v16941_v7 = vmax.f32 %v16939_v62, %v16940_v46  ;;  %v16943_v32 = vld [vmem:[#allocation34_spill] sm:$0xff]  ;;  %v16946_v9 = vld [vmem:[#allocation36_spill] sm:$0xff]  ;;  %v14265_v60 = vpop.f32.mrf.mxu1 }
 0x718   : > { %v14220_v59 = vadd.f32 %v6921_v49, %v6810_v19  ;;  %v6602_v19 = vmul.f32 1.442695, %v6573_v54  ;;  %8139 = vpow2.f32 %v6221_v45  ;;  %v6729_v6 = vmul.f32 1.442695, %v6700_v35  ;;  %v16947_v49 = vld [vmem:[#allocation177_spill] sm:$0xff] }
 0x719   : > { %v5240_v29 = vmax.f32 %v16941_v7, %v14179_v47  ;;  %v14240_v57 = vpop.eup %8133  ;;  %vm16944_vm3 = vcmp.gt.s32.totalorder %v16943_v32, 14  ;;  %8141 = vpow2.f32 %v6348_v17  ;;  %v16948_v22 = vmax.f32 %v16946_v9, %v16947_v49 }
 0x71a   : > { %16938 = vst [vmem:[#allocation186_spill] sm:$0xff] %v14220_v59  ;;  %v6992_v50 = vsel %vm16944_vm3, %v16852_v12, %v16942_v3  ;;  %vm16945_vm6 = vmmov %vm16944_vm3  ;;  %vm16949_vm15 = vcmp.lt.s32.totalorder %v16943_v32, 1  ;;  %v6856_v35 = vmul.f32 1.442695, %v6827_v48  ;;  %v7081_v62 = vsub.f32 %v14143_v31, %v14164_v11  ;;  %v16954_v32 = vld [vmem:[#allocation133_spill] sm:$0xff]  ;;  %v16956_v31 = vld [vmem:[#allocation146_spill] sm:$0xff] }
 0x71b   : > { %v7119_v1 = vsel %vm16945_vm6, %v13585_v21, %v13797_v40  ;;  %v5241_v54 = vmax.f32 %v16948_v22, %v14231_v52  ;;  %v6999_v44 = vsel %vm16949_vm15, %v16851_v8, %v6992_v50  ;;  %vm16950_vm11 = vmmov %vm16949_vm15  ;;  %8143 = vpow2.f32 %v6475_v13  ;;  %v16952_v50 = vld [vmem:[#allocation226_spill] sm:$0xff]  ;;  %v16968_v13 = vld [vmem:[#allocation124_spill] sm:$0xff] }
 0x71c   : > { %v7126_v45 = vsel %vm16950_vm11, %v16704_v38, %v7119_v1  ;;  %v7026_v7 = vunpack.c.l.bf16 %v6999_v44  ;;  %v7027_v40 = vunpack.c.h.bf16 %v6999_v44  ;;  %v8136_v17 = vpop.eup %8135  ;;  %v6983_v3 = vmul.f32 1.442695, %v6954_v24  ;;  %v16958_v24 = vld [vmem:[#allocation155_spill] sm:$0xff] }
 0x71d   : > { %v5256_v9 = vmax.f32 %v5240_v29, %v14202_v5  ;;  %v7153_v22 = vunpack.c.l.bf16 %v7126_v45  ;;  %v14263_v42 = vpop.eup %8137  ;;  %vm16955_vm9 = vcmp.gt.s32.totalorder %v16954_v32, 14  ;;  %v7154_v44 = vunpack.c.h.bf16 %v7126_v45  ;;  %v16959_v29 = vld [vmem:[#allocation130_spill] sm:$0xff] }
 0x71e   : > { %16951 = vst [vmem:[#allocation121_spill] sm:$0xff] %v14263_v42  ;;  %v6106_v48 = vsel %vm16955_vm9, %v16953_v26, %v16952_v50  ;;  %v7042_v1 = vmul.f32 %v13822_v41, %v7026_v7  ;;  %v7043_v11 = vmul.f32 %v16956_v31, %v7027_v40  ;;  %8145 = vpow2.f32 %v6602_v19  ;;  %vm16965_vm10 = vmmov %vm16955_vm9  ;;  %v8140_v45 = vpop.eup %8139  ;;  %v16966_v19 = vld [vmem:[#allocation145_spill] sm:$0xff]  ;;  %v16967_v40 = vld [vmem:[#allocation50_spill] sm:$0xff] }
 0x71f   : > { %v16960_v30 = vsel %vm9446_vm5, %v16958_v24, %v16959_v29  ;;  %v16962_v23 = vperm.slane %v16961_v58, 0  ;;  %v6233_v41 = vsel %vm16965_vm10, %v16882_v0, %v16904_v33  ;;  %v5257_v26 = vmax.f32 %v5241_v54, %v14265_v60  ;;  %v16969_v29 = vld [vmem:[#allocation89_spill] sm:$0xff]  ;;  %v8142_v59 = vpop.eup %8141  ;;  %vm16972_vm7 = vmmov %vm16955_vm9 }
 0x720   : > { %v7058_v7 = vadd.f32 %v7042_v1, %v16966_v19  ;;  %v7059_v31 = vadd.f32 %v7043_v11, %v16967_v40  ;;  %v7169_v24 = vmul.f32 %v16968_v13, %v7153_v22  ;;  %v7170_v58 = vmul.f32 %v16969_v29, %v7154_v44  ;;  %v14305_v1 = vpop.f32.mrf.mxu2  ;;  %vm16985_vm15 = vmmov %vm16972_vm7 }
 0x721   : > { %v14282_v15 = vsel %vm9477_vm8, %v16962_v23, %v16960_v30  ;;  %8147 = vpow2.f32 %v6729_v6  ;;  %v14294_v23 = vmax.f32 %v5256_v9, %v14226_v61  ;;  %v16970_v30 = vld [vmem:[#allocation135_spill] sm:$0xff]  ;;  %vm16971_vm12 = vcmp.lt.s32.totalorder %v16954_v32, 1  ;;  %v8144_v19 = vpop.eup %8143  ;;  %vm17004_vm10 = vmmov %vm16972_vm7 }
 0x722   : > { %16964 = vst [vmem:[#allocation150_spill] sm:$0xff] %v14282_v15  ;;  %v14299_v42 = vsel %vm16971_vm12, %v16970_v30, %v6106_v48  ;;  %v6360_v54 = vsel %vm16972_vm7, %v13337_v28, %v13495_v14  ;;  %v16973_v22 = vunpack.c.h.bf16 %v16893_v16  ;;  %v7185_v44 = vadd.f32 %v7169_v24, %v7058_v7  ;;  %v16974_v9 = vld [vmem:[#allocation123_spill] sm:$0xff]  ;;  %vm16977_vm1 = vmmov %vm16971_vm12 }
 0x723   : > { %v7186_v6 = vadd.f32 %v7170_v58, %v7059_v31  ;;  %vm16975_vm0 = vcmp.gt.s32.totalorder %v16974_v9, 14  ;;  %v6255_v48 = vadd.f32 %v8140_v45, %v8136_v17  ;;  %v16976_v40 = vunpack.c.h.bf16 %v14076_v53  ;;  %v16978_v31 = vld [vmem:[#allocation192_spill] sm:$0xff]  ;;  %vm16982_vm3 = vmmov %vm16977_vm1 }
 0x724   : > { %v6160_v11 = vmul.f32 %v8136_v17, %v16973_v22  ;;  %v6993_v13 = vsel %vm16975_vm0, %v16852_v12, %v16882_v0  ;;  %v14318_v30 = vsel %vm16977_vm1, %v16883_v51, %v6233_v41  ;;  %v14321_v16 = vmax.f32 %v5257_v26, %v14305_v1  ;;  %v16979_v58 = vld [vmem:[#allocation148_spill] sm:$0xff]  ;;  %v8146_v0 = vpop.eup %8145  ;;  %v16980_v17 = vld [vmem:[#allocation97_spill] sm:$0xff]  ;;  %vm16983_vm6 = vmmov %vm16975_vm0 }
 0x725   : > { %v6287_v29 = vmul.f32 %v8140_v45, %v16976_v40  ;;  %8149 = vpow2.f32 %v6856_v35  ;;  %v7110_v7 = vmul.f32 1.442695, %v7081_v62  ;;  %v7217_v24 = vmul.f32 %v16978_v31, %v7185_v44  ;;  %v16984_v40 = vld [vmem:[#allocation44_spill] sm:$0xff]  ;;  %v16986_v31 = vld [vmem:[#allocation174_spill] sm:$0xff]  ;;  %vm17003_vm9 = vmmov %vm16977_vm1 }
 0x726   : > { %v7218_v22 = vmul.f32 %v16979_v58, %v7186_v6  ;;  %8151 = vpow2.f32 %v6983_v3  ;;  %v6066_v53 = vsub.f32 %v16980_v17, %v14294_v23  ;;  %vm16981_vm2 = vcmp.lt.s32.totalorder %v16974_v9, 1  ;;  %v16990_v17 = vld [vmem:[#allocation67_spill] sm:$0xff]  ;;  %vm17008_vm12 = vmmov %vm16977_vm1 }
 0x727   : > { %v7000_v51 = vsel %vm16981_vm2, %v16851_v8, %v6993_v13  ;;  %v14335_v35 = vsel %vm16982_vm3, %v13092_v18, %v6360_v54  ;;  %v7120_v3 = vsel %vm16983_vm6, %v13585_v21, %v13337_v28  ;;  %v8148_v26 = vpop.eup %8147  ;;  %v6303_v44 = vadd.f32 %v6287_v29, %v6160_v11  ;;  %vm16991_vm11 = vmmov %vm16981_vm2 }
 0x728   : > { %v7230_v62 = vpack.c.bf16 %v7218_v22, %v7217_v24  ;;  %v6382_v6 = vadd.f32 %v8142_v59, %v6255_v48  ;;  %v6487_v13 = vsel %vm16985_vm15, %v16952_v50, %v16984_v40  ;;  %v6067_v58 = vsub.f32 %v16986_v31, %v14321_v16  ;;  %v16988_v24 = vld [vmem:[#allocation120_spill] sm:$0xff]  ;;  %vm17012_vm0 = vmmov %vm16977_vm1 }
 0x729   : > { %v16987_v18 = vunpack.c.h.bf16 %v14084_v25  ;;  %8153 = vpow2.f32 %v7110_v7  ;;  %v6194_v22 = vsub.f32 %v16988_v24, %v14321_v16  ;;  %v7029_v28 = vunpack.c.h.bf16 %v7000_v51  ;;  %v16989_v48 = vld [vmem:[#allocation184_spill] sm:$0xff]  ;;  %vm17026_vm1 = vmmov %vm16972_vm7 }
 0x72a   : > { %7753 = vmatmul.msk.bf16.gmra.mxu0 %vm1117_vm4, %v7230_v62  ;;  %v6096_v11 = vmul.f32 1.442695, %v6066_v53  ;;  %v6193_v29 = vsub.f32 %v16989_v48, %v14294_v23  ;;  %v6320_v50 = vsub.f32 %v16990_v17, %v14294_v23  ;;  %v7127_v31 = vsel %vm16991_vm11, %v16704_v38, %v7120_v3  ;;  %v16994_v3 = vld [vmem:[#allocation147_spill] sm:$0xff]  ;;  %vm17030_vm2 = vmmov %vm17012_vm0 }
 0x72b   : > { %v6414_v54 = vmul.f32 %v8142_v59, %v16987_v18  ;;  %v14359_v25 = vpop.eup %8149  ;;  %v16992_v59 = vunpack.c.h.bf16 %v16907_v39  ;;  %v7028_v62 = vunpack.c.l.bf16 %v7000_v51  ;;  %v7045_v53 = vmul.f32 %v13995_v43, %v7029_v28  ;;  %v16995_v51 = vld [vmem:[#allocation84_spill] sm:$0xff]  ;;  %vm17035_vm3 = vmmov %vm17026_vm1 }
 0x72c   : > { %v14365_v24 = vpop.eup %8151  ;;  %v6509_v41 = vadd.f32 %v8144_v19, %v6382_v6  ;;  %v16993_v17 = vunpack.c.h.bf16 %v14133_v37  ;;  %v6098_v40 = vmul.f32 1.442695, %v6067_v58  ;;  %v6225_v9 = vmul.f32 1.442695, %v6194_v22  ;;  %v16997_v37 = vld [vmem:[#allocation107_spill] sm:$0xff]  ;;  %vm17043_vm6 = vmmov %vm17012_vm0 }
 0x72d   : > { %v6541_v7 = vmul.f32 %v8144_v19, %v16992_v59  ;;  %v6430_v48 = vadd.f32 %v6414_v54, %v6303_v44  ;;  %v7044_v15 = vmul.f32 %v16994_v3, %v7028_v62  ;;  %v7061_v36 = vadd.f32 %v7045_v53, %v14054_v63  ;;  %v16996_v19 = vld [vmem:[#allocation81_spill] sm:$0xff]  ;;  %v16998_v54 = vld [vmem:[#allocation199_spill] sm:$0xff] }
 0x72e   : > { %v6668_v45 = vmul.f32 %v8146_v0, %v16993_v17  ;;  %v7156_v39 = vunpack.c.h.bf16 %v7127_v31  ;;  %8155 = vpow2.f32 %v6096_v11  ;;  %v6223_v59 = vmul.f32 1.442695, %v6193_v29  ;;  %v17001_v17 = vld [vmem:[#allocation12_spill] sm:$0xff] }
 0x72f   : > { %v6350_v18 = vmul.f32 1.442695, %v6320_v50  ;;  %v6447_v43 = vsub.f32 %v16995_v51, %v14294_v23  ;;  %v14373_v28 = vpop.eup %8153  ;;  %v6321_v44 = vsub.f32 %v16996_v19, %v14321_v16  ;;  %v7060_v6 = vadd.f32 %v7044_v15, %v16997_v37  ;;  %v17002_v15 = vld [vmem:[#allocation39_spill] sm:$0xff] }
 0x730   : > { %v7155_v58 = vunpack.c.l.bf16 %v7127_v31  ;;  %v7172_v22 = vmul.f32 %v16998_v54, %v7156_v39  ;;  %v6557_v62 = vadd.f32 %v6541_v7, %v6430_v48  ;;  %v16999_v63 = vunpack.c.h.bf16 %v14161_v56  ;;  %v17007_v39 = vld [vmem:[#allocation190_spill] sm:$0xff] }
 0x731   : > { %v17000_v11 = vunpack.c.h.bf16 %v16935_v10  ;;  %8157 = vpow2.f32 %v6098_v40  ;;  %v6636_v50 = vadd.f32 %v8146_v0, %v6509_v41  ;;  %v14390_v31 = vsel %vm17003_vm9, %v17002_v15, %v6487_v13  ;;  %v17005_v10 = vld [vmem:[#allocation111_spill] sm:$0xff] }
 0x732   : > { %v6795_v53 = vmul.f32 %v8148_v26, %v16999_v63  ;;  %8159 = vpow2.f32 %v6225_v9  ;;  %v7171_v3 = vmul.f32 %v17001_v17, %v7155_v58  ;;  %v7188_v51 = vadd.f32 %v7172_v22, %v7061_v36  ;;  %v17011_v15 = vld [vmem:[#allocation219_spill] sm:$0xff] }
 0x733   : > { %v14384_v29 = vmul.f32 %v14359_v25, %v17000_v11  ;;  %8161 = vpow2.f32 %v6223_v59  ;;  %v6614_v56 = vsel %vm17004_vm10, %v16904_v33, %v16852_v12  ;;  %v6448_v7 = vsub.f32 %v17005_v10, %v14321_v16 }
 0x734   : > { %v6352_v40 = vmul.f32 1.442695, %v6321_v44  ;;  %v7187_v0 = vadd.f32 %v7171_v3, %v7060_v6  ;;  %v7220_v41 = vmul.f32 %v14218_v20, %v7188_v51  ;;  %v6994_v48 = vsel %vm3115_vm14, %v16852_v12, %v16904_v33  ;;  %v8156_v9 = vpop.eup %8155  ;;  %v17009_v44 = vld [vmem:[#allocation136_spill] sm:$0xff] }
 0x735   : > { %8163 = vpow2.f32 %v6350_v18  ;;  %v6477_v13 = vmul.f32 1.442695, %v6447_v43  ;;  %v6574_v59 = vsub.f32 %v17007_v39, %v14294_v23  ;;  %v6701_v19 = vsub.f32 %v16940_v46, %v14294_v23 }
 0x736   : > { %v6684_v37 = vadd.f32 %v6668_v45, %v6557_v62  ;;  %v6763_v58 = vadd.f32 %v8148_v26, %v6636_v50  ;;  %v14410_v20 = vsel %vm17008_vm12, %v16905_v34, %v6614_v56  ;;  %v7219_v6 = vmul.f32 %v17009_v44, %v7187_v0  ;;  %v17010_v34 = vld [vmem:[#allocation172_spill] sm:$0xff] }
 0x737   : > { %v8158_v54 = vpop.eup %8157  ;;  %v6526_v33 = vunpack.c.l.bf16 %v14390_v31  ;;  %v6741_v18 = vsel %vm16972_vm7, %v13495_v14, %v13585_v21  ;;  %v6479_v43 = vmul.f32 1.442695, %v6448_v7  ;;  %v7001_v46 = vsel %vm3107_vm13, %v16851_v8, %v6994_v48  ;;  %v17013_v48 = vld [vmem:[#allocation194_spill] sm:$0xff] }
 0x738   : > { %v8160_v45 = vpop.eup %8159  ;;  %8165 = vpow2.f32 %v6352_v40  ;;  %v6575_v26 = vsub.f32 %v17010_v34, %v14321_v16  ;;  %v7231_v22 = vpack.c.bf16 %v7220_v41, %v7219_v6  ;;  %v7121_v62 = vsel %vm3115_vm14, %v13585_v21, %v13495_v14 }
 0x739   : > { %v8162_v63 = vpop.eup %8161  ;;  %8167 = vpow2.f32 %v6477_v13  ;;  %v6604_v11 = vmul.f32 1.442695, %v6574_v59  ;;  %v6653_v50 = vunpack.c.l.bf16 %v14410_v20  ;;  %v6731_v17 = vmul.f32 1.442695, %v6701_v19 }
 0x73a   : > { %v6811_v3 = vadd.f32 %v6795_v53, %v6684_v37  ;;  %v6890_v51 = vadd.f32 %v14359_v25, %v6763_v58  ;;  %v14432_v56 = vsel %vm17012_vm0, %v17011_v15, %v6741_v18  ;;  %7754 = vmatmul.msk.bf16.gmra.mxu0 %vm1117_vm4, %v7231_v22  ;;  %v7031_v10 = vunpack.c.h.bf16 %v7001_v46  ;;  %v17015_v58 = vld [vmem:[#allocation68_spill] sm:$0xff] }
 0x73b   : > { %v8164_v7 = vpop.eup %8163  ;;  %v6828_v14 = vsub.f32 %v14179_v47, %v14294_v23  ;;  %v6257_v40 = vadd.f32 %v8160_v45, %v8158_v54  ;;  %v6702_v0 = vsub.f32 %v16947_v49, %v14321_v16  ;;  %v7128_v25 = vsel %vm3107_vm13, %v16704_v38, %v7121_v62 }
 0x73c   : > { %8169 = vpow2.f32 %v6479_v43  ;;  %v6606_v53 = vmul.f32 1.442695, %v6575_v26  ;;  %v7030_v41 = vunpack.c.l.bf16 %v7001_v46  ;;  %v7047_v13 = vmul.f32 %v17013_v48, %v7031_v10 }
 0x73d   : > { %v17014_v39 = vunpack.c.l.bf16 %v14299_v42  ;;  %v6256_v19 = vadd.f32 %v8162_v63, %v8156_v9  ;;  %8171 = vpow2.f32 %v6604_v11  ;;  %v6955_v47 = vsub.f32 %v14202_v5, %v14294_v23 }
 0x73e   : > { %v8166_v37 = vpop.eup %8165  ;;  %v6146_v49 = vunpack.c.h.bf16 %v14299_v42  ;;  %v7046_v44 = vmul.f32 %v17015_v58, %v7030_v41  ;;  %v7063_v36 = vadd.f32 %v7047_v13, %v14204_v4  ;;  %v7158_v6 = vunpack.c.h.bf16 %v7128_v25 }
 0x73f   : > { %v6161_v59 = vmul.f32 %v8156_v9, %v17014_v39  ;;  %v8168_v18 = vpop.eup %8167  ;;  %v6273_v43 = vunpack.c.h.bf16 %v14318_v30  ;;  %v6384_v46 = vadd.f32 %v8166_v37, %v6257_v40  ;;  %v6733_v34 = vmul.f32 1.442695, %v6702_v0  ;;  %v17017_v0 = vld [vmem:[#allocation134_spill] sm:$0xff] }
 0x740   : > { %v6829_v9 = vsub.f32 %v14231_v52, %v14321_v16  ;;  %8173 = vpow2.f32 %v6606_v53  ;;  %v7062_v26 = vadd.f32 %v7046_v44, %v14190_v2  ;;  %v7157_v5 = vunpack.c.l.bf16 %v7128_v25 }
 0x741   : > { %v7174_v22 = vmul.f32 %v14170_v27, %v7158_v6  ;;  %v7017_v42 = vadd.f32 %v14365_v24, %v6890_v51  ;;  %v17016_v62 = vunpack.c.l.bf16 %v14318_v30  ;;  %v6383_v11 = vadd.f32 %v8164_v7, %v6256_v19 }
 0x742   : > { %v6858_v15 = vmul.f32 1.442695, %v6828_v14  ;;  %v8170_v10 = vpop.eup %8169  ;;  %v6162_v41 = vmul.f32 %v8158_v54, %v6146_v49  ;;  %v6289_v40 = vmul.f32 %v8160_v45, %v6273_v43  ;;  %v7173_v48 = vmul.f32 %v17017_v0, %v7157_v5 }
 0x743   : > { %v6288_v4 = vmul.f32 %v8162_v63, %v17016_v62  ;;  %v7190_v52 = vadd.f32 %v7174_v22, %v7063_v36  ;;  %v14459_v53 = vpop.eup %8171  ;;  %v6938_v2 = vadd.f32 %v14384_v29, %v6811_v3  ;;  %v17018_v27 = vunpack.c.l.bf16 %v14335_v35 }
 0x744   : > { %v6511_v51 = vadd.f32 %v8170_v10, %v6384_v46  ;;  %v6956_v30 = vsub.f32 %v14265_v60, %v14321_v16  ;;  %8175 = vpow2.f32 %v6733_v34  ;;  %v6860_v63 = vmul.f32 1.442695, %v6829_v9 }
 0x745   : > { %v6415_v25 = vmul.f32 %v8164_v7, %v17018_v27  ;;  %v7189_v14 = vadd.f32 %v7173_v48, %v7062_v26  ;;  %v7222_v54 = vmul.f32 %v14240_v57, %v7190_v52  ;;  %v7144_v45 = vadd.f32 %v14373_v28, %v7017_v42  ;;  %v17019_v57 = vld [vmem:[#allocation59_spill] sm:$0xff]  ;;  %v17024_v52 = vld [vmem:[#allocation150_spill] sm:$0xff]  ;;  %v17025_v27 = vld [vmem:[#allocation44_spill] sm:$0xff] }
 0x746   : > { %v6304_v13 = vadd.f32 %v6288_v4, %v6161_v59  ;;  %v6510_v39 = vadd.f32 %v8168_v18, %v6383_v11  ;;  %8177 = vpow2.f32 %v6731_v17  ;;  %v8174_v29 = vpop.eup %8173  ;;  %v6305_v3 = vadd.f32 %v6289_v40, %v6162_v41  ;;  %v17023_v41 = vld [vmem:[#allocation77_spill] sm:$0xff] }
 0x747   : > { %8179 = vpow2.f32 %v6858_v15  ;;  %v6400_v7 = vunpack.c.h.bf16 %v14335_v35  ;;  %v7221_v19 = vmul.f32 %v14224_v55, %v7189_v14  ;;  %v6638_v60 = vadd.f32 %v8174_v29, %v6511_v51 }
 0x748   : > { %v6987_v49 = vmul.f32 1.442695, %v6956_v30  ;;  %v7083_v58 = vsub.f32 %v14305_v1, %v14321_v16  ;;  %vm17020_vm13 = vcmp.lt.s32.totalorder %v17019_v57, 1  ;;  %v6542_v17 = vmul.f32 %v8168_v18, %v6526_v33  ;;  %v7288_v18 = vpop.f32.mrf.mxu0 }
 0x749   : > { %v7002_v59 = vsel %vm17020_vm13, %v16851_v8, %v16852_v12  ;;  %v6416_v44 = vmul.f32 %v8166_v37, %v6400_v7  ;;  %8181 = vpow2.f32 %v6860_v63  ;;  %v7232_v36 = vpack.c.bf16 %v7222_v54, %v7221_v19  ;;  %v14491_v37 = vld [vmem:[%s17021_s27] ss:$0 sm:$0xff]  ;;  %vm17022_vm14 = vmmov %vm17020_vm13  ;;  %v17027_v63 = vld [vmem:[#allocation186_spill] sm:$0xff]  ;;  %s7362_s27 = sshll.u32 %s7359_s20, 4  ;;  %s7363_s27 = int_to_ptr.hbm [resolvable:$true] %s7362_s27 }
 0x74a   : > { %8183 = vrcp.f32 %v7144_v45  ;;  %v6637_v55 = vadd.f32 %v14459_v53, %v6510_v39  ;;  %v6985_v35 = vmul.f32 1.442695, %v6955_v47  ;;  %v7082_v1 = vsub.f32 %v14226_v61, %v14294_v23  ;;  %v8176_v16 = vpop.eup %8175  ;;  %s8218_s22 = sshra.s32 %s7363_s27, 4  ;;  %s8219_s22 = int_to_ptr.hbm [resolvable:$true] %s8218_s22 }
 0x74b   : > { %v6431_v6 = vadd.f32 %v6415_v25, %v6304_v13  ;;  %v6432_v43 = vadd.f32 %v6416_v44, %v6305_v3  ;;  %v6527_v46 = vunpack.c.h.bf16 %v14390_v31  ;;  %7755 = vmatmul.msk.bf16.gmra.mxu0 %vm1117_vm4, %v7232_v36  ;;  %v7033_v33 = vunpack.c.h.bf16 %v7002_v59  ;;  %v17032_v36 = vld [vmem:[#allocation29_spill] sm:$0xff]  ;;  %s8220_s30 = scalar_lea.hbm %s8219_s22, 128  ;;  %p8225_p7 = scmp.lt.s32.totalorder %s8219_s22, %s17046_s26 }
 0x74c   : > { %v8178_v34 = vpop.eup %8177  ;;  %v6765_v9 = vadd.f32 %v8176_v16, %v6638_v60  ;;  %8185 = vpow2.f32 %v6987_v49  ;;  %v7114_v47 = vmul.f32 1.442695, %v7083_v58  ;;  %v7129_v61 = vsel %vm17022_vm14, %v16704_v38, %v13585_v21  ;;  %v17028_v60 = vld [vmem:[#allocation231_spill] sm:$0xff]  ;;  %p8221_p4 = scmp.ne.s32.totalorder %s8219_s22, %s8220_s30  ;;  %p8226_p9 = scmp.lt.s32.totalorder %s8224_s15, %s8220_s30 }
 0x74d   : > { %v8180_v23 = vpop.eup %8179  ;;  %v6543_v31 = vmul.f32 %v8170_v10, %v6527_v46  ;;  %v7032_v26 = vunpack.c.l.bf16 %v7002_v59  ;;  %v7049_v5 = vmul.f32 %v14365_v24, %v7033_v33  ;;  %v7289_v22 = vadd.f32 %v14491_v37, %v7288_v18  ;;  %v17037_v33 = vld [vmem:[#allocation92_spill] sm:$0xff] }
 0x74e   : > { %v6764_v42 = vadd.f32 %v8178_v34, %v6637_v55  ;;  %8187 = vpow2.f32 %v6985_v35  ;;  %v7112_v62 = vmul.f32 1.442695, %v7082_v1  ;;  %v6654_v4 = vunpack.c.h.bf16 %v14410_v20  ;;  %v17033_v55 = vld [vmem:[#allocation30_spill] sm:$0xff]  ;;  %v17038_v18 = vld [vmem:[#allocation144_spill] sm:$0xff]  ;;  %p8222_p5 = pnand %p8221_p4, %p8435_p3  ;;  %p8227_p10 = por %p8226_p9, %p8225_p7 }
 0x74f   : > { %v8182_v11 = vpop.eup %8181  ;;  %v6559_v15 = vadd.f32 %v6543_v31, %v6432_v43  ;;  %v7048_v40 = vmul.f32 %v17023_v41, %v7032_v26  ;;  %v7065_v0 = vadd.f32 %v7049_v5, %v6938_v2  ;;  %v7160_v48 = vunpack.c.h.bf16 %v7129_v61  ;;  %7328 = vst.msk [vmem:[%s14502_s13] sm:$0xff] %vm1117_vm4, %v7289_v22 }
 0x750   : > { %v8184_v10 = vpop.eup %8183  ;;  %v6558_v24 = vadd.f32 %v6542_v17, %v6431_v6  ;;  %v6868_v25 = vsel %vm17026_vm1, %v17025_v27, %v17024_v52  ;;  %v6892_v51 = vadd.f32 %v8182_v11, %v6765_v9  ;;  %8189 = vpow2.f32 %v7114_v47  ;;  %v7290_v58 = vpop.f32.mrf.mxu0  ;;  %v17040_v47 = vld [vmem:[#allocation48_spill] sm:$0xff]  ;;  %p8223_p6 = pneg %p8222_p5 }
 0x751   : > { %v6670_v30 = vmul.f32 %v8174_v29, %v6654_v4  ;;  %v7064_v14 = vadd.f32 %v7048_v40, %v17027_v63  ;;  %v7159_v54 = vunpack.c.l.bf16 %v7129_v61  ;;  %v7176_v2 = vmul.f32 %v14373_v28, %v7160_v48  ;;  %v17029_v28 = vld [vmem:[#allocation217_spill] sm:$0xff] }
 0x752   : > { %v8186_v45 = vpop.eup %8185  ;;  %v6669_v13 = vmul.f32 %v14459_v53, %v6653_v50  ;;  %v6780_v39 = vunpack.c.l.bf16 %v14432_v56  ;;  %v6891_v3 = vadd.f32 %v8180_v23, %v6764_v42  ;;  %8191 = vpow2.f32 %v7112_v62  ;;  %p8228_p11 = pnand %p8227_p10, %p8223_p6 }
 0x753   : > { %v6686_v7 = vadd.f32 %v6670_v30, %v6559_v15  ;;  %v6781_v19 = vunpack.c.h.bf16 %v14432_v56  ;;  %v7175_v29 = vmul.f32 %v17028_v60, %v7159_v54  ;;  %v7192_v49 = vadd.f32 %v7176_v2, %v7065_v0 }
 0x754   : > { %v8188_v57 = vpop.eup %8187  ;;  %v6685_v59 = vadd.f32 %v6669_v13, %v6558_v24  ;;  %v6876_v20 = vsel %vm17030_vm2, %v17029_v28, %v6868_v25  ;;  %v7019_v17 = vadd.f32 %v8186_v45, %v6892_v51  ;;  %v7291_v50 = vadd.f32 %v14491_v37, %v7290_v58 }
 0x755   : > { %v6797_v53 = vmul.f32 %v8176_v16, %v6781_v19  ;;  %v17034_v56 = vsel %vm9477_vm8, %v17032_v36, %v17033_v55  ;;  %v7191_v1 = vadd.f32 %v7175_v29, %v7064_v14  ;;  %v7224_v6 = vmul.f32 %v8184_v10, %v7192_v49 }
 0x756   : > { %v6995_v35 = vsel %vm17035_vm3, %v16852_v12, %v17034_v56  ;;  %v8190_v43 = vpop.eup %8189  ;;  %v17039_v9 = vsel %vm9446_vm5, %v17037_v33, %v17038_v18  ;;  %v17041_v61 = vperm.slane %v17040_v47, 0  ;;  %v7018_v31 = vadd.f32 %v8188_v57, %v6891_v3  ;;  %7329 = vst.msk [vmem:[%s14502_s13 + $0x8] sm:$0xff] %vm1117_vm4, %v7291_v50  ;;  %v17042_v12 = vld [vmem:[#allocation121_spill] sm:$0xff]  ;;  %vm17044_vm5 = vmmov %vm17026_vm1 }
 0x757   : > { %v6796_v26 = vmul.f32 %v8178_v34, %v6780_v39  ;;  %v6813_v5 = vadd.f32 %v6797_v53, %v6686_v7  ;;  %v6908_v22 = vunpack.c.h.bf16 %v6876_v20  ;;  %v7223_v42 = vmul.f32 %v17042_v12, %v7191_v1 }
 0x758   : > { %v6051_v16 = vsel %vm9477_vm8, %v17041_v61, %v17039_v9  ;;  %v8192_v62 = vpop.eup %8191  ;;  %v6907_v4 = vunpack.c.l.bf16 %v6876_v20  ;;  %v7003_v15 = vsel %vm17043_vm6, %v16851_v8, %v6995_v35  ;;  %v7146_v41 = vadd.f32 %v8190_v43, %v7019_v17  ;;  %vm17045_vm8 = vmmov %vm17012_vm0 }
 0x759   : > { %v6812_v40 = vadd.f32 %v6796_v26, %v6685_v59  ;;  %v6924_v0 = vmul.f32 %v8182_v11, %v6908_v22  ;;  %v7233_v48 = vpack.c.bf16 %v7224_v6, %v7223_v42  ;;  %v7122_v10 = vsel %vm17044_vm5, %v13585_v21, %v6051_v16 }
 0x75a   : > { %v7145_v24 = vadd.f32 %v8192_v62, %v7018_v31  ;;  %v6923_v34 = vmul.f32 %v8180_v23, %v6907_v4  ;;  %v7035_v27 = vunpack.c.h.bf16 %v7003_v15  ;;  %8193 = vrcp.f32 %v7146_v41 }
 0x75b   : > { %v6940_v52 = vadd.f32 %v6924_v0, %v6813_v5  ;;  %7756 = vmatmul.msk.bf16.gmra.mxu0 %vm1117_vm4, %v7233_v48  ;;  %v7130_v25 = vsel %vm17045_vm8, %v16704_v38, %v7122_v10  ;;  %v7034_v30 = vunpack.c.l.bf16 %v7003_v15 }
 0x75c   : > { %v6939_v8 = vadd.f32 %v6923_v34, %v6812_v40  ;;  %v7051_v51 = vmul.f32 %v8186_v45, %v7035_v27  ;;  %8195 = vrcp.f32 %v7145_v24  ;;  %v7162_v14 = vunpack.c.h.bf16 %v7130_v25 }
 0x75d   : > { %v7050_v63 = vmul.f32 %v8188_v57, %v7034_v30  ;;  %v7161_v54 = vunpack.c.l.bf16 %v7130_v25 }
 0x75e   : > { %v7067_v11 = vadd.f32 %v7051_v51, %v6940_v52  ;;  %v7178_v23 = vmul.f32 %v8190_v43, %v7162_v14 }
 0x75f   : > { %v7066_v21 = vadd.f32 %v7050_v63, %v6939_v8  ;;  %v7177_v13 = vmul.f32 %v8192_v62, %v7161_v54 }
 0x760   : > { %v8194_v2 = vpop.eup %8193  ;;  %v7194_v39 = vadd.f32 %v7178_v23, %v7067_v11 }
 0x761   : > { %v7193_v7 = vadd.f32 %v7177_v13, %v7066_v21 }
 0x762   : > { %v8196_v3 = vpop.eup %8195  ;;  %v7226_v38 = vmul.f32 %v8194_v2, %v7194_v39 }
 0x763   : > { %v7225_v32 = vmul.f32 %v8196_v3, %v7193_v7 }
 0x765   : > { %v7234_v45 = vpack.c.bf16 %v7226_v38, %v7225_v32 }
 0x76b   : > { %7757 = vmatmul.msk.bf16.gmra.mxu0 %vm1117_vm4, %v7234_v45 }
 0x76c   : > { %v7293_v19 = vpop.f32.mrf.mxu0 }
 0x76d   : > { %v7294_v60 = vadd.f32 %v14491_v37, %v7293_v19 }
 0x76f   : > { %7330 = vst.msk [vmem:[%s14502_s13 + $0x10] sm:$0xff] %vm1117_vm4, %v7294_v60 }
 0x774   : > { %v7295_v29 = vpop.f32.mrf.mxu0 }
 0x775   : > { %v7296_v49 = vadd.f32 %v14491_v37, %v7295_v29 }
 0x777   : > { %7331 = vst.msk [vmem:[%s14502_s13 + $0x18] sm:$0xff] %vm1117_vm4, %v7296_v49 }
 0x794   : > { %v7298_v58 = vpop.f32.mrf.mxu0 }
 0x795   : > { %v7299_v57 = vadd.f32 %v14491_v37, %v7298_v58 }
 0x797   : > { %7332 = vst.msk [vmem:[%s14502_s13 + $0x20] sm:$0xff] %vm1117_vm4, %v7299_v57 }
 0x79c   : > { %v7300_v59 = vpop.f32.mrf.mxu0 }
 0x79d   : > { %v7301_v28 = vadd.f32 %v14491_v37, %v7300_v59 }
 0x79f   : > { %7333 = vst.msk [vmem:[%s14502_s13 + $0x28] sm:$0xff] %vm1117_vm4, %v7301_v28 }
 0x7a7   : > { %v7303_v20 = vpop.f32.mrf.mxu0 }
 0x7a8   : > { %v7304_v17 = vadd.f32 %v14491_v37, %v7303_v20 }
 0x7aa   : > { %7334 = vst.msk [vmem:[%s14502_s13 + $0x30] sm:$0xff] %vm1117_vm4, %v7304_v17 }
 0x7af   : > { %v7305_v50 = vpop.f32.mrf.mxu0 }
 0x7b0   : > { %v7306_v53 = vadd.f32 %v14491_v37, %v7305_v50 }
 0x7b2   : > { %7335 = vst.msk [vmem:[%s14502_s13 + $0x38] sm:$0xff] %vm1117_vm4, %v7306_v53 }
 0x7b7   : > { %v7308_v44 = vpop.f32.mrf.mxu0 }
 0x7b8   : > { %v7309_v36 = vadd.f32 %v14491_v37, %v7308_v44 }
 0x7ba   : > { %7336 = vst.msk [vmem:[%s14502_s13 + $0x40] sm:$0xff] %vm1117_vm4, %v7309_v36 }
 0x7bf   : > { %v7310_v55 = vpop.f32.mrf.mxu0 }
 0x7c0   : > { %v7311_v56 = vadd.f32 %v14491_v37, %v7310_v55 }
 0x7c2   : > { %7337 = vst.msk [vmem:[%s14502_s13 + $0x48] sm:$0xff] %vm1117_vm4, %v7311_v56 }
 0x7c8   : > { %v7313_v35 = vpop.f32.mrf.mxu0 }
 0x7c9   : > { %v7314_v1 = vadd.f32 %v14491_v37, %v7313_v35 }
 0x7cb   : > { %7338 = vst.msk [vmem:[%s14502_s13 + $0x50] sm:$0xff] %vm1117_vm4, %v7314_v1 }
 0x7d0   : > { %v7315_v6 = vpop.f32.mrf.mxu0 }
 0x7d1   : > { %v7316_v43 = vadd.f32 %v14491_v37, %v7315_v6 }
 0x7d3   : > { %7339 = vst.msk [vmem:[%s14502_s13 + $0x58] sm:$0xff] %vm1117_vm4, %v7316_v43 }
 0x7d8   : > { %v7318_v46 = vpop.f32.mrf.mxu0 }
 0x7d9   : > { %v7319_v33 = vadd.f32 %v14491_v37, %v7318_v46 }
 0x7db   : > { %7340 = vst.msk [vmem:[%s14502_s13 + $0x60] sm:$0xff] %vm1117_vm4, %v7319_v33 }
 0x7e0   : > { %v7320_v18 = vpop.f32.mrf.mxu0 }
 0x7e1   : > { %v7321_v9 = vadd.f32 %v14491_v37, %v7320_v18 }
 0x7e3   : > { %7341 = vst.msk [vmem:[%s14502_s13 + $0x68] sm:$0xff] %vm1117_vm4, %v7321_v9 }
 0x7e8   : > { %v7323_v47 = vpop.f32.mrf.mxu0 }
 0x7e9   : > { %v7324_v61 = vadd.f32 %v14491_v37, %v7323_v47 }
 0x7eb   : > { %7342 = vst.msk [vmem:[%s14502_s13 + $0x70] sm:$0xff] %vm1117_vm4, %v7324_v61 }
 0x7f0   : > { %v7325_v16 = vpop.f32.mrf.mxu0 }
 0x7f1   : > { %v7326_v31 = vadd.f32 %v14491_v37, %v7325_v16 }
 0x7f3   : > { %7343 = vst.msk [vmem:[%s14502_s13 + $0x78] sm:$0xff] %vm1117_vm4, %v7326_v31 }
 0x7f4   : > { %8231 = shalt.err (!%p8228_p11)
}
 0x7f5   : > { %s8302_s28 = smov 128   ;;  %s8303_s13 = smov 8  }
 0x7f6   : > { %7798 = dma.vmem_to_hbm [thread:$0]  (%p8435_p3), %s7361_s29, 2048, %s7363_s27, %s7345_s21, %s8302_s28, %s8302_s28, %s8303_s13  }
 0x7f7 PF: > { %s17047_s20 = sld [smem:[#allocation5_spill]]  ;;  %p7804_p12 = scmp.ge.s32.totalorder %s8298_s25, 2 }
 0x7f9   : > { %p7801_p13 = pnand %p7804_p12, %p8444_p8 }
 0x7fb   : > { %p7802_p0 = pneg %p7801_p13 }
 0x7fd   : > { %s7377_s23 = sand.u32 1, %s17047_s20  }
 0x7fe   : > { %s7378_s10 = scalar_lea.sflag [#allocation3], %s7377_s23 }
 0x7ff   : > { %8265 = dma.done.wait (%p7802_p0), %s7378_s10, 2048  }
 0x800   : > { %8267 = vsyncadd (%p7802_p0), %s7378_s10, 4294965248  ;;  %s28_s25 = sadd.s32 1, %s8298_s25   ;;  %s17048_s22 = sld [smem:[#allocation6_spill]] }
 0x801   : > { %p25_p1 = scmp.ge.s32.totalorder %s28_s25, 6   ;;  %s17049_s20 = sld [smem:[#allocation11_spill]] }
 0x802   : > { %s17050_s21 = sld [smem:[#allocation7_spill]]  ;;  %s17054_s18 = smov %s8274_s19 }
 0x803   : > { %s17051_s16 = sld [smem:[#allocation8_spill]] }
 0x804   : > { %s17052_s23 = sld [smem:[#allocation9_spill]] }
 0x805   : > { %s17053_s24 = sld [smem:[#allocation10_spill]]  ;;  %27 = sbr.rel (!%p25_p1) target bundleno = 9 (0x9), region = 186 }
 0x806   : > { %s17055_s19 = smov %s17048_s22 }
 0x809   : > { %s17056_s22 = smov %s17051_s16 }
 0x80a   :  { %7384 = vsyncpa [#allocation3], 1 }
 0x80b   :  { %7386 = vsyncpa [#allocation3 + $0x1], 1 }

</bundles_post_ra>
